<compile_context>
chip_gen: v7x
topology: tpu7x:2x2x1
jax: 0.10.0
libtpu: 0.0.40
codegen_flags: <defaults>
</compile_context>

<pallas_src>
import functools

import jax
import jax.numpy as jnp
from jax.experimental import pallas as pl
from jax.experimental.pallas import tpu as pltpu


# ----------------------------- fused Pallas kernel -----------------------------


def _fused_cnn_kernel(x_ref, w1_ref, b1_ref, w2_ref, b2_ref, w3_ref, b3_ref,
                      wf_ref, bf_ref, o_ref, col1_ref, col2_ref, col3_ref,
                      *, L, n_out):
    """Full forward pass for one batch element, entirely resident in VMEM."""

    def conv_relu_pool(col_ref, h, w_ref, b_ref, l_cur, c_in):
        # im2col patch matrix: col[l, k*c_in + c] = h[l + k - 1, c]
        # (zero boundary rows implement Conv1d padding=1).
        zrow = jnp.zeros((1, c_in), jnp.float32)
        col_ref[0:1, 0:c_in] = zrow                                 # tap k=0, l=0
        col_ref[1:l_cur, 0:c_in] = h[0:l_cur - 1, :]                # tap k=0
        col_ref[:, c_in:2 * c_in] = h                               # tap k=1
        col_ref[0:l_cur - 1, 2 * c_in:3 * c_in] = h[1:l_cur, :]     # tap k=2
        col_ref[l_cur - 1:l_cur, 2 * c_in:3 * c_in] = zrow          # tap k=2, l=L-1
        c_out = w_ref.shape[-1]
        # One MXU matmul per layer (contraction dim = 3*c_in).
        y = jnp.dot(col_ref[...], w_ref[...],
                    preferred_element_type=jnp.float32)
        y = jnp.maximum(y + b_ref[...], 0.0)                        # bias + ReLU
        # MaxPool1d(kernel_size=2, stride=2)
        y = y.reshape(l_cur // 2, 2, c_out)
        return jnp.max(y, axis=1)                                   # (l_cur/2, c_out)

    c_in0 = x_ref.shape[-1]
    h1 = conv_relu_pool(col1_ref, x_ref[0], w1_ref, b1_ref, L, c_in0)         # (L/2, 64)
    h2 = conv_relu_pool(col2_ref, h1, w2_ref, b2_ref, L // 2, h1.shape[-1])   # (L/4, 128)
    h3 = conv_relu_pool(col3_ref, h2, w3_ref, b3_ref, L // 4, h2.shape[-1])   # (L/8, 256)

    # Fully-connected layer. wf_ref is [n_out, Lo, C] with PyTorch's
    # channel-major flatten order folded into the weight layout at init time,
    # so the contraction is just a sum over both activation axes.
    lane = jax.lax.broadcasted_iota(jnp.int32, (1, n_out), 1)
    out = bf_ref[...]                                               # (1, n_out)
    for n in range(n_out):
        p = h3 * wf_ref[n]                                          # (Lo, C)
        r = jnp.sum(jnp.sum(p, axis=1, keepdims=True),
                    axis=0, keepdims=True)                          # (1, 1)
        out = out + jnp.where(lane == n, r, 0.0)
    o_ref[0] = out


def cnn_forward_fused(x_nlc, params):
    """x_nlc: [B, L, Cin] float32 -> logits [B, num_classes+1]."""
    B, L, Cin = x_nlc.shape
    w1, b1 = params["w1"], params["b1"]
    w2, b2 = params["w2"], params["b2"]
    w3, b3 = params["w3"], params["b3"]
    wf, bf = params["wf"], params["bf"]
    n_out = bf.shape[-1]
    c1, c2 = w1.shape[-1], w2.shape[-1]

    kernel = functools.partial(_fused_cnn_kernel, L=L, n_out=n_out)
    out = pl.pallas_call(
        kernel,
        out_shape=jax.ShapeDtypeStruct((B, 1, n_out), jnp.float32),
        grid=(B,),
        in_specs=[
            pl.BlockSpec((1, L, Cin), lambda b: (b, 0, 0)),   # input (per batch elem)
            pl.BlockSpec(w1.shape, lambda b: (0, 0)),         # packed conv1 weight
            pl.BlockSpec(b1.shape, lambda b: (0, 0)),
            pl.BlockSpec(w2.shape, lambda b: (0, 0)),         # packed conv2 weight
            pl.BlockSpec(b2.shape, lambda b: (0, 0)),
            pl.BlockSpec(w3.shape, lambda b: (0, 0)),         # packed conv3 weight
            pl.BlockSpec(b3.shape, lambda b: (0, 0)),
            pl.BlockSpec(wf.shape, lambda b: (0, 0, 0)),      # fc weight [N, Lo, C]
            pl.BlockSpec(bf.shape, lambda b: (0, 0)),
        ],
        out_specs=pl.BlockSpec((1, 1, n_out), lambda b: (b, 0, 0)),
        scratch_shapes=[
            pltpu.VMEM((L, 3 * Cin), jnp.float32),            # im2col buffer, layer 1
            pltpu.VMEM((L // 2, 3 * c1), jnp.float32),        # im2col buffer, layer 2
            pltpu.VMEM((L // 4, 3 * c2), jnp.float32),        # im2col buffer, layer 3
        ],
        compiler_params=pltpu.CompilerParams(
            dimension_semantics=("parallel",)),
    )(x_nlc, w1, b1, w2, b2, w3, b3, wf, bf)
    return out.reshape(B, n_out)


# ----------------------------- model wrapper -----------------------------


def init_params(key, input_channels, num_classes):
    """Deterministic synthetic parameters (PyTorch-shaped, then re-laid-out)."""
    def conv_params(k, cin, cout):
        k1, k2 = jax.random.split(k)
        bound = 1.0 / jnp.sqrt(cin * 3)
        w = jax.random.uniform(k1, (cout, cin, 3), jnp.float32, -bound, bound)
        b = jax.random.uniform(k2, (cout,), jnp.float32, -bound, bound)
        # Pack for im2col: [Cout, Cin, K] -> [K, Cin, Cout] -> [K*Cin, Cout]
        w_packed = jnp.transpose(w, (2, 1, 0)).reshape(3 * cin, cout)
        return w_packed, b.reshape(1, cout)

    keys = jax.random.split(key, 4)
    w1, b1 = conv_params(keys[0], input_channels, 64)
    w2, b2 = conv_params(keys[1], 64, 128)
    w3, b3 = conv_params(keys[2], 128, 256)

    in_f, out_f = 11264, num_classes + 1
    kf1, kf2 = jax.random.split(keys[3])
    bound = 1.0 / jnp.sqrt(in_f)
    wf = jax.random.uniform(kf1, (out_f, in_f), jnp.float32, -bound, bound)
    bf = jax.random.uniform(kf2, (out_f,), jnp.float32, -bound, bound)
    # PyTorch flatten of the NCL tensor is channel-major: flat index f = c*Lo + l
    # with (C=256, Lo=44). Fold that permutation into the FC weight once:
    # [N, 11264] -> [N, C, Lo] -> [N, Lo, C].
    c3 = 256
    lo3 = in_f // c3
    wf_k = jnp.transpose(wf.reshape(out_f, c3, lo3), (0, 2, 1))
    return {
        "w1": w1, "b1": b1,
        "w2": w2, "b2": b2,
        "w3": w3, "b3": b3,
        "wf": wf_k, "bf": bf.reshape(1, out_f),
    }


@jax.jit
def cnn_forward(x, params):
    """x: [B, Cin, L] (PyTorch NCL). Returns logits [B, num_classes+1]."""
    h = jnp.transpose(x, (0, 2, 1))          # one-off tiny relayout -> [B, L, Cin]
    return cnn_forward_fused(h, params)


if __name__ == "__main__":
    # fc hard-codes 11264 = 256 * 44 input features => L = 44 * 8 = 352.
    B, CIN, L = 2, 4, 352
    NUM_CLASSES = 5

    key = jax.random.PRNGKey(0)
    kx, kp = jax.random.split(key)
    x = jax.random.normal(kx, (B, CIN, L), jnp.float32)
    params = init_params(kp, CIN, NUM_CLASSES)

    out = cnn_forward(x, params)
    out = jax.block_until_ready(out)
    assert out.shape == (B, NUM_CLASSES + 1), out.shape
    print("KERNEL_OK")
</pallas_src>

<mosaic_0001>
module attributes {stable_mosaic.version = 11 : i64} {
  func.func @_fused_cnn_kernel(%arg0: i32, %arg1: memref<1x352x4xf32, #tpu.memory_space<vmem>>, %arg2: memref<12x64xf32, #tpu.memory_space<vmem>>, %arg3: memref<1x64xf32, #tpu.memory_space<vmem>>, %arg4: memref<192x128xf32, #tpu.memory_space<vmem>>, %arg5: memref<1x128xf32, #tpu.memory_space<vmem>>, %arg6: memref<384x256xf32, #tpu.memory_space<vmem>>, %arg7: memref<1x256xf32, #tpu.memory_space<vmem>>, %arg8: memref<6x44x256xf32, #tpu.memory_space<vmem>>, %arg9: memref<1x6xf32, #tpu.memory_space<vmem>>, %arg10: memref<1x1x6xf32, #tpu.memory_space<vmem>>, %arg11: memref<352x12xf32, #tpu.memory_space<vmem>>, %arg12: memref<176x192xf32, #tpu.memory_space<vmem>>, %arg13: memref<88x384xf32, #tpu.memory_space<vmem>>) attributes {dimension_semantics = [#tpu.dimension_semantics<parallel>], iteration_bounds = array<i64: 2>, scalar_prefetch = 0 : i64, scratch_operands = 3 : i64, tpu.core_type = #tpu.core_type<tc>, window_params = [{transform_indices = @transform_0, window_bounds = array<i64: 1, 352, 4>}, {pipeline_mode = #tpu.pipeline_mode<synchronous>, transform_indices = @transform_1, window_bounds = array<i64: 12, 64>}, {pipeline_mode = #tpu.pipeline_mode<synchronous>, transform_indices = @transform_2, window_bounds = array<i64: 1, 64>}, {pipeline_mode = #tpu.pipeline_mode<synchronous>, transform_indices = @transform_3, window_bounds = array<i64: 192, 128>}, {pipeline_mode = #tpu.pipeline_mode<synchronous>, transform_indices = @transform_4, window_bounds = array<i64: 1, 128>}, {pipeline_mode = #tpu.pipeline_mode<synchronous>, transform_indices = @transform_5, window_bounds = array<i64: 384, 256>}, {pipeline_mode = #tpu.pipeline_mode<synchronous>, transform_indices = @transform_6, window_bounds = array<i64: 1, 256>}, {pipeline_mode = #tpu.pipeline_mode<synchronous>, transform_indices = @transform_7, window_bounds = array<i64: 6, 44, 256>}, {pipeline_mode = #tpu.pipeline_mode<synchronous>, transform_indices = @transform_8, window_bounds = array<i64: 1, 6>}, {transform_indices = @transform_9, window_bounds = array<i64: 1, 1, 6>}]} {
    %c0 = arith.constant 0 : index
    %c0_0 = arith.constant 0 : index
    %c0_1 = arith.constant 0 : index
    %0 = vector.load %arg1[%c0, %c0_0, %c0_1] : memref<1x352x4xf32, #tpu.memory_space<vmem>>, vector<1x352x4xf32>
    %1 = vector.shape_cast %0 : vector<1x352x4xf32> to vector<352x4xf32>
    %cst = arith.constant 0.000000e+00 : f32
    %2 = vector.broadcast %cst : f32 to vector<1x4xf32>
    %c0_2 = arith.constant 0 : index
    %c0_3 = arith.constant 0 : index
    %3 = vector.load %arg11[%c0_2, %c0_3] : memref<352x12xf32, #tpu.memory_space<vmem>>, vector<1x4xf32>
    tpu.vector_store %arg11[%c0_2, %c0_3], %2 {strides = array<i32>} : memref<352x12xf32, #tpu.memory_space<vmem>>, vector<1x4xf32>,
    %4 = vector.extract_strided_slice %1 {offsets = [0, 0], sizes = [351, 4], strides = [1, 1]} : vector<352x4xf32> to vector<351x4xf32>
    %c1 = arith.constant 1 : index
    %c0_4 = arith.constant 0 : index
    %5 = vector.load %arg11[%c1, %c0_4] : memref<352x12xf32, #tpu.memory_space<vmem>>, vector<351x4xf32>
    tpu.vector_store %arg11[%c1, %c0_4], %4 {strides = array<i32>} : memref<352x12xf32, #tpu.memory_space<vmem>>, vector<351x4xf32>,
    %c0_5 = arith.constant 0 : index
    %c4 = arith.constant 4 : index
    %6 = vector.load %arg11[%c0_5, %c4] : memref<352x12xf32, #tpu.memory_space<vmem>>, vector<352x4xf32>
    tpu.vector_store %arg11[%c0_5, %c4], %1 {strides = array<i32>} : memref<352x12xf32, #tpu.memory_space<vmem>>, vector<352x4xf32>,
    %7 = vector.extract_strided_slice %1 {offsets = [1, 0], sizes = [351, 4], strides = [1, 1]} : vector<352x4xf32> to vector<351x4xf32>
    %c0_6 = arith.constant 0 : index
    %c8 = arith.constant 8 : index
    %8 = vector.load %arg11[%c0_6, %c8] : memref<352x12xf32, #tpu.memory_space<vmem>>, vector<351x4xf32>
    tpu.vector_store %arg11[%c0_6, %c8], %7 {strides = array<i32>} : memref<352x12xf32, #tpu.memory_space<vmem>>, vector<351x4xf32>,
    %c351 = arith.constant 351 : index
    %c8_7 = arith.constant 8 : index
    %9 = vector.load %arg11[%c351, %c8_7] : memref<352x12xf32, #tpu.memory_space<vmem>>, vector<1x4xf32>
    tpu.vector_store %arg11[%c351, %c8_7], %2 {strides = array<i32>} : memref<352x12xf32, #tpu.memory_space<vmem>>, vector<1x4xf32>,
    %c0_8 = arith.constant 0 : index
    %c0_9 = arith.constant 0 : index
    %10 = vector.load %arg11[%c0_8, %c0_9] : memref<352x12xf32, #tpu.memory_space<vmem>>, vector<352x12xf32>
    %c0_10 = arith.constant 0 : index
    %c0_11 = arith.constant 0 : index
    %11 = vector.load %arg2[%c0_10, %c0_11] : memref<12x64xf32, #tpu.memory_space<vmem>>, vector<12x64xf32>
    %cst_12 = arith.constant dense<0.000000e+00> : vector<352x64xf32>
    %12 = tpu.matmul %10, %11, %cst_12 {dimension_numbers = #tpu.dot_dimension_numbers<[1], [0], [0], [1], [0, 0, 1, 1], [], []>} : vector<352x12xf32>, vector<12x64xf32>, vector<352x64xf32> -> vector<352x64xf32>
    %c0_13 = arith.constant 0 : index
    %c0_14 = arith.constant 0 : index
    %13 = vector.load %arg3[%c0_13, %c0_14] : memref<1x64xf32, #tpu.memory_space<vmem>>, vector<1x64xf32>
    %14 = vector.broadcast %13 : vector<1x64xf32> to vector<352x64xf32>
    %15 = arith.addf %12, %14 : vector<352x64xf32>
    %cst_15 = arith.constant 0.000000e+00 : f32
    %16 = vector.broadcast %cst_15 : f32 to vector<352x64xf32>
    %17 = arith.maximumf %15, %16 : vector<352x64xf32>
    %18 = vector.shape_cast %17 : vector<352x64xf32> to vector<176x2x64xf32>
    %cst_16 = arith.constant dense<0xFF800000> : vector<176x64xf32>
    %19 = vector.multi_reduction <maximumf>, %18, %cst_16 [1] : vector<176x2x64xf32> to vector<176x64xf32>
    %cst_17 = arith.constant 0.000000e+00 : f32
    %20 = vector.broadcast %cst_17 : f32 to vector<1x64xf32>
    %c0_18 = arith.constant 0 : index
    %c0_19 = arith.constant 0 : index
    %21 = vector.load %arg12[%c0_18, %c0_19] : memref<176x192xf32, #tpu.memory_space<vmem>>, vector<1x64xf32>
    tpu.vector_store %arg12[%c0_18, %c0_19], %20 {strides = array<i32>} : memref<176x192xf32, #tpu.memory_space<vmem>>, vector<1x64xf32>,
    %22 = vector.extract_strided_slice %19 {offsets = [0, 0], sizes = [175, 64], strides = [1, 1]} : vector<176x64xf32> to vector<175x64xf32>
    %c1_20 = arith.constant 1 : index
    %c0_21 = arith.constant 0 : index
    %23 = vector.load %arg12[%c1_20, %c0_21] : memref<176x192xf32, #tpu.memory_space<vmem>>, vector<175x64xf32>
    tpu.vector_store %arg12[%c1_20, %c0_21], %22 {strides = array<i32>} : memref<176x192xf32, #tpu.memory_space<vmem>>, vector<175x64xf32>,
    %c0_22 = arith.constant 0 : index
    %c64 = arith.constant 64 : index
    %24 = vector.load %arg12[%c0_22, %c64] : memref<176x192xf32, #tpu.memory_space<vmem>>, vector<176x64xf32>
    tpu.vector_store %arg12[%c0_22, %c64], %19 {strides = array<i32>} : memref<176x192xf32, #tpu.memory_space<vmem>>, vector<176x64xf32>,
    %25 = vector.extract_strided_slice %19 {offsets = [1, 0], sizes = [175, 64], strides = [1, 1]} : vector<176x64xf32> to vector<175x64xf32>
    %c0_23 = arith.constant 0 : index
    %c128 = arith.constant 128 : index
    %26 = vector.load %arg12[%c0_23, %c128] : memref<176x192xf32, #tpu.memory_space<vmem>>, vector<175x64xf32>
    tpu.vector_store %arg12[%c0_23, %c128], %25 {strides = array<i32>} : memref<176x192xf32, #tpu.memory_space<vmem>>, vector<175x64xf32>,
    %c175 = arith.constant 175 : index
    %c128_24 = arith.constant 128 : index
    %27 = vector.load %arg12[%c175, %c128_24] : memref<176x192xf32, #tpu.memory_space<vmem>>, vector<1x64xf32>
    tpu.vector_store %arg12[%c175, %c128_24], %20 {strides = array<i32>} : memref<176x192xf32, #tpu.memory_space<vmem>>, vector<1x64xf32>,
    %c0_25 = arith.constant 0 : index
    %c0_26 = arith.constant 0 : index
    %28 = vector.load %arg12[%c0_25, %c0_26] : memref<176x192xf32, #tpu.memory_space<vmem>>, vector<176x192xf32>
    %c0_27 = arith.constant 0 : index
    %c0_28 = arith.constant 0 : index
    %29 = vector.load %arg4[%c0_27, %c0_28] : memref<192x128xf32, #tpu.memory_space<vmem>>, vector<192x128xf32>
    %cst_29 = arith.constant dense<0.000000e+00> : vector<176x128xf32>
    %30 = tpu.matmul %28, %29, %cst_29 {dimension_numbers = #tpu.dot_dimension_numbers<[1], [0], [0], [1], [0, 0, 1, 1], [], []>} : vector<176x192xf32>, vector<192x128xf32>, vector<176x128xf32> -> vector<176x128xf32>
    %c0_30 = arith.constant 0 : index
    %c0_31 = arith.constant 0 : index
    %31 = vector.load %arg5[%c0_30, %c0_31] : memref<1x128xf32, #tpu.memory_space<vmem>>, vector<1x128xf32>
    %32 = vector.broadcast %31 : vector<1x128xf32> to vector<176x128xf32>
    %33 = arith.addf %30, %32 : vector<176x128xf32>
    %cst_32 = arith.constant 0.000000e+00 : f32
    %34 = vector.broadcast %cst_32 : f32 to vector<176x128xf32>
    %35 = arith.maximumf %33, %34 : vector<176x128xf32>
    %36 = vector.shape_cast %35 : vector<176x128xf32> to vector<88x2x128xf32>
    %cst_33 = arith.constant dense<0xFF800000> : vector<88x128xf32>
    %37 = vector.multi_reduction <maximumf>, %36, %cst_33 [1] : vector<88x2x128xf32> to vector<88x128xf32>
    %cst_34 = arith.constant 0.000000e+00 : f32
    %38 = vector.broadcast %cst_34 : f32 to vector<1x128xf32>
    %c0_35 = arith.constant 0 : index
    %c0_36 = arith.constant 0 : index
    %39 = vector.load %arg13[%c0_35, %c0_36] : memref<88x384xf32, #tpu.memory_space<vmem>>, vector<1x128xf32>
    tpu.vector_store %arg13[%c0_35, %c0_36], %38 {strides = array<i32>} : memref<88x384xf32, #tpu.memory_space<vmem>>, vector<1x128xf32>,
    %40 = vector.extract_strided_slice %37 {offsets = [0, 0], sizes = [87, 128], strides = [1, 1]} : vector<88x128xf32> to vector<87x128xf32>
    %c1_37 = arith.constant 1 : index
    %c0_38 = arith.constant 0 : index
    %41 = vector.load %arg13[%c1_37, %c0_38] : memref<88x384xf32, #tpu.memory_space<vmem>>, vector<87x128xf32>
    tpu.vector_store %arg13[%c1_37, %c0_38], %40 {strides = array<i32>} : memref<88x384xf32, #tpu.memory_space<vmem>>, vector<87x128xf32>,
    %c0_39 = arith.constant 0 : index
    %c128_40 = arith.constant 128 : index
    %42 = vector.load %arg13[%c0_39, %c128_40] : memref<88x384xf32, #tpu.memory_space<vmem>>, vector<88x128xf32>
    tpu.vector_store %arg13[%c0_39, %c128_40], %37 {strides = array<i32>} : memref<88x384xf32, #tpu.memory_space<vmem>>, vector<88x128xf32>,
    %43 = vector.extract_strided_slice %37 {offsets = [1, 0], sizes = [87, 128], strides = [1, 1]} : vector<88x128xf32> to vector<87x128xf32>
    %c0_41 = arith.constant 0 : index
    %c256 = arith.constant 256 : index
    %44 = vector.load %arg13[%c0_41, %c256] : memref<88x384xf32, #tpu.memory_space<vmem>>, vector<87x128xf32>
    tpu.vector_store %arg13[%c0_41, %c256], %43 {strides = array<i32>} : memref<88x384xf32, #tpu.memory_space<vmem>>, vector<87x128xf32>,
    %c87 = arith.constant 87 : index
    %c256_42 = arith.constant 256 : index
    %45 = vector.load %arg13[%c87, %c256_42] : memref<88x384xf32, #tpu.memory_space<vmem>>, vector<1x128xf32>
    tpu.vector_store %arg13[%c87, %c256_42], %38 {strides = array<i32>} : memref<88x384xf32, #tpu.memory_space<vmem>>, vector<1x128xf32>,
    %c0_43 = arith.constant 0 : index
    %c0_44 = arith.constant 0 : index
    %46 = vector.load %arg13[%c0_43, %c0_44] : memref<88x384xf32, #tpu.memory_space<vmem>>, vector<88x384xf32>
    %c0_45 = arith.constant 0 : index
    %c0_46 = arith.constant 0 : index
    %47 = vector.load %arg6[%c0_45, %c0_46] : memref<384x256xf32, #tpu.memory_space<vmem>>, vector<384x256xf32>
    %cst_47 = arith.constant dense<0.000000e+00> : vector<88x256xf32>
    %48 = tpu.matmul %46, %47, %cst_47 {dimension_numbers = #tpu.dot_dimension_numbers<[1], [0], [0], [1], [0, 0, 1, 1], [], []>} : vector<88x384xf32>, vector<384x256xf32>, vector<88x256xf32> -> vector<88x256xf32>
    %c0_48 = arith.constant 0 : index
    %c0_49 = arith.constant 0 : index
    %49 = vector.load %arg7[%c0_48, %c0_49] : memref<1x256xf32, #tpu.memory_space<vmem>>, vector<1x256xf32>
    %50 = vector.broadcast %49 : vector<1x256xf32> to vector<88x256xf32>
    %51 = arith.addf %48, %50 : vector<88x256xf32>
    %cst_50 = arith.constant 0.000000e+00 : f32
    %52 = vector.broadcast %cst_50 : f32 to vector<88x256xf32>
    %53 = arith.maximumf %51, %52 : vector<88x256xf32>
    %54 = vector.shape_cast %53 : vector<88x256xf32> to vector<44x2x256xf32>
    %cst_51 = arith.constant dense<0xFF800000> : vector<44x256xf32>
    %55 = vector.multi_reduction <maximumf>, %54, %cst_51 [1] : vector<44x2x256xf32> to vector<44x256xf32>
    %56 = tpu.iota {dimensions = array<i32: 1>} : vector<1x6xi32>
    %c0_52 = arith.constant 0 : index
    %c0_53 = arith.constant 0 : index
    %57 = vector.load %arg9[%c0_52, %c0_53] : memref<1x6xf32, #tpu.memory_space<vmem>>, vector<1x6xf32>
    %c0_54 = arith.constant 0 : index
    %c0_55 = arith.constant 0 : index
    %c0_56 = arith.constant 0 : index
    %58 = vector.load %arg8[%c0_54, %c0_55, %c0_56] : memref<6x44x256xf32, #tpu.memory_space<vmem>>, vector<1x44x256xf32>
    %59 = vector.shape_cast %58 : vector<1x44x256xf32> to vector<44x256xf32>
    %60 = arith.mulf %55, %59 : vector<44x256xf32>
    %cst_57 = arith.constant dense<0.000000e+00> : vector<44xf32>
    %61 = vector.multi_reduction <add>, %60, %cst_57 [1] : vector<44x256xf32> to vector<44xf32>
    %62 = vector.shape_cast %61 : vector<44xf32> to vector<44x1xf32>
    %cst_58 = arith.constant dense<0.000000e+00> : vector<1xf32>
    %63 = vector.multi_reduction <add>, %62, %cst_58 [0] : vector<44x1xf32> to vector<1xf32>
    %64 = vector.shape_cast %63 : vector<1xf32> to vector<1x1xf32>
    %c0_i32 = arith.constant 0 : i32
    %65 = vector.broadcast %c0_i32 : i32 to vector<1x6xi32>
    %66 = arith.cmpi eq, %56, %65 : vector<1x6xi32>
    %cst_59 = arith.constant 0.000000e+00 : f32
    %67 = vector.shape_cast %64 : vector<1x1xf32> to vector<1x1xf32>
    %68 = vector.broadcast %67 : vector<1x1xf32> to vector<1x6xf32>
    %69 = vector.broadcast %cst_59 : f32 to vector<1x6xf32>
    %70 = arith.select %66, %68, %69 : vector<1x6xi1>, vector<1x6xf32>
    %71 = arith.addf %57, %70 : vector<1x6xf32>
    %c1_60 = arith.constant 1 : index
    %c0_61 = arith.constant 0 : index
    %c0_62 = arith.constant 0 : index
    %72 = vector.load %arg8[%c1_60, %c0_61, %c0_62] : memref<6x44x256xf32, #tpu.memory_space<vmem>>, vector<1x44x256xf32>
    %73 = vector.shape_cast %72 : vector<1x44x256xf32> to vector<44x256xf32>
    %74 = arith.mulf %55, %73 : vector<44x256xf32>
    %cst_63 = arith.constant dense<0.000000e+00> : vector<44xf32>
    %75 = vector.multi_reduction <add>, %74, %cst_63 [1] : vector<44x256xf32> to vector<44xf32>
    %76 = vector.shape_cast %75 : vector<44xf32> to vector<44x1xf32>
    %cst_64 = arith.constant dense<0.000000e+00> : vector<1xf32>
    %77 = vector.multi_reduction <add>, %76, %cst_64 [0] : vector<44x1xf32> to vector<1xf32>
    %78 = vector.shape_cast %77 : vector<1xf32> to vector<1x1xf32>
    %c1_i32 = arith.constant 1 : i32
    %79 = vector.broadcast %c1_i32 : i32 to vector<1x6xi32>
    %80 = arith.cmpi eq, %56, %79 : vector<1x6xi32>
    %cst_65 = arith.constant 0.000000e+00 : f32
    %81 = vector.shape_cast %78 : vector<1x1xf32> to vector<1x1xf32>
    %82 = vector.broadcast %81 : vector<1x1xf32> to vector<1x6xf32>
    %83 = vector.broadcast %cst_65 : f32 to vector<1x6xf32>
    %84 = arith.select %80, %82, %83 : vector<1x6xi1>, vector<1x6xf32>
    %85 = arith.addf %71, %84 : vector<1x6xf32>
    %c2 = arith.constant 2 : index
    %c0_66 = arith.constant 0 : index
    %c0_67 = arith.constant 0 : index
    %86 = vector.load %arg8[%c2, %c0_66, %c0_67] : memref<6x44x256xf32, #tpu.memory_space<vmem>>, vector<1x44x256xf32>
    %87 = vector.shape_cast %86 : vector<1x44x256xf32> to vector<44x256xf32>
    %88 = arith.mulf %55, %87 : vector<44x256xf32>
    %cst_68 = arith.constant dense<0.000000e+00> : vector<44xf32>
    %89 = vector.multi_reduction <add>, %88, %cst_68 [1] : vector<44x256xf32> to vector<44xf32>
    %90 = vector.shape_cast %89 : vector<44xf32> to vector<44x1xf32>
    %cst_69 = arith.constant dense<0.000000e+00> : vector<1xf32>
    %91 = vector.multi_reduction <add>, %90, %cst_69 [0] : vector<44x1xf32> to vector<1xf32>
    %92 = vector.shape_cast %91 : vector<1xf32> to vector<1x1xf32>
    %c2_i32 = arith.constant 2 : i32
    %93 = vector.broadcast %c2_i32 : i32 to vector<1x6xi32>
    %94 = arith.cmpi eq, %56, %93 : vector<1x6xi32>
    %cst_70 = arith.constant 0.000000e+00 : f32
    %95 = vector.shape_cast %92 : vector<1x1xf32> to vector<1x1xf32>
    %96 = vector.broadcast %95 : vector<1x1xf32> to vector<1x6xf32>
    %97 = vector.broadcast %cst_70 : f32 to vector<1x6xf32>
    %98 = arith.select %94, %96, %97 : vector<1x6xi1>, vector<1x6xf32>
    %99 = arith.addf %85, %98 : vector<1x6xf32>
    %c3 = arith.constant 3 : index
    %c0_71 = arith.constant 0 : index
    %c0_72 = arith.constant 0 : index
    %100 = vector.load %arg8[%c3, %c0_71, %c0_72] : memref<6x44x256xf32, #tpu.memory_space<vmem>>, vector<1x44x256xf32>
    %101 = vector.shape_cast %100 : vector<1x44x256xf32> to vector<44x256xf32>
    %102 = arith.mulf %55, %101 : vector<44x256xf32>
    %cst_73 = arith.constant dense<0.000000e+00> : vector<44xf32>
    %103 = vector.multi_reduction <add>, %102, %cst_73 [1] : vector<44x256xf32> to vector<44xf32>
    %104 = vector.shape_cast %103 : vector<44xf32> to vector<44x1xf32>
    %cst_74 = arith.constant dense<0.000000e+00> : vector<1xf32>
    %105 = vector.multi_reduction <add>, %104, %cst_74 [0] : vector<44x1xf32> to vector<1xf32>
    %106 = vector.shape_cast %105 : vector<1xf32> to vector<1x1xf32>
    %c3_i32 = arith.constant 3 : i32
    %107 = vector.broadcast %c3_i32 : i32 to vector<1x6xi32>
    %108 = arith.cmpi eq, %56, %107 : vector<1x6xi32>
    %cst_75 = arith.constant 0.000000e+00 : f32
    %109 = vector.shape_cast %106 : vector<1x1xf32> to vector<1x1xf32>
    %110 = vector.broadcast %109 : vector<1x1xf32> to vector<1x6xf32>
    %111 = vector.broadcast %cst_75 : f32 to vector<1x6xf32>
    %112 = arith.select %108, %110, %111 : vector<1x6xi1>, vector<1x6xf32>
    %113 = arith.addf %99, %112 : vector<1x6xf32>
    %c4_76 = arith.constant 4 : index
    %c0_77 = arith.constant 0 : index
    %c0_78 = arith.constant 0 : index
    %114 = vector.load %arg8[%c4_76, %c0_77, %c0_78] : memref<6x44x256xf32, #tpu.memory_space<vmem>>, vector<1x44x256xf32>
    %115 = vector.shape_cast %114 : vector<1x44x256xf32> to vector<44x256xf32>
    %116 = arith.mulf %55, %115 : vector<44x256xf32>
    %cst_79 = arith.constant dense<0.000000e+00> : vector<44xf32>
    %117 = vector.multi_reduction <add>, %116, %cst_79 [1] : vector<44x256xf32> to vector<44xf32>
    %118 = vector.shape_cast %117 : vector<44xf32> to vector<44x1xf32>
    %cst_80 = arith.constant dense<0.000000e+00> : vector<1xf32>
    %119 = vector.multi_reduction <add>, %118, %cst_80 [0] : vector<44x1xf32> to vector<1xf32>
    %120 = vector.shape_cast %119 : vector<1xf32> to vector<1x1xf32>
    %c4_i32 = arith.constant 4 : i32
    %121 = vector.broadcast %c4_i32 : i32 to vector<1x6xi32>
    %122 = arith.cmpi eq, %56, %121 : vector<1x6xi32>
    %cst_81 = arith.constant 0.000000e+00 : f32
    %123 = vector.shape_cast %120 : vector<1x1xf32> to vector<1x1xf32>
    %124 = vector.broadcast %123 : vector<1x1xf32> to vector<1x6xf32>
    %125 = vector.broadcast %cst_81 : f32 to vector<1x6xf32>
    %126 = arith.select %122, %124, %125 : vector<1x6xi1>, vector<1x6xf32>
    %127 = arith.addf %113, %126 : vector<1x6xf32>
    %c5 = arith.constant 5 : index
    %c0_82 = arith.constant 0 : index
    %c0_83 = arith.constant 0 : index
    %128 = vector.load %arg8[%c5, %c0_82, %c0_83] : memref<6x44x256xf32, #tpu.memory_space<vmem>>, vector<1x44x256xf32>
    %129 = vector.shape_cast %128 : vector<1x44x256xf32> to vector<44x256xf32>
    %130 = arith.mulf %55, %129 : vector<44x256xf32>
    %cst_84 = arith.constant dense<0.000000e+00> : vector<44xf32>
    %131 = vector.multi_reduction <add>, %130, %cst_84 [1] : vector<44x256xf32> to vector<44xf32>
    %132 = vector.shape_cast %131 : vector<44xf32> to vector<44x1xf32>
    %cst_85 = arith.constant dense<0.000000e+00> : vector<1xf32>
    %133 = vector.multi_reduction <add>, %132, %cst_85 [0] : vector<44x1xf32> to vector<1xf32>
    %134 = vector.shape_cast %133 : vector<1xf32> to vector<1x1xf32>
    %c5_i32 = arith.constant 5 : i32
    %135 = vector.broadcast %c5_i32 : i32 to vector<1x6xi32>
    %136 = arith.cmpi eq, %56, %135 : vector<1x6xi32>
    %cst_86 = arith.constant 0.000000e+00 : f32
    %137 = vector.shape_cast %134 : vector<1x1xf32> to vector<1x1xf32>
    %138 = vector.broadcast %137 : vector<1x1xf32> to vector<1x6xf32>
    %139 = vector.broadcast %cst_86 : f32 to vector<1x6xf32>
    %140 = arith.select %136, %138, %139 : vector<1x6xi1>, vector<1x6xf32>
    %141 = arith.addf %127, %140 : vector<1x6xf32>
    %c0_87 = arith.constant 0 : index
    %c0_88 = arith.constant 0 : index
    %c0_89 = arith.constant 0 : index
    %142 = vector.load %arg10[%c0_87, %c0_88, %c0_89] : memref<1x1x6xf32, #tpu.memory_space<vmem>>, vector<1x1x6xf32>
    %143 = vector.shape_cast %142 : vector<1x1x6xf32> to vector<1x6xf32>
    %144 = vector.shape_cast %141 : vector<1x6xf32> to vector<1x1x6xf32>
    tpu.vector_store %arg10[%c0_87, %c0_88, %c0_89], %144 {strides = array<i32>} : memref<1x1x6xf32, #tpu.memory_space<vmem>>, vector<1x1x6xf32>,
    return
  }
  func.func @transform_0(%arg0: i32) -> (i32, i32, i32) {
    %c0_i32 = arith.constant 0 : i32
    %c0_i32_0 = arith.constant 0 : i32
    %c0_i32_1 = arith.constant 0 : i32
    return %arg0, %c0_i32, %c0_i32_0 : i32, i32, i32
  }
  func.func @transform_1(%arg0: i32) -> (i32, i32) {
    %c0_i32 = arith.constant 0 : i32
    %c0_i32_0 = arith.constant 0 : i32
    %c0_i32_1 = arith.constant 0 : i32
    return %c0_i32, %c0_i32_0 : i32, i32
  }
  func.func @transform_2(%arg0: i32) -> (i32, i32) {
    %c0_i32 = arith.constant 0 : i32
    %c0_i32_0 = arith.constant 0 : i32
    %c0_i32_1 = arith.constant 0 : i32
    return %c0_i32, %c0_i32_0 : i32, i32
  }
  func.func @transform_3(%arg0: i32) -> (i32, i32) {
    %c0_i32 = arith.constant 0 : i32
    %c0_i32_0 = arith.constant 0 : i32
    %c0_i32_1 = arith.constant 0 : i32
    return %c0_i32, %c0_i32_0 : i32, i32
  }
  func.func @transform_4(%arg0: i32) -> (i32, i32) {
    %c0_i32 = arith.constant 0 : i32
    %c0_i32_0 = arith.constant 0 : i32
    %c0_i32_1 = arith.constant 0 : i32
    return %c0_i32, %c0_i32_0 : i32, i32
  }
  func.func @transform_5(%arg0: i32) -> (i32, i32) {
    %c0_i32 = arith.constant 0 : i32
    %c0_i32_0 = arith.constant 0 : i32
    %c0_i32_1 = arith.constant 0 : i32
    return %c0_i32, %c0_i32_0 : i32, i32
  }
  func.func @transform_6(%arg0: i32) -> (i32, i32) {
    %c0_i32 = arith.constant 0 : i32
    %c0_i32_0 = arith.constant 0 : i32
    %c0_i32_1 = arith.constant 0 : i32
    return %c0_i32, %c0_i32_0 : i32, i32
  }
  func.func @transform_7(%arg0: i32) -> (i32, i32, i32) {
    %c0_i32 = arith.constant 0 : i32
    %c0_i32_0 = arith.constant 0 : i32
    %c0_i32_1 = arith.constant 0 : i32
    %c0_i32_2 = arith.constant 0 : i32
    return %c0_i32, %c0_i32_0, %c0_i32_1 : i32, i32, i32
  }
  func.func @transform_8(%arg0: i32) -> (i32, i32) {
    %c0_i32 = arith.constant 0 : i32
    %c0_i32_0 = arith.constant 0 : i32
    %c0_i32_1 = arith.constant 0 : i32
    return %c0_i32, %c0_i32_0 : i32, i32
  }
  func.func @transform_9(%arg0: i32) -> (i32, i32, i32) {
    %c0_i32 = arith.constant 0 : i32
    %c0_i32_0 = arith.constant 0 : i32
    %c0_i32_1 = arith.constant 0 : i32
    return %arg0, %c0_i32, %c0_i32_0 : i32, i32, i32
  }
}

</mosaic_0001>

<bundles_post_ra>
// kernel: cnn_forward.1
= control target key start
LH: loop header
LB: loop body
LE: loop exit
PB: predicated region body
PF: predicated region fallthrough
CT: control target
= control target key end

     0   :  { %14 = vsyncpa [#allocation6], 0  ;;  %s17533_s0 = inlined_call_operand.vmem [shape: f32[2,352,4], index: 0, kind: input, shape index: {}]   ;;  %s17534_s1 = inlined_call_operand.vmem [shape: f32[12,64], index: 1, kind: input, shape index: {}]   ;;  %s17535_s2 = inlined_call_operand.vmem [shape: f32[1,64], index: 2, kind: input, shape index: {}]   ;;  %s17536_s3 = inlined_call_operand.hbm [shape: f32[192,128], index: 3, kind: input, shape index: {}]   ;;  %s17537_s4 = inlined_call_operand.vmem [shape: f32[1,128], index: 4, kind: input, shape index: {}]   ;;  %s17538_s5 = inlined_call_operand.hbm [shape: f32[384,256], index: 5, kind: input, shape index: {}]   ;;  %s17539_s6 = inlined_call_operand.vmem [shape: f32[1,256], index: 6, kind: input, shape index: {}]   ;;  %s17540_s7 = inlined_call_operand.vmem [shape: f32[6,44,256], index: 7, kind: input, shape index: {}]   ;;  %s17541_s8 = inlined_call_operand.vmem [shape: f32[1,6], index: 8, kind: input, shape index: {}]   ;;  %s17542_s9 = inlined_call_operand.hbm [shape: f32[2,1,6], index: 9, kind: output, shape index: {}]  }
   0x1   :  { %15 = vsyncpa [#allocation9], 0 }
   0x2   :  { %16 = vsyncpa [#allocation7], 0 }
   0x3   :  { %18 = vsyncpa [#allocation7 + $0x1], 0  ;;  %s12143_s30 = smov 0   ;;  %s12145_s10 = smov 0  }
   0x4   :  { %s12147_s11 = smov 0   ;;  %s12149_s12 = smov 0  }
   0x5 LB: > { %17685 = sst [smem:[#allocation14_spill]] %s12073_s11  ;;  %s12164_s13 = sadd.s32 4294967295, %s12077_s12   ;;  %s12077_s12 = sphi %s12149_s12, %s18074_s12   ;;  %s12073_s11 = sphi %s12147_s11, %s18076_s11   ;;  %s12069_s10 = sphi %s12145_s10, %s18078_s10   ;;  %s12065_s30 = sphi %s12143_s30, %s18077_s30  }
   0x6   : > { %s11402_s14 = sadd.s32 4294967294, %s12077_s12   ;;  %s12168_s15 = sadd.s32 1, %s12077_s12  }
   0x7   : > { %17686 = sst [smem:[#allocation15_spill]] %s12168_s15  ;;  %s225_s16 = sadd.s32 1, %s12073_s11 }
   0x8   : > { %s222_s17 = ssub.s32 %s12077_s12, %s12168_s15  ;;  %p235_p0 = scmp.ne.s32.totalorder %s12073_s11, %s12069_s10 }
   0x9   : > { %p223_p1 = scmp.eq.s32.totalorder %s222_s17, 0  ;;  %p236_p2 = scmp.eq.s32.totalorder %s12164_s13, 1 }
   0xa   : > { %p241_p3 = scmp.ne.s32.totalorder %s12069_s10, %s12065_s30  ;;  %p242_p4 = scmp.eq.s32.totalorder %s11402_s14, 1 }
   0xb   : > { %s12179_s18 = scalar_select %p223_p1, %s12073_s11, %s225_s16  }
   0xc   : > { %p12181_p5 = por %p236_p2, %p235_p0  ;;  %p12185_p6 = por %p242_p4, %p241_p3 }
   0xd   : > { %17687 = sst [smem:[#allocation16_spill]] %s12179_s18  ;;  %p11403_p7 = scmp.ge.s32.totalorder %s12077_s12, 1 }
   0xe   : > { %s17688_s19 = scalar_select %p12181_p5, 1, 0 }
   0xf   : > { %s17689_s20 = scalar_select %p12185_p6, 1, 0 }
  0x10   : > { %p249_p8 = scmp.lt.s32.totalorder %s12077_s12, 3  ;;  %p17543_p9 = scmp.eq.s32.totalorder %s12164_s13, 0 }
  0x11   : > { %s12079_s22 = smov [#allocation5]   ;;  %s12080_s25 = smov [#allocation8]  }
  0x12   : > { %p12192_p10 = pnand %p11403_p7, %p249_p8  ;;  %s267_s23 = sshll.u32 %s12079_s22, 4  ;;  %s268_s23 = int_to_ptr.vmem [resolvable:$true] %s267_s23 }
  0x13   : > { %s283_s26 = sshll.u32 %s12080_s25, 4  ;;  %s11951_s29 = scalar_lea.hbm %s17536_s3, 3072  ;;  %s12204_s26 = int_to_ptr.vmem [resolvable:$true] %s283_s26 }
  0x14   : > { %s17690_s21 = scalar_select %p12192_p10, 1, 0 }
  0x15   : > { %p11886_p11 = pneg %p12192_p10  ;;  %p11952_p13 = scmp.ne.s32.totalorder %s17536_s3, %s11951_s29 }
  0x16   : > { %p11958_p3 = scmp.lt.u32.totalorder %s11951_s29, %s17536_s3 }
  0x17   : > { %p12200_p12 = pnand %p17543_p9, %p11886_p11 }
  0x19   : > { %p11953_p0 = pneg %p12200_p12 }
  0x1b   : > { %p11954_p1 = pnand %p11953_p0, %p11952_p13 }
  0x1d   : > { %p11955_p2 = pneg %p11954_p1 }
  0x1f   : > { %p11960_p4 = pnand %p11958_p3, %p11955_p2 }
  0x21   : > { %11963 = shalt.err (!%p11960_p4)
}
  0x22   : > { %s11964_s25 = scalar_lea.vmem %s268_s23, 3072  ;;  %p11972_p9 = scmp.lt.s32.totalorder %s268_s23, %s268_s23 }
  0x23   : > { %p11965_p7 = scmp.ne.s32.totalorder %s268_s23, %s11964_s25  ;;  %p11973_p6 = scmp.lt.s32.totalorder %s11964_s25, %s11964_s25 }
  0x25   : > { %p11967_p8 = pnand %p11965_p7, %p11953_p0  ;;  %p11974_p5 = por %p11973_p6, %p11972_p9 }
  0x27   : > { %p11968_p11 = pneg %p11967_p8 }
  0x29   : > { %p11975_p10 = pnand %p11974_p5, %p11968_p11 }
  0x2b   : > { %11978 = shalt.err (!%p11975_p10)
}
  0x2c   : > { %s12081_s27 = smov 128   ;;  %s12082_s28 = smov 8  }
  0x2d   : > { %11889 = dma.hbm_to_vmem [thread:$0]  (!%p12200_p12), %s17536_s3, 3072, %s268_s23, [#allocation6], %s12081_s27, %s12081_s27, %s12082_s28  }
  0x2e   : > { %s11979_s22 = scalar_lea.hbm %s17538_s5, 12288 }
  0x2f   : > { %p11980_p13 = scmp.ne.s32.totalorder %s17538_s5, %s11979_s22  ;;  %p11986_p9 = scmp.lt.u32.totalorder %s11979_s22, %s17538_s5 }
  0x31   : > { %p11982_p5 = pnand %p11980_p13, %p11953_p0 }
  0x33   : > { %p11983_p6 = pneg %p11982_p5 }
  0x35   : > { %p11988_p10 = pnand %p11986_p9, %p11983_p6 }
  0x37   : > { %11991 = shalt.err (!%p11988_p10)
}
  0x38   : > { %s11992_s23 = scalar_lea.vmem %s12204_s26, 12288  ;;  %p12000_p4 = scmp.lt.s32.totalorder %s12204_s26, %s12204_s26 }
  0x39   : > { %p11993_p1 = scmp.ne.s32.totalorder %s12204_s26, %s11992_s23  ;;  %p12001_p7 = scmp.lt.s32.totalorder %s11992_s23, %s11992_s23 }
  0x3b   : > { %p11995_p2 = pnand %p11993_p1, %p11953_p0  ;;  %p12002_p8 = por %p12001_p7, %p12000_p4 }
  0x3d   : > { %p11996_p3 = pneg %p11995_p2 }
  0x3f   : > { %p12003_p11 = pnand %p12002_p8, %p11996_p3 }
  0x41   : > { %12006 = shalt.err (!%p12003_p11)
}
  0x42   : > { %s12083_s11 = smov 256   ;;  %s12084_s15 = smov 16  }
  0x43   : > { %11892 = dma.hbm_to_vmem [thread:$0]  (!%p12200_p12), %s17538_s5, 12288, %s12204_s26, [#allocation9], %s12083_s11, %s12083_s11, %s12084_s15  }
  0x44   : > { %p17692_p13 = scmp.ne.s32.totalorder %s17690_s21, 0 }
  0x46   : > { %316 = sbr.rel (%p17692_p13) target bundleno = 2436 (0x984), region = 56 }
  0x4d   : > { %p17693_p0 = scmp.eq.s32.totalorder %s12164_s13, 0 }
  0x4f   : > { %12052 = dma.done.wait (%p17693_p0), [#allocation6], 3072   ;;  %p17694_p5 = pmov %p17693_p0 }
  0x50   : > { %p17695_p6 = pmov %p17693_p0 }
  0x51   : > { %12054 = vsyncadd (%p17694_p5), [#allocation6], 4294964224 }
  0x52   : > { %12056 = dma.done.wait (%p17695_p6), [#allocation9], 12288   ;;  %p17696_p9 = pmov %p17693_p0 }
  0x53   : > { %p355_p10 = scmp.lt.s32.totalorder %s12164_s13, 1  ;;  %vm404_vm0 = vcmask 24576   ;;  %v17550_v0 = vmov 0.0   ;;  %vm406_vm1 = vcmask 31744   ;;  %s12086_s14 = smov 4   ;;  %vm1039_vm2 = vcmask 1043456  }
  0x54   : > { %12058 = vsyncadd (%p17696_p9), [#allocation9], 4294955008  ;;  %405 = vst.msk [vmem:[#allocation2] sm:$0x1] %vm404_vm0, %v17550_v0  ;;  %s12087_s16 = smov 8   ;;  %vm12088_vm3 = vmmov 1  }
  0x55   : > { %s356_s24 = scalar_select %p355_p10, %s12164_s13, 1  ;;  %5838 = vst [vmem:[#allocation4] sm:$0x1] %v17550_v0  ;;  %6222 = vst [vmem:[#allocation4 + $0x107] sm:$0x1] %v17550_v0  ;;  %v897_v35 = vld [vmem:[%s17534_s1] sm:$0xff] }
  0x56   : > { %vm12402_vm4 = vmpackc.low %vm1039_vm2, %vm12088_vm3  ;;  %v898_v36 = vld [vmem:[%s17534_s1 + $0x8] sm:$0xf]  ;;  %vm450_vm5 = vcmask 30720   ;;  %vm628_vm6 = vcmask 64544   ;;  %vm805_vm7 = vcmask 97345   ;;  %vm807_vm8 = vcmask 97344  }
  0x57   : > { %s11875_s21 = smul.u32 352, %s356_s24  ;;  %v11659_v38 = vpack.c.bf16 %v898_v36, %v897_v35  ;;  %vm906_vm9 = vcmask 97280   ;;  %vm851_vm10 = vcmask 90176   ;;  %vm2340_vm11 = vcmask 517120   ;;  %s12090_s18 = smov 64  }
  0x58   : > { %vm3750_vm12 = vcmask 1042434   ;;  %vm3762_vm13 = vcmask 1041409   ;;  %vm3752_vm14 = vcmask 1043459   ;;  %vm3754_vm15 = vcmask 1044484   ;;  %s353_s17 = sand.u32 1, %s12069_s10   ;;  %s11540_s22 = sshll.u32 %s12164_s13, 4 }
  0x59   : > { %s12271_s29 = scalar_lea.vmem %s17533_s0, %s11875_s21  ;;  %11661 = vmatprep.subr.msk.bf16.mxu0 %vm12402_vm4, %v11659_v38  ;;  %11797 = vmatprep.subr.msk.bf16.mxu1 %vm12402_vm4, %v11659_v38  ;;  %vm3756_vm0 = vcmask 1045509   ;;  %vm3760_vm3 = vcmask 1047559   ;;  %s354_s25 = scalar_lea.vmem [#allocation10], %s353_s17 }
  0x5a   : > { %v362_v1 = vld [vmem:[%s12271_s29 + $0x10] sm:$0xff]  ;;  %v360_v2 = vld [vmem:[%s12271_s29] sm:$0xff]  ;;  %v361_v3 = vld [vmem:[%s12271_s29 + $0x8] sm:$0xff]  ;;  %11664 = vmatpush3.bf16.msk.msra.mxu0 %vm12402_vm4, %v11659_v38  ;;  %11798 = vmatpush3.bf16.msk.msra.mxu1 %vm12402_vm4, %v11659_v38  ;;  %vm3934_vm4 = vcmask 523264   ;;  %s11325_s23 = sshll.u32 %s354_s25, 4  ;;  %s11313_s27 = scalar_lea.sflag [#allocation7], %s353_s17  ;;  %s17493_s23 = int_to_ptr.vmem [resolvable:$true] %s11325_s23 }
  0x5b   : > { %500 = vrot.lane.b32.xlu1 %v362_v1, %s12086_s14  ;;  %409 = vst.msk [vmem:[#allocation2 + $0x11] sm:$0xff] %vm406_vm1, %v362_v1  ;;  %496 = vrot.lane.b32.xlu0 %v360_v2, %s12086_s14  ;;  %407 = vst.msk [vmem:[#allocation2 + $0x1] sm:$0xff] %vm406_vm1, %v360_v2  ;;  %v12282_v4 = vld [vmem:[%s12271_s29 + $0x20] sm:$0xff]  ;;  %v12285_v5 = vld [vmem:[%s12271_s29 + $0x18] sm:$0xff]  ;;  %s12007_s24 = scalar_lea.vmem %s17493_s23, 16  ;;  %p18072_p1 = scmp.ne.s32.totalorder %s17688_s19, 0 }
  0x5c   : > { %408 = vst.msk [vmem:[#allocation2 + $0x9] sm:$0xff] %vm406_vm1, %v361_v3  ;;  %411 = vst.msk [vmem:[#allocation2 + $0x21] sm:$0xff] %vm406_vm1, %v12282_v4  ;;  %v12292_v6 = vld [vmem:[%s12271_s29 + $0x30] sm:$0xff]  ;;  %v12295_v7 = vld [vmem:[%s12271_s29 + $0x28] sm:$0xff]  ;;  %p12008_p12 = scmp.ne.s32.totalorder %s17493_s23, %s12007_s24  ;;  %s12092_s13 = smov [#allocation10]  }
  0x5d   : > { %410 = vst.msk [vmem:[#allocation2 + $0x19] sm:$0xff] %vm406_vm1, %v12285_v5  ;;  %v12298_v8 = vld [vmem:[%s12271_s29 + $0x40] sm:$0xff]  ;;  %413 = vst.msk [vmem:[#allocation2 + $0x31] sm:$0xff] %vm406_vm1, %v12292_v6  ;;  %v12307_v9 = vld [vmem:[%s12271_s29 + $0x38] sm:$0xff]  ;;  %s12011_s21 = sshll.u32 %s12092_s13, 4  ;;  %s12012_s21 = int_to_ptr.vmem [resolvable:$false] %s12011_s21 }
  0x5e   : > { %412 = vst.msk [vmem:[#allocation2 + $0x29] sm:$0xff] %vm406_vm1, %v12295_v7  ;;  %415 = vst.msk [vmem:[#allocation2 + $0x41] sm:$0xff] %vm406_vm1, %v12298_v8  ;;  %v12310_v10 = vld [vmem:[%s12271_s29 + $0x50] sm:$0xff]  ;;  %v12313_v11 = vld [vmem:[%s12271_s29 + $0x48] sm:$0xff]  ;;  %p12009_p2 = pnand %p12008_p12, %p18072_p1  ;;  %s12013_s26 = scalar_lea.vmem %s12012_s21, 32 }
  0x5f   : > { %414 = vst.msk [vmem:[#allocation2 + $0x39] sm:$0xff] %vm406_vm1, %v12307_v9  ;;  %417 = vst.msk [vmem:[#allocation2 + $0x51] sm:$0xff] %vm406_vm1, %v12310_v10  ;;  %v12322_v12 = vld [vmem:[%s12271_s29 + $0x60] sm:$0xff]  ;;  %v12325_v13 = vld [vmem:[%s12271_s29 + $0x58] sm:$0xff]  ;;  %673 = vrot.lane.b32.xlu1 %v360_v2, %s12087_s16  ;;  %498 = vrot.lane.b32.xlu0 %v361_v3, %s12086_s14  ;;  %p12014_p4 = scmp.lt.s32.totalorder %s17493_s23, %s12012_s21  ;;  %p12015_p7 = scmp.lt.s32.totalorder %s12013_s26, %s12007_s24 }
  0x60   : > { %416 = vst.msk [vmem:[#allocation2 + $0x49] sm:$0xff] %vm406_vm1, %v12313_v11  ;;  %v12328_v14 = vld [vmem:[%s12271_s29 + $0x70] sm:$0xff]  ;;  %419 = vst.msk [vmem:[#allocation2 + $0x61] sm:$0xff] %vm406_vm1, %v12322_v12  ;;  %v12339_v15 = vld [vmem:[%s12271_s29 + $0x68] sm:$0xff]  ;;  %p12010_p3 = pneg %p12009_p2 }
  0x61   : > { %418 = vst.msk [vmem:[#allocation2 + $0x59] sm:$0xff] %vm406_vm1, %v12325_v13  ;;  %421 = vst.msk [vmem:[#allocation2 + $0x71] sm:$0xff] %vm406_vm1, %v12328_v14  ;;  %v12342_v16 = vld [vmem:[%s12271_s29 + $0x80] sm:$0xff]  ;;  %v12349_v17 = vld [vmem:[%s12271_s29 + $0x78] sm:$0xff]  ;;  %p12016_p8 = por %p12015_p7, %p12014_p4 }
  0x62   : > { %420 = vst.msk [vmem:[#allocation2 + $0x69] sm:$0xff] %vm406_vm1, %v12339_v15  ;;  %423 = vst.msk [vmem:[#allocation2 + $0x81] sm:$0xff] %vm406_vm1, %v12342_v16  ;;  %v12352_v18 = vld [vmem:[%s12271_s29 + $0x90] sm:$0xff]  ;;  %v12355_v19 = vld [vmem:[%s12271_s29 + $0x88] sm:$0xff] }
  0x63   : > { %422 = vst.msk [vmem:[#allocation2 + $0x79] sm:$0xff] %vm406_vm1, %v12349_v17  ;;  %425 = vst.msk [vmem:[#allocation2 + $0x91] sm:$0xff] %vm406_vm1, %v12352_v18  ;;  %v12364_v20 = vld [vmem:[%s12271_s29 + $0xa0] sm:$0xff]  ;;  %v12367_v21 = vld [vmem:[%s12271_s29 + $0x98] sm:$0xff]  ;;  %677 = vrot.lane.b32.xlu1 %v362_v1, %s12087_s16  ;;  %675 = vrot.lane.b32.xlu0 %v361_v3, %s12087_s16  ;;  %p12017_p11 = pnand %p12016_p8, %p12010_p3 }
  0x64   : > { %424 = vst.msk [vmem:[#allocation2 + $0x89] sm:$0xff] %vm406_vm1, %v12355_v19  ;;  %v12370_v22 = vld [vmem:[%s12271_s29 + $0xb0] sm:$0xff]  ;;  %427 = vst.msk [vmem:[#allocation2 + $0xa1] sm:$0xff] %vm406_vm1, %v12364_v20  ;;  %v12379_v23 = vld [vmem:[%s12271_s29 + $0xa8] sm:$0xff] }
  0x65   : > { %426 = vst.msk [vmem:[#allocation2 + $0x99] sm:$0xff] %vm406_vm1, %v12367_v21  ;;  %429 = vst.msk [vmem:[#allocation2 + $0xb1] sm:$0xff] %vm406_vm1, %v12370_v22  ;;  %v12382_v24 = vld [vmem:[%s12271_s29 + $0xc0] sm:$0xff]  ;;  %v12385_v25 = vld [vmem:[%s12271_s29 + $0xb8] sm:$0xff] }
  0x66   : > { %428 = vst.msk [vmem:[#allocation2 + $0xa9] sm:$0xff] %vm406_vm1, %v12379_v23  ;;  %431 = vst.msk [vmem:[#allocation2 + $0xc1] sm:$0xff] %vm406_vm1, %v12382_v24  ;;  %v12396_v26 = vld [vmem:[%s12271_s29 + $0xd0] sm:$0xff]  ;;  %v12399_v27 = vld [vmem:[%s12271_s29 + $0xc8] sm:$0xff] }
  0x67   : > { %430 = vst.msk [vmem:[#allocation2 + $0xb9] sm:$0xff] %vm406_vm1, %v12385_v25  ;;  %433 = vst.msk [vmem:[#allocation2 + $0xd1] sm:$0xff] %vm406_vm1, %v12396_v26  ;;  %v12411_v29 = vld [vmem:[%s12271_s29 + $0xe0] sm:$0xff]  ;;  %v12414_v30 = vld [vmem:[%s12271_s29 + $0xd8] sm:$0xff]  ;;  %504 = vrot.lane.b32.xlu1 %v12282_v4, %s12086_s14  ;;  %502 = vrot.lane.b32.xlu0 %v12285_v5, %s12086_s14 }
  0x68   : > { %432 = vst.msk [vmem:[#allocation2 + $0xc9] sm:$0xff] %vm406_vm1, %v12399_v27  ;;  %v12417_v31 = vld [vmem:[%s12271_s29 + $0xf0] sm:$0xff]  ;;  %435 = vst.msk [vmem:[#allocation2 + $0xe1] sm:$0xff] %vm406_vm1, %v12411_v29  ;;  %v12426_v32 = vld [vmem:[%s12271_s29 + $0xe8] sm:$0xff] }
  0x69   : > { %434 = vst.msk [vmem:[#allocation2 + $0xd9] sm:$0xff] %vm406_vm1, %v12414_v30  ;;  %437 = vst.msk [vmem:[#allocation2 + $0xf1] sm:$0xff] %vm406_vm1, %v12417_v31  ;;  %v12429_v33 = vld [vmem:[%s12271_s29 + $0x100] sm:$0xff]  ;;  %v12432_v34 = vld [vmem:[%s12271_s29 + $0xf8] sm:$0xff] }
  0x6a   : > { %436 = vst.msk [vmem:[#allocation2 + $0xe9] sm:$0xff] %vm406_vm1, %v12426_v32  ;;  %439 = vst.msk [vmem:[#allocation2 + $0x101] sm:$0xff] %vm406_vm1, %v12429_v33  ;;  %v12447_v37 = vld [vmem:[%s12271_s29 + $0x110] sm:$0xff]  ;;  %v12456_v39 = vld [vmem:[%s12271_s29 + $0x108] sm:$0xff] }
  0x6b   : > { %438 = vst.msk [vmem:[#allocation2 + $0xf9] sm:$0xff] %vm406_vm1, %v12432_v34  ;;  %441 = vst.msk [vmem:[#allocation2 + $0x111] sm:$0xff] %vm406_vm1, %v12447_v37  ;;  %v12459_v40 = vld [vmem:[%s12271_s29 + $0x120] sm:$0xff]  ;;  %v12466_v41 = vld [vmem:[%s12271_s29 + $0x118] sm:$0xff]  ;;  %681 = vrot.lane.b32.xlu1 %v12282_v4, %s12087_s16  ;;  %679 = vrot.lane.b32.xlu0 %v12285_v5, %s12087_s16 }
  0x6c   : > { %440 = vst.msk [vmem:[#allocation2 + $0x109] sm:$0xff] %vm406_vm1, %v12456_v39  ;;  %443 = vst.msk [vmem:[#allocation2 + $0x121] sm:$0xff] %vm406_vm1, %v12459_v40  ;;  %v12483_v42 = vld [vmem:[%s12271_s29 + $0x128] sm:$0xff]  ;;  %v12492_v43 = vld [vmem:[%s12271_s29 + $0x130] sm:$0xff] }
  0x6d   : > { %442 = vst.msk [vmem:[#allocation2 + $0x119] sm:$0xff] %vm406_vm1, %v12466_v41  ;;  %444 = vst.msk [vmem:[#allocation2 + $0x129] sm:$0xff] %vm406_vm1, %v12483_v42  ;;  %v12501_v44 = vld [vmem:[%s12271_s29 + $0x138] sm:$0xff]  ;;  %v12510_v45 = vld [vmem:[%s12271_s29 + $0x140] sm:$0xff] }
  0x6e   : > { %445 = vst.msk [vmem:[#allocation2 + $0x131] sm:$0xff] %vm406_vm1, %v12492_v43  ;;  %446 = vst.msk [vmem:[#allocation2 + $0x139] sm:$0xff] %vm406_vm1, %v12501_v44  ;;  %v12519_v46 = vld [vmem:[%s12271_s29 + $0x148] sm:$0xff]  ;;  %v12528_v47 = vld [vmem:[%s12271_s29 + $0x150] sm:$0xff] }
  0x6f   : > { %508 = vrot.lane.b32.xlu1 %v12292_v6, %s12086_s14  ;;  %506 = vrot.lane.b32.xlu0 %v12295_v7, %s12086_s14  ;;  %447 = vst.msk [vmem:[#allocation2 + $0x141] sm:$0xff] %vm406_vm1, %v12510_v45  ;;  %448 = vst.msk [vmem:[#allocation2 + $0x149] sm:$0xff] %vm406_vm1, %v12519_v46  ;;  %v12541_v48 = vld [vmem:[%s12271_s29 + $0x158] sm:$0xff] }
  0x70   : > { %449 = vst.msk [vmem:[#allocation2 + $0x151] sm:$0xff] %vm406_vm1, %v12528_v47  ;;  %vm3758_vm1 = vcmask 1046534  }
  0x71   : > { %451 = vst.msk [vmem:[#allocation2 + $0x159] sm:$0x7f] %vm450_vm5, %v12541_v48  ;;  %vm3573_vm5 = vcmask 516096  }
  0x73   : > { %685 = vrot.lane.b32.xlu1 %v12292_v6, %s12087_s16  ;;  %683 = vrot.lane.b32.xlu0 %v12295_v7, %s12087_s16 }
  0x77   : > { %512 = vrot.lane.b32.xlu1 %v12298_v8, %s12086_s14  ;;  %510 = vrot.lane.b32.xlu0 %v12307_v9, %s12086_s14 }
  0x7b   : > { %689 = vrot.lane.b32.xlu1 %v12298_v8, %s12087_s16  ;;  %687 = vrot.lane.b32.xlu0 %v12307_v9, %s12087_s16 }
  0x7f   : > { %516 = vrot.lane.b32.xlu1 %v12310_v10, %s12086_s14  ;;  %514 = vrot.lane.b32.xlu0 %v12313_v11, %s12086_s14 }
  0x83   : > { %693 = vrot.lane.b32.xlu1 %v12310_v10, %s12087_s16  ;;  %691 = vrot.lane.b32.xlu0 %v12313_v11, %s12087_s16 }
  0x87   : > { %520 = vrot.lane.b32.xlu1 %v12322_v12, %s12086_s14  ;;  %518 = vrot.lane.b32.xlu0 %v12325_v13, %s12086_s14 }
  0x8b   : > { %697 = vrot.lane.b32.xlu1 %v12322_v12, %s12087_s16  ;;  %695 = vrot.lane.b32.xlu0 %v12325_v13, %s12087_s16 }
  0x8f   : > { %524 = vrot.lane.b32.xlu1 %v12328_v14, %s12086_s14  ;;  %522 = vrot.lane.b32.xlu0 %v12339_v15, %s12086_s14 }
  0x93   : > { %701 = vrot.lane.b32.xlu1 %v12328_v14, %s12087_s16  ;;  %699 = vrot.lane.b32.xlu0 %v12339_v15, %s12087_s16 }
  0x97   : > { %528 = vrot.lane.b32.xlu1 %v12342_v16, %s12086_s14  ;;  %526 = vrot.lane.b32.xlu0 %v12349_v17, %s12086_s14 }
  0x9b   : > { %705 = vrot.lane.b32.xlu1 %v12342_v16, %s12087_s16  ;;  %703 = vrot.lane.b32.xlu0 %v12349_v17, %s12087_s16 }
  0x9f   : > { %532 = vrot.lane.b32.xlu1 %v12352_v18, %s12086_s14  ;;  %530 = vrot.lane.b32.xlu0 %v12355_v19, %s12086_s14 }
  0xa3   : > { %709 = vrot.lane.b32.xlu1 %v12352_v18, %s12087_s16  ;;  %707 = vrot.lane.b32.xlu0 %v12355_v19, %s12087_s16 }
  0xa7   : > { %536 = vrot.lane.b32.xlu1 %v12364_v20, %s12086_s14  ;;  %534 = vrot.lane.b32.xlu0 %v12367_v21, %s12086_s14 }
  0xab   : > { %713 = vrot.lane.b32.xlu1 %v12364_v20, %s12087_s16  ;;  %711 = vrot.lane.b32.xlu0 %v12367_v21, %s12087_s16 }
  0xaf   : > { %540 = vrot.lane.b32.xlu1 %v12370_v22, %s12086_s14  ;;  %538 = vrot.lane.b32.xlu0 %v12379_v23, %s12086_s14 }
  0xb3   : > { %717 = vrot.lane.b32.xlu1 %v12370_v22, %s12087_s16  ;;  %715 = vrot.lane.b32.xlu0 %v12379_v23, %s12087_s16 }
  0xb7   : > { %544 = vrot.lane.b32.xlu1 %v12382_v24, %s12086_s14  ;;  %542 = vrot.lane.b32.xlu0 %v12385_v25, %s12086_s14 }
  0xbb   : > { %721 = vrot.lane.b32.xlu1 %v12382_v24, %s12087_s16  ;;  %719 = vrot.lane.b32.xlu0 %v12385_v25, %s12087_s16 }
  0xbf   : > { %548 = vrot.lane.b32.xlu1 %v12396_v26, %s12086_s14  ;;  %546 = vrot.lane.b32.xlu0 %v12399_v27, %s12086_s14 }
  0xc3   : > { %725 = vrot.lane.b32.xlu1 %v12396_v26, %s12087_s16  ;;  %723 = vrot.lane.b32.xlu0 %v12399_v27, %s12087_s16 }
  0xc7   : > { %552 = vrot.lane.b32.xlu1 %v12411_v29, %s12086_s14  ;;  %550 = vrot.lane.b32.xlu0 %v12414_v30, %s12086_s14 }
  0xcb   : > { %729 = vrot.lane.b32.xlu1 %v12411_v29, %s12087_s16  ;;  %727 = vrot.lane.b32.xlu0 %v12414_v30, %s12087_s16 }
  0xcd   : > { %v501_v49 = vpop.permute.xlu1 %500  ;;  %v497_v50 = vpop.permute.xlu0 %496 }
  0xce   : > { %631 = vst.msk [vmem:[#allocation2 + $0x10] sm:$0xff] %vm628_vm6, %v501_v49  ;;  %629 = vst.msk [vmem:[#allocation2] sm:$0xff] %vm628_vm6, %v497_v50 }
  0xcf   : > { %556 = vrot.lane.b32.xlu1 %v12417_v31, %s12086_s14  ;;  %554 = vrot.lane.b32.xlu0 %v12426_v32, %s12086_s14 }
  0xd1   : > { %v674_v51 = vpop.permute.xlu1 %673  ;;  %v499_v52 = vpop.permute.xlu0 %498 }
  0xd2   : > { %806 = vst.msk [vmem:[#allocation2 - $0x1] sm:$0xfe] %vm805_vm7, %v674_v51  ;;  %vm4177_vm7 = vcmask 1048064  }
  0xd3   : > { %630 = vst.msk [vmem:[#allocation2 + $0x8] sm:$0xff] %vm628_vm6, %v499_v52  ;;  %733 = vrot.lane.b32.xlu1 %v12417_v31, %s12087_s16  ;;  %731 = vrot.lane.b32.xlu0 %v12426_v32, %s12087_s16 }
  0xd5   : > { %v678_v53 = vpop.permute.xlu1 %677  ;;  %v676_v54 = vpop.permute.xlu0 %675 }
  0xd6   : > { %809 = vst.msk [vmem:[#allocation2 + $0xf] sm:$0xff] %vm807_vm8, %v678_v53  ;;  %808 = vst.msk [vmem:[#allocation2 + $0x7] sm:$0xff] %vm807_vm8, %v676_v54 }
  0xd7   : > { %560 = vrot.lane.b32.xlu1 %v12429_v33, %s12086_s14  ;;  %558 = vrot.lane.b32.xlu0 %v12432_v34, %s12086_s14 }
  0xd9   : > { %v505_v55 = vpop.permute.xlu1 %504  ;;  %v503_v56 = vpop.permute.xlu0 %502 }
  0xda   : > { %633 = vst.msk [vmem:[#allocation2 + $0x20] sm:$0xff] %vm628_vm6, %v505_v55  ;;  %632 = vst.msk [vmem:[#allocation2 + $0x18] sm:$0xff] %vm628_vm6, %v503_v56 }
  0xdb   : > { %737 = vrot.lane.b32.xlu1 %v12429_v33, %s12087_s16  ;;  %735 = vrot.lane.b32.xlu0 %v12432_v34, %s12087_s16 }
  0xdd   : > { %v682_v57 = vpop.permute.xlu1 %681  ;;  %v680_v58 = vpop.permute.xlu0 %679  ;;  %v853_v59 = vld [vmem:[#allocation2] sm:$0xff]  ;;  %v854_v60 = vld [vmem:[#allocation2 + $0x8] sm:$0xff] }
  0xde   : > { %811 = vst.msk [vmem:[#allocation2 + $0x1f] sm:$0xff] %vm807_vm8, %v682_v57  ;;  %810 = vst.msk [vmem:[#allocation2 + $0x17] sm:$0xff] %vm807_vm8, %v680_v58  ;;  %11593 = vmatprep.mubr.msk.f32.mxu0 %vm906_vm9, %v853_v59 }
  0xdf   : > { %564 = vrot.lane.b32.xlu1 %v12447_v37, %s12086_s14  ;;  %562 = vrot.lane.b32.xlu0 %v12456_v39, %s12086_s14 }
  0xe0   : > { %11594 = vmatmul.mubr.msk.f32.vlgmr.msra.gmra.mrb[0].mxu0 %vm906_vm9, %v854_v60 }
  0xe1   : > { %v509_v61 = vpop.permute.xlu1 %508  ;;  %v507_v62 = vpop.permute.xlu0 %506 }
  0xe2   : > { %635 = vst.msk [vmem:[#allocation2 + $0x30] sm:$0xff] %vm628_vm6, %v509_v61  ;;  %634 = vst.msk [vmem:[#allocation2 + $0x28] sm:$0xff] %vm628_vm6, %v507_v62 }
  0xe3   : > { %741 = vrot.lane.b32.xlu1 %v12447_v37, %s12087_s16  ;;  %739 = vrot.lane.b32.xlu0 %v12456_v39, %s12087_s16 }
  0xe5   : > { %v686_v63 = vpop.permute.xlu1 %685  ;;  %v684_v1 = vpop.permute.xlu0 %683  ;;  %v855_v2 = vld [vmem:[#allocation2 + $0x10] sm:$0xff]  ;;  %v856_v3 = vld [vmem:[#allocation2 + $0x18] sm:$0xff] }
  0xe6   : > { %813 = vst.msk [vmem:[#allocation2 + $0x2f] sm:$0xff] %vm807_vm8, %v686_v63  ;;  %812 = vst.msk [vmem:[#allocation2 + $0x27] sm:$0xff] %vm807_vm8, %v684_v1  ;;  %11596 = vmatprep.mubr.msk.f32.mxu0 %vm906_vm9, %v855_v2 }
  0xe7   : > { %568 = vrot.lane.b32.xlu1 %v12459_v40, %s12086_s14  ;;  %566 = vrot.lane.b32.xlu0 %v12466_v41, %s12086_s14 }
  0xe8   : > { %11597 = vmatmul.mubr.msk.f32.gmra.mrb[2].mxu0 %vm906_vm9, %v856_v3 }
  0xe9   : > { %v513_v4 = vpop.permute.xlu1 %512  ;;  %v511_v5 = vpop.permute.xlu0 %510 }
  0xea   : > { %637 = vst.msk [vmem:[#allocation2 + $0x40] sm:$0xff] %vm628_vm6, %v513_v4  ;;  %636 = vst.msk [vmem:[#allocation2 + $0x38] sm:$0xff] %vm628_vm6, %v511_v5 }
  0xeb   : > { %745 = vrot.lane.b32.xlu1 %v12459_v40, %s12087_s16  ;;  %743 = vrot.lane.b32.xlu0 %v12466_v41, %s12087_s16 }
  0xed   : > { %v690_v6 = vpop.permute.xlu1 %689  ;;  %v688_v7 = vpop.permute.xlu0 %687  ;;  %v857_v8 = vld [vmem:[#allocation2 + $0x20] sm:$0xff]  ;;  %v858_v9 = vld [vmem:[#allocation2 + $0x28] sm:$0xff] }
  0xee   : > { %815 = vst.msk [vmem:[#allocation2 + $0x3f] sm:$0xff] %vm807_vm8, %v690_v6  ;;  %814 = vst.msk [vmem:[#allocation2 + $0x37] sm:$0xff] %vm807_vm8, %v688_v7  ;;  %11599 = vmatprep.mubr.msk.f32.mxu0 %vm906_vm9, %v857_v8 }
  0xef   : > { %570 = vrot.lane.b32.xlu0 %v12483_v42, %s12086_s14  ;;  %11600 = vmatmul.mubr.msk.f32.gmra.mrb[4].mxu0 %vm906_vm9, %v858_v9 }
  0xf0   : > { %572 = vrot.lane.b32.xlu1 %v12492_v43, %s12086_s14 }
  0xf1   : > { %v517_v10 = vpop.permute.xlu1 %516  ;;  %v515_v11 = vpop.permute.xlu0 %514 }
  0xf2   : > { %639 = vst.msk [vmem:[#allocation2 + $0x50] sm:$0xff] %vm628_vm6, %v517_v10  ;;  %638 = vst.msk [vmem:[#allocation2 + $0x48] sm:$0xff] %vm628_vm6, %v515_v11 }
  0xf3   : > { %747 = vrot.lane.b32.xlu0 %v12483_v42, %s12087_s16 }
  0xf4   : > { %749 = vrot.lane.b32.xlu1 %v12492_v43, %s12087_s16 }
  0xf5   : > { %v694_v12 = vpop.permute.xlu1 %693  ;;  %v692_v13 = vpop.permute.xlu0 %691  ;;  %v859_v14 = vld [vmem:[#allocation2 + $0x30] sm:$0xff]  ;;  %v860_v15 = vld [vmem:[#allocation2 + $0x38] sm:$0xff] }
  0xf6   : > { %817 = vst.msk [vmem:[#allocation2 + $0x4f] sm:$0xff] %vm807_vm8, %v694_v12  ;;  %816 = vst.msk [vmem:[#allocation2 + $0x47] sm:$0xff] %vm807_vm8, %v692_v13  ;;  %11602 = vmatprep.mubr.msk.f32.mxu0 %vm906_vm9, %v859_v14 }
  0xf7   : > { %574 = vrot.lane.b32.xlu0 %v12501_v44, %s12086_s14  ;;  %11603 = vmatmul.mubr.msk.f32.gmra.mrb[6].mxu0 %vm906_vm9, %v860_v15 }
  0xf8   : > { %576 = vrot.lane.b32.xlu1 %v12510_v45, %s12086_s14 }
  0xf9   : > { %v521_v16 = vpop.permute.xlu1 %520  ;;  %v519_v17 = vpop.permute.xlu0 %518 }
  0xfa   : > { %641 = vst.msk [vmem:[#allocation2 + $0x60] sm:$0xff] %vm628_vm6, %v521_v16  ;;  %640 = vst.msk [vmem:[#allocation2 + $0x58] sm:$0xff] %vm628_vm6, %v519_v17 }
  0xfb   : > { %751 = vrot.lane.b32.xlu0 %v12501_v44, %s12087_s16 }
  0xfc   : > { %753 = vrot.lane.b32.xlu1 %v12510_v45, %s12087_s16 }
  0xfd   : > { %v698_v18 = vpop.permute.xlu1 %697  ;;  %v696_v19 = vpop.permute.xlu0 %695  ;;  %v861_v20 = vld [vmem:[#allocation2 + $0x40] sm:$0xff]  ;;  %v862_v21 = vld [vmem:[#allocation2 + $0x48] sm:$0xff] }
  0xfe   : > { %819 = vst.msk [vmem:[#allocation2 + $0x5f] sm:$0xff] %vm807_vm8, %v698_v18  ;;  %818 = vst.msk [vmem:[#allocation2 + $0x57] sm:$0xff] %vm807_vm8, %v696_v19  ;;  %11605 = vmatprep.mubr.msk.f32.mxu0 %vm906_vm9, %v861_v20 }
  0xff   : > { %578 = vrot.lane.b32.xlu0 %v12519_v46, %s12086_s14  ;;  %11606 = vmatmul.mubr.msk.f32.gmra.mrb[8].mxu0 %vm906_vm9, %v862_v21 }
 0x100   : > { %580 = vrot.lane.b32.xlu1 %v12528_v47, %s12086_s14 }
 0x101   : > { %v525_v22 = vpop.permute.xlu1 %524  ;;  %v523_v23 = vpop.permute.xlu0 %522 }
 0x102   : > { %643 = vst.msk [vmem:[#allocation2 + $0x70] sm:$0xff] %vm628_vm6, %v525_v22  ;;  %642 = vst.msk [vmem:[#allocation2 + $0x68] sm:$0xff] %vm628_vm6, %v523_v23 }
 0x103   : > { %755 = vrot.lane.b32.xlu0 %v12519_v46, %s12087_s16 }
 0x104   : > { %757 = vrot.lane.b32.xlu1 %v12528_v47, %s12087_s16 }
 0x105   : > { %v702_v24 = vpop.permute.xlu1 %701  ;;  %v700_v25 = vpop.permute.xlu0 %699  ;;  %v863_v26 = vld [vmem:[#allocation2 + $0x50] sm:$0xff]  ;;  %v864_v27 = vld [vmem:[#allocation2 + $0x58] sm:$0xff] }
 0x106   : > { %821 = vst.msk [vmem:[#allocation2 + $0x6f] sm:$0xff] %vm807_vm8, %v702_v24  ;;  %820 = vst.msk [vmem:[#allocation2 + $0x67] sm:$0xff] %vm807_vm8, %v700_v25  ;;  %11608 = vmatprep.mubr.msk.f32.mxu0 %vm906_vm9, %v863_v26 }
 0x107   : > { %11609 = vmatmul.mubr.msk.f32.gmra.mrb[10].mxu0 %vm906_vm9, %v864_v27  ;;  %582 = vrot.lane.b32.xlu0 %v12541_v48, %s12086_s14 }
 0x108   : > { %759 = vrot.lane.b32.xlu1 %v12541_v48, %s12087_s16 }
 0x109   : > { %v529_v28 = vpop.permute.xlu1 %528  ;;  %v527_v29 = vpop.permute.xlu0 %526 }
 0x10a   : > { %645 = vst.msk [vmem:[#allocation2 + $0x80] sm:$0xff] %vm628_vm6, %v529_v28  ;;  %644 = vst.msk [vmem:[#allocation2 + $0x78] sm:$0xff] %vm628_vm6, %v527_v29 }
 0x10d   : > { %v706_v30 = vpop.permute.xlu1 %705  ;;  %v704_v31 = vpop.permute.xlu0 %703  ;;  %v865_v32 = vld [vmem:[#allocation2 + $0x60] sm:$0xff]  ;;  %v866_v33 = vld [vmem:[#allocation2 + $0x68] sm:$0xff] }
 0x10e   : > { %823 = vst.msk [vmem:[#allocation2 + $0x7f] sm:$0xff] %vm807_vm8, %v706_v30  ;;  %822 = vst.msk [vmem:[#allocation2 + $0x77] sm:$0xff] %vm807_vm8, %v704_v31  ;;  %11611 = vmatprep.mubr.msk.f32.mxu0 %vm906_vm9, %v865_v32 }
 0x10f   : > { %11612 = vmatmul.mubr.msk.f32.gmra.mrb[12].mxu0 %vm906_vm9, %v866_v33 }
 0x111   : > { %v533_v34 = vpop.permute.xlu1 %532  ;;  %v531_v35 = vpop.permute.xlu0 %530 }
 0x112   : > { %647 = vst.msk [vmem:[#allocation2 + $0x90] sm:$0xff] %vm628_vm6, %v533_v34  ;;  %646 = vst.msk [vmem:[#allocation2 + $0x88] sm:$0xff] %vm628_vm6, %v531_v35 }
 0x115   : > { %v710_v36 = vpop.permute.xlu1 %709  ;;  %v708_v37 = vpop.permute.xlu0 %707  ;;  %v867_v38 = vld [vmem:[#allocation2 + $0x70] sm:$0xff]  ;;  %v868_v39 = vld [vmem:[#allocation2 + $0x78] sm:$0xff] }
 0x116   : > { %825 = vst.msk [vmem:[#allocation2 + $0x8f] sm:$0xff] %vm807_vm8, %v710_v36  ;;  %824 = vst.msk [vmem:[#allocation2 + $0x87] sm:$0xff] %vm807_vm8, %v708_v37  ;;  %11614 = vmatprep.mubr.msk.f32.mxu0 %vm906_vm9, %v867_v38 }
 0x117   : > { %11615 = vmatmul.mubr.msk.f32.gmra.mrb[14].mxu0 %vm906_vm9, %v868_v39 }
 0x119   : > { %v537_v40 = vpop.permute.xlu1 %536  ;;  %v535_v41 = vpop.permute.xlu0 %534 }
 0x11a   : > { %649 = vst.msk [vmem:[#allocation2 + $0xa0] sm:$0xff] %vm628_vm6, %v537_v40  ;;  %648 = vst.msk [vmem:[#allocation2 + $0x98] sm:$0xff] %vm628_vm6, %v535_v41 }
 0x11d   : > { %v714_v42 = vpop.permute.xlu1 %713  ;;  %v712_v43 = vpop.permute.xlu0 %711  ;;  %v869_v44 = vld [vmem:[#allocation2 + $0x80] sm:$0xff]  ;;  %v870_v45 = vld [vmem:[#allocation2 + $0x88] sm:$0xff] }
 0x11e   : > { %827 = vst.msk [vmem:[#allocation2 + $0x9f] sm:$0xff] %vm807_vm8, %v714_v42  ;;  %826 = vst.msk [vmem:[#allocation2 + $0x97] sm:$0xff] %vm807_vm8, %v712_v43  ;;  %11617 = vmatprep.mubr.msk.f32.mxu0 %vm906_vm9, %v869_v44 }
 0x11f   : > { %11618 = vmatmul.mubr.msk.f32.gmra.mrb[16].mxu0 %vm906_vm9, %v870_v45 }
 0x121   : > { %v541_v46 = vpop.permute.xlu1 %540  ;;  %v539_v47 = vpop.permute.xlu0 %538 }
 0x122   : > { %651 = vst.msk [vmem:[#allocation2 + $0xb0] sm:$0xff] %vm628_vm6, %v541_v46  ;;  %650 = vst.msk [vmem:[#allocation2 + $0xa8] sm:$0xff] %vm628_vm6, %v539_v47 }
 0x125   : > { %v718_v48 = vpop.permute.xlu1 %717  ;;  %v716_v49 = vpop.permute.xlu0 %715  ;;  %v871_v50 = vld [vmem:[#allocation2 + $0x90] sm:$0xff]  ;;  %v872_v51 = vld [vmem:[#allocation2 + $0x98] sm:$0xff] }
 0x126   : > { %829 = vst.msk [vmem:[#allocation2 + $0xaf] sm:$0xff] %vm807_vm8, %v718_v48  ;;  %828 = vst.msk [vmem:[#allocation2 + $0xa7] sm:$0xff] %vm807_vm8, %v716_v49  ;;  %11620 = vmatprep.mubr.msk.f32.mxu0 %vm906_vm9, %v871_v50 }
 0x127   : > { %11621 = vmatmul.mubr.msk.f32.gmra.mrb[18].mxu0 %vm906_vm9, %v872_v51 }
 0x129   : > { %v545_v52 = vpop.permute.xlu1 %544  ;;  %v543_v53 = vpop.permute.xlu0 %542 }
 0x12a   : > { %653 = vst.msk [vmem:[#allocation2 + $0xc0] sm:$0xff] %vm628_vm6, %v545_v52  ;;  %652 = vst.msk [vmem:[#allocation2 + $0xb8] sm:$0xff] %vm628_vm6, %v543_v53 }
 0x12d   : > { %v722_v54 = vpop.permute.xlu1 %721  ;;  %v720_v55 = vpop.permute.xlu0 %719  ;;  %v873_v56 = vld [vmem:[#allocation2 + $0xa0] sm:$0xff]  ;;  %v874_v57 = vld [vmem:[#allocation2 + $0xa8] sm:$0xff] }
 0x12e   : > { %831 = vst.msk [vmem:[#allocation2 + $0xbf] sm:$0xff] %vm807_vm8, %v722_v54  ;;  %830 = vst.msk [vmem:[#allocation2 + $0xb7] sm:$0xff] %vm807_vm8, %v720_v55  ;;  %11623 = vmatprep.mubr.msk.f32.mxu0 %vm906_vm9, %v873_v56  ;;  %v12089_v55 = vmov 1983009808  }
 0x12f   : > { %11624 = vmatmul.mubr.msk.f32.gmra.mrb[20].mxu0 %vm906_vm9, %v874_v57  ;;  %v1418_v56 = vunpack.c.l.s4 %v12089_v55  ;;  %v17549_v57 = vlaneseq }
 0x131   : > { %v549_v58 = vpop.permute.xlu1 %548  ;;  %v547_v59 = vpop.permute.xlu0 %546 }
 0x132   : > { %655 = vst.msk [vmem:[#allocation2 + $0xd0] sm:$0xff] %vm628_vm6, %v549_v58  ;;  %654 = vst.msk [vmem:[#allocation2 + $0xc8] sm:$0xff] %vm628_vm6, %v547_v59  ;;  %v1419_v58 = vunpack.c.0.s8 %v1418_v56  ;;  %v12805_v59 = vshrl.u32 %v17549_v57, 7 }
 0x134   : > { %17699 = vst [vmem:[#allocation17_spill] sm:$0xff] %v12805_v59 }
 0x135   : > { %v726_v60 = vpop.permute.xlu1 %725  ;;  %v724_v61 = vpop.permute.xlu0 %723  ;;  %v875_v62 = vld [vmem:[#allocation2 + $0xb0] sm:$0xff]  ;;  %v876_v63 = vld [vmem:[#allocation2 + $0xb8] sm:$0xff] }
 0x136   : > { %833 = vst.msk [vmem:[#allocation2 + $0xcf] sm:$0xff] %vm807_vm8, %v726_v60  ;;  %832 = vst.msk [vmem:[#allocation2 + $0xc7] sm:$0xff] %vm807_vm8, %v724_v61  ;;  %11626 = vmatprep.mubr.msk.f32.mxu0 %vm906_vm9, %v875_v62  ;;  %v12810_v60 = vld [vmem:[%s17535_s2] ss:$0 sm:$0xff] }
 0x137   : > { %11627 = vmatmul.mubr.msk.f32.gmra.mrb[22].mxu0 %vm906_vm9, %v876_v63  ;;  %v12814_v63 = vsub.s32 %v1419_v58, %v12805_v59 }
 0x139   : > { %v553_v1 = vpop.permute.xlu1 %552  ;;  %v551_v2 = vpop.permute.xlu0 %550  ;;  %17700 = vst [vmem:[#allocation18_spill] sm:$0xff] %v12814_v63 }
 0x13a   : > { %657 = vst.msk [vmem:[#allocation2 + $0xe0] sm:$0xff] %vm628_vm6, %v553_v1  ;;  %656 = vst.msk [vmem:[#allocation2 + $0xd8] sm:$0xff] %vm628_vm6, %v551_v2 }
 0x13d   : > { %v730_v3 = vpop.permute.xlu1 %729  ;;  %v728_v4 = vpop.permute.xlu0 %727  ;;  %v877_v5 = vld [vmem:[#allocation2 + $0xc0] sm:$0xff]  ;;  %v878_v6 = vld [vmem:[#allocation2 + $0xc8] sm:$0xff] }
 0x13e   : > { %835 = vst.msk [vmem:[#allocation2 + $0xdf] sm:$0xff] %vm807_vm8, %v730_v3  ;;  %834 = vst.msk [vmem:[#allocation2 + $0xd7] sm:$0xff] %vm807_vm8, %v728_v4  ;;  %11629 = vmatprep.mubr.msk.f32.mxu0 %vm906_vm9, %v877_v5 }
 0x13f   : > { %11630 = vmatmul.mubr.msk.f32.gmra.mrb[24].mxu0 %vm906_vm9, %v878_v6 }
 0x141   : > { %v557_v7 = vpop.permute.xlu1 %556  ;;  %v555_v8 = vpop.permute.xlu0 %554 }
 0x142   : > { %659 = vst.msk [vmem:[#allocation2 + $0xf0] sm:$0xff] %vm628_vm6, %v557_v7  ;;  %658 = vst.msk [vmem:[#allocation2 + $0xe8] sm:$0xff] %vm628_vm6, %v555_v8 }
 0x145   : > { %v734_v9 = vpop.permute.xlu1 %733  ;;  %v732_v10 = vpop.permute.xlu0 %731  ;;  %v879_v11 = vld [vmem:[#allocation2 + $0xd0] sm:$0xff]  ;;  %v880_v12 = vld [vmem:[#allocation2 + $0xd8] sm:$0xff] }
 0x146   : > { %837 = vst.msk [vmem:[#allocation2 + $0xef] sm:$0xff] %vm807_vm8, %v734_v9  ;;  %836 = vst.msk [vmem:[#allocation2 + $0xe7] sm:$0xff] %vm807_vm8, %v732_v10  ;;  %11632 = vmatprep.mubr.msk.f32.mxu0 %vm906_vm9, %v879_v11 }
 0x147   : > { %11633 = vmatmul.mubr.msk.f32.gmra.mrb[26].mxu0 %vm906_vm9, %v880_v12 }
 0x149   : > { %v561_v13 = vpop.permute.xlu1 %560  ;;  %v559_v14 = vpop.permute.xlu0 %558 }
 0x14a   : > { %661 = vst.msk [vmem:[#allocation2 + $0x100] sm:$0xff] %vm628_vm6, %v561_v13  ;;  %660 = vst.msk [vmem:[#allocation2 + $0xf8] sm:$0xff] %vm628_vm6, %v559_v14 }
 0x14d   : > { %v738_v15 = vpop.permute.xlu1 %737  ;;  %v736_v16 = vpop.permute.xlu0 %735  ;;  %v881_v17 = vld [vmem:[#allocation2 + $0xe0] sm:$0xff]  ;;  %v882_v18 = vld [vmem:[#allocation2 + $0xe8] sm:$0xff] }
 0x14e   : > { %839 = vst.msk [vmem:[#allocation2 + $0xff] sm:$0xff] %vm807_vm8, %v738_v15  ;;  %838 = vst.msk [vmem:[#allocation2 + $0xf7] sm:$0xff] %vm807_vm8, %v736_v16  ;;  %11635 = vmatprep.mubr.msk.f32.mxu0 %vm906_vm9, %v881_v17 }
 0x14f   : > { %11636 = vmatmul.mubr.msk.f32.gmra.mrb[28].mxu0 %vm906_vm9, %v882_v18 }
 0x151   : > { %v565_v19 = vpop.permute.xlu1 %564  ;;  %v563_v20 = vpop.permute.xlu0 %562 }
 0x152   : > { %663 = vst.msk [vmem:[#allocation2 + $0x110] sm:$0xff] %vm628_vm6, %v565_v19  ;;  %662 = vst.msk [vmem:[#allocation2 + $0x108] sm:$0xff] %vm628_vm6, %v563_v20 }
 0x155   : > { %v742_v21 = vpop.permute.xlu1 %741  ;;  %v740_v22 = vpop.permute.xlu0 %739  ;;  %v883_v23 = vld [vmem:[#allocation2 + $0xf0] sm:$0xff]  ;;  %v884_v24 = vld [vmem:[#allocation2 + $0xf8] sm:$0xff] }
 0x156   : > { %841 = vst.msk [vmem:[#allocation2 + $0x10f] sm:$0xff] %vm807_vm8, %v742_v21  ;;  %840 = vst.msk [vmem:[#allocation2 + $0x107] sm:$0xff] %vm807_vm8, %v740_v22  ;;  %11638 = vmatprep.mubr.msk.f32.mxu0 %vm906_vm9, %v883_v23 }
 0x157   : > { %11639 = vmatmul.mubr.msk.f32.gmra.mrb[30].mxu0 %vm906_vm9, %v884_v24 }
 0x159   : > { %v569_v25 = vpop.permute.xlu1 %568  ;;  %v567_v26 = vpop.permute.xlu0 %566 }
 0x15a   : > { %665 = vst.msk [vmem:[#allocation2 + $0x120] sm:$0xff] %vm628_vm6, %v569_v25  ;;  %664 = vst.msk [vmem:[#allocation2 + $0x118] sm:$0xff] %vm628_vm6, %v567_v26 }
 0x15d   : > { %v746_v27 = vpop.permute.xlu1 %745  ;;  %v744_v28 = vpop.permute.xlu0 %743  ;;  %v885_v29 = vld [vmem:[#allocation2 + $0x100] sm:$0xff]  ;;  %v886_v30 = vld [vmem:[#allocation2 + $0x108] sm:$0xff] }
 0x15e   : > { %843 = vst.msk [vmem:[#allocation2 + $0x11f] sm:$0xff] %vm807_vm8, %v746_v27  ;;  %842 = vst.msk [vmem:[#allocation2 + $0x117] sm:$0xff] %vm807_vm8, %v744_v28  ;;  %11641 = vmatprep.mubr.msk.f32.mxu1 %vm906_vm9, %v885_v29 }
 0x15f   : > { %11642 = vmatmul.mubr.msk.f32.vlgmr.msra.gmra.mrb[0].mxu1 %vm906_vm9, %v886_v30 }
 0x161   : > { %v571_v31 = vpop.permute.xlu0 %570 }
 0x162   : > { %666 = vst.msk [vmem:[#allocation2 + $0x128] sm:$0xff] %vm628_vm6, %v571_v31  ;;  %v573_v32 = vpop.permute.xlu1 %572 }
 0x163   : > { %667 = vst.msk [vmem:[#allocation2 + $0x130] sm:$0xff] %vm628_vm6, %v573_v32 }
 0x165   : > { %v748_v33 = vpop.permute.xlu0 %747  ;;  %v887_v34 = vld [vmem:[#allocation2 + $0x110] sm:$0xff]  ;;  %v888_v35 = vld [vmem:[#allocation2 + $0x118] sm:$0xff] }
 0x166   : > { %844 = vst.msk [vmem:[#allocation2 + $0x127] sm:$0xff] %vm807_vm8, %v748_v33  ;;  %v750_v36 = vpop.permute.xlu1 %749  ;;  %11644 = vmatprep.mubr.msk.f32.mxu1 %vm906_vm9, %v887_v34 }
 0x167   : > { %845 = vst.msk [vmem:[#allocation2 + $0x12f] sm:$0xff] %vm807_vm8, %v750_v36  ;;  %11645 = vmatmul.mubr.msk.f32.gmra.mrb[2].mxu1 %vm906_vm9, %v888_v35 }
 0x169   : > { %v575_v37 = vpop.permute.xlu0 %574 }
 0x16a   : > { %668 = vst.msk [vmem:[#allocation2 + $0x138] sm:$0xff] %vm628_vm6, %v575_v37  ;;  %v577_v38 = vpop.permute.xlu1 %576 }
 0x16b   : > { %669 = vst.msk [vmem:[#allocation2 + $0x140] sm:$0xff] %vm628_vm6, %v577_v38 }
 0x16d   : > { %v752_v39 = vpop.permute.xlu0 %751  ;;  %v889_v40 = vld [vmem:[#allocation2 + $0x120] sm:$0xff] }
 0x16e   : > { %846 = vst.msk [vmem:[#allocation2 + $0x137] sm:$0xff] %vm807_vm8, %v752_v39  ;;  %v754_v41 = vpop.permute.xlu1 %753  ;;  %11647 = vmatprep.mubr.msk.f32.mxu1 %vm906_vm9, %v889_v40  ;;  %v890_v42 = vld [vmem:[#allocation2 + $0x128] sm:$0xff] }
 0x16f   : > { %847 = vst.msk [vmem:[#allocation2 + $0x13f] sm:$0xff] %vm807_vm8, %v754_v41  ;;  %11648 = vmatmul.mubr.msk.f32.gmra.mrb[4].mxu1 %vm906_vm9, %v890_v42 }
 0x171   : > { %v579_v43 = vpop.permute.xlu0 %578 }
 0x172   : > { %670 = vst.msk [vmem:[#allocation2 + $0x148] sm:$0xff] %vm628_vm6, %v579_v43  ;;  %v581_v44 = vpop.permute.xlu1 %580 }
 0x173   : > { %671 = vst.msk [vmem:[#allocation2 + $0x150] sm:$0xff] %vm628_vm6, %v581_v44 }
 0x175   : > { %v756_v45 = vpop.permute.xlu0 %755  ;;  %v891_v46 = vld [vmem:[#allocation2 + $0x130] sm:$0xff] }
 0x176   : > { %848 = vst.msk [vmem:[#allocation2 + $0x147] sm:$0xff] %vm807_vm8, %v756_v45  ;;  %v758_v47 = vpop.permute.xlu1 %757  ;;  %11650 = vmatprep.mubr.msk.f32.mxu1 %vm906_vm9, %v891_v46  ;;  %v892_v48 = vld [vmem:[#allocation2 + $0x138] sm:$0xff] }
 0x177   : > { %849 = vst.msk [vmem:[#allocation2 + $0x14f] sm:$0xff] %vm807_vm8, %v758_v47  ;;  %11651 = vmatmul.mubr.msk.f32.gmra.mrb[6].mxu1 %vm906_vm9, %v892_v48 }
 0x179   : > { %v583_v49 = vpop.permute.xlu0 %582 }
 0x17a   : > { %672 = vst.msk [vmem:[#allocation2 + $0x158] sm:$0xff] %vm628_vm6, %v583_v49  ;;  %v760_v50 = vpop.permute.xlu1 %759  ;;  %vm3932_vm6 = vcmask 523265  }
 0x17b   : > { %852 = vst.msk [vmem:[#allocation2 + $0x15f] sm:$0x1] %vm851_vm10, %v17550_v0 }
 0x17c   : > { %850 = vst.msk [vmem:[#allocation2 + $0x157] sm:$0xff] %vm807_vm8, %v760_v50  ;;  %vm4396_vm8 = vcmask 522240  }
 0x17d   : > { %v893_v51 = vld [vmem:[#allocation2 + $0x140] sm:$0xff] }
 0x17e   : > { %11653 = vmatprep.mubr.msk.f32.mxu1 %vm906_vm9, %v893_v51  ;;  %v894_v52 = vld [vmem:[#allocation2 + $0x148] sm:$0xff] }
 0x17f   : > { %11654 = vmatmul.mubr.msk.f32.gmra.mrb[8].mxu1 %vm906_vm9, %v894_v52 }
 0x183   : > { %v895_v53 = vld [vmem:[#allocation2 + $0x150] sm:$0xff]  ;;  %v896_v54 = vld [vmem:[#allocation2 + $0x158] sm:$0xff] }
 0x184   : > { %11656 = vmatprep.mubr.msk.f32.mxu1 %vm906_vm9, %v895_v53 }
 0x185   : > { %11657 = vmatmul.mubr.msk.f32.gmra.mrb[10].mxu1 %vm906_vm9, %v896_v54  ;;  %vm5221_vm9 = vcmask 1041408  }
 0x1b3   : > { %v11595_v61 = vpop.f32.mrb[0].mxu0 }
 0x1b4   : > { %v1115_v62 = vadd.f32 %v11595_v61, %v12810_v60  ;;  %v1109_v1 = vpop.f32.mrb[1].mxu0 }
 0x1b5   : > { %v1110_v2 = vadd.f32 %v12810_v60, %v1109_v1 }
 0x1b6   : > { %v1329_v3 = vmax.f32 %v1115_v62, 0.0 }
 0x1b7   : > { %v1328_v4 = vmax.f32 %v1110_v2, 0.0 }
 0x1b8   : > { %v1433_v5 = vcombine.high %v1329_v3, %v1329_v3  ;;  %v1440_v6 = vrot.slane %v1329_v3, %v12814_v63 }
 0x1b9   : > { %v1416_v7 = vcombine.high %v1328_v4, %v1328_v4  ;;  %v1423_v8 = vrot.slane %v1328_v4, %v12814_v63 }
 0x1ba   : > { %v1447_v9 = vrot.slane %v1433_v5, %v12814_v63  ;;  %v1448_v10 = vcombine.high %v1440_v6, %v1440_v6  ;;  %v2369_v11 = vsel %vm2340_vm11, %v1440_v6, -inf }
 0x1bb   : > { %v2370_v12 = vrot.slane %v2369_v11, 4  ;;  %v1430_v13 = vrot.slane %v1416_v7, %v12814_v63  ;;  %v1431_v14 = vcombine.high %v1423_v8, %v1423_v8  ;;  %v2341_v15 = vsel %vm2340_vm11, %v1423_v8, -inf  ;;  %v11598_v16 = vpop.f32.mrb[2].mxu0 }
 0x1bc   : > { %v1449_v17 = vcombine.high %v1447_v9, %v1447_v9  ;;  %v2376_v18 = vsel %vm2340_vm11, %v1448_v10, -inf  ;;  %v2383_v19 = vsel %vm2340_vm11, %v1447_v9, -inf  ;;  %v2342_v20 = vrot.slane %v2341_v15, 4  ;;  %v1119_v21 = vpop.f32.mrb[3].mxu0 }
 0x1bd   : > { %v2371_v22 = vmax.f32 %v2369_v11, %v2370_v12  ;;  %v2377_v23 = vrot.slane %v2376_v18, 4  ;;  %v2384_v24 = vrot.slane %v2383_v19, 4  ;;  %v1432_v25 = vcombine.high %v1430_v13, %v1430_v13 }
 0x1be   : > { %v2390_v26 = vsel %vm2340_vm11, %v1449_v17, -inf  ;;  %v2343_v27 = vmax.f32 %v2341_v15, %v2342_v20  ;;  %v2348_v28 = vsel %vm2340_vm11, %v1431_v14, -inf  ;;  %v2355_v29 = vsel %vm2340_vm11, %v1430_v13, -inf }
 0x1bf   : > { %v2372_v30 = vrot.slane %v2371_v22, 2  ;;  %v2378_v31 = vmax.f32 %v2376_v18, %v2377_v23  ;;  %v2385_v32 = vmax.f32 %v2383_v19, %v2384_v24  ;;  %v2391_v33 = vrot.slane %v2390_v26, 4 }
 0x1c0   : > { %v2344_v34 = vrot.slane %v2343_v27, 2  ;;  %v2349_v35 = vrot.slane %v2348_v28, 4  ;;  %v2356_v36 = vrot.slane %v2355_v29, 4  ;;  %v2362_v37 = vsel %vm2340_vm11, %v1432_v25, -inf }
 0x1c1   : > { %v2373_v38 = vmax.f32 %v2371_v22, %v2372_v30  ;;  %v2379_v39 = vrot.slane %v2378_v31, 2  ;;  %v2386_v40 = vrot.slane %v2385_v32, 2  ;;  %v12829_v41 = vmax.f32 %v2390_v26, %v2391_v33 }
 0x1c2   : > { %v2345_v42 = vmax.f32 %v2343_v27, %v2344_v34  ;;  %v2350_v43 = vmax.f32 %v2348_v28, %v2349_v35  ;;  %v2357_v44 = vmax.f32 %v2355_v29, %v2356_v36  ;;  %v2363_v45 = vrot.slane %v2362_v37, 4  ;;  %v11601_v46 = vpop.f32.mrb[4].mxu0 }
 0x1c3   : > { %v2374_v47 = vrot.slane %v2373_v38, 1  ;;  %v12831_v48 = vmax.f32 %v2378_v31, %v2379_v39  ;;  %v12833_v49 = vmax.f32 %v2385_v32, %v2386_v40  ;;  %v1125_v50 = vadd.f32 %v11598_v16, %v12810_v60  ;;  %v1129_v51 = vpop.f32.mrb[5].mxu0 }
 0x1c4   : > { %v2346_v52 = vrot.slane %v2345_v42, 1  ;;  %v2351_v53 = vrot.slane %v2350_v43, 2  ;;  %v2358_v54 = vrot.slane %v2357_v44, 2  ;;  %v2364_v55 = vmax.f32 %v2362_v37, %v2363_v45 }
 0x1c5   : > { %v12836_v56 = vmax.f32 %v2373_v38, %v2374_v47  ;;  %v2381_v58 = vrot.slane %v12831_v48, 1  ;;  %v1331_v61 = vmax.f32 %v1125_v50, 0.0  ;;  %v1120_v62 = vadd.f32 %v12810_v60, %v1119_v21 }
 0x1c6   : > { %v2347_v1 = vmax.f32 %v2345_v42, %v2346_v52  ;;  %v2352_v2 = vmax.f32 %v2350_v43, %v2351_v53  ;;  %v2359_v3 = vmax.f32 %v2357_v44, %v2358_v54  ;;  %v2365_v4 = vrot.slane %v2364_v55, 2 }
 0x1c7   : > { %v1467_v5 = vcombine.high %v1331_v61, %v1331_v61  ;;  %v1474_v6 = vrot.slane %v1331_v61, %v12814_v63  ;;  %v1330_v7 = vmax.f32 %v1120_v62, 0.0  ;;  %v1135_v8 = vadd.f32 %v11601_v46, %v12810_v60 }
 0x1c8   : > { %v2353_v9 = vrot.slane %v2352_v2, 1  ;;  %v2360_v10 = vrot.slane %v2359_v3, 1  ;;  %v2366_v11 = vmax.f32 %v2364_v55, %v2365_v4  ;;  %v1130_v12 = vadd.f32 %v12810_v60, %v1129_v51 }
 0x1c9   : > { %v1481_v13 = vrot.slane %v1467_v5, %v12814_v63  ;;  %v1482_v14 = vcombine.high %v1474_v6, %v1474_v6  ;;  %v2425_v15 = vsel %vm2340_vm11, %v1474_v6, -inf  ;;  %v1450_v16 = vcombine.high %v1330_v7, %v1330_v7 }
 0x1ca   : > { %v2354_v17 = vmax.f32 %v2352_v2, %v2353_v9  ;;  %v12845_v18 = vmax.f32 %v2359_v3, %v2360_v10  ;;  %v2367_v19 = vrot.slane %v2366_v11, 1  ;;  %v2426_v20 = vrot.slane %v2425_v15, 4  ;;  %v12847_v21 = vpop.f32.mrb[6].mxu0 }
 0x1cb   : > { %v1483_v22 = vcombine.high %v1481_v13, %v1481_v13  ;;  %v2432_v23 = vsel %vm2340_vm11, %v1482_v14, -inf  ;;  %v2439_v24 = vsel %vm2340_vm11, %v1481_v13, -inf  ;;  %v1457_v25 = vrot.slane %v1330_v7, %v12814_v63  ;;  %v12852_v26 = vpop.f32.mrb[7].mxu0 }
 0x1cc   : > { %v12854_v27 = vmax.f32 %v2366_v11, %v2367_v19  ;;  %v3751_v28 = vsel %vm3750_vm12, %v2354_v17, %v2347_v1  ;;  %v12858_v29 = vsel %vm3762_vm13, %v2354_v17, %v2347_v1  ;;  %v4200_v30 = vsel %vm3762_vm13, %v12845_v18, %v2354_v17 }
 0x1cd   : > { %v3753_v31 = vsel %vm3752_vm14, %v12845_v18, %v3751_v28  ;;  %v2427_v32 = vmax.f32 %v2425_v15, %v2426_v20  ;;  %v2433_v33 = vrot.slane %v2432_v23, 4  ;;  %v2440_v34 = vrot.slane %v2439_v24, 4 }
 0x1ce   : > { %v12866_v35 = vsel %vm3754_vm15, %v12854_v27, %v3753_v31  ;;  %v12870_v36 = vsel %vm3750_vm12, %v12854_v27, %v4200_v30  ;;  %v2446_v37 = vsel %vm2340_vm11, %v1483_v22, -inf  ;;  %v1464_v38 = vrot.slane %v1450_v16, %v12814_v63 }
 0x1cf   : > { %v2428_v39 = vrot.slane %v2427_v32, 2  ;;  %v2434_v40 = vmax.f32 %v2432_v23, %v2433_v33  ;;  %v2441_v42 = vmax.f32 %v2439_v24, %v2440_v34  ;;  %v2447_v43 = vrot.slane %v2446_v37, 4 }
 0x1d0   : > { %v1465_v44 = vcombine.high %v1457_v25, %v1457_v25  ;;  %v1466_v45 = vcombine.high %v1464_v38, %v1464_v38  ;;  %v2397_v46 = vsel %vm2340_vm11, %v1457_v25, -inf  ;;  %v2411_v47 = vsel %vm2340_vm11, %v1464_v38, -inf }
 0x1d1   : > { %v2429_v50 = vmax.f32 %v2427_v32, %v2428_v39  ;;  %v2435_v51 = vrot.slane %v2434_v40, 2  ;;  %v2442_v52 = vrot.slane %v2441_v42, 2  ;;  %v12876_v53 = vmax.f32 %v2446_v37, %v2447_v43 }
 0x1d2   : > { %v2398_v54 = vrot.slane %v2397_v46, 4  ;;  %v2404_v55 = vsel %vm2340_vm11, %v1465_v44, -inf  ;;  %v2412_v61 = vrot.slane %v2411_v47, 4  ;;  %v2418_v62 = vsel %vm2340_vm11, %v1466_v45, -inf  ;;  %v12880_v1 = vpop.f32.mrb[8].mxu0 }
 0x1d3   : > { %v2430_v2 = vrot.slane %v2429_v50, 1  ;;  %v12882_v3 = vmax.f32 %v2434_v40, %v2435_v51  ;;  %v12884_v4 = vmax.f32 %v2441_v42, %v2442_v52  ;;  %v2405_v5 = vrot.slane %v2404_v55, 4  ;;  %v12886_v6 = vpop.f32.mrb[9].mxu0 }
 0x1d4   : > { %v2399_v7 = vmax.f32 %v2397_v46, %v2398_v54  ;;  %v2413_v9 = vmax.f32 %v2411_v47, %v2412_v61  ;;  %v2419_v10 = vrot.slane %v2418_v62, 4  ;;  %v1333_v11 = vmax.f32 %v1135_v8, 0.0 }
 0x1d5   : > { %v12888_v13 = vmax.f32 %v2429_v50, %v2430_v2  ;;  %v2406_v15 = vmax.f32 %v2404_v55, %v2405_v5  ;;  %v1332_v16 = vmax.f32 %v1130_v12, 0.0 }
 0x1d6   : > { %v2400_v17 = vrot.slane %v2399_v7, 2  ;;  %v2414_v19 = vrot.slane %v2413_v9, 2  ;;  %v2420_v20 = vmax.f32 %v2418_v62, %v2419_v10  ;;  %v1501_v22 = vcombine.high %v1333_v11, %v1333_v11 }
 0x1d7   : > { %17701 = vst [vmem:[#allocation19_spill] sm:$0xff] %v12888_v13  ;;  %v2407_v23 = vrot.slane %v2406_v15, 2  ;;  %v1508_v24 = vrot.slane %v1333_v11, %v12814_v63  ;;  %v1484_v25 = vcombine.high %v1332_v16, %v1332_v16  ;;  %v1491_v28 = vrot.slane %v1332_v16, %v12814_v63 }
 0x1d8   : > { %v2401_v30 = vmax.f32 %v2399_v7, %v2400_v17  ;;  %v2415_v31 = vmax.f32 %v2413_v9, %v2414_v19  ;;  %v2421_v32 = vrot.slane %v2420_v20, 2  ;;  %v1515_v8 = vrot.slane %v1501_v22, %v12814_v63 }
 0x1d9   : > { %v2408_v33 = vmax.f32 %v2406_v15, %v2407_v23  ;;  %v1516_v34 = vcombine.high %v1508_v24, %v1508_v24  ;;  %v2481_v37 = vsel %vm2340_vm11, %v1508_v24, -inf  ;;  %v1498_v12 = vrot.slane %v1484_v25, %v12814_v63 }
 0x1da   : > { %v2402_v38 = vrot.slane %v2401_v30, 1  ;;  %v2416_v39 = vrot.slane %v2415_v31, 1  ;;  %v2422_v40 = vmax.f32 %v2420_v20, %v2421_v32  ;;  %v1517_v42 = vcombine.high %v1515_v8, %v1515_v8  ;;  %v12896_v43 = vpop.f32.mrb[10].mxu0 }
 0x1db   : > { %v2409_v44 = vrot.slane %v2408_v33, 1  ;;  %v2482_v45 = vrot.slane %v2481_v37, 4  ;;  %v2488_v46 = vsel %vm2340_vm11, %v1516_v34, -inf  ;;  %v2495_v47 = vsel %vm2340_vm11, %v1515_v8, -inf  ;;  %v12900_v50 = vpop.f32.mrb[11].mxu0 }
 0x1dc   : > { %v12902_v51 = vmax.f32 %v2401_v30, %v2402_v38  ;;  %v12904_v52 = vmax.f32 %v2415_v31, %v2416_v39  ;;  %v2423_v54 = vrot.slane %v2422_v40, 1  ;;  %v2489_v55 = vrot.slane %v2488_v46, 4 }
 0x1dd   : > { %v12906_v61 = vmax.f32 %v2408_v33, %v2409_v44  ;;  %v2483_v62 = vmax.f32 %v2481_v37, %v2482_v45  ;;  %v2496_v2 = vrot.slane %v2495_v47, 4  ;;  %v2502_v5 = vsel %vm2340_vm11, %v1517_v42, -inf }
 0x1de   : > { %v12909_v7 = vmax.f32 %v2422_v40, %v2423_v54  ;;  %v2490_v9 = vmax.f32 %v2488_v46, %v2489_v55  ;;  %v2503_v10 = vrot.slane %v2502_v5, 4  ;;  %v1499_v11 = vcombine.high %v1491_v28, %v1491_v28 }
 0x1df   : > { %v12914_v15 = vsel %vm3762_vm13, %v12906_v61, %v12902_v51  ;;  %v4207_v16 = vsel %vm3762_vm13, %v12904_v52, %v12906_v61  ;;  %v2484_v17 = vrot.slane %v2483_v62, 2  ;;  %v2497_v19 = vmax.f32 %v2495_v47, %v2496_v2 }
 0x1e0   : > { %17702 = vst [vmem:[#allocation20_spill] sm:$0xff] %v12909_v7  ;;  %v12921_v20 = vsel %vm3750_vm12, %v12909_v7, %v4207_v16  ;;  %v2491_v22 = vrot.slane %v2490_v9, 2  ;;  %v12923_v23 = vmax.f32 %v2502_v5, %v2503_v10  ;;  %v1500_v24 = vcombine.high %v1498_v12, %v1498_v12 }
 0x1e1   : > { %v2485_v25 = vmax.f32 %v2483_v62, %v2484_v17  ;;  %v2498_v30 = vrot.slane %v2497_v19, 2  ;;  %v2453_v31 = vsel %vm2340_vm11, %v1491_v28, -inf  ;;  %v2460_v32 = vsel %vm2340_vm11, %v1499_v11, -inf }
 0x1e2   : > { %v12927_v8 = vmax.f32 %v2490_v9, %v2491_v22  ;;  %v2454_v33 = vrot.slane %v2453_v31, 4  ;;  %v2461_v34 = vrot.slane %v2460_v32, 4  ;;  %v2467_v37 = vsel %vm2340_vm11, %v1498_v12, -inf  ;;  %v12930_v38 = vpop.f32.mrb[12].mxu0 }
 0x1e3   : > { %v2486_v39 = vrot.slane %v2485_v25, 1  ;;  %v12932_v40 = vmax.f32 %v2497_v19, %v2498_v30  ;;  %v2468_v42 = vrot.slane %v2467_v37, 4  ;;  %v2474_v44 = vsel %vm2340_vm11, %v1500_v24, -inf  ;;  %v12935_v45 = vpop.f32.mrb[13].mxu0 }
 0x1e4   : > { %v2455_v46 = vmax.f32 %v2453_v31, %v2454_v33  ;;  %v2462_v47 = vmax.f32 %v2460_v32, %v2461_v34  ;;  %v2475_v54 = vrot.slane %v2474_v44, 4  ;;  %v1145_v12 = vadd.f32 %v12847_v21, %v12810_v60 }
 0x1e5   : > { %v12938_v55 = vmax.f32 %v2485_v25, %v2486_v39  ;;  %v2469_v62 = vmax.f32 %v2467_v37, %v2468_v42  ;;  %v1140_v2 = vadd.f32 %v12810_v60, %v12852_v26  ;;  %v12947_v11 = vmax.f32 %v12831_v48, %v2381_v58 }
 0x1e6   : > { %v2456_v5 = vrot.slane %v2455_v46, 2  ;;  %v2463_v9 = vrot.slane %v2462_v47, 2  ;;  %v2476_v10 = vmax.f32 %v2474_v44, %v2475_v54  ;;  %v1335_v17 = vmax.f32 %v1145_v12, 0.0 }
 0x1e7   : > { %17703 = vst [vmem:[#allocation21_spill] sm:$0xff] %v12938_v55  ;;  %v2470_v16 = vrot.slane %v2469_v62, 2  ;;  %v1334_v19 = vmax.f32 %v1140_v2, 0.0  ;;  %v2388_v22 = vrot.slane %v12833_v49, 1 }
 0x1e8   : > { %v2457_v24 = vmax.f32 %v2455_v46, %v2456_v5  ;;  %v2464_v25 = vmax.f32 %v2462_v47, %v2463_v9  ;;  %v2477_v30 = vrot.slane %v2476_v10, 2  ;;  %v1535_v26 = vcombine.high %v1335_v17, %v1335_v17 }
 0x1e9   : > { %v2471_v31 = vmax.f32 %v2469_v62, %v2470_v16  ;;  %v1542_v32 = vrot.slane %v1335_v17, %v12814_v63  ;;  %v1518_v33 = vcombine.high %v1334_v19, %v1334_v19  ;;  %v1525_v48 = vrot.slane %v1334_v19, %v12814_v63 }
 0x1ea   : > { %v2458_v34 = vrot.slane %v2457_v24, 1  ;;  %v2465_v37 = vrot.slane %v2464_v25, 1  ;;  %v2478_v39 = vmax.f32 %v2476_v10, %v2477_v30  ;;  %v12953_v58 = vpop.f32.mrb[14].mxu0  ;;  %v1549_v44 = vrot.slane %v1535_v26, %v12814_v63 }
 0x1eb   : > { %v2472_v42 = vrot.slane %v2471_v31, 1  ;;  %v1550_v46 = vcombine.high %v1542_v32, %v1542_v32  ;;  %v2537_v47 = vsel %vm2340_vm11, %v1542_v32, -inf  ;;  %v12957_v54 = vpop.f32.mrb[15].mxu0  ;;  %v2389_v59 = vmax.f32 %v12833_v49, %v2388_v22 }
 0x1ec   : > { %v12959_v62 = vmax.f32 %v2457_v24, %v2458_v34  ;;  %v12961_v12 = vmax.f32 %v2464_v25, %v2465_v37  ;;  %v2479_v2 = vrot.slane %v2478_v39, 1  ;;  %v2538_v5 = vrot.slane %v2537_v47, 4 }
 0x1ed   : > { %v12963_v9 = vmax.f32 %v2471_v31, %v2472_v42  ;;  %v1551_v10 = vcombine.high %v1549_v44, %v1549_v44  ;;  %v2544_v16 = vsel %vm2340_vm11, %v1550_v46, -inf  ;;  %v2551_v17 = vsel %vm2340_vm11, %v1549_v44, -inf }
 0x1ee   : > { %v12967_v19 = vmax.f32 %v2478_v39, %v2479_v2  ;;  %v12972_v30 = vsel %vm3762_vm13, %v12961_v12, %v12959_v62  ;;  %v2539_v24 = vmax.f32 %v2537_v47, %v2538_v5  ;;  %v2545_v26 = vrot.slane %v2544_v16, 4 }
 0x1ef   : > { %v4214_v25 = vsel %vm3762_vm13, %v12963_v9, %v12961_v12  ;;  %v2552_v31 = vrot.slane %v2551_v17, 4  ;;  %v2558_v32 = vsel %vm2340_vm11, %v1551_v10, -inf  ;;  %v1532_v34 = vrot.slane %v1518_v33, %v12814_v63 }
 0x1f0   : > { %17704 = vst [vmem:[#allocation22_spill] sm:$0xff] %v12967_v19  ;;  %v12981_v37 = vsel %vm3750_vm12, %v12967_v19, %v4214_v25  ;;  %v2540_v39 = vrot.slane %v2539_v24, 2  ;;  %v2546_v42 = vmax.f32 %v2544_v16, %v2545_v26  ;;  %v2559_v44 = vrot.slane %v2558_v32, 4 }
 0x1f1   : > { %v2553_v46 = vmax.f32 %v2551_v17, %v2552_v31  ;;  %v1533_v47 = vcombine.high %v1525_v48, %v1525_v48  ;;  %v1534_v2 = vcombine.high %v1532_v34, %v1532_v34  ;;  %v2509_v5 = vsel %vm2340_vm11, %v1525_v48, -inf }
 0x1f2   : > { %v2541_v57 = vmax.f32 %v2539_v24, %v2540_v39  ;;  %v2547_v0 = vrot.slane %v2546_v42, 2  ;;  %v12984_v28 = vmax.f32 %v2558_v32, %v2559_v44  ;;  %v2510_v10 = vrot.slane %v2509_v5, 4  ;;  %v12986_v33 = vpop.f32.mrb[16].mxu0 }
 0x1f3   : > { %17705 = vst [vmem:[#allocation23_spill] sm:$0xff] %v12986_v33  ;;  %v2554_v14 = vrot.slane %v2553_v46, 2  ;;  %v2516_v25 = vsel %vm2340_vm11, %v1533_v47, -inf  ;;  %v2523_v16 = vsel %vm2340_vm11, %v1532_v34, -inf  ;;  %v2530_v26 = vsel %vm2340_vm11, %v1534_v2, -inf  ;;  %v12991_v17 = vpop.f32.mrb[17].mxu0 }
 0x1f4   : > { %17706 = vst [vmem:[#allocation24_spill] sm:$0xff] %v12991_v17  ;;  %v2542_v31 = vrot.slane %v2541_v57, 1  ;;  %v12993_v21 = vmax.f32 %v2546_v42, %v2547_v0  ;;  %v2511_v48 = vmax.f32 %v2509_v5, %v2510_v10  ;;  %v2517_v24 = vrot.slane %v2516_v25, 4 }
 0x1f5   : > { %v12995_v32 = vmax.f32 %v2553_v46, %v2554_v14  ;;  %v2524_v39 = vrot.slane %v2523_v16, 4  ;;  %v2531_v44 = vrot.slane %v2530_v26, 4  ;;  %v17708_v42 = vrot.slane %v12829_v41, 2 }
 0x1f6   : > { %v13000_v47 = vmax.f32 %v2541_v57, %v2542_v31  ;;  %v2512_v2 = vrot.slane %v2511_v48, 2  ;;  %v2518_v17 = vmax.f32 %v2516_v25, %v2517_v24  ;;  %v3958_v46 = vsel %vm3750_vm12, %v12845_v18, %v12858_v29 }
 0x1f7   : > { %v2525_v33 = vmax.f32 %v2523_v16, %v2524_v39  ;;  %v2532_v0 = vmax.f32 %v2530_v26, %v2531_v44  ;;  %v2394_v14 = vmax.f32 %v12829_v41, %v17708_v42  ;;  %v3959_v57 = vsel %vm3752_vm14, %v12854_v27, %v3958_v46 }
 0x1f8   : > { %17707 = vst [vmem:[#allocation25_spill] sm:$0xff] %v13000_v47  ;;  %v2513_v5 = vmax.f32 %v2511_v48, %v2512_v2  ;;  %v2519_v10 = vrot.slane %v2518_v17, 2  ;;  %v4202_v49 = vsel %vm3752_vm14, %v12836_v56, %v12870_v36  ;;  %v3960_v26 = vsel %vm3754_vm15, %v12836_v56, %v3959_v57 }
 0x1f9   : > { %v2526_v22 = vrot.slane %v2525_v33, 2  ;;  %v2533_v25 = vrot.slane %v2532_v0, 2  ;;  %v2395_v16 = vrot.slane %v2394_v14, 1  ;;  %v3961_v18 = vsel %vm3756_vm0, %v12947_v11, %v3960_v26 }
 0x1fa   : > { %v2514_v41 = vrot.slane %v2513_v5, 1  ;;  %v2520_v31 = vmax.f32 %v2518_v17, %v2519_v10  ;;  %v4203_v29 = vsel %vm3754_vm15, %v12947_v11, %v4202_v49  ;;  %v13020_v48 = vpop.f32.mrb[18].mxu0  ;;  %v3962_v36 = vsel %vm3758_vm1, %v2389_v59, %v3961_v18 }
 0x1fb   : > { %v2527_v27 = vmax.f32 %v2525_v33, %v2526_v22  ;;  %v2534_v24 = vmax.f32 %v2532_v0, %v2533_v25  ;;  %v2396_v39 = vmax.f32 %v2394_v14, %v2395_v16  ;;  %v13023_v44 = vpop.f32.mrb[19].mxu0  ;;  %v4204_v17 = vsel %vm3756_vm0, %v2389_v59, %v4203_v29 }
 0x1fc   : > { %17709 = vst [vmem:[#allocation26_spill] sm:$0xff] %v13023_v44  ;;  %v13025_v2 = vmax.f32 %v2513_v5, %v2514_v41  ;;  %v2521_v42 = vrot.slane %v2520_v31, 1  ;;  %v3757_v46 = vsel %vm3756_vm0, %v12836_v56, %v12866_v35  ;;  %v1155_v26 = vadd.f32 %v12880_v1, %v12810_v60 }
 0x1fd   : > { %v2528_v10 = vrot.slane %v2527_v27, 1  ;;  %v2535_v57 = vrot.slane %v2534_v24, 1  ;;  %v3763_v33 = vsel %vm3762_vm13, %v12902_v51, %v2396_v39  ;;  %v3963_v0 = vsel %vm3760_vm3, %v2396_v39, %v3962_v36 }
 0x1fe   : > { %v13034_v14 = vmax.f32 %v2520_v31, %v2521_v42  ;;  %v3764_v5 = vsel %vm3750_vm12, %v12906_v61, %v3763_v33  ;;  %v4205_v49 = vsel %vm3758_vm1, %v2396_v39, %v4204_v17  ;;  %4111 = vrot.lane.b32.xlu0 %v3963_v0, %s12090_s18  ;;  %v3759_v56 = vsel %vm3758_vm1, %v12947_v11, %v3757_v46 }
 0x1ff   : > { %v13042_v35 = vmax.f32 %v2527_v27, %v2528_v10  ;;  %v13044_v22 = vmax.f32 %v2534_v24, %v2535_v57  ;;  %v13048_v25 = vsel %vm3752_vm14, %v12904_v52, %v3764_v5  ;;  %v4206_v16 = vsel %vm3760_vm3, %v12902_v51, %v4205_v49 }
 0x200   : > { %17711 = vst [vmem:[#allocation28_spill] sm:$0xff] %v13048_v25  ;;  %v13055_v61 = vsel %vm3762_vm13, %v13034_v14, %v13025_v2  ;;  %4375 = vst.msk [vmem:[#allocation3 + $0x8] sm:$0xff] %vm3934_vm4, %v4206_v16  ;;  %v13059_v11 = vsel %vm3760_vm3, %v2389_v59, %v3759_v56  ;;  %v1150_v41 = vadd.f32 %v12810_v60, %v12886_v6  ;;  %v17713_v31 = vrot.slane %v12882_v3, 1 }
 0x201   : > { %17710 = vst [vmem:[#allocation27_spill] sm:$0xff] %v13044_v22  ;;  %17712 = vst [vmem:[#allocation29_spill] sm:$0xff] %v13059_v11  ;;  %v4221_v51 = vsel %vm3762_vm13, %v13042_v35, %v13034_v14  ;;  %v2444_v29 = vrot.slane %v12884_v4, 1  ;;  %v2449_v59 = vrot.slane %v12876_v53, 2  ;;  %v1337_v1 = vmax.f32 %v1155_v26, 0.0 }
 0x202   : > { %v13071_v18 = vmax.f32 %v12882_v3, %v17713_v31  ;;  %v13077_v27 = vsel %vm3750_vm12, %v13044_v22, %v4221_v51  ;;  %v1336_v24 = vmax.f32 %v1150_v41, 0.0  ;;  %v3965_v6 = vsel %vm3750_vm12, %v12904_v52, %v12914_v15  ;;  %v13093_v33 = vpop.f32.mrb[20].mxu0 }
 0x203   : > { %v13083_v39 = vmax.f32 %v12884_v4, %v2444_v29  ;;  %v2450_v3 = vmax.f32 %v12876_v53, %v2449_v59  ;;  %v3966_v36 = vsel %vm3752_vm14, %v12909_v7, %v3965_v6  ;;  %v4209_v42 = vsel %vm3752_vm14, %v12888_v13, %v12921_v20  ;;  %17716 = vst [vmem:[#allocation32_spill] sm:$0xff] %v13093_v33 }
 0x204   : > { %17714 = vst [vmem:[#allocation30_spill] sm:$0xff] %v13071_v18  ;;  %v1569_v17 = vcombine.high %v1337_v1, %v1337_v1  ;;  %v1576_v46 = vrot.slane %v1337_v1, %v12814_v63  ;;  %v1552_v10 = vcombine.high %v1336_v24, %v1336_v24  ;;  %v1559_v57 = vrot.slane %v1336_v24, %v12814_v63 }
 0x205   : > { %17715 = vst [vmem:[#allocation31_spill] sm:$0xff] %v13083_v39  ;;  %v2451_v52 = vrot.slane %v2450_v3, 1  ;;  %v3967_v4 = vsel %vm3754_vm15, %v12888_v13, %v3966_v36  ;;  %v4210_v53 = vsel %vm3754_vm15, %v13071_v18, %v4209_v42  ;;  %v1165_v15 = vadd.f32 %v12896_v43, %v12810_v60 }
 0x206   : > { %v1583_v20 = vrot.slane %v1569_v17, %v12814_v63  ;;  %v1584_v0 = vcombine.high %v1576_v46, %v1576_v46  ;;  %v2593_v5 = vsel %vm2340_vm11, %v1576_v46, -inf  ;;  %v1566_v49 = vrot.slane %v1552_v10, %v12814_v63 }
 0x207   : > { %v2594_v56 = vrot.slane %v2593_v5, 4  ;;  %v1567_v16 = vcombine.high %v1559_v57, %v1559_v57  ;;  %v2565_v26 = vsel %vm2340_vm11, %v1559_v57, -inf  ;;  %v2452_v41 = vmax.f32 %v2450_v3, %v2451_v52  ;;  %v4400_v51 = vld [vmem:[#allocation3 + $0x8] sm:$0xff] }
 0x208   : > { %v1585_v31 = vcombine.high %v1583_v20, %v1583_v20  ;;  %v2600_v29 = vsel %vm2340_vm11, %v1584_v0, -inf  ;;  %v2607_v59 = vsel %vm2340_vm11, %v1583_v20, -inf  ;;  %v1568_v1 = vcombine.high %v1566_v49, %v1566_v49  ;;  %11458 = vmatprep.mubr.msk.f32.mxu1 %vm3934_vm4, %v4400_v51  ;;  %v13112_v20 = vpop.f32.mrb[21].mxu0 }
 0x209   : > { %v2595_v43 = vmax.f32 %v2593_v5, %v2594_v56  ;;  %v2601_v24 = vrot.slane %v2600_v29, 4  ;;  %v2608_v6 = vrot.slane %v2607_v59, 4  ;;  %v2566_v36 = vrot.slane %v2565_v26, 4 }
 0x20a   : > { %v2614_v42 = vsel %vm2340_vm11, %v1585_v31, -inf  ;;  %v2572_v17 = vsel %vm2340_vm11, %v1567_v16, -inf  ;;  %v2579_v46 = vsel %vm2340_vm11, %v1566_v49, -inf  ;;  %v2586_v3 = vsel %vm2340_vm11, %v1568_v1, -inf }
 0x20b   : > { %v2596_v10 = vrot.slane %v2595_v43, 2  ;;  %v2602_v57 = vmax.f32 %v2600_v29, %v2601_v24  ;;  %v2609_v52 = vmax.f32 %v2607_v59, %v2608_v6  ;;  %v2615_v0 = vrot.slane %v2614_v42, 4 }
 0x20c   : > { %v2567_v34 = vmax.f32 %v2565_v26, %v2566_v36  ;;  %v2573_v51 = vrot.slane %v2572_v17, 4  ;;  %v2580_v5 = vrot.slane %v2579_v46, 4  ;;  %v2587_v56 = vrot.slane %v2586_v3, 4 }
 0x20d   : > { %v2597_v13 = vmax.f32 %v2595_v43, %v2596_v10  ;;  %v2603_v7 = vrot.slane %v2602_v57, 2  ;;  %v2610_v25 = vrot.slane %v2609_v52, 2  ;;  %v13114_v31 = vmax.f32 %v2614_v42, %v2615_v0 }
 0x20e   : > { %v2568_v16 = vrot.slane %v2567_v34, 2  ;;  %v2574_v11 = vmax.f32 %v2572_v17, %v2573_v51  ;;  %v2581_v49 = vmax.f32 %v2579_v46, %v2580_v5  ;;  %v2588_v33 = vmax.f32 %v2586_v3, %v2587_v56 }
 0x20f   : > { %v2598_v1 = vrot.slane %v2597_v13, 1  ;;  %v13116_v44 = vmax.f32 %v2602_v57, %v2603_v7  ;;  %v13118_v29 = vmax.f32 %v2609_v52, %v2610_v25  ;;  %v3770_v26 = vsel %vm3762_vm13, %v12959_v62, %v2452_v41 }
 0x210   : > { %v2569_v59 = vmax.f32 %v2567_v34, %v2568_v16  ;;  %v2575_v24 = vrot.slane %v2574_v11, 2  ;;  %v2582_v6 = vrot.slane %v2581_v49, 2  ;;  %v2589_v43 = vrot.slane %v2588_v33, 2 }
 0x211   : > { %v13122_v36 = vmax.f32 %v2597_v13, %v2598_v1  ;;  %v3771_v17 = vsel %vm3750_vm12, %v12961_v12, %v3770_v26  ;;  %v3968_v7 = vsel %vm3756_vm0, %v13071_v18, %v3967_v4  ;;  %v4211_v57 = vsel %vm3756_vm0, %v13083_v39, %v4210_v53 }
 0x212   : > { %v2570_v46 = vrot.slane %v2569_v59, 1  ;;  %v2576_v25 = vmax.f32 %v2574_v11, %v2575_v24  ;;  %v2583_v3 = vmax.f32 %v2581_v49, %v2582_v6  ;;  %v2590_v10 = vmax.f32 %v2588_v33, %v2589_v43 }
 0x213   : > { %17717 = vst [vmem:[#allocation33_spill] sm:$0xff] %v13122_v36  ;;  %v13131_v34 = vsel %vm3752_vm14, %v12963_v9, %v3771_v17  ;;  %v3969_v13 = vsel %vm3758_vm1, %v13083_v39, %v3968_v7  ;;  %v1339_v52 = vmax.f32 %v1165_v15, 0.0  ;;  %v4212_v33 = vsel %vm3758_vm1, %v2452_v41, %v4211_v57 }
 0x214   : > { %17718 = vst [vmem:[#allocation34_spill] sm:$0xff] %v13131_v34  ;;  %v13137_v0 = vmax.f32 %v2569_v59, %v2570_v46  ;;  %v2577_v12 = vrot.slane %v2576_v25, 1  ;;  %v2584_v51 = vrot.slane %v2583_v3, 1  ;;  %v2591_v4 = vrot.slane %v2590_v10, 1 }
 0x215   : > { %v3970_v11 = vsel %vm3760_vm3, %v2452_v41, %v3969_v13  ;;  %v1603_v5 = vcombine.high %v1339_v52, %v1339_v52  ;;  %v1610_v56 = vrot.slane %v1339_v52, %v12814_v63  ;;  %v4213_v53 = vsel %vm3760_vm3, %v12959_v62, %v4212_v33  ;;  %v13175_v52 = vpop.f32.mrb[22].mxu0 }
 0x216   : > { %v13142_v16 = vmax.f32 %v2576_v25, %v2577_v12  ;;  %v13144_v49 = vmax.f32 %v2583_v3, %v2584_v51  ;;  %v13146_v1 = vmax.f32 %v2590_v10, %v2591_v4  ;;  %4113 = vrot.lane.b32.xlu1 %v3970_v11, %s12090_s18  ;;  %4376 = vst.msk [vmem:[#allocation3 + $0x18] sm:$0xff] %vm3934_vm4, %v4213_v53  ;;  %v17720_v43 = vrot.slane %v12927_v8, 1  ;;  %v13183_v11 = vpop.f32.mrb[23].mxu0 }
 0x217   : > { %v1617_v15 = vrot.slane %v1603_v5, %v12814_v63  ;;  %v1618_v26 = vcombine.high %v1610_v56, %v1610_v56  ;;  %v2649_v41 = vsel %vm2340_vm11, %v1610_v56, -inf  ;;  %v1160_v59 = vadd.f32 %v12810_v60, %v12900_v50 }
 0x218   : > { %17719 = vst [vmem:[#allocation35_spill] sm:$0xff] %v13146_v1  ;;  %v13159_v24 = vsel %vm3762_vm13, %v13142_v16, %v13137_v0  ;;  %v4228_v62 = vsel %vm3762_vm13, %v13144_v49, %v13142_v16  ;;  %v2650_v6 = vrot.slane %v2649_v41, 4  ;;  %v13167_v17 = vmax.f32 %v12927_v8, %v17720_v43 }
 0x219   : > { %v13171_v7 = vsel %vm3750_vm12, %v13146_v1, %v4228_v62  ;;  %v1619_v50 = vcombine.high %v1617_v15, %v1617_v15  ;;  %v2656_v46 = vsel %vm2340_vm11, %v1618_v26, -inf  ;;  %v2663_v25 = vsel %vm2340_vm11, %v1617_v15, -inf }
 0x21a   : > { %17721 = vst [vmem:[#allocation36_spill] sm:$0xff] %v13167_v17  ;;  %v2651_v3 = vmax.f32 %v2649_v41, %v2650_v6  ;;  %v2657_v10 = vrot.slane %v2656_v46, 4  ;;  %v2664_v13 = vrot.slane %v2663_v25, 4  ;;  %v1338_v57 = vmax.f32 %v1160_v59, 0.0 }
 0x21b   : > { %v2670_v12 = vsel %vm2340_vm11, %v1619_v50, -inf  ;;  %v2500_v8 = vrot.slane %v12932_v40, 1  ;;  %v2505_v51 = vrot.slane %v12923_v23, 2  ;;  %v3972_v4 = vsel %vm3750_vm12, %v12963_v9, %v12972_v30 }
 0x21c   : > { %v2652_v33 = vrot.slane %v2651_v3, 2  ;;  %v2658_v5 = vmax.f32 %v2656_v46, %v2657_v10  ;;  %v2665_v56 = vmax.f32 %v2663_v25, %v2664_v13  ;;  %v2671_v53 = vrot.slane %v2670_v12, 4 }
 0x21d   : > { %v1586_v15 = vcombine.high %v1338_v57, %v1338_v57  ;;  %v1593_v26 = vrot.slane %v1338_v57, %v12814_v63  ;;  %v13187_v41 = vmax.f32 %v12932_v40, %v2500_v8  ;;  %v2506_v59 = vmax.f32 %v12923_v23, %v2505_v51 }
 0x21e   : > { %v2653_v62 = vmax.f32 %v2651_v3, %v2652_v33  ;;  %v2659_v6 = vrot.slane %v2658_v5, 2  ;;  %v2666_v43 = vrot.slane %v2665_v56, 2  ;;  %v13190_v50 = vmax.f32 %v2670_v12, %v2671_v53 }
 0x21f   : > { %17722 = vst [vmem:[#allocation37_spill] sm:$0xff] %v13187_v41  ;;  %v1600_v9 = vrot.slane %v1586_v15, %v12814_v63  ;;  %v1601_v30 = vcombine.high %v1593_v26, %v1593_v26  ;;  %v2621_v46 = vsel %vm2340_vm11, %v1593_v26, -inf  ;;  %v2507_v25 = vrot.slane %v2506_v59, 1 }
 0x220   : > { %v2654_v10 = vrot.slane %v2653_v62, 1  ;;  %v13194_v13 = vmax.f32 %v2658_v5, %v2659_v6  ;;  %v13196_v57 = vmax.f32 %v2665_v56, %v2666_v43  ;;  %v2622_v40 = vrot.slane %v2621_v46, 4 }
 0x221   : > { %v1602_v8 = vcombine.high %v1600_v9, %v1600_v9  ;;  %v2628_v23 = vsel %vm2340_vm11, %v1601_v30, -inf  ;;  %v2635_v3 = vsel %vm2340_vm11, %v1600_v9, -inf  ;;  %v2508_v51 = vmax.f32 %v2506_v59, %v2507_v25 }
 0x222   : > { %v13200_v12 = vmax.f32 %v2653_v62, %v2654_v10  ;;  %v2623_v53 = vmax.f32 %v2621_v46, %v2622_v40  ;;  %v2629_v15 = vrot.slane %v2628_v23, 4  ;;  %v2636_v26 = vrot.slane %v2635_v3, 4 }
 0x223   : > { %v2642_v42 = vsel %vm2340_vm11, %v1602_v8, -inf  ;;  %v3777_v5 = vsel %vm3762_vm13, %v13025_v2, %v2508_v51  ;;  %v3973_v56 = vsel %vm3752_vm14, %v12967_v19, %v3972_v4  ;;  %v4216_v25 = vsel %vm3752_vm14, %v12938_v55, %v12981_v37 }
 0x224   : > { %17723 = vst [vmem:[#allocation38_spill] sm:$0xff] %v13200_v12  ;;  %v2624_v6 = vrot.slane %v2623_v53, 2  ;;  %v2630_v43 = vmax.f32 %v2628_v23, %v2629_v15  ;;  %v2643_v30 = vrot.slane %v2642_v42, 4  ;;  %v3778_v59 = vsel %vm3750_vm12, %v13034_v14, %v3777_v5 }
 0x225   : > { %v2637_v62 = vmax.f32 %v2635_v3, %v2636_v26  ;;  %v13212_v9 = vsel %vm3752_vm14, %v13042_v35, %v3778_v59  ;;  %v3974_v46 = vsel %vm3754_vm15, %v12938_v55, %v3973_v56  ;;  %v4217_v3 = vsel %vm3754_vm15, %v13167_v17, %v4216_v25 }
 0x226   : > { %17724 = vst [vmem:[#allocation39_spill] sm:$0xff] %v13212_v9  ;;  %v2625_v10 = vmax.f32 %v2623_v53, %v2624_v6  ;;  %v2631_v4 = vrot.slane %v2630_v43, 2  ;;  %v2644_v40 = vmax.f32 %v2642_v42, %v2643_v30  ;;  %v3975_v8 = vsel %vm3756_vm0, %v13167_v17, %v3974_v46 }
 0x227   : > { %v2638_v23 = vrot.slane %v2637_v62, 2  ;;  %v3976_v14 = vsel %vm3758_vm1, %v13187_v41, %v3975_v8  ;;  %v1175_v15 = vadd.f32 %v12930_v38, %v12810_v60  ;;  %v4218_v42 = vsel %vm3756_vm0, %v13187_v41, %v4217_v3 }
 0x228   : > { %v2626_v26 = vrot.slane %v2625_v10, 1  ;;  %v2632_v5 = vmax.f32 %v2630_v43, %v2631_v4  ;;  %v2645_v56 = vrot.slane %v2644_v40, 2  ;;  %v3977_v37 = vsel %vm3760_vm3, %v2508_v51, %v3976_v14 }
 0x229   : > { %v2639_v53 = vmax.f32 %v2637_v62, %v2638_v23  ;;  %4115 = vrot.lane.b32.xlu0 %v3977_v37, %s12090_s18  ;;  %v1341_v6 = vmax.f32 %v1175_v15, 0.0  ;;  %v1170_v30 = vadd.f32 %v12810_v60, %v12935_v45  ;;  %v4219_v38 = vsel %vm3758_vm1, %v2508_v51, %v4218_v42 }
 0x22a   : > { %v13233_v59 = vmax.f32 %v2625_v10, %v2626_v26  ;;  %v2633_v46 = vrot.slane %v2632_v5, 1  ;;  %v2646_v25 = vmax.f32 %v2644_v40, %v2645_v56  ;;  %v4220_v4 = vsel %vm3760_vm3, %v13025_v2, %v4219_v38 }
 0x22b   : > { %v2640_v43 = vrot.slane %v2639_v53, 1  ;;  %v1637_v62 = vcombine.high %v1341_v6, %v1341_v6  ;;  %v1644_v8 = vrot.slane %v1341_v6, %v12814_v63  ;;  %4377 = vst.msk [vmem:[#allocation3 + $0x28] sm:$0xff] %vm3934_vm4, %v4220_v4  ;;  %v1340_v3 = vmax.f32 %v1170_v30, 0.0 }
 0x22c   : > { %v13239_v23 = vmax.f32 %v2632_v5, %v2633_v46  ;;  %v2647_v14 = vrot.slane %v2646_v25, 1  ;;  %v17725_v60 = vrot.slane %v12993_v21, 1 }
 0x22d   : > { %v13247_v10 = vmax.f32 %v2639_v53, %v2640_v43  ;;  %v1651_v51 = vrot.slane %v1637_v62, %v12814_v63  ;;  %v1652_v40 = vcombine.high %v1644_v8, %v1644_v8  ;;  %v2705_v2 = vsel %vm2340_vm11, %v1644_v8, -inf }
 0x22e   : > { %v13245_v45 = vmax.f32 %v12993_v21, %v17725_v60  ;;  %v13251_v15 = vmax.f32 %v2646_v25, %v2647_v14  ;;  %v13256_v26 = vsel %vm3762_vm13, %v13239_v23, %v13233_v59  ;;  %v2706_v5 = vrot.slane %v2705_v2, 4 }
 0x22f   : > { %v1620_v56 = vcombine.high %v1340_v3, %v1340_v3  ;;  %v4235_v21 = vsel %vm3762_vm13, %v13247_v10, %v13239_v23  ;;  %v1653_v37 = vcombine.high %v1651_v51, %v1651_v51  ;;  %v2712_v53 = vsel %vm2340_vm11, %v1652_v40, -inf }
 0x230   : > { %17726 = vst [vmem:[#allocation40_spill] sm:$0xff] %v13245_v45  ;;  %17727 = vst [vmem:[#allocation41_spill] sm:$0xff] %v13251_v15  ;;  %v2719_v42 = vsel %vm2340_vm11, %v1651_v51, -inf  ;;  %v13265_v6 = vsel %vm3750_vm12, %v13251_v15, %v4235_v21  ;;  %v2707_v30 = vmax.f32 %v2705_v2, %v2706_v5  ;;  %v2713_v46 = vrot.slane %v2712_v53, 4  ;;  %v13271_v51 = vpop.f32.mrb[24].mxu0 }
 0x231   : > { %v2720_v25 = vrot.slane %v2719_v42, 4  ;;  %v2726_v38 = vsel %vm2340_vm11, %v1653_v37, -inf  ;;  %v1627_v43 = vrot.slane %v1340_v3, %v12814_v63  ;;  %v1634_v4 = vrot.slane %v1620_v56, %v12814_v63 }
 0x232   : > { %v2556_v62 = vrot.slane %v12995_v32, 1  ;;  %v2708_v8 = vrot.slane %v2707_v30, 2  ;;  %v2714_v14 = vmax.f32 %v2712_v53, %v2713_v46  ;;  %v2727_v40 = vrot.slane %v2726_v38, 4 }
 0x233   : > { %v2721_v60 = vmax.f32 %v2719_v42, %v2720_v25  ;;  %v1635_v33 = vcombine.high %v1627_v43, %v1627_v43  ;;  %v1636_v21 = vcombine.high %v1634_v4, %v1634_v4  ;;  %v2677_v2 = vsel %vm2340_vm11, %v1627_v43, -inf  ;;  %v13279_v42 = vpop.f32.mrb[25].mxu0 }
 0x234   : > { %v2691_v5 = vsel %vm2340_vm11, %v1634_v4, -inf  ;;  %v2709_v9 = vmax.f32 %v2707_v30, %v2708_v8  ;;  %v2715_v37 = vrot.slane %v2714_v14, 2  ;;  %v13275_v3 = vmax.f32 %v2726_v38, %v2727_v40  ;;  %17728 = vst [vmem:[#allocation42_spill] sm:$0xff] %v13279_v42 }
 0x235   : > { %v2722_v41 = vrot.slane %v2721_v60, 2  ;;  %v2678_v56 = vrot.slane %v2677_v2, 4  ;;  %v2684_v17 = vsel %vm2340_vm11, %v1635_v33, -inf  ;;  %v2692_v55 = vrot.slane %v2691_v5, 4 }
 0x236   : > { %v2698_v53 = vsel %vm2340_vm11, %v1636_v21, -inf  ;;  %v2710_v46 = vrot.slane %v2709_v9, 1  ;;  %v13281_v25 = vmax.f32 %v2714_v14, %v2715_v37  ;;  %v2685_v43 = vrot.slane %v2684_v17, 4 }
 0x237   : > { %v13283_v19 = vmax.f32 %v2721_v60, %v2722_v41  ;;  %v2679_v4 = vmax.f32 %v2677_v2, %v2678_v56  ;;  %v2693_v30 = vmax.f32 %v2691_v5, %v2692_v55  ;;  %v2699_v8 = vrot.slane %v2698_v53, 4 }
 0x238   : > { %v13286_v38 = vmax.f32 %v12995_v32, %v2556_v62  ;;  %v13288_v40 = vmax.f32 %v2709_v9, %v2710_v46  ;;  %v2686_v34 = vmax.f32 %v2684_v17, %v2685_v43  ;;  %v2561_v21 = vrot.slane %v12984_v28, 2 }
 0x239   : > { %v2680_v39 = vrot.slane %v2679_v4, 2  ;;  %v2694_v18 = vrot.slane %v2693_v30, 2  ;;  %v2700_v14 = vmax.f32 %v2698_v53, %v2699_v8  ;;  %v3979_v41 = vsel %vm3750_vm12, %v13042_v35, %v13055_v61 }
 0x23a   : > { %17729 = vst [vmem:[#allocation43_spill] sm:$0xff] %v13286_v38  ;;  %17730 = vst [vmem:[#allocation44_spill] sm:$0xff] %v13288_v40  ;;  %v2687_v60 = vrot.slane %v2686_v34, 2  ;;  %v2562_v55 = vmax.f32 %v12984_v28, %v2561_v21  ;;  %v3980_v32 = vsel %vm3752_vm14, %v13044_v22, %v3979_v41  ;;  %v4223_v9 = vsel %vm3752_vm14, %v13000_v47, %v13077_v27 }
 0x23b   : > { %v2681_v17 = vmax.f32 %v2679_v4, %v2680_v39  ;;  %v2695_v62 = vmax.f32 %v2693_v30, %v2694_v18  ;;  %v2701_v2 = vrot.slane %v2700_v14, 2  ;;  %v3981_v5 = vsel %vm3754_vm15, %v13000_v47, %v3980_v32 }
 0x23c   : > { %v2688_v37 = vmax.f32 %v2686_v34, %v2687_v60  ;;  %v2563_v56 = vrot.slane %v2562_v55, 1  ;;  %v3982_v35 = vsel %vm3756_vm0, %v13245_v45, %v3981_v5  ;;  %v4224_v28 = vsel %vm3754_vm15, %v13245_v45, %v4223_v9  ;;  %v13314_v34 = vld [vmem:[%s17535_s2] ss:$0 sm:$0xff] }
 0x23d   : > { %v2682_v61 = vrot.slane %v2681_v17, 1  ;;  %v2696_v53 = vrot.slane %v2695_v62, 1  ;;  %v2702_v46 = vmax.f32 %v2700_v14, %v2701_v2  ;;  %v3983_v27 = vsel %vm3758_vm1, %v13286_v38, %v3982_v35 }
 0x23e   : > { %v2689_v39 = vrot.slane %v2688_v37, 1  ;;  %v2564_v18 = vmax.f32 %v2562_v55, %v2563_v56  ;;  %v4225_v43 = vsel %vm3756_vm0, %v13286_v38, %v4224_v28  ;;  %v1185_v4 = vadd.f32 %v13314_v34, %v12953_v58 }
 0x23f   : > { %v13318_v30 = vmax.f32 %v2681_v17, %v2682_v61  ;;  %v13320_v8 = vmax.f32 %v2695_v62, %v2696_v53  ;;  %v2703_v21 = vrot.slane %v2702_v46, 1  ;;  %v1180_v14 = vadd.f32 %v13314_v34, %v12957_v54 }
 0x240   : > { %v13324_v41 = vmax.f32 %v2688_v37, %v2689_v39  ;;  %v3784_v60 = vsel %vm3762_vm13, %v13137_v0, %v2564_v18  ;;  %v3984_v55 = vsel %vm3760_vm3, %v2564_v18, %v3983_v27  ;;  %v4226_v32 = vsel %vm3758_vm1, %v2564_v18, %v4225_v43 }
 0x241   : > { %v13330_v9 = vmax.f32 %v2702_v46, %v2703_v21  ;;  %v3785_v58 = vsel %vm3750_vm12, %v13142_v16, %v3784_v60  ;;  %v4227_v17 = vsel %vm3760_vm3, %v13137_v0, %v4226_v32  ;;  %4117 = vrot.lane.b32.xlu1 %v3984_v55, %s12090_s18  ;;  %v1343_v54 = vmax.f32 %v1185_v4, 0.0 }
 0x242   : > { %v13340_v62 = vsel %vm3762_vm13, %v13324_v41, %v13318_v30  ;;  %v4242_v2 = vsel %vm3762_vm13, %v13320_v8, %v13324_v41  ;;  %v13347_v5 = vsel %vm3752_vm14, %v13144_v49, %v3785_v58  ;;  %4378 = vst.msk [vmem:[#allocation3 + $0x38] sm:$0xff] %vm3934_vm4, %v4227_v17  ;;  %v1342_v16 = vmax.f32 %v1180_v14, 0.0 }
 0x243   : > { %17731 = vst [vmem:[#allocation45_spill] sm:$0xff] %v13330_v9  ;;  %17732 = vst [vmem:[#allocation46_spill] sm:$0xff] %v13347_v5  ;;  %v13352_v0 = vsel %vm3750_vm12, %v13330_v9, %v4242_v2  ;;  %v1671_v37 = vcombine.high %v1343_v54, %v1343_v54  ;;  %v1678_v56 = vrot.slane %v1343_v54, %v12814_v63  ;;  %v17733_v35 = vrot.slane %v13116_v44, 1 }
 0x244   : > { %v1654_v61 = vcombine.high %v1342_v16, %v1342_v16  ;;  %v1661_v53 = vrot.slane %v1342_v16, %v12814_v63  ;;  %v2612_v46 = vrot.slane %v13118_v29, 1  ;;  %v2617_v27 = vrot.slane %v13114_v31, 2 }
 0x245   : > { %v13358_v28 = vmax.f32 %v13116_v44, %v17733_v35  ;;  %v1685_v39 = vrot.slane %v1671_v37, %v12814_v63  ;;  %v1686_v18 = vcombine.high %v1678_v56, %v1678_v56  ;;  %v2761_v43 = vsel %vm2340_vm11, %v1678_v56, -inf  ;;  %v13372_v56 = vpop.f32.mrb[26].mxu0 }
 0x246   : > { %v3986_v4 = vsel %vm3750_vm12, %v13144_v49, %v13159_v24  ;;  %v2762_v21 = vrot.slane %v2761_v43, 4  ;;  %v1668_v44 = vrot.slane %v1654_v61, %v12814_v63  ;;  %v1669_v14 = vcombine.high %v1661_v53, %v1661_v53  ;;  %17735 = vst [vmem:[#allocation48_spill] sm:$0xff] %v13372_v56 }
 0x247   : > { %17734 = vst [vmem:[#allocation47_spill] sm:$0xff] %v13358_v28  ;;  %v2733_v60 = vsel %vm2340_vm11, %v1661_v53, -inf  ;;  %v1687_v55 = vcombine.high %v1685_v39, %v1685_v39  ;;  %v2768_v32 = vsel %vm2340_vm11, %v1686_v18, -inf  ;;  %v2775_v58 = vsel %vm2340_vm11, %v1685_v39, -inf  ;;  %v13377_v53 = vpop.f32.mrb[27].mxu0 }
 0x248   : > { %v2734_v17 = vrot.slane %v2733_v60, 4  ;;  %v2763_v54 = vmax.f32 %v2761_v43, %v2762_v21  ;;  %v2769_v2 = vrot.slane %v2768_v32, 4  ;;  %v2776_v16 = vrot.slane %v2775_v58, 4  ;;  %17736 = vst [vmem:[#allocation49_spill] sm:$0xff] %v13377_v53 }
 0x249   : > { %v1670_v37 = vcombine.high %v1668_v44, %v1668_v44  ;;  %v2782_v49 = vsel %vm2340_vm11, %v1687_v55, -inf  ;;  %v2740_v35 = vsel %vm2340_vm11, %v1669_v14, -inf  ;;  %v2747_v61 = vsel %vm2340_vm11, %v1668_v44, -inf }
 0x24a   : > { %v2735_v24 = vmax.f32 %v2733_v60, %v2734_v17  ;;  %v2764_v33 = vrot.slane %v2763_v54, 2  ;;  %v2770_v18 = vmax.f32 %v2768_v32, %v2769_v2  ;;  %v2777_v5 = vmax.f32 %v2775_v58, %v2776_v16 }
 0x24b   : > { %v2783_v39 = vrot.slane %v2782_v49, 4  ;;  %v2741_v43 = vrot.slane %v2740_v35, 4  ;;  %v2748_v21 = vrot.slane %v2747_v61, 4  ;;  %v2754_v45 = vsel %vm2340_vm11, %v1670_v37, -inf }
 0x24c   : > { %v2736_v38 = vrot.slane %v2735_v24, 2  ;;  %v2765_v47 = vmax.f32 %v2763_v54, %v2764_v33  ;;  %v2771_v22 = vrot.slane %v2770_v18, 2  ;;  %v2778_v56 = vrot.slane %v2777_v5, 2 }
 0x24d   : > { %v13380_v55 = vmax.f32 %v2782_v49, %v2783_v39  ;;  %v2742_v14 = vmax.f32 %v2740_v35, %v2741_v43  ;;  %v2749_v17 = vmax.f32 %v2747_v61, %v2748_v21  ;;  %v2755_v44 = vrot.slane %v2754_v45, 4 }
 0x24e   : > { %v2737_v60 = vmax.f32 %v2735_v24, %v2736_v38  ;;  %v2766_v42 = vrot.slane %v2765_v47, 1  ;;  %v13382_v53 = vmax.f32 %v2770_v18, %v2771_v22  ;;  %v13384_v32 = vmax.f32 %v2777_v5, %v2778_v56 }
 0x24f   : > { %v13387_v58 = vmax.f32 %v13118_v29, %v2612_v46  ;;  %v2743_v16 = vrot.slane %v2742_v14, 2  ;;  %v2750_v37 = vrot.slane %v2749_v17, 2  ;;  %v2756_v33 = vmax.f32 %v2754_v45, %v2755_v44  ;;  %v17739_v45 = vld [vmem:[#allocation23_spill] sm:$0xff] }
 0x250   : > { %v2738_v2 = vrot.slane %v2737_v60, 1  ;;  %v13389_v54 = vmax.f32 %v2765_v47, %v2766_v42  ;;  %v2618_v38 = vmax.f32 %v13114_v31, %v2617_v27  ;;  %v3987_v24 = vsel %vm3752_vm14, %v13146_v1, %v3986_v4 }
 0x251   : > { %17737 = vst [vmem:[#allocation50_spill] sm:$0xff] %v13387_v58  ;;  %v2744_v5 = vmax.f32 %v2742_v14, %v2743_v16  ;;  %v2751_v56 = vmax.f32 %v2749_v17, %v2750_v37  ;;  %v2757_v35 = vrot.slane %v2756_v33, 2  ;;  %v3988_v46 = vsel %vm3754_vm15, %v13122_v36, %v3987_v24 }
 0x252   : > { %17738 = vst [vmem:[#allocation51_spill] sm:$0xff] %v13389_v54  ;;  %v13395_v22 = vmax.f32 %v2737_v60, %v2738_v2  ;;  %v2619_v29 = vrot.slane %v2618_v38, 1  ;;  %v4230_v47 = vsel %vm3752_vm14, %v13122_v36, %v13171_v7  ;;  %v1195_v42 = vadd.f32 %v13314_v34, %v17739_v45 }
 0x253   : > { %v2745_v31 = vrot.slane %v2744_v5, 1  ;;  %v2752_v27 = vrot.slane %v2751_v56, 1  ;;  %v2758_v61 = vmax.f32 %v2756_v33, %v2757_v35  ;;  %v3989_v4 = vsel %vm3756_vm0, %v13358_v28, %v3988_v46 }
 0x254   : > { %v2620_v18 = vmax.f32 %v2618_v38, %v2619_v29  ;;  %v3990_v39 = vsel %vm3758_vm1, %v13387_v58, %v3989_v4  ;;  %v4231_v43 = vsel %vm3754_vm15, %v13358_v28, %v4230_v47  ;;  %v1345_v21 = vmax.f32 %v1195_v42, 0.0 }
 0x255   : > { %v13410_v60 = vmax.f32 %v2744_v5, %v2745_v31  ;;  %v13412_v7 = vmax.f32 %v2751_v56, %v2752_v27  ;;  %v2759_v14 = vrot.slane %v2758_v61, 1  ;;  %v4232_v17 = vsel %vm3756_vm0, %v13387_v58, %v4231_v43 }
 0x256   : > { %v3791_v44 = vsel %vm3762_vm13, %v13233_v59, %v2620_v18  ;;  %v3991_v2 = vsel %vm3760_vm3, %v2620_v18, %v3990_v39  ;;  %v4233_v16 = vsel %vm3758_vm1, %v2620_v18, %v4232_v17  ;;  %v1705_v37 = vcombine.high %v1345_v21, %v1345_v21 }
 0x257   : > { %v13420_v33 = vmax.f32 %v2758_v61, %v2759_v14  ;;  %v13425_v38 = vsel %vm3762_vm13, %v13410_v60, %v13395_v22  ;;  %v4249_v24 = vsel %vm3762_vm13, %v13412_v7, %v13410_v60  ;;  %v3792_v5 = vsel %vm3750_vm12, %v13239_v23, %v3791_v44  ;;  %4119 = vrot.lane.b32.xlu0 %v3991_v2, %s12090_s18  ;;  %v17742_v23 = vld [vmem:[#allocation24_spill] sm:$0xff] }
 0x258   : > { %v13435_v56 = vsel %vm3752_vm14, %v13247_v10, %v3792_v5  ;;  %v4234_v35 = vsel %vm3760_vm3, %v13233_v59, %v4233_v16  ;;  %v1712_v29 = vrot.slane %v1345_v21, %v12814_v63  ;;  %v1719_v46 = vrot.slane %v1705_v37, %v12814_v63 }
 0x259   : > { %17740 = vst [vmem:[#allocation23_spill] sm:$0xff] %v13420_v33  ;;  %17741 = vst [vmem:[#allocation52_spill] sm:$0xff] %v13435_v56  ;;  %v13443_v47 = vsel %vm3750_vm12, %v13420_v33, %v4249_v24  ;;  %v1190_v45 = vadd.f32 %v13314_v34, %v17742_v23  ;;  %v17743_v42 = vrot.slane %v13194_v13, 1  ;;  %v2668_v59 = vrot.slane %v13196_v57, 1 }
 0x25a   : > { %4379 = vst.msk [vmem:[#allocation3 + $0x48] sm:$0xff] %vm3934_vm4, %v4234_v35  ;;  %v1720_v27 = vcombine.high %v1712_v29, %v1712_v29  ;;  %v1721_v61 = vcombine.high %v1719_v46, %v1719_v46  ;;  %v2817_v4 = vsel %vm2340_vm11, %v1712_v29, -inf  ;;  %v2831_v18 = vsel %vm2340_vm11, %v1719_v46, -inf }
 0x25b   : > { %v13451_v31 = vmax.f32 %v13194_v13, %v17743_v42  ;;  %v2818_v39 = vrot.slane %v2817_v4, 4  ;;  %v2832_v43 = vrot.slane %v2831_v18, 4  ;;  %v1344_v21 = vmax.f32 %v1190_v45, 0.0 }
 0x25c   : > { %v13457_v14 = vmax.f32 %v13196_v57, %v2668_v59  ;;  %v2824_v17 = vsel %vm2340_vm11, %v1720_v27, -inf  ;;  %v2838_v44 = vsel %vm2340_vm11, %v1721_v61, -inf  ;;  %v2673_v13 = vrot.slane %v13190_v50, 2  ;;  %v13471_v27 = vpop.f32.mrb[28].mxu0 }
 0x25d   : > { %17744 = vst [vmem:[#allocation24_spill] sm:$0xff] %v13451_v31  ;;  %v3993_v2 = vsel %vm3750_vm12, %v13247_v10, %v13256_v26  ;;  %v2819_v16 = vmax.f32 %v2817_v4, %v2818_v39  ;;  %v2825_v37 = vrot.slane %v2824_v17, 4  ;;  %v2833_v24 = vmax.f32 %v2831_v18, %v2832_v43  ;;  %v13475_v18 = vpop.f32.mrb[29].mxu0 }
 0x25e   : > { %17745 = vst [vmem:[#allocation53_spill] sm:$0xff] %v13457_v14  ;;  %v2839_v5 = vrot.slane %v2838_v44, 4  ;;  %v1688_v35 = vcombine.high %v1344_v21, %v1344_v21  ;;  %v1695_v29 = vrot.slane %v1344_v21, %v12814_v63  ;;  %v2674_v57 = vmax.f32 %v13190_v50, %v2673_v13 }
 0x25f   : > { %v3994_v46 = vsel %vm3752_vm14, %v13251_v15, %v3993_v2  ;;  %v2820_v23 = vrot.slane %v2819_v16, 2  ;;  %v2826_v45 = vmax.f32 %v2824_v17, %v2825_v37  ;;  %v2834_v42 = vrot.slane %v2833_v24, 2 }
 0x260   : > { %v13469_v59 = vmax.f32 %v2838_v44, %v2839_v5  ;;  %v1702_v10 = vrot.slane %v1688_v35, %v12814_v63  ;;  %v1703_v26 = vcombine.high %v1695_v29, %v1695_v29  ;;  %v2789_v61 = vsel %vm2340_vm11, %v1695_v29, -inf }
 0x261   : > { %v2675_v4 = vrot.slane %v2674_v57, 1  ;;  %v2821_v39 = vmax.f32 %v2819_v16, %v2820_v23  ;;  %v2827_v50 = vrot.slane %v2826_v45, 2  ;;  %v13477_v43 = vmax.f32 %v2833_v24, %v2834_v42 }
 0x262   : > { %v2790_v21 = vrot.slane %v2789_v61, 4  ;;  %v1704_v13 = vcombine.high %v1702_v10, %v1702_v10  ;;  %v2796_v17 = vsel %vm2340_vm11, %v1703_v26, -inf  ;;  %v2803_v44 = vsel %vm2340_vm11, %v1702_v10, -inf }
 0x263   : > { %v2676_v2 = vmax.f32 %v2674_v57, %v2675_v4  ;;  %v2822_v37 = vrot.slane %v2821_v39, 1  ;;  %v13481_v5 = vmax.f32 %v2826_v45, %v2827_v50  ;;  %v2797_v49 = vrot.slane %v2796_v17, 4 }
 0x264   : > { %v2791_v35 = vmax.f32 %v2789_v61, %v2790_v21  ;;  %v2804_v29 = vrot.slane %v2803_v44, 4  ;;  %v2810_v15 = vsel %vm2340_vm11, %v1704_v13, -inf  ;;  %v3995_v24 = vsel %vm3754_vm15, %v13200_v12, %v3994_v46 }
 0x265   : > { %v3798_v16 = vsel %vm3762_vm13, %v13318_v30, %v2676_v2  ;;  %v13488_v23 = vmax.f32 %v2821_v39, %v2822_v37  ;;  %v2798_v57 = vmax.f32 %v2796_v17, %v2797_v49  ;;  %v2811_v45 = vrot.slane %v2810_v15, 4 }
 0x266   : > { %v2792_v10 = vrot.slane %v2791_v35, 2  ;;  %v2805_v26 = vmax.f32 %v2803_v44, %v2804_v29  ;;  %v3799_v61 = vsel %vm3750_vm12, %v13324_v41, %v3798_v16  ;;  %v3996_v4 = vsel %vm3756_vm0, %v13451_v31, %v3995_v24 }
 0x267   : > { %17746 = vst [vmem:[#allocation54_spill] sm:$0xff] %v13488_v23  ;;  %v2799_v21 = vrot.slane %v2798_v57, 2  ;;  %v13497_v13 = vsel %vm3752_vm14, %v13320_v8, %v3799_v61  ;;  %v3997_v46 = vsel %vm3758_vm1, %v13457_v14, %v3996_v4  ;;  %v2812_v37 = vmax.f32 %v2810_v15, %v2811_v45 }
 0x268   : > { %v2793_v50 = vmax.f32 %v2791_v35, %v2792_v10  ;;  %17747 = vst [vmem:[#allocation55_spill] sm:$0xff] %v13497_v13  ;;  %v2806_v39 = vrot.slane %v2805_v26, 2  ;;  %v3998_v49 = vsel %vm3760_vm3, %v2676_v2, %v3997_v46  ;;  %v4237_v41 = vsel %vm3752_vm14, %v13200_v12, %v13265_v6  ;;  %v17748_v10 = vld [vmem:[#allocation26_spill] sm:$0xff] }
 0x269   : > { %v2800_v44 = vmax.f32 %v2798_v57, %v2799_v21  ;;  %v4238_v35 = vsel %vm3754_vm15, %v13451_v31, %v4237_v41  ;;  %4121 = vrot.lane.b32.xlu1 %v3998_v49, %s12090_s18  ;;  %v1205_v29 = vadd.f32 %v13314_v34, %v13020_v48  ;;  %v2813_v24 = vrot.slane %v2812_v37, 2 }
 0x26a   : > { %v2794_v17 = vrot.slane %v2793_v50, 1  ;;  %v2807_v16 = vmax.f32 %v2805_v26, %v2806_v39  ;;  %v4239_v15 = vsel %vm3756_vm0, %v13457_v14, %v4238_v35  ;;  %v1200_v45 = vadd.f32 %v13314_v34, %v17748_v10 }
 0x26b   : > { %v2801_v6 = vrot.slane %v2800_v44, 1  ;;  %v4240_v57 = vsel %vm3758_vm1, %v2676_v2, %v4239_v15  ;;  %v1347_v4 = vmax.f32 %v1205_v29, 0.0  ;;  %v2814_v46 = vmax.f32 %v2812_v37, %v2813_v24 }
 0x26c   : > { %v13514_v61 = vmax.f32 %v2793_v50, %v2794_v17  ;;  %v2808_v21 = vrot.slane %v2807_v16, 1  ;;  %v4241_v49 = vsel %vm3760_vm3, %v13318_v30, %v4240_v57  ;;  %v1346_v48 = vmax.f32 %v1200_v45, 0.0 }
 0x26d   : > { %v13519_v26 = vmax.f32 %v2800_v44, %v2801_v6  ;;  %4380 = vst.msk [vmem:[#allocation3 + $0x58] sm:$0xff] %vm3934_vm4, %v4241_v49  ;;  %v1739_v39 = vcombine.high %v1347_v4, %v1347_v4  ;;  %v1746_v41 = vrot.slane %v1347_v4, %v12814_v63  ;;  %v17749_v50 = vrot.slane %v13281_v25, 1 }
 0x26e   : > { %v13528_v2 = vmax.f32 %v2807_v16, %v2808_v21  ;;  %v2815_v35 = vrot.slane %v2814_v46, 1  ;;  %v1722_v37 = vcombine.high %v1346_v48, %v1346_v48  ;;  %v1729_v29 = vrot.slane %v1346_v48, %v12814_v63 }
 0x26f   : > { %v13526_v17 = vmax.f32 %v13281_v25, %v17749_v50  ;;  %v13534_v30 = vsel %vm3762_vm13, %v13519_v26, %v13514_v61  ;;  %v1753_v44 = vrot.slane %v1739_v39, %v12814_v63  ;;  %v1754_v24 = vcombine.high %v1746_v41, %v1746_v41 }
 0x270   : > { %v2873_v15 = vsel %vm2340_vm11, %v1746_v41, -inf  ;;  %v13538_v10 = vmax.f32 %v2814_v46, %v2815_v35  ;;  %v4256_v25 = vsel %vm3762_vm13, %v13528_v2, %v13519_v26  ;;  %v1736_v45 = vrot.slane %v1722_v37, %v12814_v63 }
 0x271   : > { %17750 = vst [vmem:[#allocation26_spill] sm:$0xff] %v13526_v17  ;;  %v2874_v16 = vrot.slane %v2873_v15, 4  ;;  %v1755_v6 = vcombine.high %v1753_v44, %v1753_v44  ;;  %v2880_v57 = vsel %vm2340_vm11, %v1754_v24, -inf  ;;  %v2887_v4 = vsel %vm2340_vm11, %v1753_v44, -inf }
 0x272   : > { %17751 = vst [vmem:[#allocation56_spill] sm:$0xff] %v13538_v10  ;;  %v1737_v21 = vcombine.high %v1729_v29, %v1729_v29  ;;  %v13548_v49 = vsel %vm3750_vm12, %v13538_v10, %v4256_v25  ;;  %v2881_v46 = vrot.slane %v2880_v57, 4  ;;  %v2888_v39 = vrot.slane %v2887_v4, 4 }
 0x273   : > { %v2875_v48 = vmax.f32 %v2873_v15, %v2874_v16  ;;  %v2894_v41 = vsel %vm2340_vm11, %v1755_v6, -inf  ;;  %v1738_v50 = vcombine.high %v1736_v45, %v1736_v45  ;;  %v2845_v35 = vsel %vm2340_vm11, %v1729_v29, -inf  ;;  %v13555_v15 = vpop.f32.mrb[30].mxu0 }
 0x274   : > { %v2852_v37 = vsel %vm2340_vm11, %v1737_v21, -inf  ;;  %v2882_v13 = vmax.f32 %v2880_v57, %v2881_v46  ;;  %v2889_v24 = vmax.f32 %v2887_v4, %v2888_v39  ;;  %v2895_v14 = vrot.slane %v2894_v41, 4  ;;  %17752 = vst [vmem:[#allocation57_spill] sm:$0xff] %v13555_v15  ;;  %v13559_v29 = vpop.f32.mrb[31].mxu0 }
 0x275   : > { %v2876_v42 = vrot.slane %v2875_v48, 2  ;;  %v2846_v44 = vrot.slane %v2845_v35, 4  ;;  %v2853_v31 = vrot.slane %v2852_v37, 4  ;;  %v2859_v12 = vsel %vm2340_vm11, %v1736_v45, -inf }
 0x276   : > { %v2866_v25 = vsel %vm2340_vm11, %v1738_v50, -inf  ;;  %v2883_v56 = vrot.slane %v2882_v13, 2  ;;  %v2890_v6 = vrot.slane %v2889_v24, 2  ;;  %v13557_v58 = vmax.f32 %v2894_v41, %v2895_v14 }
 0x277   : > { %v2877_v16 = vmax.f32 %v2875_v48, %v2876_v42  ;;  %v2847_v21 = vmax.f32 %v2845_v35, %v2846_v44  ;;  %v2854_v28 = vmax.f32 %v2852_v37, %v2853_v31  ;;  %v2860_v57 = vrot.slane %v2859_v12, 4 }
 0x278   : > { %v2867_v4 = vrot.slane %v2866_v25, 4  ;;  %v13561_v39 = vmax.f32 %v2882_v13, %v2883_v56  ;;  %v13563_v36 = vmax.f32 %v2889_v24, %v2890_v6  ;;  %v2724_v45 = vrot.slane %v13283_v19, 1 }
 0x279   : > { %v2878_v46 = vrot.slane %v2877_v16, 1  ;;  %v2848_v50 = vrot.slane %v2847_v21, 2  ;;  %v2855_v1 = vrot.slane %v2854_v28, 2  ;;  %v2861_v42 = vmax.f32 %v2859_v12, %v2860_v57 }
 0x27a   : > { %v2868_v48 = vmax.f32 %v2866_v25, %v2867_v4  ;;  %v13570_v41 = vmax.f32 %v13283_v19, %v2724_v45  ;;  %v2729_v31 = vrot.slane %v13275_v3, 2  ;;  %v4000_v12 = vsel %vm3750_vm12, %v13320_v8, %v13340_v62  ;;  %v17755_v25 = vld [vmem:[#allocation32_spill] sm:$0xff] }
 0x27b   : > { %v13566_v15 = vmax.f32 %v2877_v16, %v2878_v46  ;;  %v2849_v35 = vmax.f32 %v2847_v21, %v2848_v50  ;;  %v2856_v56 = vmax.f32 %v2854_v28, %v2855_v1  ;;  %v2862_v13 = vrot.slane %v2861_v42, 2 }
 0x27c   : > { %17754 = vst [vmem:[#allocation59_spill] sm:$0xff] %v13570_v41  ;;  %v2869_v37 = vrot.slane %v2868_v48, 2  ;;  %v2730_v24 = vmax.f32 %v13275_v3, %v2729_v31  ;;  %v4244_v44 = vsel %vm3752_vm14, %v13288_v40, %v13352_v0  ;;  %v1215_v19 = vadd.f32 %v13314_v34, %v17755_v25 }
 0x27d   : > { %17753 = vst [vmem:[#allocation58_spill] sm:$0xff] %v13566_v15  ;;  %v2850_v16 = vrot.slane %v2849_v35, 1  ;;  %v2857_v6 = vrot.slane %v2856_v56, 1  ;;  %v2863_v57 = vmax.f32 %v2861_v42, %v2862_v13  ;;  %v4001_v28 = vsel %vm3752_vm14, %v13330_v9, %v4000_v12 }
 0x27e   : > { %v2870_v21 = vmax.f32 %v2868_v48, %v2869_v37  ;;  %v2731_v1 = vrot.slane %v2730_v24, 1  ;;  %v4245_v3 = vsel %vm3754_vm15, %v13526_v17, %v4244_v44  ;;  %v1349_v4 = vmax.f32 %v1215_v19, 0.0 }
 0x27f   : > { %v13586_v8 = vmax.f32 %v2849_v35, %v2850_v16  ;;  %v13588_v62 = vmax.f32 %v2856_v56, %v2857_v6  ;;  %v2864_v0 = vrot.slane %v2863_v57, 1  ;;  %v4002_v50 = vsel %vm3754_vm15, %v13288_v40, %v4001_v28 }
 0x280   : > { %v2871_v46 = vrot.slane %v2870_v21, 1  ;;  %v2732_v45 = vmax.f32 %v2730_v24, %v2731_v1  ;;  %v4246_v42 = vsel %vm3756_vm0, %v13570_v41, %v4245_v3  ;;  %v1773_v48 = vcombine.high %v1349_v4, %v1349_v4 }
 0x281   : > { %v13594_v31 = vmax.f32 %v2863_v57, %v2864_v0  ;;  %v13601_v35 = vsel %vm3762_vm13, %v13588_v62, %v13586_v8  ;;  %v4003_v56 = vsel %vm3756_vm0, %v13526_v17, %v4002_v50  ;;  %v1780_v44 = vrot.slane %v1349_v4, %v12814_v63 }
 0x282   : > { %v13596_v13 = vmax.f32 %v2870_v21, %v2871_v46  ;;  %v3805_v37 = vsel %vm3762_vm13, %v13395_v22, %v2732_v45  ;;  %v4004_v24 = vsel %vm3758_vm1, %v13570_v41, %v4003_v56  ;;  %v4247_v12 = vsel %vm3758_vm1, %v2732_v45, %v4246_v42 }
 0x283   : > { %v4263_v25 = vsel %vm3762_vm13, %v13594_v31, %v13588_v62  ;;  %v3806_v19 = vsel %vm3750_vm12, %v13410_v60, %v3805_v37  ;;  %v4005_v16 = vsel %vm3760_vm3, %v2732_v45, %v4004_v24  ;;  %v4248_v6 = vsel %vm3760_vm3, %v13395_v22, %v4247_v12 }
 0x284   : > { %17756 = vst [vmem:[#allocation32_spill] sm:$0xff] %v13596_v13  ;;  %v13621_v57 = vsel %vm3750_vm12, %v13596_v13, %v4263_v25  ;;  %v13625_v21 = vsel %vm3752_vm14, %v13412_v7, %v3806_v19  ;;  %4381 = vst.msk [vmem:[#allocation3 + $0x68] sm:$0xff] %vm3934_vm4, %v4248_v6  ;;  %4123 = vrot.lane.b32.xlu0 %v4005_v16, %s12090_s18  ;;  %v1787_v1 = vrot.slane %v1773_v48, %v12814_v63 }
 0x285   : > { %17757 = vst [vmem:[#allocation60_spill] sm:$0xff] %v13625_v21  ;;  %v1788_v60 = vcombine.high %v1780_v44, %v1780_v44  ;;  %v2929_v28 = vsel %vm2340_vm11, %v1780_v44, -inf  ;;  %v1210_v22 = vadd.f32 %v13314_v34, %v13112_v20  ;;  %v17758_v3 = vrot.slane %v13382_v53, 1 }
 0x286   : > { %v2780_v0 = vrot.slane %v13384_v32, 1  ;;  %v1789_v46 = vcombine.high %v1787_v1, %v1787_v1  ;;  %v2930_v45 = vrot.slane %v2929_v28, 4  ;;  %v2943_v42 = vsel %vm2340_vm11, %v1787_v1, -inf }
 0x287   : > { %v13636_v4 = vmax.f32 %v13382_v53, %v17758_v3  ;;  %v2936_v50 = vsel %vm2340_vm11, %v1788_v60, -inf  ;;  %v2944_v56 = vrot.slane %v2943_v42, 4  ;;  %v1348_v37 = vmax.f32 %v1210_v22, 0.0 }
 0x288   : > { %v2937_v48 = vrot.slane %v2936_v50, 4  ;;  %v13642_v24 = vmax.f32 %v13384_v32, %v2780_v0  ;;  %v2931_v20 = vmax.f32 %v2929_v28, %v2930_v45  ;;  %v2950_v12 = vsel %vm2340_vm11, %v1789_v46, -inf  ;;  %v13656_v45 = vpop.f32.mrb[0].mxu1 }
 0x289   : > { %17759 = vst [vmem:[#allocation61_spill] sm:$0xff] %v13636_v4  ;;  %v2785_v53 = vrot.slane %v13380_v55, 2  ;;  %v4007_v44 = vsel %vm3750_vm12, %v13412_v7, %v13425_v38  ;;  %v2945_v19 = vmax.f32 %v2943_v42, %v2944_v56  ;;  %v2951_v16 = vrot.slane %v2950_v12, 4 }
 0x28a   : > { %17760 = vst [vmem:[#allocation62_spill] sm:$0xff] %v13642_v24  ;;  %v2938_v25 = vmax.f32 %v2936_v50, %v2937_v48  ;;  %v1756_v6 = vcombine.high %v1348_v37, %v1348_v37  ;;  %v2932_v1 = vrot.slane %v2931_v20, 2  ;;  %v1763_v60 = vrot.slane %v1348_v37, %v12814_v63 }
 0x28b   : > { %v2786_v22 = vmax.f32 %v13380_v55, %v2785_v53  ;;  %v4008_v32 = vsel %vm3752_vm14, %v13420_v33, %v4007_v44  ;;  %v2946_v3 = vrot.slane %v2945_v19, 2  ;;  %v13653_v0 = vmax.f32 %v2950_v12, %v2951_v16 }
 0x28c   : > { %v2939_v28 = vrot.slane %v2938_v25, 2  ;;  %v1770_v46 = vrot.slane %v1756_v6, %v12814_v63  ;;  %v2933_v7 = vmax.f32 %v2931_v20, %v2932_v1  ;;  %v1771_v38 = vcombine.high %v1763_v60, %v1763_v60 }
 0x28d   : > { %v2901_v50 = vsel %vm2340_vm11, %v1763_v60, -inf  ;;  %v2787_v42 = vrot.slane %v2786_v22, 1  ;;  %v13659_v56 = vmax.f32 %v2945_v19, %v2946_v3 }
 0x28e   : > { %v2940_v48 = vmax.f32 %v2938_v25, %v2939_v28  ;;  %v1772_v55 = vcombine.high %v1770_v46, %v1770_v46  ;;  %v2902_v37 = vrot.slane %v2901_v50, 4  ;;  %v2934_v53 = vrot.slane %v2933_v7, 1  ;;  %v13669_v28 = vpop.f32.mrb[1].mxu1 }
 0x28f   : > { %v2908_v44 = vsel %vm2340_vm11, %v1771_v38, -inf  ;;  %v2915_v12 = vsel %vm2340_vm11, %v1770_v46, -inf  ;;  %v2788_v16 = vmax.f32 %v2786_v22, %v2787_v42 }
 0x290   : > { %v2941_v14 = vrot.slane %v2940_v48, 1  ;;  %v2903_v33 = vmax.f32 %v2901_v50, %v2902_v37  ;;  %v2909_v20 = vrot.slane %v2908_v44, 4  ;;  %v13664_v1 = vmax.f32 %v2933_v7, %v2934_v53 }
 0x291   : > { %v2916_v60 = vrot.slane %v2915_v12, 4  ;;  %v2922_v25 = vsel %vm2340_vm11, %v1772_v55, -inf  ;;  %v3812_v19 = vsel %vm3762_vm13, %v13514_v61, %v2788_v16  ;;  %v4009_v7 = vsel %vm3754_vm15, %v13389_v54, %v4008_v32 }
 0x292   : > { %17761 = vst [vmem:[#allocation63_spill] sm:$0xff] %v13664_v1  ;;  %v13671_v3 = vmax.f32 %v2940_v48, %v2941_v14  ;;  %v2904_v38 = vrot.slane %v2903_v33, 2  ;;  %v2910_v46 = vmax.f32 %v2908_v44, %v2909_v20  ;;  %v2923_v22 = vrot.slane %v2922_v25, 4 }
 0x293   : > { %v2917_v42 = vmax.f32 %v2915_v12, %v2916_v60  ;;  %v3813_v50 = vsel %vm3750_vm12, %v13519_v26, %v3812_v19  ;;  %v4251_v55 = vsel %vm3752_vm14, %v13389_v54, %v13443_v47  ;;  %v4010_v44 = vsel %vm3756_vm0, %v13636_v4, %v4009_v7 }
 0x294   : > { %17762 = vst [vmem:[#allocation64_spill] sm:$0xff] %v13671_v3  ;;  %v2905_v37 = vmax.f32 %v2903_v33, %v2904_v38  ;;  %v2911_v53 = vrot.slane %v2910_v46, 2  ;;  %v2924_v6 = vmax.f32 %v2922_v25, %v2923_v22  ;;  %v13682_v14 = vsel %vm3752_vm14, %v13528_v2, %v3813_v50 }
 0x295   : > { %17763 = vst [vmem:[#allocation65_spill] sm:$0xff] %v13682_v14  ;;  %v2918_v48 = vrot.slane %v2917_v42, 2  ;;  %v4252_v26 = vsel %vm3754_vm15, %v13636_v4, %v4251_v55  ;;  %v1225_v32 = vadd.f32 %v13314_v34, %v13175_v52  ;;  %v4011_v33 = vsel %vm3758_vm1, %v13642_v24, %v4010_v44 }
 0x296   : > { %v2906_v12 = vrot.slane %v2905_v37, 1  ;;  %v2912_v20 = vmax.f32 %v2910_v46, %v2911_v53  ;;  %v2925_v47 = vrot.slane %v2924_v6, 2  ;;  %v4012_v25 = vsel %vm3760_vm3, %v2788_v16, %v4011_v33 }
 0x297   : > { %v2919_v60 = vmax.f32 %v2917_v42, %v2918_v48  ;;  %v4253_v19 = vsel %vm3756_vm0, %v13642_v24, %v4252_v26  ;;  %v1351_v38 = vmax.f32 %v1225_v32, 0.0  ;;  %4125 = vrot.lane.b32.xlu1 %v4012_v25, %s12090_s18 }
 0x298   : > { %v13695_v22 = vmax.f32 %v2905_v37, %v2906_v12  ;;  %v2913_v50 = vrot.slane %v2912_v20, 1  ;;  %v2926_v7 = vmax.f32 %v2924_v6, %v2925_v47  ;;  %v4254_v55 = vsel %vm3758_vm1, %v2788_v16, %v4253_v19 }
 0x299   : > { %v2920_v52 = vrot.slane %v2919_v60, 1  ;;  %v4255_v46 = vsel %vm3760_vm3, %v13514_v61, %v4254_v55  ;;  %v1807_v53 = vcombine.high %v1351_v38, %v1351_v38  ;;  %v1814_v42 = vrot.slane %v1351_v38, %v12814_v63 }
 0x29a   : > { %v13702_v48 = vmax.f32 %v2912_v20, %v2913_v50  ;;  %v2927_v44 = vrot.slane %v2926_v7, 1  ;;  %4382 = vst.msk [vmem:[#allocation3 + $0x78] sm:$0xff] %vm3934_vm4, %v4255_v46  ;;  %v1220_v37 = vadd.f32 %v13314_v34, %v13183_v11  ;;  %v17764_v6 = vrot.slane %v13481_v5, 1 }
 0x29b   : > { %v13712_v26 = vmax.f32 %v2919_v60, %v2920_v52  ;;  %v1821_v61 = vrot.slane %v1807_v53, %v12814_v63  ;;  %v1822_v32 = vcombine.high %v1814_v42, %v1814_v42  ;;  %v2985_v12 = vsel %vm2340_vm11, %v1814_v42, -inf }
 0x29c   : > { %v13710_v16 = vmax.f32 %v13481_v5, %v17764_v6  ;;  %v13716_v20 = vmax.f32 %v2926_v7, %v2927_v44  ;;  %v13721_v47 = vsel %vm3762_vm13, %v13702_v48, %v13695_v22  ;;  %v2986_v11 = vrot.slane %v2985_v12, 4 }
 0x29d   : > { %v1350_v33 = vmax.f32 %v1220_v37, 0.0  ;;  %v4270_v5 = vsel %vm3762_vm13, %v13712_v26, %v13702_v48  ;;  %v1823_v60 = vcombine.high %v1821_v61, %v1821_v61  ;;  %v2992_v25 = vsel %vm2340_vm11, %v1822_v32, -inf }
 0x29e   : > { %17765 = vst [vmem:[#allocation66_spill] sm:$0xff] %v13710_v16  ;;  %17766 = vst [vmem:[#allocation67_spill] sm:$0xff] %v13716_v20  ;;  %v2999_v19 = vsel %vm2340_vm11, %v1821_v61, -inf  ;;  %v13730_v38 = vsel %vm3750_vm12, %v13716_v20, %v4270_v5  ;;  %v2987_v50 = vmax.f32 %v2985_v12, %v2986_v11  ;;  %v2993_v7 = vrot.slane %v2992_v25, 4  ;;  %v13740_v11 = vpop.f32.mrb[2].mxu1 }
 0x29f   : > { %v3000_v55 = vrot.slane %v2999_v19, 4  ;;  %v3006_v52 = vsel %vm2340_vm11, %v1823_v60, -inf  ;;  %v1790_v46 = vcombine.high %v1350_v33, %v1350_v33  ;;  %v1797_v53 = vrot.slane %v1350_v33, %v12814_v63 }
 0x2a0   : > { %v2836_v42 = vrot.slane %v13477_v43, 1  ;;  %v2988_v44 = vrot.slane %v2987_v50, 2  ;;  %v2994_v37 = vmax.f32 %v2992_v25, %v2993_v7  ;;  %v3007_v32 = vrot.slane %v3006_v52, 4 }
 0x2a1   : > { %v3001_v6 = vmax.f32 %v2999_v19, %v3000_v55  ;;  %v1804_v61 = vrot.slane %v1790_v46, %v12814_v63  ;;  %v1805_v24 = vcombine.high %v1797_v53, %v1797_v53  ;;  %v2957_v5 = vsel %vm2340_vm11, %v1797_v53, -inf }
 0x2a2   : > { %v13738_v12 = vmax.f32 %v13477_v43, %v2836_v42  ;;  %v2989_v60 = vmax.f32 %v2987_v50, %v2988_v44  ;;  %v2995_v4 = vrot.slane %v2994_v37, 2  ;;  %v13742_v33 = vmax.f32 %v3006_v52, %v3007_v32  ;;  %v13748_v43 = vpop.f32.mrb[3].mxu1 }
 0x2a3   : > { %v3002_v14 = vrot.slane %v3001_v6, 2  ;;  %v1806_v54 = vcombine.high %v1804_v61, %v1804_v61  ;;  %v2958_v21 = vrot.slane %v2957_v5, 4  ;;  %v2964_v25 = vsel %vm2340_vm11, %v1805_v24, -inf  ;;  %17768 = vst [vmem:[#allocation69_spill] sm:$0xff] %v13748_v43 }
 0x2a4   : > { %17767 = vst [vmem:[#allocation68_spill] sm:$0xff] %v13738_v12  ;;  %v2971_v19 = vsel %vm2340_vm11, %v1804_v61, -inf  ;;  %v2990_v7 = vrot.slane %v2989_v60, 1  ;;  %v2996_v55 = vmax.f32 %v2994_v37, %v2995_v4  ;;  %v2965_v53 = vrot.slane %v2964_v25, 4 }
 0x2a5   : > { %v13746_v46 = vmax.f32 %v3001_v6, %v3002_v14  ;;  %v2959_v42 = vmax.f32 %v2957_v5, %v2958_v21  ;;  %v2972_v41 = vrot.slane %v2971_v19, 4  ;;  %v2978_v50 = vsel %vm2340_vm11, %v1806_v54, -inf }
 0x2a6   : > { %v2841_v52 = vrot.slane %v13469_v59, 2  ;;  %v13752_v44 = vmax.f32 %v2989_v60, %v2990_v7  ;;  %v2997_v32 = vrot.slane %v2996_v55, 1  ;;  %v2966_v17 = vmax.f32 %v2964_v25, %v2965_v53 }
 0x2a7   : > { %v2960_v61 = vrot.slane %v2959_v42, 2  ;;  %v2973_v40 = vmax.f32 %v2971_v19, %v2972_v41  ;;  %v2979_v4 = vrot.slane %v2978_v50, 4  ;;  %v4014_v54 = vsel %vm3750_vm12, %v13528_v2, %v13534_v30 }
 0x2a8   : > { %17769 = vst [vmem:[#allocation70_spill] sm:$0xff] %v13752_v44  ;;  %v2842_v14 = vmax.f32 %v13469_v59, %v2841_v52  ;;  %v13756_v37 = vmax.f32 %v2996_v55, %v2997_v32  ;;  %v2967_v6 = vrot.slane %v2966_v17, 2  ;;  %v4258_v21 = vsel %vm3752_vm14, %v13488_v23, %v13548_v49 }
 0x2a9   : > { %v2961_v5 = vmax.f32 %v2959_v42, %v2960_v61  ;;  %v2974_v60 = vrot.slane %v2973_v40, 2  ;;  %v2980_v7 = vmax.f32 %v2978_v50, %v2979_v4  ;;  %v4015_v41 = vsel %vm3752_vm14, %v13538_v10, %v4014_v54 }
 0x2aa   : > { %17770 = vst [vmem:[#allocation71_spill] sm:$0xff] %v13756_v37  ;;  %v2843_v25 = vrot.slane %v2842_v14, 1  ;;  %v2968_v53 = vmax.f32 %v2966_v17, %v2967_v6  ;;  %v4259_v59 = vsel %vm3754_vm15, %v13710_v16, %v4258_v21  ;;  %v1235_v19 = vadd.f32 %v13314_v34, %v13271_v51 }
 0x2ab   : > { %v2962_v55 = vrot.slane %v2961_v5, 1  ;;  %v2975_v2 = vmax.f32 %v2973_v40, %v2974_v60  ;;  %v2981_v30 = vrot.slane %v2980_v7, 2  ;;  %v4016_v49 = vsel %vm3754_vm15, %v13488_v23, %v4015_v41 }
 0x2ac   : > { %v2844_v52 = vmax.f32 %v2842_v14, %v2843_v25  ;;  %v2969_v32 = vrot.slane %v2968_v53, 1  ;;  %v4260_v17 = vsel %vm3756_vm0, %v13738_v12, %v4259_v59  ;;  %v1353_v42 = vmax.f32 %v1235_v19, 0.0 }
 0x2ad   : > { %v13774_v50 = vmax.f32 %v2961_v5, %v2962_v55  ;;  %v2976_v61 = vrot.slane %v2975_v2, 1  ;;  %v2982_v4 = vmax.f32 %v2980_v7, %v2981_v30  ;;  %v4017_v14 = vsel %vm3756_vm0, %v13710_v16, %v4016_v49 }
 0x2ae   : > { %v3819_v6 = vsel %vm3762_vm13, %v13586_v8, %v2844_v52  ;;  %v13778_v51 = vmax.f32 %v2968_v53, %v2969_v32  ;;  %v4261_v54 = vsel %vm3758_vm1, %v2844_v52, %v4260_v17  ;;  %v4018_v7 = vsel %vm3758_vm1, %v13738_v12, %v4017_v14  ;;  %v13834_v12 = vpop.f32.mrb[4].mxu1 }
 0x2af   : > { %v3820_v40 = vsel %vm3750_vm12, %v13588_v62, %v3819_v6  ;;  %v13785_v21 = vmax.f32 %v2975_v2, %v2976_v61  ;;  %v2983_v60 = vrot.slane %v2982_v4, 1  ;;  %v4019_v62 = vsel %vm3760_vm3, %v2844_v52, %v4018_v7  ;;  %v17773_v2 = vld [vmem:[#allocation42_spill] sm:$0xff]  ;;  %17777 = vst [vmem:[#allocation75_spill] sm:$0xff] %v13834_v12 }
 0x2b0   : > { %v13789_v5 = vsel %vm3752_vm14, %v13594_v31, %v3820_v40  ;;  %v13796_v25 = vsel %vm3762_vm13, %v13778_v51, %v13774_v50  ;;  %v4262_v53 = vsel %vm3760_vm3, %v13586_v8, %v4261_v54  ;;  %v1841_v41 = vcombine.high %v1353_v42, %v1353_v42  ;;  %4127 = vrot.lane.b32.xlu0 %v4019_v62, %s12090_s18 }
 0x2b1   : > { %17771 = vst [vmem:[#allocation72_spill] sm:$0xff] %v13789_v5  ;;  %v13801_v59 = vmax.f32 %v2982_v4, %v2983_v60  ;;  %v4277_v19 = vsel %vm3762_vm13, %v13785_v21, %v13778_v51  ;;  %4383 = vst.msk [vmem:[#allocation3 + $0x88] sm:$0xff] %vm3934_vm4, %v4262_v53  ;;  %v1848_v55 = vrot.slane %v1353_v42, %v12814_v63  ;;  %v17774_v8 = vrot.slane %v13561_v39, 1 }
 0x2b2   : > { %v1230_v30 = vadd.f32 %v13314_v34, %v17773_v2  ;;  %v1855_v52 = vrot.slane %v1841_v41, %v12814_v63  ;;  %v2892_v49 = vrot.slane %v13563_v36, 1  ;;  %v2897_v17 = vrot.slane %v13557_v58, 2 }
 0x2b3   : > { %17772 = vst [vmem:[#allocation73_spill] sm:$0xff] %v13801_v59  ;;  %v13815_v32 = vmax.f32 %v13561_v39, %v17774_v8  ;;  %v13821_v61 = vsel %vm3750_vm12, %v13801_v59, %v4277_v19  ;;  %v1856_v4 = vcombine.high %v1848_v55, %v1848_v55  ;;  %v3041_v42 = vsel %vm2340_vm11, %v1848_v55, -inf }
 0x2b4   : > { %v1352_v6 = vmax.f32 %v1230_v30, 0.0  ;;  %v1857_v34 = vcombine.high %v1855_v52, %v1855_v52  ;;  %v3042_v40 = vrot.slane %v3041_v42, 4  ;;  %v3055_v14 = vsel %vm2340_vm11, %v1855_v52, -inf }
 0x2b5   : > { %17775 = vst [vmem:[#allocation42_spill] sm:$0xff] %v13815_v32  ;;  %v13826_v54 = vmax.f32 %v13563_v36, %v2892_v49  ;;  %v3048_v39 = vsel %vm2340_vm11, %v1856_v4, -inf  ;;  %v3056_v60 = vrot.slane %v3055_v14, 4  ;;  %v2898_v55 = vmax.f32 %v13557_v58, %v2897_v17 }
 0x2b6   : > { %v1824_v7 = vcombine.high %v1352_v6, %v1352_v6  ;;  %v1831_v62 = vrot.slane %v1352_v6, %v12814_v63  ;;  %v3043_v53 = vmax.f32 %v3041_v42, %v3042_v40  ;;  %v3049_v41 = vrot.slane %v3048_v39, 4 }
 0x2b7   : > { %17776 = vst [vmem:[#allocation74_spill] sm:$0xff] %v13826_v54  ;;  %v3062_v19 = vsel %vm2340_vm11, %v1857_v34, -inf  ;;  %v3057_v2 = vmax.f32 %v3055_v14, %v3056_v60  ;;  %v2899_v4 = vrot.slane %v2898_v55, 1 }
 0x2b8   : > { %v3063_v30 = vrot.slane %v3062_v19, 4  ;;  %v1838_v8 = vrot.slane %v1824_v7, %v12814_v63  ;;  %v1839_v52 = vcombine.high %v1831_v62, %v1831_v62  ;;  %v3044_v24 = vrot.slane %v3043_v53, 2 }
 0x2b9   : > { %v3050_v36 = vmax.f32 %v3048_v39, %v3049_v41  ;;  %v3013_v49 = vsel %vm2340_vm11, %v1831_v62, -inf  ;;  %v3058_v16 = vrot.slane %v3057_v2, 2  ;;  %v2900_v10 = vmax.f32 %v2898_v55, %v2899_v4 }
 0x2ba   : > { %v13836_v6 = vmax.f32 %v3062_v19, %v3063_v30  ;;  %v1840_v42 = vcombine.high %v1838_v8, %v1838_v8  ;;  %v3014_v40 = vrot.slane %v3013_v49, 4  ;;  %v3045_v34 = vmax.f32 %v3043_v53, %v3044_v24 }
 0x2bb   : > { %v3051_v23 = vrot.slane %v3050_v36, 2  ;;  %v3020_v58 = vsel %vm2340_vm11, %v1839_v52, -inf  ;;  %v3027_v17 = vsel %vm2340_vm11, %v1838_v8, -inf  ;;  %v13840_v14 = vmax.f32 %v3057_v2, %v3058_v16 }
 0x2bc   : > { %v3015_v60 = vmax.f32 %v3013_v49, %v3014_v40  ;;  %v3021_v39 = vrot.slane %v3020_v58, 4  ;;  %v3028_v7 = vrot.slane %v3027_v17, 4  ;;  %v3046_v62 = vrot.slane %v3045_v34, 1 }
 0x2bd   : > { %v3052_v41 = vmax.f32 %v3050_v36, %v3051_v23  ;;  %v3034_v5 = vsel %vm2340_vm11, %v1840_v42, -inf  ;;  %v3826_v16 = vsel %vm3762_vm13, %v13695_v22, %v2900_v10  ;;  %v4021_v42 = vsel %vm3750_vm12, %v13594_v31, %v13601_v35  ;;  %v17781_v31 = vld [vmem:[#allocation48_spill] sm:$0xff] }
 0x2be   : > { %v3016_v30 = vrot.slane %v3015_v60, 2  ;;  %v3022_v9 = vmax.f32 %v3020_v58, %v3021_v39  ;;  %v3029_v24 = vmax.f32 %v3027_v17, %v3028_v7  ;;  %v13844_v53 = vmax.f32 %v3045_v34, %v3046_v62 }
 0x2bf   : > { %v3053_v52 = vrot.slane %v3052_v41, 1  ;;  %v3035_v12 = vrot.slane %v3034_v5, 4  ;;  %v3827_v23 = vsel %vm3750_vm12, %v13702_v48, %v3826_v16  ;;  %v4022_v17 = vsel %vm3752_vm14, %v13596_v13, %v4021_v42 }
 0x2c0   : > { %17778 = vst [vmem:[#allocation76_spill] sm:$0xff] %v13844_v53  ;;  %v3017_v2 = vmax.f32 %v3015_v60, %v3016_v30  ;;  %v3023_v8 = vrot.slane %v3022_v9, 2  ;;  %v3030_v49 = vrot.slane %v3029_v24, 2  ;;  %v13854_v4 = vsel %vm3752_vm14, %v13712_v26, %v3827_v23 }
 0x2c1   : > { %v13850_v36 = vmax.f32 %v3052_v41, %v3053_v52  ;;  %v3036_v55 = vmax.f32 %v3034_v5, %v3035_v12  ;;  %17780 = vst [vmem:[#allocation78_spill] sm:$0xff] %v13854_v4  ;;  %v4023_v48 = vsel %vm3754_vm15, %v13566_v15, %v4022_v17  ;;  %v4265_v12 = vsel %vm3752_vm14, %v13566_v15, %v13621_v57  ;;  %v13869_v5 = vld [vmem:[%s17535_s2] ss:$0 sm:$0xff]  ;;  %v4443_v17 = vld [vmem:[#allocation5] sm:$0xff] }
 0x2c2   : > { %v3018_v40 = vrot.slane %v3017_v2, 1  ;;  %v3024_v34 = vmax.f32 %v3022_v9, %v3023_v8  ;;  %v3031_v58 = vmax.f32 %v3029_v24, %v3030_v49  ;;  %v1245_v9 = vadd.f32 %v13869_v5, %v17781_v31  ;;  %v13888_v49 = vpop.f32.mrb[5].mxu1 }
 0x2c3   : > { %17779 = vst [vmem:[#allocation77_spill] sm:$0xff] %v13850_v36  ;;  %v3037_v60 = vrot.slane %v3036_v55, 2  ;;  %v4024_v62 = vsel %vm3756_vm0, %v13815_v32, %v4023_v48  ;;  %v4266_v57 = vsel %vm3754_vm15, %v13815_v32, %v4265_v12  ;;  %17782 = vst [vmem:[#allocation48_spill] sm:$0xff] %v13888_v49  ;;  %v13935_v15 = vpop.f32.mrb[6].mxu1 }
 0x2c4   : > { %v13873_v35 = vmax.f32 %v3017_v2, %v3018_v40  ;;  %v3025_v39 = vrot.slane %v3024_v34, 1  ;;  %v3032_v7 = vrot.slane %v3031_v58, 1  ;;  %v4025_v30 = vsel %vm3758_vm1, %v13826_v54, %v4024_v62 }
 0x2c5   : > { %v3038_v41 = vmax.f32 %v3036_v55, %v3037_v60  ;;  %v1355_v24 = vmax.f32 %v1245_v9, 0.0  ;;  %v4026_v2 = vsel %vm3760_vm3, %v2900_v10, %v4025_v30  ;;  %v4267_v8 = vsel %vm3756_vm0, %v13826_v54, %v4266_v57 }
 0x2c6   : > { %v13881_v52 = vmax.f32 %v3024_v34, %v3025_v39  ;;  %v13883_v16 = vmax.f32 %v3031_v58, %v3032_v7  ;;  %v4268_v55 = vsel %vm3758_vm1, %v2900_v10, %v4267_v8  ;;  %4129 = vrot.lane.b32.xlu1 %v4026_v2, %s12090_s18  ;;  %v4444_v34 = vld [vmem:[#allocation5 + $0x8] sm:$0xff]  ;;  %v4446_v2 = vld [vmem:[#allocation5 + $0x18] sm:$0xff] }
 0x2c7   : > { %v3039_v23 = vrot.slane %v3038_v41, 1  ;;  %v1875_v42 = vcombine.high %v1355_v24, %v1355_v24  ;;  %v1882_v40 = vrot.slane %v1355_v24, %v12814_v63  ;;  %v4269_v48 = vsel %vm3760_vm3, %v13695_v22, %v4268_v55  ;;  %v17783_v10 = vld [vmem:[#allocation49_spill] sm:$0xff]  ;;  %v4445_v24 = vld [vmem:[#allocation5 + $0x10] sm:$0xff] }
 0x2c8   : > { %v13896_v58 = vsel %vm3762_vm13, %v13881_v52, %v13873_v35  ;;  %v4284_v60 = vsel %vm3762_vm13, %v13883_v16, %v13881_v52  ;;  %v1240_v12 = vadd.f32 %v13869_v5, %v17783_v10  ;;  %4384 = vst.msk [vmem:[#allocation3 + $0x98] sm:$0xff] %vm3934_vm4, %v4269_v48  ;;  %v11666_v57 = vpack.c.bf16 %v4444_v34, %v4443_v17 }
 0x2c9   : > { %v13905_v31 = vmax.f32 %v3038_v41, %v3039_v23  ;;  %v1889_v9 = vrot.slane %v1875_v42, %v12814_v63  ;;  %v1890_v39 = vcombine.high %v1882_v40, %v1882_v40  ;;  %v3097_v7 = vsel %vm2340_vm11, %v1882_v40, -inf }
 0x2ca   : > { %v3098_v62 = vrot.slane %v3097_v7, 4  ;;  %v1354_v30 = vmax.f32 %v1240_v12, 0.0  ;;  %v17588_v55 = vmov 0.0|0.0   ;;  %v17785_v12 = vrot.slane %v13659_v56, 1 }
 0x2cb   : > { %17784 = vst [vmem:[#allocation49_spill] sm:$0xff] %v13905_v31  ;;  %v13912_v22 = vsel %vm3750_vm12, %v13905_v31, %v4284_v60  ;;  %v1891_v8 = vcombine.high %v1889_v9, %v1889_v9  ;;  %v3104_v41 = vsel %vm2340_vm11, %v1890_v39, -inf  ;;  %v3111_v23 = vsel %vm2340_vm11, %v1889_v9, -inf  ;;  %11665 = vmatprep.subr.bf16.mxu1 %v17588_v55 }
 0x2cc   : > { %v3099_v42 = vmax.f32 %v3097_v7, %v3098_v62  ;;  %v3105_v48 = vrot.slane %v3104_v41, 4  ;;  %v3112_v40 = vrot.slane %v3111_v23, 4  ;;  %v1858_v10 = vcombine.high %v1354_v30, %v1354_v30  ;;  %11667 = vmatpush1.bf16.msra.mxu1 %v11666_v57 }
 0x2cd   : > { %v3118_v17 = vsel %vm2340_vm11, %v1891_v8, -inf  ;;  %v1865_v34 = vrot.slane %v1354_v30, %v12814_v63  ;;  %11668 = vmatprep.subr.bf16.mxu1 %v17588_v55  ;;  %v11669_v60 = vpack.c.bf16 %v4446_v2, %v4445_v24  ;;  %v13923_v39 = vmax.f32 %v13659_v56, %v17785_v12 }
 0x2ce   : > { %v3100_v9 = vrot.slane %v3099_v42, 2  ;;  %v3106_v19 = vmax.f32 %v3104_v41, %v3105_v48  ;;  %v3113_v54 = vmax.f32 %v3111_v23, %v3112_v40  ;;  %v3119_v7 = vrot.slane %v3118_v17, 4 }
 0x2cf   : > { %17786 = vst [vmem:[#allocation79_spill] sm:$0xff] %v13923_v39  ;;  %v1872_v62 = vrot.slane %v1858_v10, %v12814_v63  ;;  %v1873_v32 = vcombine.high %v1865_v34, %v1865_v34  ;;  %v3069_v57 = vsel %vm2340_vm11, %v1865_v34, -inf  ;;  %v2953_v8 = vrot.slane %v13653_v0, 2 }
 0x2d0   : > { %v3101_v30 = vmax.f32 %v3099_v42, %v3100_v9  ;;  %v3107_v4 = vrot.slane %v3106_v19, 2  ;;  %v3114_v55 = vrot.slane %v3113_v54, 2  ;;  %v13928_v24 = vmax.f32 %v3118_v17, %v3119_v7  ;;  %11670 = vmatpush1.bf16.msra.mxu1 %v11669_v60 }
 0x2d1   : > { %v1874_v2 = vcombine.high %v1872_v62, %v1872_v62  ;;  %v3070_v56 = vrot.slane %v3069_v57, 4  ;;  %v3076_v12 = vsel %vm2340_vm11, %v1873_v32, -inf  ;;  %v3083_v41 = vsel %vm2340_vm11, %v1872_v62, -inf }
 0x2d2   : > { %v17787_v23 = vmov 0.0|0.0   ;;  %v3102_v48 = vrot.slane %v3101_v30, 1  ;;  %v3108_v40 = vmax.f32 %v3106_v19, %v3107_v4  ;;  %v13933_v10 = vmax.f32 %v3113_v54, %v3114_v55 }
 0x2d3   : > { %11671 = vmatprep.subr.bf16.mxu1 %v17787_v23  ;;  %v3077_v34 = vrot.slane %v3076_v12, 4  ;;  %v3071_v42 = vmax.f32 %v3069_v57, %v3070_v56  ;;  %v3084_v9 = vrot.slane %v3083_v41, 4  ;;  %v3090_v17 = vsel %vm2340_vm11, %v1874_v2, -inf }
 0x2d4   : > { %v2954_v60 = vmax.f32 %v13653_v0, %v2953_v8  ;;  %v13939_v7 = vmax.f32 %v3101_v30, %v3102_v48  ;;  %v3109_v32 = vrot.slane %v3108_v40, 1  ;;  %v3091_v19 = vrot.slane %v3090_v17, 4 }
 0x2d5   : > { %v3078_v13 = vmax.f32 %v3076_v12, %v3077_v34  ;;  %v3072_v49 = vrot.slane %v3071_v42, 2  ;;  %v3085_v43 = vmax.f32 %v3083_v41, %v3084_v9  ;;  %v4028_v57 = vsel %vm3750_vm12, %v13712_v26, %v13721_v47 }
 0x2d6   : > { %v2955_v54 = vrot.slane %v2954_v60, 1  ;;  %v13942_v4 = vmax.f32 %v3108_v40, %v3109_v32  ;;  %v4272_v0 = vsel %vm3752_vm14, %v13664_v1, %v13730_v38  ;;  %v3092_v2 = vmax.f32 %v3090_v17, %v3091_v19 }
 0x2d7   : > { %v3079_v55 = vrot.slane %v3078_v13, 2  ;;  %v3073_v8 = vmax.f32 %v3071_v42, %v3072_v49  ;;  %v3086_v30 = vrot.slane %v3085_v43, 2  ;;  %v4029_v41 = vsel %vm3752_vm14, %v13716_v20, %v4028_v57  ;;  %v4448_v57 = vld [vmem:[#allocation5 + $0x28] sm:$0xff] }
 0x2d8   : > { %17788 = vst [vmem:[#allocation80_spill] sm:$0xff] %v13942_v4  ;;  %v2956_v56 = vmax.f32 %v2954_v60, %v2955_v54  ;;  %v4273_v48 = vsel %vm3754_vm15, %v13671_v3, %v4272_v0  ;;  %v1255_v40 = vadd.f32 %v13869_v5, %v13471_v27  ;;  %v3093_v47 = vrot.slane %v3092_v2, 2 }
 0x2d9   : > { %v3080_v12 = vmax.f32 %v3078_v13, %v3079_v55  ;;  %v3074_v34 = vrot.slane %v3073_v8, 1  ;;  %v3087_v26 = vmax.f32 %v3085_v43, %v3086_v30  ;;  %v4030_v13 = vsel %vm3754_vm15, %v13664_v1, %v4029_v41  ;;  %v4447_v55 = vld [vmem:[#allocation5 + $0x20] sm:$0xff]  ;;  %v4449_v41 = vld [vmem:[#allocation5 + $0x30] sm:$0xff] }
 0x2da   : > { %v3833_v38 = vsel %vm3762_vm13, %v13774_v50, %v2956_v56  ;;  %v4274_v9 = vsel %vm3756_vm0, %v13923_v39, %v4273_v48  ;;  %v3094_v27 = vmax.f32 %v3092_v2, %v3093_v47  ;;  %v4031_v19 = vsel %vm3756_vm0, %v13671_v3, %v4030_v13  ;;  %v13989_v47 = vpop.f32.mrb[7].mxu1 }
 0x2db   : > { %v3081_v49 = vrot.slane %v3080_v12, 1  ;;  %v3834_v42 = vsel %vm3750_vm12, %v13778_v51, %v3833_v38  ;;  %v13964_v17 = vmax.f32 %v3073_v8, %v3074_v34  ;;  %v3088_v60 = vrot.slane %v3087_v26, 1 }
 0x2dc   : > { %v13968_v43 = vsel %vm3752_vm14, %v13785_v21, %v3834_v42  ;;  %v4275_v51 = vsel %vm3758_vm1, %v2956_v56, %v4274_v9  ;;  %v1357_v54 = vmax.f32 %v1255_v40, 0.0  ;;  %v3095_v8 = vrot.slane %v3094_v27, 1 }
 0x2dd   : > { %17789 = vst [vmem:[#allocation81_spill] sm:$0xff] %v13968_v43  ;;  %v13970_v32 = vmax.f32 %v3080_v12, %v3081_v49  ;;  %v13975_v0 = vmax.f32 %v3087_v26, %v3088_v60  ;;  %v4032_v30 = vsel %vm3758_vm1, %v13923_v39, %v4031_v19  ;;  %v4276_v2 = vsel %vm3760_vm3, %v13774_v50, %v4275_v51  ;;  %v4450_v12 = vld [vmem:[#allocation5 + $0x38] sm:$0xff]  ;;  %v14025_v39 = vpop.f32.mrb[8].mxu1 }
 0x2de   : > { %v4033_v40 = vsel %vm3760_vm3, %v2956_v56, %v4032_v30  ;;  %4385 = vst.msk [vmem:[#allocation3 + $0xa8] sm:$0xff] %vm3934_vm4, %v4276_v2  ;;  %v1909_v34 = vcombine.high %v1357_v54, %v1357_v54  ;;  %v1916_v26 = vrot.slane %v1357_v54, %v12814_v63  ;;  %v13991_v38 = vmax.f32 %v3094_v27, %v3095_v8 }
 0x2df   : > { %v13984_v48 = vsel %vm3762_vm13, %v13970_v32, %v13964_v17  ;;  %v4291_v50 = vsel %vm3762_vm13, %v13975_v0, %v13970_v32  ;;  %4131 = vrot.lane.b32.xlu0 %v4033_v40, %s12090_s18  ;;  %v1250_v49 = vadd.f32 %v13869_v5, %v13475_v18  ;;  %v11672_v42 = vpack.c.bf16 %v4448_v57, %v4447_v55 }
 0x2e0   : > { %v1923_v56 = vrot.slane %v1909_v34, %v12814_v63  ;;  %v1924_v13 = vcombine.high %v1916_v26, %v1916_v26  ;;  %v3153_v9 = vsel %vm2340_vm11, %v1916_v26, -inf  ;;  %v11675_v60 = vpack.c.bf16 %v4450_v12, %v4449_v41  ;;  %17792 = vst [vmem:[#allocation83_spill] sm:$0xff] %v14025_v39 }
 0x2e1   : > { %v14003_v27 = vsel %vm3750_vm12, %v13991_v38, %v4291_v50  ;;  %v3154_v19 = vrot.slane %v3153_v9, 4  ;;  %v1356_v51 = vmax.f32 %v1250_v49, 0.0  ;;  %11673 = vmatpush1.bf16.msra.mxu1 %v11672_v42  ;;  %v17790_v54 = vrot.slane %v13746_v46, 1 }
 0x2e2   : > { %v1925_v18 = vcombine.high %v1923_v56, %v1923_v56  ;;  %v3160_v55 = vsel %vm2340_vm11, %v1924_v13, -inf  ;;  %v3167_v57 = vsel %vm2340_vm11, %v1923_v56, -inf  ;;  %11674 = vmatprep.subr.bf16.mxu1 %v17787_v23  ;;  %v3009_v30 = vrot.slane %v13742_v33, 2 }
 0x2e3   : > { %v14008_v8 = vmax.f32 %v13746_v46, %v17790_v54  ;;  %v3155_v2 = vmax.f32 %v3153_v9, %v3154_v19  ;;  %v3161_v41 = vrot.slane %v3160_v55, 4  ;;  %v3168_v12 = vrot.slane %v3167_v57, 4 }
 0x2e4   : > { %v1892_v40 = vcombine.high %v1356_v51, %v1356_v51  ;;  %v3174_v34 = vsel %vm2340_vm11, %v1925_v18, -inf  ;;  %v1899_v26 = vrot.slane %v1356_v51, %v12814_v63  ;;  %v3010_v46 = vmax.f32 %v13742_v33, %v3009_v30 }
 0x2e5   : > { %17791 = vst [vmem:[#allocation82_spill] sm:$0xff] %v14008_v8  ;;  %v4035_v50 = vsel %vm3750_vm12, %v13785_v21, %v13796_v25  ;;  %v3156_v49 = vrot.slane %v3155_v2, 2  ;;  %v3162_v42 = vmax.f32 %v3160_v55, %v3161_v41  ;;  %v3169_v56 = vmax.f32 %v3167_v57, %v3168_v12  ;;  %11676 = vmatpush1.bf16.msra.mxu1 %v11675_v60 }
 0x2e6   : > { %v3175_v13 = vrot.slane %v3174_v34, 4  ;;  %v1906_v9 = vrot.slane %v1892_v40, %v12814_v63  ;;  %v1907_v19 = vcombine.high %v1899_v26, %v1899_v26  ;;  %v3125_v54 = vsel %vm2340_vm11, %v1899_v26, -inf  ;;  %11677 = vmatprep.subr.bf16.mxu1 %v17787_v23 }
 0x2e7   : > { %v3011_v62 = vrot.slane %v3010_v46, 1  ;;  %v3157_v51 = vmax.f32 %v3155_v2, %v3156_v49  ;;  %v3163_v18 = vrot.slane %v3162_v42, 2  ;;  %v3170_v33 = vrot.slane %v3169_v56, 2 }
 0x2e8   : > { %v14023_v30 = vmax.f32 %v3174_v34, %v3175_v13  ;;  %v1908_v21 = vcombine.high %v1906_v9, %v1906_v9  ;;  %v3126_v25 = vrot.slane %v3125_v54, 4  ;;  %v3132_v55 = vsel %vm2340_vm11, %v1907_v19, -inf }
 0x2e9   : > { %v3139_v60 = vsel %vm2340_vm11, %v1906_v9, -inf  ;;  %v3158_v57 = vrot.slane %v3157_v51, 1  ;;  %v3164_v41 = vmax.f32 %v3162_v42, %v3163_v18  ;;  %v14029_v12 = vmax.f32 %v3169_v56, %v3170_v33 }
 0x2ea   : > { %v3133_v40 = vrot.slane %v3132_v55, 4  ;;  %v3127_v26 = vmax.f32 %v3125_v54, %v3126_v25  ;;  %v3140_v3 = vrot.slane %v3139_v60, 4  ;;  %v3146_v2 = vsel %vm2340_vm11, %v1908_v21, -inf }
 0x2eb   : > { %v3012_v49 = vmax.f32 %v3010_v46, %v3011_v62  ;;  %v14032_v34 = vmax.f32 %v3157_v51, %v3158_v57  ;;  %v3165_v13 = vrot.slane %v3164_v41, 1  ;;  %v3147_v39 = vrot.slane %v3146_v2, 4 }
 0x2ec   : > { %v3134_v1 = vmax.f32 %v3132_v55, %v3133_v40  ;;  %v3128_v20 = vrot.slane %v3127_v26, 2  ;;  %v3141_v19 = vmax.f32 %v3139_v60, %v3140_v3  ;;  %v4036_v62 = vsel %vm3752_vm14, %v13801_v59, %v4035_v50  ;;  %v17795_v55 = vld [vmem:[#allocation57_spill] sm:$0xff] }
 0x2ed   : > { %v3840_v42 = vsel %vm3762_vm13, %v13873_v35, %v3012_v49  ;;  %v14037_v56 = vmax.f32 %v3164_v41, %v3165_v13  ;;  %v3148_v18 = vmax.f32 %v3146_v2, %v3147_v39  ;;  %v4037_v21 = vsel %vm3754_vm15, %v13752_v44, %v4036_v62 }
 0x2ee   : > { %v3135_v9 = vrot.slane %v3134_v1, 2  ;;  %v3841_v54 = vsel %vm3750_vm12, %v13881_v52, %v3840_v42  ;;  %v3129_v46 = vmax.f32 %v3127_v26, %v3128_v20  ;;  %v3142_v51 = vrot.slane %v3141_v19, 2 }
 0x2ef   : > { %17793 = vst [vmem:[#allocation84_spill] sm:$0xff] %v14037_v56  ;;  %v14045_v33 = vsel %vm3752_vm14, %v13883_v16, %v3841_v54  ;;  %v4279_v25 = vsel %vm3752_vm14, %v13752_v44, %v13821_v61  ;;  %v1265_v52 = vadd.f32 %v13869_v5, %v17795_v55  ;;  %v3149_v20 = vrot.slane %v3148_v18, 2 }
 0x2f0   : > { %17794 = vst [vmem:[#allocation85_spill] sm:$0xff] %v14045_v33  ;;  %v3136_v3 = vmax.f32 %v3134_v1, %v3135_v9  ;;  %v3130_v60 = vrot.slane %v3129_v46, 1  ;;  %v3143_v50 = vmax.f32 %v3141_v19, %v3142_v51  ;;  %v4038_v39 = vsel %vm3756_vm0, %v13756_v37, %v4037_v21 }
 0x2f1   : > { %v4039_v1 = vsel %vm3758_vm1, %v14008_v8, %v4038_v39  ;;  %v4280_v41 = vsel %vm3754_vm15, %v13756_v37, %v4279_v25  ;;  %v1359_v40 = vmax.f32 %v1265_v52, 0.0  ;;  %v3150_v2 = vmax.f32 %v3148_v18, %v3149_v20  ;;  %v4452_v20 = vld [vmem:[#allocation5 + $0x48] sm:$0xff]  ;;  %v14089_v39 = vpop.f32.mrb[9].mxu1 }
 0x2f2   : > { %v3137_v57 = vrot.slane %v3136_v3, 1  ;;  %v14060_v26 = vmax.f32 %v3129_v46, %v3130_v60  ;;  %v3144_v61 = vrot.slane %v3143_v50, 1  ;;  %v4040_v13 = vsel %vm3760_vm3, %v3012_v49, %v4039_v1  ;;  %17796 = vst [vmem:[#allocation57_spill] sm:$0xff] %v14089_v39 }
 0x2f3   : > { %v4281_v19 = vsel %vm3756_vm0, %v14008_v8, %v4280_v41  ;;  %4133 = vrot.lane.b32.xlu1 %v4040_v13, %s12090_s18  ;;  %v1943_v9 = vcombine.high %v1359_v40, %v1359_v40  ;;  %v1950_v54 = vrot.slane %v1359_v40, %v12814_v63  ;;  %v3151_v51 = vrot.slane %v3150_v2, 1 }
 0x2f4   : > { %v14063_v42 = vmax.f32 %v3136_v3, %v3137_v57  ;;  %v14069_v62 = vmax.f32 %v3143_v50, %v3144_v61  ;;  %v4282_v46 = vsel %vm3758_vm1, %v3012_v49, %v4281_v19  ;;  %v1260_v18 = vadd.f32 %v13869_v5, %v13559_v29  ;;  %v4451_v50 = vld [vmem:[#allocation5 + $0x40] sm:$0xff]  ;;  %v4453_v19 = vld [vmem:[#allocation5 + $0x50] sm:$0xff] }
 0x2f5   : > { %v4283_v21 = vsel %vm3760_vm3, %v13873_v35, %v4282_v46  ;;  %v1957_v25 = vrot.slane %v1943_v9, %v12814_v63  ;;  %v1958_v55 = vcombine.high %v1950_v54, %v1950_v54  ;;  %v14082_v52 = vmax.f32 %v3150_v2, %v3151_v51  ;;  %v4454_v9 = vld [vmem:[#allocation5 + $0x58] sm:$0xff] }
 0x2f6   : > { %v14077_v3 = vsel %vm3762_vm13, %v14063_v42, %v14060_v26  ;;  %v4298_v49 = vsel %vm3762_vm13, %v14069_v62, %v14063_v42  ;;  %4386 = vst.msk [vmem:[#allocation3 + $0xb8] sm:$0xff] %vm3934_vm4, %v4283_v21  ;;  %v3209_v29 = vsel %vm2340_vm11, %v1950_v54, -inf  ;;  %v1358_v60 = vmax.f32 %v1260_v18, 0.0 }
 0x2f7   : > { %v1959_v57 = vcombine.high %v1957_v25, %v1957_v25  ;;  %v3210_v35 = vrot.slane %v3209_v29, 4  ;;  %v3216_v1 = vsel %vm2340_vm11, %v1958_v55, -inf  ;;  %v3223_v41 = vsel %vm2340_vm11, %v1957_v25, -inf }
 0x2f8   : > { %v14095_v40 = vsel %vm3750_vm12, %v14082_v52, %v4298_v49  ;;  %v3217_v61 = vrot.slane %v3216_v1, 4  ;;  %v3224_v2 = vrot.slane %v3223_v41, 4  ;;  %v1926_v13 = vcombine.high %v1358_v60, %v1358_v60 }
 0x2f9   : > { %v3211_v54 = vmax.f32 %v3209_v29, %v3210_v35  ;;  %v3230_v51 = vsel %vm2340_vm11, %v1959_v57, -inf  ;;  %v1933_v46 = vrot.slane %v1358_v60, %v12814_v63  ;;  %v11678_v18 = vpack.c.bf16 %v4452_v20, %v4451_v50 }
 0x2fa   : > { %v3218_v21 = vmax.f32 %v3216_v1, %v3217_v61  ;;  %v3225_v43 = vmax.f32 %v3223_v41, %v3224_v2  ;;  %v3231_v55 = vrot.slane %v3230_v51, 4  ;;  %v1940_v25 = vrot.slane %v1926_v13, %v12814_v63  ;;  %v14108_v2 = vpop.f32.mrb[10].mxu1 }
 0x2fb   : > { %v3212_v8 = vrot.slane %v3211_v54, 2  ;;  %v1941_v37 = vcombine.high %v1933_v46, %v1933_v46  ;;  %v3181_v49 = vsel %vm2340_vm11, %v1933_v46, -inf  ;;  %11679 = vmatpush1.bf16.msra.mxu1 %v11678_v18  ;;  %v11681_v33 = vpack.c.bf16 %v4454_v9, %v4453_v19  ;;  %17797 = vst [vmem:[#allocation86_spill] sm:$0xff] %v14108_v2 }
 0x2fc   : > { %v3219_v44 = vrot.slane %v3218_v21, 2  ;;  %v3226_v59 = vrot.slane %v3225_v43, 2  ;;  %v14101_v39 = vmax.f32 %v3230_v51, %v3231_v55  ;;  %v1942_v29 = vcombine.high %v1940_v25, %v1940_v25  ;;  %11680 = vmatprep.subr.bf16.mxu1 %v17787_v23 }
 0x2fd   : > { %v3213_v60 = vmax.f32 %v3211_v54, %v3212_v8  ;;  %v3182_v50 = vrot.slane %v3181_v49, 4  ;;  %v3188_v20 = vsel %vm2340_vm11, %v1941_v37, -inf  ;;  %v3195_v57 = vsel %vm2340_vm11, %v1940_v25, -inf }
 0x2fe   : > { %v3220_v35 = vmax.f32 %v3218_v21, %v3219_v44  ;;  %v14106_v1 = vmax.f32 %v3225_v43, %v3226_v59  ;;  %v3189_v41 = vrot.slane %v3188_v20, 4  ;;  %v3196_v61 = vrot.slane %v3195_v57, 4 }
 0x2ff   : > { %v3214_v13 = vrot.slane %v3213_v60, 1  ;;  %v3183_v19 = vmax.f32 %v3181_v49, %v3182_v50  ;;  %v3202_v9 = vsel %vm2340_vm11, %v1942_v29, -inf  ;;  %11682 = vmatpush1.bf16.msra.mxu1 %v11681_v33  ;;  %v17798_v51 = vrot.slane %v13840_v14, 1 }
 0x300   : > { %v3221_v37 = vrot.slane %v3220_v35, 1  ;;  %v3190_v44 = vmax.f32 %v3188_v20, %v3189_v41  ;;  %v3197_v59 = vmax.f32 %v3195_v57, %v3196_v61  ;;  %11683 = vmatprep.subr.bf16.mxu1 %v17787_v23  ;;  %v3203_v18 = vrot.slane %v3202_v9, 4 }
 0x301   : > { %v14114_v8 = vmax.f32 %v13840_v14, %v17798_v51  ;;  %v14118_v43 = vmax.f32 %v3213_v60, %v3214_v13  ;;  %v3184_v46 = vrot.slane %v3183_v19, 2  ;;  %v3065_v21 = vrot.slane %v13836_v6, 2 }
 0x302   : > { %v14121_v55 = vmax.f32 %v3220_v35, %v3221_v37  ;;  %v3191_v33 = vrot.slane %v3190_v44, 2  ;;  %v3198_v25 = vrot.slane %v3197_v59, 2  ;;  %v4042_v14 = vsel %vm3750_vm12, %v13883_v16, %v13896_v58 }
 0x303   : > { %17799 = vst [vmem:[#allocation87_spill] sm:$0xff] %v14114_v8  ;;  %17800 = vst [vmem:[#allocation88_spill] sm:$0xff] %v14118_v43  ;;  %v3185_v49 = vmax.f32 %v3183_v19, %v3184_v46  ;;  %v3204_v29 = vmax.f32 %v3202_v9, %v3203_v18  ;;  %v3066_v50 = vmax.f32 %v13836_v6, %v3065_v21 }
 0x304   : > { %17801 = vst [vmem:[#allocation89_spill] sm:$0xff] %v14121_v55  ;;  %v4043_v60 = vsel %vm3752_vm14, %v13905_v31, %v4042_v14  ;;  %v3192_v20 = vmax.f32 %v3190_v44, %v3191_v33  ;;  %v3199_v57 = vmax.f32 %v3197_v59, %v3198_v25  ;;  %v4286_v35 = vsel %vm3752_vm14, %v13844_v53, %v13912_v22  ;;  %v4455_v25 = vld [vmem:[#allocation5 + $0x60] sm:$0xff] }
 0x305   : > { %v4044_v41 = vsel %vm3754_vm15, %v13844_v53, %v4043_v60  ;;  %v3186_v61 = vrot.slane %v3185_v49, 1  ;;  %v3205_v13 = vrot.slane %v3204_v29, 2  ;;  %v3067_v51 = vrot.slane %v3066_v50, 1  ;;  %v4456_v60 = vld [vmem:[#allocation5 + $0x68] sm:$0xff] }
 0x306   : > { %v4045_v16 = vsel %vm3756_vm0, %v13850_v36, %v4044_v41  ;;  %v3193_v58 = vrot.slane %v3192_v20, 1  ;;  %v3200_v6 = vrot.slane %v3199_v57, 1  ;;  %v4287_v9 = vsel %vm3754_vm15, %v13850_v36, %v4286_v35  ;;  %v4458_v41 = vld [vmem:[#allocation5 + $0x78] sm:$0xff] }
 0x307   : > { %v4046_v19 = vsel %vm3758_vm1, %v14114_v8, %v4045_v16  ;;  %v14140_v37 = vmax.f32 %v3185_v49, %v3186_v61  ;;  %v3206_v44 = vmax.f32 %v3204_v29, %v3205_v13  ;;  %v3068_v59 = vmax.f32 %v3066_v50, %v3067_v51 }
 0x308   : > { %v4288_v22 = vsel %vm3756_vm0, %v14114_v8, %v4287_v9  ;;  %v14144_v46 = vmax.f32 %v3192_v20, %v3193_v58  ;;  %v14146_v18 = vmax.f32 %v3199_v57, %v3200_v6  ;;  %v1275_v21 = vadd.f32 %v13869_v5, %v13656_v45  ;;  %v4457_v20 = vld [vmem:[#allocation5 + $0x70] sm:$0xff]  ;;  %v14176_v58 = vpop.f32.mrb[11].mxu1 }
 0x309   : > { %v1270_v33 = vadd.f32 %v13869_v5, %v13669_v28  ;;  %v3207_v14 = vrot.slane %v3206_v44, 1  ;;  %v3847_v49 = vsel %vm3762_vm13, %v13964_v17, %v3068_v59  ;;  %v4047_v29 = vsel %vm3760_vm3, %v3068_v59, %v4046_v19  ;;  %17804 = vst [vmem:[#allocation92_spill] sm:$0xff] %v14176_v58 }
 0x30a   : > { %v4289_v50 = vsel %vm3758_vm1, %v3068_v59, %v4288_v22  ;;  %v14159_v57 = vsel %vm3762_vm13, %v14144_v46, %v14140_v37  ;;  %v4305_v45 = vsel %vm3762_vm13, %v14146_v18, %v14144_v46  ;;  %v3848_v28 = vsel %vm3750_vm12, %v13970_v32, %v3847_v49  ;;  %4135 = vrot.lane.b32.xlu0 %v4047_v29, %s12090_s18 }
 0x30b   : > { %v4290_v35 = vsel %vm3760_vm3, %v13964_v17, %v4289_v50  ;;  %v14169_v61 = vmax.f32 %v3206_v44, %v3207_v14  ;;  %v14173_v13 = vsel %vm3752_vm14, %v13975_v0, %v3848_v28  ;;  %v1361_v51 = vmax.f32 %v1275_v21, 0.0 }
 0x30c   : > { %17803 = vst [vmem:[#allocation91_spill] sm:$0xff] %v14173_v13  ;;  %4387 = vst.msk [vmem:[#allocation3 + $0xc8] sm:$0xff] %vm3934_vm4, %v4290_v35  ;;  %v1360_v16 = vmax.f32 %v1270_v33, 0.0  ;;  %v11684_v6 = vpack.c.bf16 %v4456_v60, %v4455_v25  ;;  %v11687_v19 = vpack.c.bf16 %v4458_v41, %v4457_v20  ;;  %v17805_v32 = vrot.slane %v13933_v10, 1 }
 0x30d   : > { %17802 = vst [vmem:[#allocation90_spill] sm:$0xff] %v14169_v61  ;;  %v3121_v9 = vrot.slane %v13928_v24, 2  ;;  %v14186_v44 = vsel %vm3750_vm12, %v14169_v61, %v4305_v45  ;;  %v1977_v59 = vcombine.high %v1361_v51, %v1361_v51  ;;  %v1984_v22 = vrot.slane %v1361_v51, %v12814_v63 }
 0x30e   : > { %v14181_v17 = vmax.f32 %v13933_v10, %v17805_v32  ;;  %v1960_v21 = vcombine.high %v1360_v16, %v1360_v16  ;;  %v1967_v33 = vrot.slane %v1360_v16, %v12814_v63  ;;  %11685 = vmatpush1.bf16.msra.mxu1 %v11684_v6  ;;  %v4049_v10 = vsel %vm3750_vm12, %v13975_v0, %v13984_v48 }
 0x30f   : > { %v3122_v25 = vmax.f32 %v13928_v24, %v3121_v9  ;;  %v4293_v14 = vsel %vm3752_vm14, %v13939_v7, %v14003_v27  ;;  %v1991_v49 = vrot.slane %v1977_v59, %v12814_v63  ;;  %v1992_v29 = vcombine.high %v1984_v22, %v1984_v22  ;;  %11686 = vmatprep.subr.bf16.mxu1 %v17787_v23 }
 0x310   : > { %17806 = vst [vmem:[#allocation93_spill] sm:$0xff] %v14181_v17  ;;  %v3265_v50 = vsel %vm2340_vm11, %v1984_v22, -inf  ;;  %v1974_v60 = vrot.slane %v1960_v21, %v12814_v63  ;;  %v1975_v41 = vcombine.high %v1967_v33, %v1967_v33  ;;  %v3237_v24 = vsel %vm2340_vm11, %v1967_v33, -inf }
 0x311   : > { %v3266_v20 = vrot.slane %v3265_v50, 4  ;;  %v3123_v45 = vrot.slane %v3122_v25, 1  ;;  %v1993_v28 = vcombine.high %v1991_v49, %v1991_v49  ;;  %v3272_v0 = vsel %vm2340_vm11, %v1992_v29, -inf }
 0x312   : > { %v3279_v48 = vsel %vm2340_vm11, %v1991_v49, -inf  ;;  %v1976_v27 = vcombine.high %v1974_v60, %v1974_v60  ;;  %v3273_v51 = vrot.slane %v3272_v0, 4  ;;  %v3238_v6 = vrot.slane %v3237_v24, 4  ;;  %11688 = vmatpush1.bf16.msra.mxu1 %v11687_v19 }
 0x313   : > { %v3267_v35 = vmax.f32 %v3265_v50, %v3266_v20  ;;  %v3280_v16 = vrot.slane %v3279_v48, 4  ;;  %v3286_v32 = vsel %vm2340_vm11, %v1993_v28, -inf  ;;  %v3244_v9 = vsel %vm2340_vm11, %v1975_v41, -inf  ;;  %11689 = vmatprep.subr.bf16.mxu1 %v17787_v23 }
 0x314   : > { %v3251_v59 = vsel %vm2340_vm11, %v1974_v60, -inf  ;;  %v3258_v22 = vsel %vm2340_vm11, %v1976_v27, -inf  ;;  %v3274_v33 = vmax.f32 %v3272_v0, %v3273_v51  ;;  %v3287_v49 = vrot.slane %v3286_v32, 4 }
 0x315   : > { %v3268_v21 = vrot.slane %v3267_v35, 2  ;;  %v3281_v29 = vmax.f32 %v3279_v48, %v3280_v16  ;;  %v3239_v54 = vmax.f32 %v3237_v24, %v3238_v6  ;;  %v3245_v50 = vrot.slane %v3244_v9, 4 }
 0x316   : > { %v3252_v20 = vrot.slane %v3251_v59, 4  ;;  %v3259_v8 = vrot.slane %v3258_v22, 4  ;;  %v3275_v19 = vrot.slane %v3274_v33, 2  ;;  %v14209_v28 = vmax.f32 %v3286_v32, %v3287_v49 }
 0x317   : > { %v3269_v36 = vmax.f32 %v3267_v35, %v3268_v21  ;;  %v3282_v13 = vrot.slane %v3281_v29, 2  ;;  %v3240_v41 = vrot.slane %v3239_v54, 2  ;;  %v3246_v53 = vmax.f32 %v3244_v9, %v3245_v50 }
 0x318   : > { %v3253_v60 = vmax.f32 %v3251_v59, %v3252_v20  ;;  %v3260_v31 = vmax.f32 %v3258_v22, %v3259_v8  ;;  %v3276_v58 = vmax.f32 %v3274_v33, %v3275_v19  ;;  %v3124_v0 = vmax.f32 %v3122_v25, %v3123_v45  ;;  %v4459_v19 = vld [vmem:[#allocation5 + $0x80] sm:$0xff] }
 0x319   : > { %v3270_v27 = vrot.slane %v3269_v36, 1  ;;  %v14211_v2 = vmax.f32 %v3281_v29, %v3282_v13  ;;  %v3241_v48 = vmax.f32 %v3239_v54, %v3240_v41  ;;  %v3247_v51 = vrot.slane %v3246_v53, 2 }
 0x31a   : > { %v3254_v24 = vrot.slane %v3253_v60, 2  ;;  %v3261_v16 = vrot.slane %v3260_v31, 2  ;;  %v3277_v35 = vrot.slane %v3276_v58, 1  ;;  %v3854_v32 = vsel %vm3762_vm13, %v14060_v26, %v3124_v0 }
 0x31b   : > { %v14213_v6 = vmax.f32 %v3269_v36, %v3270_v27  ;;  %v3242_v9 = vrot.slane %v3241_v48, 1  ;;  %v3248_v59 = vmax.f32 %v3246_v53, %v3247_v51  ;;  %v3855_v54 = vsel %vm3750_vm12, %v14063_v42, %v3854_v32 }
 0x31c   : > { %v3255_v8 = vmax.f32 %v3253_v60, %v3254_v24  ;;  %v3262_v22 = vmax.f32 %v3260_v31, %v3261_v16  ;;  %v14218_v33 = vmax.f32 %v3276_v58, %v3277_v35  ;;  %v4050_v13 = vsel %vm3752_vm14, %v13991_v38, %v4049_v10  ;;  %v4461_v24 = vld [vmem:[#allocation5 + $0x90] sm:$0xff]  ;;  %v4462_v16 = vld [vmem:[#allocation5 + $0x98] sm:$0xff] }
 0x31d   : > { %v4294_v36 = vsel %vm3754_vm15, %v13942_v4, %v4293_v14  ;;  %v14226_v25 = vmax.f32 %v3241_v48, %v3242_v9  ;;  %v3249_v45 = vrot.slane %v3248_v59, 1  ;;  %v14230_v53 = vsel %vm3752_vm14, %v14069_v62, %v3855_v54  ;;  %v17808_v48 = vld [vmem:[#allocation69_spill] sm:$0xff] }
 0x31e   : > { %17807 = vst [vmem:[#allocation94_spill] sm:$0xff] %v14218_v33  ;;  %v3256_v29 = vrot.slane %v3255_v8, 1  ;;  %v3263_v49 = vrot.slane %v3262_v22, 1  ;;  %v4051_v31 = vsel %vm3754_vm15, %v13939_v7, %v4050_v13  ;;  %v4295_v42 = vsel %vm3756_vm0, %v14181_v17, %v4294_v36 }
 0x31f   : > { %v1285_v58 = vadd.f32 %v13869_v5, %v13740_v11  ;;  %v14238_v10 = vmax.f32 %v3248_v59, %v3249_v45  ;;  %v4052_v20 = vsel %vm3756_vm0, %v13942_v4, %v4051_v31  ;;  %v4296_v60 = vsel %vm3758_vm1, %v3124_v0, %v4295_v42  ;;  %v4460_v11 = vld [vmem:[#allocation5 + $0x88] sm:$0xff] }
 0x320   : > { %v14240_v14 = vmax.f32 %v3255_v8, %v3256_v29  ;;  %v14242_v50 = vmax.f32 %v3262_v22, %v3263_v49  ;;  %v4053_v41 = vsel %vm3758_vm1, %v14181_v17, %v4052_v20  ;;  %v1280_v51 = vadd.f32 %v13869_v5, %v17808_v48 }
 0x321   : > { %v1363_v27 = vmax.f32 %v1285_v58, 0.0  ;;  %v14254_v35 = vsel %vm3762_vm13, %v14238_v10, %v14226_v25  ;;  %v4054_v9 = vsel %vm3760_vm3, %v3124_v0, %v4053_v41  ;;  %v4297_v59 = vsel %vm3760_vm3, %v14060_v26, %v4296_v60 }
 0x322   : > { %v4312_v32 = vsel %vm3762_vm13, %v14240_v14, %v14238_v10  ;;  %4388 = vst.msk [vmem:[#allocation3 + $0xd8] sm:$0xff] %vm3934_vm4, %v4297_v59  ;;  %4137 = vrot.lane.b32.xlu1 %v4054_v9, %s12090_s18  ;;  %v1362_v13 = vmax.f32 %v1280_v51, 0.0  ;;  %v11690_v36 = vpack.c.bf16 %v4460_v11, %v4459_v19  ;;  %v11693_v45 = vpack.c.bf16 %v4462_v16, %v4461_v24 }
 0x323   : > { %v14264_v8 = vsel %vm3750_vm12, %v14242_v50, %v4312_v32  ;;  %v2011_v22 = vcombine.high %v1363_v27, %v1363_v27  ;;  %v2018_v54 = vrot.slane %v1363_v27, %v12814_v63  ;;  %v17809_v29 = vrot.slane %v14029_v12, 1 }
 0x324   : > { %v3177_v26 = vrot.slane %v14023_v30, 2  ;;  %v1994_v58 = vcombine.high %v1362_v13, %v1362_v13  ;;  %v2001_v41 = vrot.slane %v1362_v13, %v12814_v63  ;;  %11691 = vmatpush1.bf16.msra.mxu1 %v11690_v36  ;;  %v4056_v60 = vsel %vm3750_vm12, %v14069_v62, %v14077_v3 }
 0x325   : > { %v14272_v0 = vmax.f32 %v14029_v12, %v17809_v29  ;;  %v2025_v49 = vrot.slane %v2011_v22, %v12814_v63  ;;  %v2026_v31 = vcombine.high %v2018_v54, %v2018_v54  ;;  %v3321_v42 = vsel %vm2340_vm11, %v2018_v54, -inf  ;;  %11692 = vmatprep.subr.bf16.mxu1 %v17787_v23 }
 0x326   : > { %v3322_v20 = vrot.slane %v3321_v42, 4  ;;  %v3178_v19 = vmax.f32 %v14023_v30, %v3177_v26  ;;  %v2008_v51 = vrot.slane %v1994_v58, %v12814_v63  ;;  %v2009_v32 = vcombine.high %v2001_v41, %v2001_v41 }
 0x327   : > { %17810 = vst [vmem:[#allocation69_spill] sm:$0xff] %v14272_v0  ;;  %v2027_v12 = vcombine.high %v2025_v49, %v2025_v49  ;;  %v3328_v27 = vsel %vm2340_vm11, %v2026_v31, -inf  ;;  %v3335_v48 = vsel %vm2340_vm11, %v2025_v49, -inf  ;;  %v3293_v59 = vsel %vm2340_vm11, %v2001_v41, -inf }
 0x328   : > { %v3323_v11 = vmax.f32 %v3321_v42, %v3322_v20  ;;  %v3329_v24 = vrot.slane %v3328_v27, 4  ;;  %v3336_v16 = vrot.slane %v3335_v48, 4  ;;  %v2010_v30 = vcombine.high %v2008_v51, %v2008_v51  ;;  %11694 = vmatpush1.bf16.msra.mxu1 %v11693_v45 }
 0x329   : > { %v3342_v9 = vsel %vm2340_vm11, %v2027_v12, -inf  ;;  %v3307_v62 = vsel %vm2340_vm11, %v2008_v51, -inf  ;;  %v3294_v36 = vrot.slane %v3293_v59, 4  ;;  %v3300_v29 = vsel %vm2340_vm11, %v2009_v32, -inf  ;;  %11695 = vmatprep.subr.bf16.mxu1 %v17787_v23 }
 0x32a   : > { %v3324_v3 = vrot.slane %v3323_v11, 2  ;;  %v3330_v22 = vmax.f32 %v3328_v27, %v3329_v24  ;;  %v3337_v54 = vmax.f32 %v3335_v48, %v3336_v16  ;;  %v3343_v13 = vrot.slane %v3342_v9, 4 }
 0x32b   : > { %v3308_v26 = vrot.slane %v3307_v62, 4  ;;  %v3314_v49 = vsel %vm2340_vm11, %v2010_v30, -inf  ;;  %v3295_v41 = vmax.f32 %v3293_v59, %v3294_v36  ;;  %v3301_v12 = vrot.slane %v3300_v29, 4 }
 0x32c   : > { %v3325_v31 = vmax.f32 %v3323_v11, %v3324_v3  ;;  %v3331_v42 = vrot.slane %v3330_v22, 2  ;;  %v3338_v58 = vrot.slane %v3337_v54, 2  ;;  %v14292_v20 = vmax.f32 %v3342_v9, %v3343_v13 }
 0x32d   : > { %v3309_v51 = vmax.f32 %v3307_v62, %v3308_v26  ;;  %v3315_v27 = vrot.slane %v3314_v49, 4  ;;  %v3179_v16 = vrot.slane %v3178_v19, 1  ;;  %v3296_v32 = vrot.slane %v3295_v41, 2 }
 0x32e   : > { %v3326_v48 = vrot.slane %v3325_v31, 1  ;;  %v3332_v24 = vmax.f32 %v3330_v22, %v3331_v42  ;;  %v14294_v45 = vmax.f32 %v3337_v54, %v3338_v58  ;;  %v3302_v21 = vmax.f32 %v3300_v29, %v3301_v12  ;;  %v17813_v12 = vld [vmem:[#allocation75_spill] sm:$0xff] }
 0x32f   : > { %v3310_v17 = vrot.slane %v3309_v51, 2  ;;  %v3316_v30 = vmax.f32 %v3314_v49, %v3315_v27  ;;  %v3180_v9 = vmax.f32 %v3178_v19, %v3179_v16  ;;  %v3297_v13 = vmax.f32 %v3295_v41, %v3296_v32 }
 0x330   : > { %v14296_v4 = vmax.f32 %v3325_v31, %v3326_v48  ;;  %v3333_v11 = vrot.slane %v3332_v24, 1  ;;  %v3303_v59 = vrot.slane %v3302_v21, 2  ;;  %v4057_v54 = vsel %vm3752_vm14, %v14082_v52, %v4056_v60 }
 0x331   : > { %v3311_v36 = vmax.f32 %v3309_v51, %v3310_v17  ;;  %v3317_v62 = vrot.slane %v3316_v30, 2  ;;  %v3861_v22 = vsel %vm3762_vm13, %v14140_v37, %v3180_v9  ;;  %v4300_v29 = vsel %vm3752_vm14, %v14032_v34, %v14095_v40 }
 0x332   : > { %17811 = vst [vmem:[#allocation95_spill] sm:$0xff] %v14296_v4  ;;  %v14299_v26 = vmax.f32 %v3332_v24, %v3333_v11  ;;  %v3298_v49 = vrot.slane %v3297_v13, 1  ;;  %v3304_v31 = vmax.f32 %v3302_v21, %v3303_v59  ;;  %v3862_v17 = vsel %vm3750_vm12, %v14144_v46, %v3861_v22  ;;  %v4463_v22 = vld [vmem:[#allocation5 + $0xa0] sm:$0xff] }
 0x333   : > { %v3312_v42 = vrot.slane %v3311_v36, 1  ;;  %v3318_v19 = vmax.f32 %v3316_v30, %v3317_v62  ;;  %v4058_v58 = vsel %vm3754_vm15, %v14032_v34, %v4057_v54  ;;  %v4301_v41 = vsel %vm3754_vm15, %v14037_v56, %v4300_v29  ;;  %v4464_v54 = vld [vmem:[#allocation5 + $0xa8] sm:$0xff] }
 0x334   : > { %17812 = vst [vmem:[#allocation96_spill] sm:$0xff] %v14299_v26  ;;  %v1295_v60 = vadd.f32 %v13869_v5, %v17813_v12  ;;  %v14316_v51 = vmax.f32 %v3297_v13, %v3298_v49  ;;  %v3305_v27 = vrot.slane %v3304_v31, 1  ;;  %v14322_v48 = vsel %vm3752_vm14, %v14146_v18, %v3862_v17  ;;  %v17817_v12 = vld [vmem:[#allocation29_spill] sm:$0xff] }
 0x335   : > { %v14318_v40 = vmax.f32 %v3311_v36, %v3312_v42  ;;  %v3319_v21 = vrot.slane %v3318_v19, 1  ;;  %17814 = vst [vmem:[#allocation75_spill] sm:$0xff] %v14322_v48  ;;  %v4059_v46 = vsel %vm3756_vm0, %v14037_v56, %v4058_v58  ;;  %v4302_v24 = vsel %vm3756_vm0, %v14272_v0, %v4301_v41  ;;  %3933 = vst.msk [vmem:[#allocation3] sm:$0xfe] %vm3932_vm6, %v17817_v12 }
 0x336   : > { %v1365_v16 = vmax.f32 %v1295_v60, 0.0  ;;  %v14328_v32 = vmax.f32 %v3304_v31, %v3305_v27  ;;  %v4060_v30 = vsel %vm3758_vm1, %v14272_v0, %v4059_v46  ;;  %v4303_v11 = vsel %vm3758_vm1, %v3180_v9, %v4302_v24  ;;  %v4466_v31 = vld [vmem:[#allocation5 + $0xb8] sm:$0xff] }
 0x337   : > { %v14330_v5 = vmax.f32 %v3318_v19, %v3319_v21  ;;  %v4061_v13 = vsel %vm3760_vm3, %v3180_v9, %v4060_v30  ;;  %v4304_v59 = vsel %vm3760_vm3, %v14140_v37, %v4303_v11  ;;  %v4112_v37 = vpop.permute.xlu0 %4111  ;;  %v4465_v9 = vld [vmem:[#allocation5 + $0xb0] sm:$0xff]  ;;  %v17816_v41 = vmov 0.0   ;;  %v14361_v27 = vld [vmem:[%s17535_s2] ss:$0 sm:$0xff]  ;;  %v17818_v21 = vld [vmem:[#allocation48_spill] sm:$0xff] }
 0x338   : > { %v2045_v36 = vcombine.high %v1365_v16, %v1365_v16  ;;  %v2052_v62 = vrot.slane %v1365_v16, %v12814_v63  ;;  %v14342_v29 = vsel %vm3762_vm13, %v14328_v32, %v14316_v51  ;;  %v4319_v49 = vsel %vm3762_vm13, %v14318_v40, %v14328_v32  ;;  %4389 = vst.msk [vmem:[#allocation3 + $0xe8] sm:$0xff] %vm3934_vm4, %v4304_v59 }
 0x339   : > { %17815 = vst [vmem:[#allocation97_spill] sm:$0xff] %v14330_v5  ;;  %4139 = vrot.lane.b32.xlu0 %v4061_v13, %s12090_s18  ;;  %v14351_v42 = vsel %vm3750_vm12, %v14330_v5, %v4319_v49  ;;  %3574 = vst.msk [vmem:[#allocation3] sm:$0x1] %vm3573_vm5, %v17816_v41  ;;  %v1290_v46 = vadd.f32 %v14361_v27, %v17818_v21  ;;  %v11696_v24 = vpack.c.bf16 %v4464_v54, %v4463_v22 }
 0x33a   : > { %v2059_v19 = vrot.slane %v2045_v36, %v12814_v63  ;;  %v2060_v17 = vcombine.high %v2052_v62, %v2052_v62  ;;  %v3377_v58 = vsel %vm2340_vm11, %v2052_v62, -inf  ;;  %4398 = vst.msk [vmem:[#allocation3 + $0x15f] sm:$0x1] %vm3573_vm5, %v17816_v41  ;;  %v11699_v13 = vpack.c.bf16 %v4466_v31, %v4465_v9 }
 0x33b   : > { %v3378_v60 = vrot.slane %v3377_v58, 4  ;;  %4178 = vst.msk [vmem:[#allocation3] sm:$0xff] %vm4177_vm7, %v4112_v37  ;;  %v1364_v49 = vmax.f32 %v1290_v46, 0.0  ;;  %11697 = vmatpush1.bf16.msra.mxu1 %v11696_v24  ;;  %v17819_v21 = vrot.slane %v14106_v1, 1  ;;  %v3233_v54 = vrot.slane %v14101_v39, 2 }
 0x33c   : > { %v2061_v16 = vcombine.high %v2059_v19, %v2059_v19  ;;  %v3384_v30 = vsel %vm2340_vm11, %v2060_v17, -inf  ;;  %v3391_v11 = vsel %vm2340_vm11, %v2059_v19, -inf  ;;  %11698 = vmatprep.subr.bf16.mxu1 %v17787_v23  ;;  %v4063_v37 = vsel %vm3750_vm12, %v14146_v18, %v14159_v57 }
 0x33d   : > { %v3379_v59 = vmax.f32 %v3377_v58, %v3378_v60  ;;  %v3385_v36 = vrot.slane %v3384_v30, 4  ;;  %v3392_v62 = vrot.slane %v3391_v11, 4  ;;  %v14373_v22 = vmax.f32 %v14106_v1, %v17819_v21 }
 0x33e   : > { %v3398_v12 = vsel %vm2340_vm11, %v2061_v16, -inf  ;;  %v2028_v58 = vcombine.high %v1364_v49, %v1364_v49  ;;  %v2035_v60 = vrot.slane %v1364_v49, %v12814_v63  ;;  %v3234_v23 = vmax.f32 %v14101_v39, %v3233_v54 }
 0x33f   : > { %17820 = vst [vmem:[#allocation29_spill] sm:$0xff] %v14373_v22  ;;  %v3380_v9 = vrot.slane %v3379_v59, 2  ;;  %v3386_v31 = vmax.f32 %v3384_v30, %v3385_v36  ;;  %v3393_v19 = vmax.f32 %v3391_v11, %v3392_v62  ;;  %v3399_v17 = vrot.slane %v3398_v12, 4  ;;  %11700 = vmatpush1.bf16.msra.mxu1 %v11699_v13  ;;  %v4402_v13 = vld [vmem:[#allocation3 + $0x18] sm:$0xff] }
 0x340   : > { %v4064_v46 = vsel %vm3752_vm14, %v14169_v61, %v4063_v37  ;;  %v2042_v18 = vrot.slane %v2028_v58, %v12814_v63  ;;  %v2043_v57 = vcombine.high %v2035_v60, %v2035_v60  ;;  %v3349_v30 = vsel %vm2340_vm11, %v2035_v60, -inf }
 0x341   : > { %v3381_v1 = vmax.f32 %v3379_v59, %v3380_v9  ;;  %v3387_v24 = vrot.slane %v3386_v31, 2  ;;  %v3394_v16 = vrot.slane %v3393_v19, 2  ;;  %v14383_v21 = vmax.f32 %v3398_v12, %v3399_v17 }
 0x342   : > { %v3235_v11 = vrot.slane %v3234_v23, 1  ;;  %v3350_v39 = vrot.slane %v3349_v30, 4  ;;  %v4399_v54 = vld [vmem:[#allocation3] sm:$0xff]  ;;  %v2044_v3 = vcombine.high %v2042_v18, %v2042_v18  ;;  %v3356_v59 = vsel %vm2340_vm11, %v2043_v57, -inf }
 0x343   : > { %v3382_v36 = vrot.slane %v3381_v1, 1  ;;  %v3388_v62 = vmax.f32 %v3386_v31, %v3387_v24  ;;  %v14387_v49 = vmax.f32 %v3393_v19, %v3394_v16  ;;  %v3363_v37 = vsel %vm2340_vm11, %v2042_v18, -inf  ;;  %4605 = vmatmul.mubr.f32.vlgmr.msra.gmra.mrb[12].mxu1 %v4399_v54 }
 0x344   : > { %v3236_v12 = vmax.f32 %v3234_v23, %v3235_v11  ;;  %v3351_v60 = vmax.f32 %v3349_v30, %v3350_v39  ;;  %11459 = vmatprep.mubr.msk.f32.mxu1 %vm3934_vm4, %v4402_v13  ;;  %v3357_v31 = vrot.slane %v3356_v59, 4  ;;  %v3364_v19 = vrot.slane %v3363_v37, 4 }
 0x345   : > { %v14391_v9 = vmax.f32 %v3381_v1, %v3382_v36  ;;  %v3389_v17 = vrot.slane %v3388_v62, 1  ;;  %v3370_v24 = vsel %vm2340_vm11, %v2044_v3, -inf  ;;  %v4065_v39 = vsel %vm3754_vm15, %v14118_v43, %v4064_v46 }
 0x346   : > { %v3868_v16 = vsel %vm3762_vm13, %v14226_v25, %v3236_v12  ;;  %v3352_v23 = vrot.slane %v3351_v60, 2  ;;  %v3371_v18 = vrot.slane %v3370_v24, 4  ;;  %v3358_v11 = vmax.f32 %v3356_v59, %v3357_v31 }
 0x347   : > { %v14398_v57 = vmax.f32 %v3388_v62, %v3389_v17  ;;  %v3869_v1 = vsel %vm3750_vm12, %v14238_v10, %v3868_v16  ;;  %v3365_v36 = vmax.f32 %v3363_v37, %v3364_v19  ;;  %v4066_v62 = vsel %vm3756_vm0, %v14121_v55, %v4065_v39 }
 0x348   : > { %v14404_v30 = vsel %vm3752_vm14, %v14240_v14, %v3869_v1  ;;  %v3353_v3 = vmax.f32 %v3351_v60, %v3352_v23  ;;  %v3372_v54 = vmax.f32 %v3370_v24, %v3371_v18  ;;  %v4307_v13 = vsel %vm3752_vm14, %v14118_v43, %v14186_v44 }
 0x349   : > { %17821 = vst [vmem:[#allocation48_spill] sm:$0xff] %v14404_v30  ;;  %v3359_v17 = vrot.slane %v3358_v11, 2  ;;  %v3366_v10 = vrot.slane %v3365_v36, 2  ;;  %v4067_v59 = vsel %vm3758_vm1, %v14373_v22, %v4066_v62  ;;  %v4308_v37 = vsel %vm3754_vm15, %v14121_v55, %v4307_v13  ;;  %v17822_v62 = vld [vmem:[#allocation28_spill] sm:$0xff] }
 0x34a   : > { %v3354_v31 = vrot.slane %v3353_v3, 1  ;;  %v3373_v19 = vrot.slane %v3372_v54, 2  ;;  %v4068_v46 = vsel %vm3760_vm3, %v3236_v12, %v4067_v59  ;;  %v4309_v60 = vsel %vm3756_vm0, %v14373_v22, %v4308_v37  ;;  %v17823_v13 = vld [vmem:[#allocation20_spill] sm:$0xff] }
 0x34b   : > { %v3360_v24 = vmax.f32 %v3358_v11, %v3359_v17  ;;  %v3367_v16 = vmax.f32 %v3365_v36, %v3366_v10  ;;  %v4310_v23 = vsel %vm3758_vm1, %v3236_v12, %v4309_v60  ;;  %4141 = vrot.lane.b32.xlu1 %v4068_v46, %s12090_s18  ;;  %v1305_v44 = vadd.f32 %v14361_v27, %v13935_v15  ;;  %v17824_v36 = vld [vmem:[#allocation19_spill] sm:$0xff]  ;;  %v17825_v15 = vld [vmem:[#allocation30_spill] sm:$0xff] }
 0x34c   : > { %v14424_v18 = vmax.f32 %v3353_v3, %v3354_v31  ;;  %v3374_v1 = vmax.f32 %v3372_v54, %v3373_v19  ;;  %v4311_v39 = vsel %vm3760_vm3, %v14226_v25, %v4310_v23  ;;  %v3766_v59 = vsel %vm3754_vm15, %v17823_v13, %v17822_v62  ;;  %v17828_v62 = vld [vmem:[#allocation31_spill] sm:$0xff] }
 0x34d   : > { %v3361_v37 = vrot.slane %v3360_v24, 1  ;;  %v3368_v11 = vrot.slane %v3367_v16, 1  ;;  %4390 = vst.msk [vmem:[#allocation3 + $0xf8] sm:$0xff] %vm3934_vm4, %v4311_v39  ;;  %v1367_v12 = vmax.f32 %v1305_v44, 0.0  ;;  %v3767_v17 = vsel %vm3756_vm0, %v17824_v36, %v3766_v59  ;;  %v4114_v44 = vpop.permute.xlu1 %4113 }
 0x34e   : > { %v3375_v10 = vrot.slane %v3374_v1, 1  ;;  %v3768_v3 = vsel %vm3758_vm1, %v17825_v15, %v3767_v17  ;;  %v1300_v54 = vadd.f32 %v14361_v27, %v13989_v47  ;;  %v17826_v25 = vrot.slane %v14211_v2, 1 }
 0x34f   : > { %v14443_v19 = vmax.f32 %v3360_v24, %v3361_v37  ;;  %v14445_v46 = vmax.f32 %v3367_v16, %v3368_v11  ;;  %v2079_v60 = vcombine.high %v1367_v12, %v1367_v12  ;;  %v2086_v23 = vrot.slane %v1367_v12, %v12814_v63 }
 0x350   : > { %v14441_v31 = vmax.f32 %v14211_v2, %v17826_v25  ;;  %v14448_v39 = vmax.f32 %v3374_v1, %v3375_v10  ;;  %v3769_v13 = vsel %vm3760_vm3, %v17828_v62, %v3768_v3  ;;  %v1366_v59 = vmax.f32 %v1300_v54, 0.0 }
 0x351   : > { %v3289_v47 = vrot.slane %v14209_v28, 2  ;;  %v14456_v2 = vsel %vm3762_vm13, %v14443_v19, %v14424_v18  ;;  %v4326_v24 = vsel %vm3762_vm13, %v14445_v46, %v14443_v19  ;;  %v2093_v16 = vrot.slane %v2079_v60, %v12814_v63  ;;  %3935 = vst.msk [vmem:[#allocation3 + $0x10] sm:$0xff] %vm3934_vm4, %v3769_v13 }
 0x352   : > { %17827 = vst [vmem:[#allocation28_spill] sm:$0xff] %v14441_v31  ;;  %v2094_v37 = vcombine.high %v2086_v23, %v2086_v23  ;;  %v14465_v1 = vsel %vm3750_vm12, %v14448_v39, %v4326_v24  ;;  %v3433_v11 = vsel %vm2340_vm11, %v2086_v23, -inf  ;;  %4179 = vst.msk [vmem:[#allocation3 + $0x10] sm:$0xff] %vm4177_vm7, %v4114_v44  ;;  %v2062_v12 = vcombine.high %v1366_v59, %v1366_v59 }
 0x353   : > { %v2069_v36 = vrot.slane %v1366_v59, %v12814_v63  ;;  %v2095_v17 = vcombine.high %v2093_v16, %v2093_v16  ;;  %v3434_v10 = vrot.slane %v3433_v11, 4  ;;  %v3447_v3 = vsel %vm2340_vm11, %v2093_v16, -inf }
 0x354   : > { %v3440_v15 = vsel %vm2340_vm11, %v2094_v37, -inf  ;;  %v3448_v25 = vrot.slane %v3447_v3, 4  ;;  %v2076_v60 = vrot.slane %v2062_v12, %v12814_v63  ;;  %v3290_v44 = vmax.f32 %v14209_v28, %v3289_v47 }
 0x355   : > { %v3441_v54 = vrot.slane %v3440_v15, 4  ;;  %v2077_v62 = vcombine.high %v2069_v36, %v2069_v36  ;;  %v3435_v13 = vmax.f32 %v3433_v11, %v3434_v10  ;;  %v3454_v24 = vsel %vm2340_vm11, %v2095_v17, -inf }
 0x356   : > { %v3405_v23 = vsel %vm2340_vm11, %v2069_v36, -inf  ;;  %v3449_v59 = vmax.f32 %v3447_v3, %v3448_v25  ;;  %v3455_v41 = vrot.slane %v3454_v24, 4  ;;  %v2078_v22 = vcombine.high %v2076_v60, %v2076_v60 }
 0x357   : > { %v3442_v58 = vmax.f32 %v3440_v15, %v3441_v54  ;;  %v3436_v55 = vrot.slane %v3435_v13, 2  ;;  %v3406_v37 = vrot.slane %v3405_v23, 4  ;;  %v3412_v16 = vsel %vm2340_vm11, %v2077_v62, -inf  ;;  %v4404_v62 = vld [vmem:[#allocation3 + $0x28] sm:$0xff] }
 0x358   : > { %v3419_v0 = vsel %vm2340_vm11, %v2076_v60, -inf  ;;  %v3450_v12 = vrot.slane %v3449_v59, 2  ;;  %v14478_v43 = vmax.f32 %v3454_v24, %v3455_v41  ;;  %v3413_v11 = vrot.slane %v3412_v16, 4 }
 0x359   : > { %v3443_v30 = vrot.slane %v3442_v58, 2  ;;  %v3437_v17 = vmax.f32 %v3435_v13, %v3436_v55  ;;  %v3407_v10 = vmax.f32 %v3405_v23, %v3406_v37  ;;  %v3420_v36 = vrot.slane %v3419_v0, 4  ;;  %v4401_v47 = vld [vmem:[#allocation3 + $0x10] sm:$0xff] }
 0x35a   : > { %v3426_v28 = vsel %vm2340_vm11, %v2078_v22, -inf  ;;  %v14481_v3 = vmax.f32 %v3449_v59, %v3450_v12  ;;  %v3414_v54 = vmax.f32 %v3412_v16, %v3413_v11  ;;  %4610 = vmatmul.mubr.f32.gmra.mrb[14].mxu1 %v4401_v47  ;;  %v3291_v48 = vrot.slane %v3290_v44, 1 }
 0x35b   : > { %v3444_v15 = vmax.f32 %v3442_v58, %v3443_v30  ;;  %v3427_v25 = vrot.slane %v3426_v28, 4  ;;  %v3438_v56 = vrot.slane %v3437_v17, 1  ;;  %v3408_v60 = vrot.slane %v3407_v10, 2  ;;  %11460 = vmatprep.mubr.msk.f32.mxu1 %vm3934_vm4, %v4404_v62 }
 0x35c   : > { %v3421_v61 = vmax.f32 %v3419_v0, %v3420_v36  ;;  %v3415_v13 = vrot.slane %v3414_v54, 2  ;;  %v3292_v23 = vmax.f32 %v3290_v44, %v3291_v48  ;;  %v4070_v0 = vsel %vm3750_vm12, %v14240_v14, %v14254_v35 }
 0x35d   : > { %v3445_v41 = vrot.slane %v3444_v15, 1  ;;  %v3428_v24 = vmax.f32 %v3426_v28, %v3427_v25  ;;  %v14485_v22 = vmax.f32 %v3437_v17, %v3438_v56  ;;  %v3409_v58 = vmax.f32 %v3407_v10, %v3408_v60 }
 0x35e   : > { %v3422_v30 = vrot.slane %v3421_v61, 2  ;;  %v3416_v37 = vmax.f32 %v3414_v54, %v3415_v13  ;;  %v3875_v36 = vsel %vm3762_vm13, %v14316_v51, %v3292_v23  ;;  %v4071_v56 = vsel %vm3752_vm14, %v14242_v50, %v4070_v0 }
 0x35f   : > { %v14487_v59 = vmax.f32 %v3444_v15, %v3445_v41  ;;  %v3429_v16 = vrot.slane %v3428_v24, 2  ;;  %v3410_v12 = vrot.slane %v3409_v58, 1  ;;  %v3876_v48 = vsel %vm3750_vm12, %v14328_v32, %v3875_v36  ;;  %v17829_v41 = vld [vmem:[#allocation83_spill] sm:$0xff]  ;;  %v17832_v36 = vld [vmem:[#allocation21_spill] sm:$0xff] }
 0x360   : > { %v3423_v11 = vmax.f32 %v3421_v61, %v3422_v30  ;;  %v3417_v17 = vrot.slane %v3416_v37, 1  ;;  %v4072_v44 = vsel %vm3754_vm15, %v14213_v6, %v4071_v56  ;;  %v14504_v61 = vsel %vm3752_vm14, %v14318_v40, %v3876_v48  ;;  %v17830_v30 = vld [vmem:[#allocation34_spill] sm:$0xff]  ;;  %v17833_v48 = vld [vmem:[#allocation36_spill] sm:$0xff] }
 0x361   : > { %v3430_v10 = vmax.f32 %v3428_v24, %v3429_v16  ;;  %v14500_v28 = vmax.f32 %v3409_v58, %v3410_v12  ;;  %v4073_v14 = vsel %vm3756_vm0, %v14218_v33, %v4072_v44  ;;  %v4314_v32 = vsel %vm3752_vm14, %v14213_v6, %v14264_v8 }
 0x362   : > { %v3424_v47 = vrot.slane %v3423_v11, 1  ;;  %v14508_v35 = vmax.f32 %v3416_v37, %v3417_v17  ;;  %v4074_v54 = vsel %vm3758_vm1, %v14441_v31, %v4073_v14  ;;  %v4315_v60 = vsel %vm3754_vm15, %v14218_v33, %v4314_v32  ;;  %v17831_v37 = vld [vmem:[#allocation22_spill] sm:$0xff]  ;;  %v17834_v14 = vld [vmem:[#allocation57_spill] sm:$0xff] }
 0x363   : > { %v3431_v15 = vrot.slane %v3430_v10, 1  ;;  %v4075_v62 = vsel %vm3760_vm3, %v3292_v23, %v4074_v54  ;;  %v1315_v13 = vadd.f32 %v14361_v27, %v17829_v41  ;;  %v4316_v8 = vsel %vm3756_vm0, %v14441_v31, %v4315_v60  ;;  %v17835_v32 = vld [vmem:[#allocation37_spill] sm:$0xff] }
 0x364   : > { %v14515_v25 = vmax.f32 %v3423_v11, %v3424_v47  ;;  %v14527_v58 = vsel %vm3762_vm13, %v14508_v35, %v14500_v28  ;;  %4143 = vrot.lane.b32.xlu0 %v4075_v62, %s12090_s18  ;;  %v3773_v16 = vsel %vm3754_vm15, %v17831_v37, %v17830_v30  ;;  %v4317_v12 = vsel %vm3758_vm1, %v3292_v23, %v4316_v8  ;;  %v4116_v47 = vpop.permute.xlu0 %4115 }
 0x365   : > { %v14522_v24 = vmax.f32 %v3430_v10, %v3431_v15  ;;  %v1369_v11 = vmax.f32 %v1315_v13, 0.0  ;;  %v3774_v56 = vsel %vm3756_vm0, %v17832_v36, %v3773_v16  ;;  %v4318_v10 = vsel %vm3760_vm3, %v14316_v51, %v4317_v12 }
 0x366   : > { %v4333_v0 = vsel %vm3762_vm13, %v14515_v25, %v14508_v35  ;;  %v3775_v44 = vsel %vm3758_vm1, %v17833_v48, %v3774_v56  ;;  %v1310_v15 = vadd.f32 %v14361_v27, %v17834_v14  ;;  %4391 = vst.msk [vmem:[#allocation3 + $0x108] sm:$0xff] %vm3934_vm4, %v4318_v10  ;;  %v17836_v60 = vrot.slane %v14294_v45, 1 }
 0x367   : > { %v14543_v17 = vsel %vm3750_vm12, %v14522_v24, %v4333_v0  ;;  %v2113_v23 = vcombine.high %v1369_v11, %v1369_v11  ;;  %v2120_v54 = vrot.slane %v1369_v11, %v12814_v63  ;;  %v3776_v62 = vsel %vm3760_vm3, %v17835_v32, %v3775_v44 }
 0x368   : > { %v14558_v41 = vmax.f32 %v14294_v45, %v17836_v60  ;;  %3936 = vst.msk [vmem:[#allocation3 + $0x20] sm:$0xff] %vm3934_vm4, %v3776_v62  ;;  %v1368_v51 = vmax.f32 %v1310_v15, 0.0  ;;  %v3345_v13 = vrot.slane %v14292_v20, 2  ;;  %v4077_v8 = vsel %vm3750_vm12, %v14318_v40, %v14342_v29 }
 0x369   : > { %v14568_v30 = vsel %vm3752_vm14, %v14296_v4, %v14351_v42  ;;  %v2127_v37 = vrot.slane %v2113_v23, %v12814_v63  ;;  %v2128_v16 = vcombine.high %v2120_v54, %v2120_v54  ;;  %v3489_v45 = vsel %vm2340_vm11, %v2120_v54, -inf  ;;  %4180 = vst.msk [vmem:[#allocation3 + $0x20] sm:$0xff] %vm4177_vm7, %v4116_v47 }
 0x36a   : > { %17837 = vst [vmem:[#allocation20_spill] sm:$0xff] %v14558_v41  ;;  %v4078_v0 = vsel %vm3752_vm14, %v14330_v5, %v4077_v8  ;;  %v3490_v12 = vrot.slane %v3489_v45, 4  ;;  %v2096_v11 = vcombine.high %v1368_v51, %v1368_v51  ;;  %v2103_v36 = vrot.slane %v1368_v51, %v12814_v63 }
 0x36b   : > { %v3346_v40 = vmax.f32 %v14292_v20, %v3345_v13  ;;  %v2129_v29 = vcombine.high %v2127_v37, %v2127_v37  ;;  %v3496_v42 = vsel %vm2340_vm11, %v2128_v16, -inf  ;;  %v3503_v56 = vsel %vm2340_vm11, %v2127_v37, -inf }
 0x36c   : > { %v4079_v10 = vsel %vm3754_vm15, %v14296_v4, %v4078_v0  ;;  %v3491_v48 = vmax.f32 %v3489_v45, %v3490_v12  ;;  %v3497_v44 = vrot.slane %v3496_v42, 4  ;;  %v3504_v47 = vrot.slane %v3503_v56, 4 }
 0x36d   : > { %v2110_v14 = vrot.slane %v2096_v11, %v12814_v63  ;;  %v3510_v15 = vsel %vm2340_vm11, %v2129_v29, -inf  ;;  %v2111_v23 = vcombine.high %v2103_v36, %v2103_v36  ;;  %v3461_v54 = vsel %vm2340_vm11, %v2103_v36, -inf }
 0x36e   : > { %v3347_v32 = vrot.slane %v3346_v40, 1  ;;  %v3492_v20 = vrot.slane %v3491_v48, 2  ;;  %v3498_v62 = vmax.f32 %v3496_v42, %v3497_v44  ;;  %v3505_v60 = vmax.f32 %v3503_v56, %v3504_v47  ;;  %v4406_v42 = vld [vmem:[#allocation3 + $0x38] sm:$0xff] }
 0x36f   : > { %v3511_v51 = vrot.slane %v3510_v15, 4  ;;  %v2112_v13 = vcombine.high %v2110_v14, %v2110_v14  ;;  %v3462_v8 = vrot.slane %v3461_v54, 4  ;;  %v3468_v37 = vsel %vm2340_vm11, %v2111_v23, -inf }
 0x370   : > { %v3475_v16 = vsel %vm2340_vm11, %v2110_v14, -inf  ;;  %v3493_v45 = vmax.f32 %v3491_v48, %v3492_v20  ;;  %v3499_v0 = vrot.slane %v3498_v62, 2  ;;  %v3506_v12 = vrot.slane %v3505_v60, 2  ;;  %v4403_v29 = vld [vmem:[#allocation3 + $0x20] sm:$0xff] }
 0x371   : > { %v14586_v11 = vmax.f32 %v3510_v15, %v3511_v51  ;;  %v3463_v55 = vmax.f32 %v3461_v54, %v3462_v8  ;;  %v3469_v31 = vrot.slane %v3468_v37, 4  ;;  %v3476_v36 = vrot.slane %v3475_v16, 4  ;;  %4615 = vmatmul.mubr.f32.gmra.mrb[16].mxu1 %v4403_v29 }
 0x372   : > { %v3482_v4 = vsel %vm2340_vm11, %v2112_v13, -inf  ;;  %v3494_v56 = vrot.slane %v3493_v45, 1  ;;  %v3500_v44 = vmax.f32 %v3498_v62, %v3499_v0  ;;  %v14589_v47 = vmax.f32 %v3505_v60, %v3506_v12  ;;  %11461 = vmatprep.mubr.msk.f32.mxu1 %vm3934_vm4, %v4406_v42 }
 0x373   : > { %v3483_v23 = vrot.slane %v3482_v4, 4  ;;  %v3464_v48 = vrot.slane %v3463_v55, 2  ;;  %v3470_v14 = vmax.f32 %v3468_v37, %v3469_v31  ;;  %v3477_v20 = vmax.f32 %v3475_v16, %v3476_v36  ;;  %v17838_v36 = vld [vmem:[#allocation86_spill] sm:$0xff] }
 0x374   : > { %v3348_v15 = vmax.f32 %v3346_v40, %v3347_v32  ;;  %v14592_v51 = vmax.f32 %v3493_v45, %v3494_v56  ;;  %v3501_v54 = vrot.slane %v3500_v44, 1  ;;  %v4080_v40 = vsel %vm3756_vm0, %v14299_v26, %v4079_v10 }
 0x375   : > { %v3484_v33 = vmax.f32 %v3482_v4, %v3483_v23  ;;  %v3465_v13 = vmax.f32 %v3463_v55, %v3464_v48  ;;  %v3471_v29 = vrot.slane %v3470_v14, 2  ;;  %v3478_v5 = vrot.slane %v3477_v20, 2  ;;  %v17839_v48 = vld [vmem:[#allocation39_spill] sm:$0xff] }
 0x376   : > { %v3882_v62 = vsel %vm3762_vm13, %v14424_v18, %v3348_v15  ;;  %v14597_v60 = vmax.f32 %v3500_v44, %v3501_v54  ;;  %v4081_v45 = vsel %vm3758_vm1, %v14558_v41, %v4080_v40  ;;  %v4322_v12 = vsel %vm3754_vm15, %v14299_v26, %v14568_v30 }
 0x377   : > { %v3485_v0 = vrot.slane %v3484_v33, 2  ;;  %v3883_v31 = vsel %vm3750_vm12, %v14443_v19, %v3882_v62  ;;  %v3466_v32 = vrot.slane %v3465_v13, 1  ;;  %v3472_v37 = vmax.f32 %v3470_v14, %v3471_v29  ;;  %v17840_v14 = vld [vmem:[#allocation27_spill] sm:$0xff]  ;;  %v17841_v29 = vld [vmem:[#allocation25_spill] sm:$0xff] }
 0x378   : > { %v3479_v16 = vmax.f32 %v3477_v20, %v3478_v5  ;;  %v14605_v4 = vsel %vm3752_vm14, %v14445_v46, %v3883_v31  ;;  %v1325_v19 = vadd.f32 %v14361_v27, %v17838_v36  ;;  %v4082_v5 = vsel %vm3760_vm3, %v3348_v15, %v4081_v45  ;;  %v17843_v45 = vld [vmem:[#allocation92_spill] sm:$0xff] }
 0x379   : > { %v3486_v55 = vmax.f32 %v3484_v33, %v3485_v0  ;;  %v14614_v42 = vmax.f32 %v3465_v13, %v3466_v32  ;;  %v3473_v10 = vrot.slane %v3472_v37, 1  ;;  %v4323_v33 = vsel %vm3756_vm0, %v14558_v41, %v4322_v12  ;;  %4145 = vrot.lane.b32.xlu1 %v4082_v5, %s12090_s18 }
 0x37a   : > { %v3480_v56 = vrot.slane %v3479_v16, 1  ;;  %v1371_v23 = vmax.f32 %v1325_v19, 0.0  ;;  %v3780_v30 = vsel %vm3754_vm15, %v17840_v14, %v17839_v48  ;;  %v4324_v13 = vsel %vm3758_vm1, %v3348_v15, %v4323_v33 }
 0x37b   : > { %v3487_v44 = vrot.slane %v3486_v55, 1  ;;  %v14623_v20 = vmax.f32 %v3472_v37, %v3473_v10  ;;  %v3781_v62 = vsel %vm3756_vm0, %v17841_v29, %v3780_v30  ;;  %v4325_v31 = vsel %vm3760_vm3, %v14424_v18, %v4324_v13 }
 0x37c   : > { %v14625_v54 = vmax.f32 %v3479_v16, %v3480_v56  ;;  %v2147_v40 = vcombine.high %v1371_v23, %v1371_v23  ;;  %v2154_v32 = vrot.slane %v1371_v23, %v12814_v63  ;;  %4392 = vst.msk [vmem:[#allocation3 + $0x118] sm:$0xff] %vm3934_vm4, %v4325_v31  ;;  %v17842_v16 = vld [vmem:[#allocation40_spill] sm:$0xff]  ;;  %v1320_v18 = vadd.f32 %v14361_v27, %v17843_v45  ;;  %v4118_v56 = vpop.permute.xlu1 %4117 }
 0x37d   : > { %v14630_v0 = vmax.f32 %v3486_v55, %v3487_v44  ;;  %v14638_v37 = vsel %vm3762_vm13, %v14623_v20, %v14614_v42  ;;  %v3782_v55 = vsel %vm3758_vm1, %v17842_v16, %v3781_v62  ;;  %v17844_v44 = vld [vmem:[#allocation43_spill] sm:$0xff]  ;;  %v17845_v48 = vrot.slane %v14387_v49, 1 }
 0x37e   : > { %v4340_v15 = vsel %vm3762_vm13, %v14625_v54, %v14623_v20  ;;  %v2161_v36 = vrot.slane %v2147_v40, %v12814_v63  ;;  %v2162_v19 = vcombine.high %v2154_v32, %v2154_v32  ;;  %v3545_v10 = vsel %vm2340_vm11, %v2154_v32, -inf }
 0x37f   : > { %v14650_v12 = vsel %vm3750_vm12, %v14630_v0, %v4340_v15  ;;  %v3546_v5 = vrot.slane %v3545_v10, 4  ;;  %v3783_v33 = vsel %vm3760_vm3, %v17844_v44, %v3782_v55  ;;  %v1370_v23 = vmax.f32 %v1320_v18, 0.0 }
 0x380   : > { %v14659_v14 = vmax.f32 %v14387_v49, %v17845_v48  ;;  %v2163_v27 = vcombine.high %v2161_v36, %v2161_v36  ;;  %v3552_v30 = vsel %vm2340_vm11, %v2162_v19, -inf  ;;  %v3559_v13 = vsel %vm2340_vm11, %v2161_v36, -inf  ;;  %3937 = vst.msk [vmem:[#allocation3 + $0x30] sm:$0xff] %vm3934_vm4, %v3783_v33 }
 0x381   : > { %v3401_v29 = vrot.slane %v14383_v21, 2  ;;  %v3547_v62 = vmax.f32 %v3545_v10, %v3546_v5  ;;  %v3553_v31 = vrot.slane %v3552_v30, 4  ;;  %v3560_v40 = vrot.slane %v3559_v13, 4  ;;  %4181 = vst.msk [vmem:[#allocation3 + $0x30] sm:$0xff] %vm4177_vm7, %v4118_v56 }
 0x382   : > { %v2130_v32 = vcombine.high %v1370_v23, %v1370_v23  ;;  %v3566_v15 = vsel %vm2340_vm11, %v2163_v27, -inf  ;;  %v2137_v49 = vrot.slane %v1370_v23, %v12814_v63  ;;  %v4084_v55 = vsel %vm3750_vm12, %v14445_v46, %v14456_v2 }
 0x383   : > { %v3402_v16 = vmax.f32 %v14383_v21, %v3401_v29  ;;  %v3548_v45 = vrot.slane %v3547_v62, 2  ;;  %v3554_v18 = vmax.f32 %v3552_v30, %v3553_v31  ;;  %v3561_v36 = vmax.f32 %v3559_v13, %v3560_v40 }
 0x384   : > { %v3567_v19 = vrot.slane %v3566_v15, 4  ;;  %v2144_v10 = vrot.slane %v2130_v32, %v12814_v63  ;;  %v2145_v5 = vcombine.high %v2137_v49, %v2137_v49  ;;  %v3517_v56 = vsel %vm2340_vm11, %v2137_v49, -inf }
 0x385   : > { %v3403_v44 = vrot.slane %v3402_v16, 1  ;;  %v3549_v33 = vmax.f32 %v3547_v62, %v3548_v45  ;;  %v3555_v48 = vrot.slane %v3554_v18, 2  ;;  %v3562_v27 = vrot.slane %v3561_v36, 2 }
 0x386   : > { %v14674_v23 = vmax.f32 %v3566_v15, %v3567_v19  ;;  %v2146_v21 = vcombine.high %v2144_v10, %v2144_v10  ;;  %v3518_v29 = vrot.slane %v3517_v56, 4  ;;  %v3524_v8 = vsel %vm2340_vm11, %v2145_v5, -inf  ;;  %v4408_v5 = vld [vmem:[#allocation3 + $0x48] sm:$0xff] }
 0x387   : > { %v3531_v46 = vsel %vm2340_vm11, %v2144_v10, -inf  ;;  %v3550_v2 = vrot.slane %v3549_v33, 1  ;;  %v3556_v30 = vmax.f32 %v3554_v18, %v3555_v48  ;;  %v14678_v13 = vmax.f32 %v3561_v36, %v3562_v27 }
 0x388   : > { %v3525_v31 = vrot.slane %v3524_v8, 4  ;;  %v3519_v40 = vmax.f32 %v3517_v56, %v3518_v29  ;;  %v3532_v32 = vrot.slane %v3531_v46, 4  ;;  %v3538_v49 = vsel %vm2340_vm11, %v2146_v21, -inf  ;;  %v4405_v45 = vld [vmem:[#allocation3 + $0x30] sm:$0xff] }
 0x389   : > { %v3404_v62 = vmax.f32 %v3402_v16, %v3403_v44  ;;  %v14681_v63 = vmax.f32 %v3549_v33, %v3550_v2  ;;  %v3557_v15 = vrot.slane %v3556_v30, 1  ;;  %v3564_v19 = vrot.slane %v14678_v13, 1  ;;  %4620 = vmatmul.mubr.f32.gmra.mrb[18].mxu1 %v4405_v45 }
 0x38a   : > { %v3526_v41 = vmax.f32 %v3524_v8, %v3525_v31  ;;  %v3520_v10 = vrot.slane %v3519_v40, 2  ;;  %v3533_v26 = vmax.f32 %v3531_v46, %v3532_v32  ;;  %v3539_v18 = vrot.slane %v3538_v49, 4  ;;  %11462 = vmatprep.mubr.msk.f32.mxu1 %vm3934_vm4, %v4408_v5  ;;  %v17848_v5 = vld [vmem:[#allocation33_spill] sm:$0xff] }
 0x38b   : > { %v3889_v36 = vsel %vm3762_vm13, %v14500_v28, %v3404_v62  ;;  %v14687_v56 = vmax.f32 %v3556_v30, %v3557_v15  ;;  %v4085_v33 = vsel %vm3752_vm14, %v14448_v39, %v4084_v55  ;;  %v4328_v2 = vsel %vm3752_vm14, %v14391_v9, %v14465_v1  ;;  %v17846_v30 = vld [vmem:[#allocation46_spill] sm:$0xff] }
 0x38c   : > { %v3527_v16 = vrot.slane %v3526_v41, 2  ;;  %v3890_v44 = vsel %vm3750_vm12, %v14508_v35, %v3889_v36  ;;  %v3521_v8 = vmax.f32 %v3519_v40, %v3520_v10  ;;  %v3534_v48 = vrot.slane %v3533_v26, 2  ;;  %v17847_v35 = vld [vmem:[#allocation35_spill] sm:$0xff] }
 0x38d   : > { %v3540_v27 = vmax.f32 %v3538_v49, %v3539_v18  ;;  %v14695_v21 = vsel %vm3752_vm14, %v14515_v25, %v3890_v44  ;;  %v4086_v46 = vsel %vm3754_vm15, %v14391_v9, %v4085_v33  ;;  %v3787_v31 = vsel %vm3754_vm15, %v17847_v35, %v17846_v30  ;;  %v17849_v33 = vld [vmem:[#allocation47_spill] sm:$0xff]  ;;  %v17851_v35 = vld [vmem:[#allocation50_spill] sm:$0xff] }
 0x38e   : > { %v3528_v29 = vmax.f32 %v3526_v41, %v3527_v16  ;;  %v3522_v55 = vrot.slane %v3521_v8, 1  ;;  %v3535_v40 = vmax.f32 %v3533_v26, %v3534_v48  ;;  %v4087_v49 = vsel %vm3756_vm0, %v14398_v57, %v4086_v46  ;;  %v4120_v46 = vpop.permute.xlu0 %4119 }
 0x38f   : > { %v3541_v32 = vrot.slane %v3540_v27, 2  ;;  %v4088_v41 = vsel %vm3758_vm1, %v14659_v14, %v4087_v49  ;;  %v4329_v15 = vsel %vm3754_vm15, %v14398_v57, %v4328_v2  ;;  %v3788_v1 = vsel %vm3756_vm0, %v17848_v5, %v3787_v31  ;;  %v17853_v5 = vld [vmem:[#allocation41_spill] sm:$0xff] }
 0x390   : > { %v3529_v45 = vrot.slane %v3528_v29, 1  ;;  %v14713_v10 = vmax.f32 %v3521_v8, %v3522_v55  ;;  %v3536_v18 = vrot.slane %v3535_v40, 1  ;;  %v4089_v26 = vsel %vm3760_vm3, %v3404_v62, %v4088_v41 }
 0x391   : > { %v3542_v36 = vmax.f32 %v3540_v27, %v3541_v32  ;;  %v4330_v44 = vsel %vm3756_vm0, %v14659_v14, %v4329_v15  ;;  %4147 = vrot.lane.b32.xlu0 %v4089_v26, %s12090_s18  ;;  %v3789_v48 = vsel %vm3758_vm1, %v17849_v33, %v3788_v1  ;;  %v17850_v2 = vrot.slane %v14481_v3, 1  ;;  %v17852_v15 = vld [vmem:[#allocation52_spill] sm:$0xff] }
 0x392   : > { %v14716_v16 = vmax.f32 %v3528_v29, %v3529_v45  ;;  %v14728_v30 = vmax.f32 %v3535_v40, %v3536_v18  ;;  %v4331_v29 = vsel %vm3758_vm1, %v3404_v62, %v4330_v44  ;;  %v3790_v31 = vsel %vm3760_vm3, %v17851_v35, %v3789_v48  ;;  %v17855_v48 = vld [vmem:[#allocation24_spill] sm:$0xff]  ;;  %v17857_v35 = vld [vmem:[#allocation53_spill] sm:$0xff] }
 0x393   : > { %v14726_v8 = vmax.f32 %v14481_v3, %v17850_v2  ;;  %v3543_v27 = vrot.slane %v3542_v36, 1  ;;  %v4332_v32 = vsel %vm3760_vm3, %v14500_v28, %v4331_v29  ;;  %3938 = vst.msk [vmem:[#allocation3 + $0x40] sm:$0xff] %vm3934_vm4, %v3790_v31  ;;  %v3457_v3 = vrot.slane %v14478_v43, 2  ;;  %v4122_v2 = vpop.permute.xlu1 %4121 }
 0x394   : > { %v4104_v55 = vsel %vm3762_vm13, %v14716_v16, %v14713_v10  ;;  %v4091_v40 = vsel %vm3750_vm12, %v14515_v25, %v14527_v58  ;;  %v4347_v62 = vsel %vm3762_vm13, %v14728_v30, %v14716_v16  ;;  %4393 = vst.msk [vmem:[#allocation3 + $0x128] sm:$0xff] %vm3934_vm4, %v4332_v32  ;;  %v4335_v45 = vsel %vm3752_vm14, %v14485_v22, %v14543_v17 }
 0x395   : > { %v14743_v49 = vmax.f32 %v3542_v36, %v3543_v27  ;;  %4182 = vst.msk [vmem:[#allocation3 + $0x40] sm:$0xff] %vm4177_vm7, %v4120_v46  ;;  %v4092_v28 = vsel %vm3752_vm14, %v14522_v24, %v4091_v40  ;;  %v3458_v41 = vmax.f32 %v14478_v43, %v3457_v3  ;;  %v4336_v58 = vsel %vm3754_vm15, %v14487_v59, %v4335_v45  ;;  %v17854_v43 = vld [vmem:[#allocation38_spill] sm:$0xff]  ;;  %v17858_v45 = vld [vmem:[#allocation55_spill] sm:$0xff] }
 0x396   : > { %v4093_v25 = vsel %vm3754_vm15, %v14485_v22, %v4092_v28  ;;  %v3794_v1 = vsel %vm3754_vm15, %v17853_v5, %v17852_v15  ;;  %v4337_v17 = vsel %vm3756_vm0, %v14726_v8, %v4336_v58  ;;  %v17856_v27 = vrot.slane %v14589_v47, 1  ;;  %v17860_v15 = vld [vmem:[#allocation44_spill] sm:$0xff] }
 0x397   : > { %v4348_v18 = vsel %vm3750_vm12, %v14743_v49, %v4347_v62  ;;  %v4094_v36 = vsel %vm3756_vm0, %v14487_v59, %v4093_v25  ;;  %v3795_v26 = vsel %vm3756_vm0, %v17854_v43, %v3794_v1  ;;  %v3459_v44 = vrot.slane %v3458_v41, 1  ;;  %v17859_v25 = vld [vmem:[#allocation45_spill] sm:$0xff] }
 0x398   : > { %v4095_v33 = vsel %vm3758_vm1, %v14726_v8, %v4094_v36  ;;  %v3796_v46 = vsel %vm3758_vm1, %v17855_v48, %v3795_v26  ;;  %v14778_v29 = vmax.f32 %v14589_v47, %v17856_v27  ;;  %v3513_v32 = vrot.slane %v14586_v11, 2 }
 0x399   : > { %v3797_v31 = vsel %vm3760_vm3, %v17857_v35, %v3796_v46  ;;  %v4098_v3 = vsel %vm3750_vm12, %v14625_v54, %v14638_v37  ;;  %v4342_v40 = vsel %vm3752_vm14, %v14592_v51, %v14650_v12  ;;  %v3460_v62 = vmax.f32 %v3458_v41, %v3459_v44  ;;  %v4124_v44 = vpop.permute.xlu0 %4123 }
 0x39a   : > { %3939 = vst.msk [vmem:[#allocation3 + $0x50] sm:$0xff] %vm3934_vm4, %v3797_v31  ;;  %v4099_v47 = vsel %vm3752_vm14, %v14630_v0, %v4098_v3  ;;  %v4343_v28 = vsel %vm3754_vm15, %v14597_v60, %v4342_v40  ;;  %v3801_v58 = vsel %vm3754_vm15, %v17859_v25, %v17858_v45  ;;  %v3514_v37 = vmax.f32 %v14586_v11, %v3513_v32  ;;  %v17862_v3 = vld [vmem:[#allocation59_spill] sm:$0xff] }
 0x39b   : > { %4183 = vst.msk [vmem:[#allocation3 + $0x50] sm:$0xff] %vm4177_vm7, %v4122_v2  ;;  %v4100_v12 = vsel %vm3754_vm15, %v14592_v51, %v4099_v47  ;;  %v4344_v41 = vsel %vm3756_vm0, %v14778_v29, %v4343_v28  ;;  %v3802_v5 = vsel %vm3756_vm0, %v17860_v15, %v3801_v58  ;;  %v3896_v1 = vsel %vm3762_vm13, %v14614_v42, %v3460_v62  ;;  %v4410_v2 = vld [vmem:[#allocation3 + $0x58] sm:$0xff]  ;;  %v4126_v47 = vpop.permute.xlu1 %4125 }
 0x39c   : > { %v4096_v36 = vsel %vm3760_vm3, %v3460_v62, %v4095_v33  ;;  %v4338_v43 = vsel %vm3758_vm1, %v3460_v62, %v4337_v17  ;;  %v4407_v26 = vld [vmem:[#allocation3 + $0x40] sm:$0xff]  ;;  %v4101_v11 = vsel %vm3756_vm0, %v14597_v60, %v4100_v12  ;;  %v3897_v48 = vsel %vm3750_vm12, %v14623_v20, %v3896_v1  ;;  %v17861_v20 = vld [vmem:[#allocation26_spill] sm:$0xff]  ;;  %v4412_v1 = vld [vmem:[#allocation3 + $0x68] sm:$0xff] }
 0x39d   : > { %v4339_v46 = vsel %vm3760_vm3, %v14614_v42, %v4338_v43  ;;  %4149 = vrot.lane.b32.xlu1 %v4096_v36, %s12090_s18  ;;  %4625 = vmatmul.mubr.f32.gmra.mrb[20].mxu1 %v4407_v26  ;;  %v3515_v27 = vrot.slane %v3514_v37, 1  ;;  %v4102_v33 = vsel %vm3758_vm1, %v14778_v29, %v4101_v11  ;;  %v14820_v17 = vsel %vm3752_vm14, %v14625_v54, %v3897_v48  ;;  %v4128_v45 = vpop.permute.xlu0 %4127  ;;  %v17863_v36 = vld [vmem:[#allocation60_spill] sm:$0xff]  ;;  %v17864_v43 = vld [vmem:[#allocation23_spill] sm:$0xff] }
 0x39e   : > { %4394 = vst.msk [vmem:[#allocation3 + $0x138] sm:$0xff] %vm3934_vm4, %v4339_v46  ;;  %11463 = vmatprep.mubr.msk.f32.mxu1 %vm3934_vm4, %v4410_v2  ;;  %v3803_v35 = vsel %vm3758_vm1, %v17861_v20, %v3802_v5  ;;  %v14829_v42 = vmax.f32 %v14678_v13, %v3564_v19  ;;  %v3569_v31 = vrot.slane %v14674_v23, 2  ;;  %v4105_v54 = vsel %vm3750_vm12, %v14728_v30, %v4104_v55  ;;  %v17866_v46 = vld [vmem:[#allocation65_spill] sm:$0xff]  ;;  %v17867_v2 = vld [vmem:[#allocation56_spill] sm:$0xff] }
 0x39f   : > { %v3516_v32 = vmax.f32 %v3514_v37, %v3515_v27  ;;  %v3804_v40 = vsel %vm3760_vm3, %v17862_v3, %v3803_v35  ;;  %v4349_v62 = vsel %vm3752_vm14, %v14681_v63, %v4348_v18  ;;  %v4106_v13 = vsel %vm3752_vm14, %v14743_v49, %v4105_v54  ;;  %v4130_v11 = vpop.permute.xlu1 %4129  ;;  %v17869_v20 = vld [vmem:[#allocation32_spill] sm:$0xff] }
 0x3a0   : > { %3940 = vst.msk [vmem:[#allocation3 + $0x60] sm:$0xff] %vm3934_vm4, %v3804_v40  ;;  %v3570_v28 = vmax.f32 %v14674_v23, %v3569_v31  ;;  %v4350_v19 = vsel %vm3754_vm15, %v14687_v56, %v4349_v62  ;;  %v4107_v23 = vsel %vm3754_vm15, %v14681_v63, %v4106_v13  ;;  %v3808_v26 = vsel %vm3754_vm15, %v17864_v43, %v17863_v36  ;;  %v17871_v40 = vld [vmem:[#allocation54_spill] sm:$0xff]  ;;  %v17879_v36 = vld [vmem:[#allocation63_spill] sm:$0xff]  ;;  %v17880_v43 = vld [vmem:[#allocation81_spill] sm:$0xff] }
 0x3a1   : > { %v3903_v25 = vsel %vm3762_vm13, %v14713_v10, %v3516_v32  ;;  %v4103_v55 = vsel %vm3760_vm3, %v3516_v32, %v4102_v33  ;;  %v4345_v18 = vsel %vm3758_vm1, %v3516_v32, %v4344_v41  ;;  %4184 = vst.msk [vmem:[#allocation3 + $0x60] sm:$0xff] %vm4177_vm7, %v4124_v44  ;;  %v4108_v5 = vsel %vm3756_vm0, %v14687_v56, %v4107_v23  ;;  %v17868_v33 = vld [vmem:[#allocation72_spill] sm:$0xff]  ;;  %v4132_v31 = vpop.permute.xlu0 %4131  ;;  %v17870_v32 = vld [vmem:[#allocation61_spill] sm:$0xff]  ;;  %v17872_v62 = vld [vmem:[#allocation58_spill] sm:$0xff] }
 0x3a2   : > { %v3904_v58 = vsel %vm3750_vm12, %v14716_v16, %v3903_v25  ;;  %v4346_v37 = vsel %vm3760_vm3, %v14713_v10, %v4345_v18  ;;  %4151 = vrot.lane.b32.xlu0 %v4103_v55, %s12090_s18  ;;  %v4409_v12 = vld [vmem:[#allocation3 + $0x50] sm:$0xff]  ;;  %v3571_v15 = vrot.slane %v3570_v28, 1  ;;  %v4109_v16 = vsel %vm3758_vm1, %v14829_v42, %v4108_v5 }
 0x3a3   : > { %v14860_v41 = vsel %vm3752_vm14, %v14728_v30, %v3904_v58  ;;  %4395 = vst.msk [vmem:[#allocation3 + $0x148] sm:$0xff] %vm3934_vm4, %v4346_v37  ;;  %4630 = vmatmul.mubr.f32.gmra.mrb[22].mxu1 %v4409_v12  ;;  %v4351_v10 = vsel %vm3756_vm0, %v14829_v42, %v4350_v19  ;;  %v17865_v30 = vld [vmem:[#allocation51_spill] sm:$0xff]  ;;  %v3815_v27 = vsel %vm3754_vm15, %v17867_v2, %v17866_v46  ;;  %v17873_v13 = vld [vmem:[#allocation78_spill] sm:$0xff] }
 0x3a4   : > { %11464 = vmatprep.mubr.msk.f32.mxu1 %vm3934_vm4, %v4412_v1  ;;  %v3572_v44 = vmax.f32 %v3570_v28, %v3571_v15  ;;  %v3809_v48 = vsel %vm3756_vm0, %v17865_v30, %v3808_v26  ;;  %v3822_v35 = vsel %vm3754_vm15, %v17869_v20, %v17868_v33  ;;  %v3816_v54 = vsel %vm3756_vm0, %v17871_v40, %v3815_v27  ;;  %v17874_v19 = vld [vmem:[#allocation67_spill] sm:$0xff]  ;;  %v17875_v23 = vld [vmem:[#allocation62_spill] sm:$0xff]  ;;  %v17877_v15 = vld [vmem:[#allocation68_spill] sm:$0xff]  ;;  %v4134_v30 = vpop.permute.xlu1 %4133 }
 0x3a5   : > { %v3810_v3 = vsel %vm3758_vm1, %v17870_v32, %v3809_v48  ;;  %v3823_v28 = vsel %vm3756_vm0, %v17872_v62, %v3822_v35  ;;  %v3829_v25 = vsel %vm3754_vm15, %v17874_v19, %v17873_v13  ;;  %v17876_v37 = vld [vmem:[#allocation66_spill] sm:$0xff]  ;;  %v17881_v26 = vld [vmem:[#allocation73_spill] sm:$0xff]  ;;  %v17883_v27 = vld [vmem:[#allocation64_spill] sm:$0xff] }
 0x3a6   : > { %v4110_v55 = vsel %vm3760_vm3, %v3572_v44, %v4109_v16  ;;  %v4352_v18 = vsel %vm3758_vm1, %v3572_v44, %v4351_v10  ;;  %v3811_v58 = vsel %vm3760_vm3, %v17875_v23, %v3810_v3  ;;  %v3817_v12 = vsel %vm3758_vm1, %v17876_v37, %v3816_v54  ;;  %v17878_v1 = vld [vmem:[#allocation42_spill] sm:$0xff]  ;;  %v17885_v32 = vld [vmem:[#allocation85_spill] sm:$0xff]  ;;  %v4136_v54 = vpop.permute.xlu0 %4135  ;;  %v17888_v13 = vld [vmem:[#allocation71_spill] sm:$0xff] }
 0x3a7   : > { %4397 = vst.msk [vmem:[#allocation3 + $0x158] sm:$0x7f] %vm4396_vm8, %v4352_v18  ;;  %4153 = vrot.lane.b32.xlu1 %v4110_v55, %s12090_s18  ;;  %v3818_v5 = vsel %vm3760_vm3, %v17877_v15, %v3817_v12  ;;  %v3824_v16 = vsel %vm3758_vm1, %v17878_v1, %v3823_v28  ;;  %v3830_v10 = vsel %vm3756_vm0, %v17879_v36, %v3829_v25  ;;  %v17882_v46 = vld [vmem:[#allocation74_spill] sm:$0xff]  ;;  %v17886_v3 = vld [vmem:[#allocation49_spill] sm:$0xff]  ;;  %v17889_v25 = vld [vmem:[#allocation76_spill] sm:$0xff]  ;;  %s17491_s18 = scalar_lea.hbm %s17542_s9, %s11540_s22 }
 0x3a8   : > { %3941 = vst.msk [vmem:[#allocation3 + $0x70] sm:$0xff] %vm3934_vm4, %v3811_v58  ;;  %v3836_v44 = vsel %vm3754_vm15, %v17881_v26, %v17880_v43  ;;  %v4411_v48 = vld [vmem:[#allocation3 + $0x60] sm:$0xff]  ;;  %3942 = vst.msk [vmem:[#allocation3 + $0x80] sm:$0xff] %vm3934_vm4, %v3818_v5  ;;  %v3825_v2 = vsel %vm3760_vm3, %v17882_v46, %v3824_v16  ;;  %v3831_v33 = vsel %vm3758_vm1, %v17883_v27, %v3830_v10  ;;  %v17884_v20 = vld [vmem:[#allocation70_spill] sm:$0xff]  ;;  %v4138_v36 = vpop.permute.xlu1 %4137 }
 0x3a9   : > { %4185 = vst.msk [vmem:[#allocation3 + $0x70] sm:$0xff] %vm4177_vm7, %v4126_v47  ;;  %v3837_v35 = vsel %vm3756_vm0, %v17884_v20, %v3836_v44  ;;  %v3843_v40 = vsel %vm3754_vm15, %v17886_v3, %v17885_v32  ;;  %4635 = vmatmul.mubr.f32.gmra.mrb[24].mxu1 %v4411_v48  ;;  %v4414_v62 = vld [vmem:[#allocation3 + $0x78] sm:$0xff]  ;;  %4186 = vst.msk [vmem:[#allocation3 + $0x80] sm:$0xff] %vm4177_vm7, %v4128_v45  ;;  %v17892_v37 = vld [vmem:[#allocation77_spill] sm:$0xff]  ;;  %v3857_v5 = vsel %vm3754_vm15, %v14082_v52, %v14230_v53 }
 0x3aa   : > { %3943 = vst.msk [vmem:[#allocation3 + $0x90] sm:$0xff] %vm3934_vm4, %v3825_v2  ;;  %v17887_v47 = vld [vmem:[#allocation79_spill] sm:$0xff]  ;;  %v3838_v19 = vsel %vm3758_vm1, %v17888_v13, %v3837_v35  ;;  %v3844_v55 = vsel %vm3756_vm0, %v17889_v25, %v3843_v40  ;;  %11465 = vmatprep.mubr.msk.f32.mxu1 %vm3934_vm4, %v4414_v62  ;;  %v17891_v45 = vld [vmem:[#allocation82_spill] sm:$0xff]  ;;  %v17894_v1 = vld [vmem:[#allocation80_spill] sm:$0xff]  ;;  %v3858_v10 = vsel %vm3756_vm0, %v14032_v34, %v3857_v5 }
 0x3ab   : > { %v3832_v28 = vsel %vm3760_vm3, %v17887_v47, %v3831_v33  ;;  %v17890_v18 = vld [vmem:[#allocation91_spill] sm:$0xff]  ;;  %4187 = vst.msk [vmem:[#allocation3 + $0x90] sm:$0xff] %vm4177_vm7, %v4130_v11  ;;  %v3839_v58 = vsel %vm3760_vm3, %v17891_v45, %v3838_v19  ;;  %v3845_v12 = vsel %vm3758_vm1, %v17892_v37, %v3844_v55  ;;  %v17897_v52 = vld [vmem:[#allocation93_spill] sm:$0xff]  ;;  %v4140_v48 = vpop.permute.xlu0 %4139  ;;  %v17899_v46 = vld [vmem:[#allocation88_spill] sm:$0xff]  ;;  %v3892_v37 = vsel %vm3754_vm15, %v14522_v24, %v14695_v21 }
 0x3ac   : > { %v3850_v23 = vsel %vm3754_vm15, %v13991_v38, %v17890_v18  ;;  %3944 = vst.msk [vmem:[#allocation3 + $0xa0] sm:$0xff] %vm3934_vm4, %v3832_v28  ;;  %3945 = vst.msk [vmem:[#allocation3 + $0xb0] sm:$0xff] %vm3934_vm4, %v3839_v58  ;;  %v17893_v38 = vld [vmem:[#allocation87_spill] sm:$0xff]  ;;  %v17900_v27 = vld [vmem:[#allocation48_spill] sm:$0xff] }
 0x3ad   : > { %v3851_v15 = vsel %vm3756_vm0, %v13939_v7, %v3850_v23  ;;  %4188 = vst.msk [vmem:[#allocation3 + $0xa0] sm:$0xff] %vm4177_vm7, %v4132_v31  ;;  %v3846_v11 = vsel %vm3760_vm3, %v17893_v38, %v3845_v12  ;;  %v17895_v43 = vld [vmem:[#allocation75_spill] sm:$0xff]  ;;  %v17896_v7 = vld [vmem:[#allocation90_spill] sm:$0xff]  ;;  %4189 = vst.msk [vmem:[#allocation3 + $0xb0] sm:$0xff] %vm4177_vm7, %v4134_v30  ;;  %v3871_v34 = vsel %vm3754_vm15, %v14242_v50, %v17900_v27 }
 0x3ae   : > { %v3852_v16 = vsel %vm3758_vm1, %v17894_v1, %v3851_v15  ;;  %v3864_v26 = vsel %vm3754_vm15, %v17896_v7, %v17895_v43  ;;  %3946 = vst.msk [vmem:[#allocation3 + $0xc0] sm:$0xff] %vm3934_vm4, %v3846_v11  ;;  %v17898_v31 = vld [vmem:[#allocation84_spill] sm:$0xff]  ;;  %v17901_v30 = vld [vmem:[#allocation69_spill] sm:$0xff]  ;;  %v3872_v32 = vsel %vm3756_vm0, %v14213_v6, %v3871_v34  ;;  %v17905_v47 = vld [vmem:[#allocation94_spill] sm:$0xff]  ;;  %v3885_v6 = vsel %vm3754_vm15, %v14448_v39, %v14605_v4 }
 0x3af   : > { %v3853_v53 = vsel %vm3760_vm3, %v17897_v52, %v3852_v16  ;;  %v3859_v44 = vsel %vm3758_vm1, %v17898_v31, %v3858_v10  ;;  %v3865_v2 = vsel %vm3756_vm0, %v17899_v46, %v3864_v26  ;;  %4190 = vst.msk [vmem:[#allocation3 + $0xc0] sm:$0xff] %vm4177_vm7, %v4136_v54  ;;  %v17902_v20 = vld [vmem:[#allocation89_spill] sm:$0xff]  ;;  %v3873_v28 = vsel %vm3758_vm1, %v17905_v47, %v3872_v32  ;;  %v17906_v13 = vld [vmem:[#allocation95_spill] sm:$0xff]  ;;  %v17907_v55 = vld [vmem:[#allocation28_spill] sm:$0xff] }
 0x3b0   : > { %3947 = vst.msk [vmem:[#allocation3 + $0xd0] sm:$0xff] %vm3934_vm4, %v3853_v53  ;;  %v3860_v33 = vsel %vm3760_vm3, %v17901_v30, %v3859_v44  ;;  %v3866_v35 = vsel %vm3758_vm1, %v17902_v20, %v3865_v2  ;;  %v17903_v3 = vld [vmem:[#allocation97_spill] sm:$0xff]  ;;  %v3874_v18 = vsel %vm3760_vm3, %v17907_v55, %v3873_v28  ;;  %v17908_v23 = vld [vmem:[#allocation96_spill] sm:$0xff]  ;;  %v3886_v58 = vsel %vm3756_vm0, %v14391_v9, %v3885_v6  ;;  %v6258_v11 = vld [vmem:[#allocation8 + $0x10] sm:$0xff] }
 0x3b1   : > { %v3878_v40 = vsel %vm3754_vm15, %v17903_v3, %v14504_v61  ;;  %v4416_v62 = vld [vmem:[#allocation3 + $0x88] sm:$0xff]  ;;  %4191 = vst.msk [vmem:[#allocation3 + $0xd0] sm:$0xff] %vm4177_vm7, %v4138_v36  ;;  %v6257_v25 = vld [vmem:[#allocation8 + $0x8] sm:$0xff]  ;;  %v6259_v39 = vld [vmem:[#allocation8 + $0x18] sm:$0xff]  ;;  %v3887_v5 = vsel %vm3758_vm1, %v14398_v57, %v3886_v58  ;;  %v3893_v38 = vsel %vm3756_vm0, %v14485_v22, %v3892_v37  ;;  %v3899_v9 = vsel %vm3754_vm15, %v14630_v0, %v14820_v17 }
 0x3b2   : > { %3948 = vst.msk [vmem:[#allocation3 + $0xe0] sm:$0xff] %vm3934_vm4, %v3860_v33  ;;  %v17904_v50 = vld [vmem:[#allocation29_spill] sm:$0xff]  ;;  %v3879_v19 = vsel %vm3756_vm0, %v17906_v13, %v3878_v40  ;;  %3950 = vst.msk [vmem:[#allocation3 + $0x100] sm:$0xff] %vm3934_vm4, %v3874_v18  ;;  %v17909_v12 = vld [vmem:[#allocation20_spill] sm:$0xff]  ;;  %v3888_v16 = vsel %vm3760_vm3, %v14659_v14, %v3887_v5  ;;  %v3894_v57 = vsel %vm3758_vm1, %v14487_v59, %v3893_v38 }
 0x3b3   : > { %v3867_v54 = vsel %vm3760_vm3, %v17904_v50, %v3866_v35  ;;  %v4413_v61 = vld [vmem:[#allocation3 + $0x70] sm:$0xff]  ;;  %4192 = vst.msk [vmem:[#allocation3 + $0xe0] sm:$0xff] %vm4177_vm7, %v4140_v48  ;;  %v3880_v45 = vsel %vm3758_vm1, %v17908_v23, %v3879_v19  ;;  %v6256_v4 = vld [vmem:[#allocation8] sm:$0xff]  ;;  %v6263_v21 = vld [vmem:[#allocation8 + $0x38] sm:$0xff]  ;;  %v3900_v22 = vsel %vm3756_vm0, %v14592_v51, %v3899_v9  ;;  %v3906_v0 = vsel %vm3754_vm15, %v14743_v49, %v14860_v41 }
 0x3b4   : > { %3949 = vst.msk [vmem:[#allocation3 + $0xf0] sm:$0xff] %vm3934_vm4, %v3867_v54  ;;  %4640 = vmatmul.mubr.f32.gmra.mrb[26].mxu1 %v4413_v61  ;;  %v3881_v15 = vsel %vm3760_vm3, %v17909_v12, %v3880_v45  ;;  %v6261_v24 = vld [vmem:[#allocation8 + $0x28] sm:$0xff]  ;;  %v4415_v1 = vld [vmem:[#allocation3 + $0x80] sm:$0xff]  ;;  %3952 = vst.msk [vmem:[#allocation3 + $0x120] sm:$0xff] %vm3934_vm4, %v3888_v16  ;;  %v3895_v17 = vsel %vm3760_vm3, %v14726_v8, %v3894_v57  ;;  %v3901_v36 = vsel %vm3758_vm1, %v14597_v60, %v3900_v22 }
 0x3b5   : > { %11466 = vmatprep.mubr.msk.f32.mxu1 %vm3934_vm4, %v4416_v62  ;;  %3951 = vst.msk [vmem:[#allocation3 + $0x110] sm:$0xff] %vm3934_vm4, %v3881_v15  ;;  %v3907_v14 = vsel %vm3756_vm0, %v14681_v63, %v3906_v0  ;;  %v11701_v10 = vpack.c.bf16 %v6259_v39, %v6257_v25  ;;  %v6260_v59 = vld [vmem:[#allocation8 + $0x20] sm:$0xff]  ;;  %v6262_v43 = vld [vmem:[#allocation8 + $0x30] sm:$0xff]  ;;  %3953 = vst.msk [vmem:[#allocation3 + $0x130] sm:$0xff] %vm3934_vm4, %v3895_v17  ;;  %v3902_v51 = vsel %vm3760_vm3, %v14778_v29, %v3901_v36 }
 0x3b6   : > { %v3908_v49 = vsel %vm3758_vm1, %v14687_v56, %v3907_v14  ;;  %v11703_v41 = vpack.c.bf16 %v6258_v11, %v6256_v4  ;;  %v11705_v7 = vpack.c.bf16 %v6263_v21, %v6261_v24  ;;  %v6265_v8 = vld [vmem:[#allocation8 + $0x48] sm:$0xff]  ;;  %v6267_v26 = vld [vmem:[#allocation8 + $0x58] sm:$0xff]  ;;  %v4418_v60 = vld [vmem:[#allocation3 + $0x98] sm:$0xff]  ;;  %3954 = vst.msk [vmem:[#allocation3 + $0x140] sm:$0xff] %vm3934_vm4, %v3902_v51  ;;  %v11707_v29 = vpack.c.bf16 %v6262_v43, %v6260_v59 }
 0x3b7   : > { %v3909_v63 = vsel %vm3760_vm3, %v14829_v42, %v3908_v49  ;;  %11702 = vmatprep.subr.bf16.mxu0 %v11701_v10  ;;  %v4417_v52 = vld [vmem:[#allocation3 + $0x90] sm:$0xff]  ;;  %v11709_v56 = vpack.c.bf16 %v6267_v26, %v6265_v8  ;;  %v6264_v53 = vld [vmem:[#allocation8 + $0x40] sm:$0xff]  ;;  %v6266_v31 = vld [vmem:[#allocation8 + $0x50] sm:$0xff]  ;;  %11799 = vmatprep.subr.bf16.mxu1 %v11701_v10 }
 0x3b8   : > { %4645 = vmatmul.mubr.f32.gmra.mrb[28].mxu1 %v4415_v1  ;;  %3955 = vst.msk [vmem:[#allocation3 + $0x150] sm:$0xff] %vm3934_vm4, %v3909_v63  ;;  %11704 = vmatpush1.bf16.msra.mxu0 %v11703_v41  ;;  %v6269_v44 = vld [vmem:[#allocation8 + $0x68] sm:$0xff]  ;;  %v6271_v48 = vld [vmem:[#allocation8 + $0x78] sm:$0xff]  ;;  %v4420_v46 = vld [vmem:[#allocation3 + $0xa8] sm:$0xff]  ;;  %v11711_v2 = vpack.c.bf16 %v6266_v31, %v6264_v53 }
 0x3b9   : > { %11467 = vmatprep.mubr.msk.f32.mxu1 %vm3934_vm4, %v4418_v60  ;;  %11706 = vmatprep.subr.bf16.mxu0 %v11705_v7  ;;  %v4419_v42 = vld [vmem:[#allocation3 + $0xa0] sm:$0xff]  ;;  %v11713_v27 = vpack.c.bf16 %v6271_v48, %v6269_v44  ;;  %v6268_v34 = vld [vmem:[#allocation8 + $0x60] sm:$0xff]  ;;  %v6270_v30 = vld [vmem:[#allocation8 + $0x70] sm:$0xff] }
 0x3ba   : > { %11815 = vmatpush1.bf16.msra.mxu1 %v11703_v41  ;;  %v6273_v33 = vld [vmem:[#allocation8 + $0x88] sm:$0xff]  ;;  %v6275_v20 = vld [vmem:[#allocation8 + $0x98] sm:$0xff]  ;;  %v4422_v35 = vld [vmem:[#allocation3 + $0xb8] sm:$0xff]  ;;  %v11715_v3 = vpack.c.bf16 %v6270_v30, %v6268_v34 }
 0x3bb   : > { %11800 = vmatprep.subr.bf16.mxu1 %v11705_v7  ;;  %v4421_v32 = vld [vmem:[#allocation3 + $0xb0] sm:$0xff]  ;;  %v11717_v62 = vpack.c.bf16 %v6275_v20, %v6273_v33  ;;  %v6272_v50 = vld [vmem:[#allocation8 + $0x80] sm:$0xff]  ;;  %v6274_v54 = vld [vmem:[#allocation8 + $0x90] sm:$0xff] }
 0x3bc   : > { %4650 = vmatmul.mubr.f32.gmra.mrb[30].mxu1 %v4417_v52  ;;  %11708 = vmatpush1.bf16.msra.mxu0 %v11707_v29  ;;  %v6277_v47 = vld [vmem:[#allocation8 + $0xa8] sm:$0xff]  ;;  %v6279_v28 = vld [vmem:[#allocation8 + $0xb8] sm:$0xff]  ;;  %v4424_v13 = vld [vmem:[#allocation3 + $0xc8] sm:$0xff]  ;;  %v11719_v6 = vpack.c.bf16 %v6274_v54, %v6272_v50 }
 0x3bd   : > { %11468 = vmatprep.mubr.msk.f32.mxu1 %vm3934_vm4, %v4420_v46  ;;  %11710 = vmatprep.subr.bf16.mxu0 %v11709_v56  ;;  %v4142_v40 = vpop.permute.xlu1 %4141  ;;  %v4423_v19 = vld [vmem:[#allocation3 + $0xc0] sm:$0xff]  ;;  %v11721_v25 = vpack.c.bf16 %v6279_v28, %v6277_v47  ;;  %v6276_v61 = vld [vmem:[#allocation8 + $0xa0] sm:$0xff]  ;;  %v6278_v55 = vld [vmem:[#allocation8 + $0xb0] sm:$0xff] }
 0x3be   : > { %11816 = vmatpush1.bf16.msra.mxu1 %v11707_v29  ;;  %4193 = vst.msk [vmem:[#allocation3 + $0xf0] sm:$0xff] %vm4177_vm7, %v4142_v40  ;;  %v6281_v18 = vld [vmem:[#allocation8 + $0xc8] sm:$0xff]  ;;  %v6283_v23 = vld [vmem:[#allocation8 + $0xd8] sm:$0xff]  ;;  %v4426_v45 = vld [vmem:[#allocation3 + $0xd8] sm:$0xff]  ;;  %v11723_v37 = vpack.c.bf16 %v6278_v55, %v6276_v61 }
 0x3bf   : > { %11801 = vmatprep.subr.bf16.mxu1 %v11709_v56  ;;  %v4425_v58 = vld [vmem:[#allocation3 + $0xd0] sm:$0xff]  ;;  %v11725_v39 = vpack.c.bf16 %v6283_v23, %v6281_v18  ;;  %v6280_v4 = vld [vmem:[#allocation8 + $0xc0] sm:$0xff]  ;;  %v6282_v12 = vld [vmem:[#allocation8 + $0xd0] sm:$0xff] }
 0x3c0   : > { %4655 = vmatmul.mubr.f32.gmra.mrb[32].mxu1 %v4419_v42  ;;  %11712 = vmatpush1.bf16.msra.mxu0 %v11711_v2  ;;  %v6285_v15 = vld [vmem:[#allocation8 + $0xe8] sm:$0xff]  ;;  %v6287_v5 = vld [vmem:[#allocation8 + $0xf8] sm:$0xff]  ;;  %v4428_v38 = vld [vmem:[#allocation3 + $0xe8] sm:$0xff]  ;;  %v11727_v11 = vpack.c.bf16 %v6282_v12, %v6280_v4 }
 0x3c1   : > { %11469 = vmatprep.mubr.msk.f32.mxu1 %vm3934_vm4, %v4422_v35  ;;  %11714 = vmatprep.subr.bf16.mxu0 %v11713_v27  ;;  %v4427_v9 = vld [vmem:[#allocation3 + $0xe0] sm:$0xff]  ;;  %v11729_v24 = vpack.c.bf16 %v6287_v5, %v6285_v15  ;;  %v6284_v21 = vld [vmem:[#allocation8 + $0xe0] sm:$0xff]  ;;  %v6286_v1 = vld [vmem:[#allocation8 + $0xf0] sm:$0xff] }
 0x3c2   : > { %11817 = vmatpush1.bf16.msra.mxu1 %v11711_v2  ;;  %v6289_v16 = vld [vmem:[#allocation8 + $0x108] sm:$0xff]  ;;  %v6291_v57 = vld [vmem:[#allocation8 + $0x118] sm:$0xff]  ;;  %v4430_v22 = vld [vmem:[#allocation3 + $0xf8] sm:$0xff]  ;;  %v11731_v17 = vpack.c.bf16 %v6286_v1, %v6284_v21 }
 0x3c3   : > { %11802 = vmatprep.subr.bf16.mxu1 %v11713_v27  ;;  %v11733_v36 = vpack.c.bf16 %v6291_v57, %v6289_v16  ;;  %v6288_v14 = vld [vmem:[#allocation8 + $0x100] sm:$0xff]  ;;  %v6290_v10 = vld [vmem:[#allocation8 + $0x110] sm:$0xff]  ;;  %v6293_v59 = vld [vmem:[#allocation8 + $0x128] sm:$0xff] }
 0x3c4   : > { %4660 = vmatmul.mubr.f32.gmra.mrb[34].mxu1 %v4421_v32  ;;  %11716 = vmatpush1.bf16.msra.mxu0 %v11715_v3  ;;  %v6295_v43 = vld [vmem:[#allocation8 + $0x138] sm:$0xff]  ;;  %v4432_v51 = vld [vmem:[#allocation3 + $0x108] sm:$0xff]  ;;  %v11735_v49 = vpack.c.bf16 %v6290_v10, %v6288_v14  ;;  %v6294_v8 = vld [vmem:[#allocation8 + $0x130] sm:$0xff] }
 0x3c5   : > { %11470 = vmatprep.mubr.msk.f32.mxu1 %vm3934_vm4, %v4424_v13  ;;  %11718 = vmatprep.subr.bf16.mxu0 %v11717_v62  ;;  %v4429_v0 = vld [vmem:[#allocation3 + $0xf0] sm:$0xff]  ;;  %v11737_v41 = vpack.c.bf16 %v6295_v43, %v6293_v59  ;;  %v6292_v7 = vld [vmem:[#allocation8 + $0x120] sm:$0xff]  ;;  %v6299_v52 = vld [vmem:[#allocation8 + $0x158] sm:$0xff] }
 0x3c6   : > { %11818 = vmatpush1.bf16.msra.mxu1 %v11715_v3  ;;  %v11739_v26 = vpack.c.bf16 %v6294_v8, %v6292_v7  ;;  %v6297_v63 = vld [vmem:[#allocation8 + $0x148] sm:$0xff]  ;;  %v6296_v29 = vld [vmem:[#allocation8 + $0x140] sm:$0xff]  ;;  %v6298_v53 = vld [vmem:[#allocation8 + $0x150] sm:$0xff] }
 0x3c7   : > { %11803 = vmatprep.subr.bf16.mxu1 %v11717_v62  ;;  %v11741_v56 = vpack.c.bf16 %v6299_v52, %v6297_v63  ;;  %v6301_v31 = vld [vmem:[#allocation8 + $0x168] sm:$0xff]  ;;  %v6303_v44 = vld [vmem:[#allocation8 + $0x178] sm:$0xff]  ;;  %v11743_v48 = vpack.c.bf16 %v6298_v53, %v6296_v29  ;;  %v6300_v42 = vld [vmem:[#allocation8 + $0x160] sm:$0xff] }
 0x3c8   : > { %4665 = vmatmul.mubr.f32.gmra.mrb[36].mxu1 %v4423_v19  ;;  %11720 = vmatpush1.bf16.msra.mxu0 %v11719_v6  ;;  %v11745_v46 = vpack.c.bf16 %v6303_v44, %v6301_v31  ;;  %v6302_v2 = vld [vmem:[#allocation8 + $0x170] sm:$0xff]  ;;  %v4436_v35 = vld [vmem:[#allocation3 + $0x128] sm:$0xff]  ;;  %v6305_v32 = vld [vmem:[#allocation8 + $0x188] sm:$0xff] }
 0x3c9   : > { %11471 = vmatprep.mubr.msk.f32.mxu1 %vm3934_vm4, %v4426_v45  ;;  %11722 = vmatprep.subr.bf16.mxu0 %v11721_v25  ;;  %v4434_v34 = vld [vmem:[#allocation3 + $0x118] sm:$0xff]  ;;  %v11747_v30 = vpack.c.bf16 %v6302_v2, %v6300_v42  ;;  %v6307_v3 = vld [vmem:[#allocation8 + $0x198] sm:$0xff]  ;;  %v6304_v40 = vld [vmem:[#allocation8 + $0x180] sm:$0xff] }
 0x3ca   : > { %11819 = vmatpush1.bf16.msra.mxu1 %v11719_v6  ;;  %v11749_v62 = vpack.c.bf16 %v6307_v3, %v6305_v32  ;;  %v6306_v50 = vld [vmem:[#allocation8 + $0x190] sm:$0xff]  ;;  %v6309_v54 = vld [vmem:[#allocation8 + $0x1a8] sm:$0xff]  ;;  %v6311_v47 = vld [vmem:[#allocation8 + $0x1b8] sm:$0xff] }
 0x3cb   : > { %11804 = vmatprep.subr.bf16.mxu1 %v11721_v25  ;;  %v11751_v28 = vpack.c.bf16 %v6306_v50, %v6304_v40  ;;  %v11753_v13 = vpack.c.bf16 %v6311_v47, %v6309_v54  ;;  %v6308_v19 = vld [vmem:[#allocation8 + $0x1a0] sm:$0xff]  ;;  %v6310_v6 = vld [vmem:[#allocation8 + $0x1b0] sm:$0xff]  ;;  %v6313_v55 = vld [vmem:[#allocation8 + $0x1c8] sm:$0xff] }
 0x3cc   : > { %4670 = vmatmul.mubr.f32.gmra.mrb[38].mxu1 %v4425_v58  ;;  %11724 = vmatpush1.bf16.msra.mxu0 %v11723_v37  ;;  %v11755_v25 = vpack.c.bf16 %v6310_v6, %v6308_v19  ;;  %v6315_v18 = vld [vmem:[#allocation8 + $0x1d8] sm:$0xff]  ;;  %v6312_v23 = vld [vmem:[#allocation8 + $0x1c0] sm:$0xff]  ;;  %v6314_v58 = vld [vmem:[#allocation8 + $0x1d0] sm:$0xff] }
 0x3cd   : > { %11472 = vmatprep.mubr.msk.f32.mxu1 %vm3934_vm4, %v4428_v38  ;;  %11726 = vmatprep.subr.bf16.mxu0 %v11725_v39  ;;  %v11757_v45 = vpack.c.bf16 %v6315_v18, %v6313_v55  ;;  %v11759_v4 = vpack.c.bf16 %v6314_v58, %v6312_v23  ;;  %v6316_v15 = vld [vmem:[#allocation8 + $0x1e0] sm:$0xff]  ;;  %v6318_v5 = vld [vmem:[#allocation8 + $0x1f0] sm:$0xff]  ;;  %v15052_v1 = vld [vmem:[%s17537_s4] ss:$0 sm:$0xff] }
 0x3ce   : > { %11820 = vmatpush1.bf16.msra.mxu1 %v11723_v37  ;;  %v6317_v37 = vld [vmem:[#allocation8 + $0x1e8] sm:$0xff] }
 0x3cf   : > { %11805 = vmatprep.subr.bf16.mxu1 %v11725_v39  ;;  %v6319_v39 = vld [vmem:[#allocation8 + $0x1f8] sm:$0xff]  ;;  %v17910_v43 = vld [vmem:[#allocation18_spill] sm:$0xff] }
 0x3d0   : > { %4675 = vmatmul.mubr.f32.gmra.mrb[40].mxu1 %v4427_v9  ;;  %11728 = vmatpush1.bf16.msra.mxu0 %v11727_v11  ;;  %v11761_v12 = vpack.c.bf16 %v6319_v39, %v6317_v37  ;;  %v11763_v9 = vpack.c.bf16 %v6318_v5, %v6316_v15 }
 0x3d1   : > { %11473 = vmatprep.mubr.msk.f32.mxu1 %vm3934_vm4, %v4430_v22  ;;  %11730 = vmatprep.subr.bf16.mxu0 %v11729_v24  ;;  %v4440_v22 = vld [vmem:[#allocation3 + $0x148] sm:$0xff] }
 0x3d2   : > { %11821 = vmatpush1.bf16.msra.mxu1 %v11727_v11  ;;  %v4438_v11 = vld [vmem:[#allocation3 + $0x138] sm:$0xff] }
 0x3d3   : > { %11806 = vmatprep.subr.bf16.mxu1 %v11729_v24 }
 0x3d4   : > { %4680 = vmatmul.mubr.f32.gmra.mrb[42].mxu1 %v4429_v0  ;;  %11732 = vmatpush1.bf16.msra.mxu0 %v11731_v17 }
 0x3d5   : > { %11474 = vmatprep.mubr.msk.f32.mxu1 %vm3934_vm4, %v4432_v51  ;;  %11734 = vmatprep.subr.bf16.mxu0 %v11733_v36 }
 0x3d6   : > { %11822 = vmatpush1.bf16.msra.mxu1 %v11731_v17  ;;  %v4144_v60 = vpop.permute.xlu0 %4143 }
 0x3d7   : > { %11807 = vmatprep.subr.bf16.mxu1 %v11733_v36  ;;  %4194 = vst.msk [vmem:[#allocation3 + $0x100] sm:$0xff] %vm4177_vm7, %v4144_v60 }
 0x3d8   : > { %11736 = vmatpush1.bf16.msra.mxu0 %v11735_v49 }
 0x3d9   : > { %11738 = vmatprep.subr.bf16.mxu0 %v11737_v41 }
 0x3da   : > { %11823 = vmatpush1.bf16.msra.mxu1 %v11735_v49  ;;  %v4442_v49 = vld [vmem:[#allocation3 + $0x158] sm:$0xff] }
 0x3db   : > { %11808 = vmatprep.subr.bf16.mxu1 %v11737_v41 }
 0x3dc   : > { %11740 = vmatpush1.bf16.msra.mxu0 %v11739_v26 }
 0x3dd   : > { %11742 = vmatprep.subr.bf16.mxu0 %v11741_v56 }
 0x3de   : > { %11824 = vmatpush1.bf16.msra.mxu1 %v11739_v26  ;;  %v4431_v27 = vld [vmem:[#allocation3 + $0x100] sm:$0xff] }
 0x3df   : > { %11809 = vmatprep.subr.bf16.mxu1 %v11741_v56  ;;  %4685 = vmatmul.mubr.f32.gmra.mrb[44].mxu1 %v4431_v27 }
 0x3e0   : > { %11744 = vmatpush1.bf16.msra.mxu0 %v11743_v48  ;;  %11475 = vmatprep.mubr.msk.f32.mxu1 %vm3934_vm4, %v4434_v34 }
 0x3e1   : > { %11746 = vmatprep.subr.bf16.mxu0 %v11745_v46 }
 0x3e2   : > { %11825 = vmatpush1.bf16.msra.mxu1 %v11743_v48 }
 0x3e3   : > { %11810 = vmatprep.subr.bf16.mxu1 %v11745_v46 }
 0x3e4   : > { %11748 = vmatpush1.bf16.msra.mxu0 %v11747_v30 }
 0x3e5   : > { %11750 = vmatprep.subr.bf16.mxu0 %v11749_v62 }
 0x3e6   : > { %11826 = vmatpush1.bf16.msra.mxu1 %v11747_v30 }
 0x3e7   : > { %11811 = vmatprep.subr.bf16.mxu1 %v11749_v62 }
 0x3e8   : > { %11752 = vmatpush1.bf16.msra.mxu0 %v11751_v28 }
 0x3e9   : > { %11754 = vmatprep.subr.bf16.mxu0 %v11753_v13 }
 0x3ea   : > { %11827 = vmatpush1.bf16.msra.mxu1 %v11751_v28 }
 0x3eb   : > { %v4146_v33 = vpop.permute.xlu1 %4145  ;;  %11812 = vmatprep.subr.bf16.mxu1 %v11753_v13 }
 0x3ec   : > { %4195 = vst.msk [vmem:[#allocation3 + $0x110] sm:$0xff] %vm4177_vm7, %v4146_v33  ;;  %11756 = vmatpush1.bf16.msra.mxu0 %v11755_v25 }
 0x3ed   : > { %11758 = vmatprep.subr.bf16.mxu0 %v11757_v45 }
 0x3ee   : > { %11828 = vmatpush1.bf16.msra.mxu1 %v11755_v25 }
 0x3ef   : > { %11813 = vmatprep.subr.bf16.mxu1 %v11757_v45 }
 0x3f0   : > { %11760 = vmatpush1.bf16.msra.mxu0 %v11759_v4 }
 0x3f1   : > { %11762 = vmatprep.subr.bf16.mxu0 %v11761_v12 }
 0x3f2   : > { %11829 = vmatpush1.bf16.msra.mxu1 %v11759_v4 }
 0x3f3   : > { %v4433_v20 = vld [vmem:[#allocation3 + $0x110] sm:$0xff]  ;;  %11814 = vmatprep.subr.bf16.mxu1 %v11761_v12 }
 0x3f4   : > { %4690 = vmatmul.mubr.f32.gmra.mrb[46].mxu1 %v4433_v20  ;;  %11764 = vmatpush1.bf16.msra.mxu0 %v11763_v9 }
 0x3f5   : > { %11476 = vmatprep.mubr.msk.f32.mxu1 %vm3934_vm4, %v4436_v35 }
 0x3f6   : > { %11830 = vmatpush1.bf16.msra.mxu1 %v11763_v9 }
 0x403   : > { %v4148_v61 = vpop.permute.xlu0 %4147 }
 0x404   : > { %4196 = vst.msk [vmem:[#allocation3 + $0x120] sm:$0xff] %vm4177_vm7, %v4148_v61 }
 0x40b   : > { %v4435_v38 = vld [vmem:[#allocation3 + $0x120] sm:$0xff] }
 0x40c   : > { %4695 = vmatmul.mubr.f32.gmra.mrb[48].mxu1 %v4435_v38 }
 0x40d   : > { %11477 = vmatprep.mubr.msk.f32.mxu1 %vm3934_vm4, %v4438_v11 }
 0x40f   : > { %v4150_v24 = vpop.permute.xlu1 %4149 }
 0x410   : > { %4197 = vst.msk [vmem:[#allocation3 + $0x130] sm:$0xff] %vm4177_vm7, %v4150_v24 }
 0x414   : > { %v4152_v21 = vpop.permute.xlu0 %4151 }
 0x415   : > { %4198 = vst.msk [vmem:[#allocation3 + $0x140] sm:$0xff] %vm4177_vm7, %v4152_v21 }
 0x416   : > { %v4606_v57 = vpop.f32.mrb[12].mxu1 }
 0x417   : > { %v4437_v16 = vld [vmem:[#allocation3 + $0x130] sm:$0xff]  ;;  %v4607_v0 = vadd.f32 %v15052_v1, %v4606_v57  ;;  %v4608_v17 = vpop.f32.mrb[13].mxu1 }
 0x418   : > { %4700 = vmatmul.mubr.f32.gmra.mrb[50].mxu1 %v4437_v16 }
 0x419   : > { %11478 = vmatprep.mubr.msk.f32.mxu1 %vm3934_vm4, %v4440_v22  ;;  %v4154_v36 = vpop.permute.xlu1 %4153  ;;  %v4715_v14 = vmax.f32 %v4607_v0, 0.0 }
 0x41a   : > { %4199 = vst.msk [vmem:[#allocation3 + $0x150] sm:$0xff] %vm4177_vm7, %v4154_v36 }
 0x41b   : > { %v4759_v59 = vcombine.high %v4715_v14, %v4715_v14  ;;  %v4766_v51 = vrot.slane %v4715_v14, %v17910_v43 }
 0x41c   : > { %v4439_v10 = vld [vmem:[#allocation3 + $0x140] sm:$0xff] }
 0x41d   : > { %4705 = vmatmul.mubr.f32.gmra.mrb[52].mxu1 %v4439_v10  ;;  %v4773_v41 = vrot.slane %v4759_v59, %v17910_v43  ;;  %v4774_v7 = vcombine.high %v4766_v51, %v4766_v51  ;;  %v5222_v8 = vsel %vm5221_vm9, %v4766_v51, -inf }
 0x41e   : > { %11479 = vmatprep.mubr.msk.f32.mxu1 %vm3934_vm4, %v4442_v49  ;;  %v5223_v56 = vrot.slane %v5222_v8, 4 }
 0x41f   : > { %v5229_v26 = vsel %vm5221_vm9, %v4774_v7, -inf  ;;  %v4775_v63 = vcombine.high %v4773_v41, %v4773_v41  ;;  %v5236_v29 = vsel %vm5221_vm9, %v4773_v41, -inf }
 0x420   : > { %v5230_v52 = vrot.slane %v5229_v26, 4  ;;  %v5237_v53 = vrot.slane %v5236_v29, 4  ;;  %v5224_v48 = vmax.f32 %v5222_v8, %v5223_v56 }
 0x421   : > { %v4441_v60 = vld [vmem:[#allocation3 + $0x150] sm:$0xff]  ;;  %v5243_v44 = vsel %vm5221_vm9, %v4775_v63, -inf }
 0x422   : > { %4710 = vmatmul.mubr.f32.gmra.mrb[54].mxu1 %v4441_v60  ;;  %v5231_v31 = vmax.f32 %v5229_v26, %v5230_v52  ;;  %v5238_v46 = vmax.f32 %v5236_v29, %v5237_v53  ;;  %v5244_v42 = vrot.slane %v5243_v44, 4  ;;  %v5225_v27 = vrot.slane %v5224_v48, 2 }
 0x424   : > { %v5232_v2 = vrot.slane %v5231_v31, 2  ;;  %v5239_v34 = vrot.slane %v5238_v46, 2  ;;  %v5245_v30 = vmax.f32 %v5243_v44, %v5244_v42  ;;  %v5226_v35 = vmax.f32 %v5224_v48, %v5225_v27 }
 0x426   : > { %v5233_v33 = vmax.f32 %v5231_v31, %v5232_v2  ;;  %v5240_v40 = vmax.f32 %v5238_v46, %v5239_v34  ;;  %v5246_v62 = vrot.slane %v5245_v30, 2  ;;  %v5227_v47 = vrot.slane %v5226_v35, 1 }
 0x428   : > { %v5234_v50 = vrot.slane %v5233_v33, 1  ;;  %v5241_v19 = vrot.slane %v5240_v40, 1  ;;  %v5247_v6 = vmax.f32 %v5245_v30, %v5246_v62  ;;  %v5228_v45 = vmax.f32 %v5226_v35, %v5227_v47 }
 0x42a   : > { %v5235_v25 = vmax.f32 %v5233_v33, %v5234_v50  ;;  %v5242_v4 = vmax.f32 %v5240_v40, %v5241_v19  ;;  %v5248_v38 = vrot.slane %v5247_v6, 1 }
 0x42c   : > { %v5926_v9 = vsel %vm3750_vm12, %v5235_v25, %v5228_v45  ;;  %v6025_v11 = vsel %vm3762_vm13, %v5235_v25, %v5228_v45  ;;  %v5249_v10 = vmax.f32 %v5247_v6, %v5248_v38  ;;  %v6124_v49 = vsel %vm3762_vm13, %v5242_v4, %v5235_v25 }
 0x42d   : > { %v4611_v20 = vpop.f32.mrb[14].mxu1  ;;  %v5927_v59 = vsel %vm3752_vm14, %v5242_v4, %v5926_v9  ;;  %v6026_v51 = vsel %vm3750_vm12, %v5242_v4, %v6025_v11 }
 0x42e   : > { %v4612_v32 = vadd.f32 %v15052_v1, %v4611_v20  ;;  %v4613_v3 = vpop.f32.mrb[15].mxu1  ;;  %v5928_v56 = vsel %vm3754_vm15, %v5249_v10, %v5927_v59  ;;  %v6027_v53 = vsel %vm3752_vm14, %v5249_v10, %v6026_v51  ;;  %v6125_v31 = vsel %vm3750_vm12, %v5249_v10, %v6124_v49 }
 0x430   : > { %v4716_v54 = vmax.f32 %v4612_v32, 0.0 }
 0x432   : > { %v4776_v28 = vcombine.high %v4716_v54, %v4716_v54  ;;  %v4783_v13 = vrot.slane %v4716_v54, %v17910_v43 }
 0x434   : > { %v4790_v61 = vrot.slane %v4776_v28, %v17910_v43  ;;  %v4791_v55 = vcombine.high %v4783_v13, %v4783_v13  ;;  %v5250_v18 = vsel %vm5221_vm9, %v4783_v13, -inf }
 0x435   : > { %v5251_v23 = vrot.slane %v5250_v18, 4 }
 0x436   : > { %v4792_v58 = vcombine.high %v4790_v61, %v4790_v61  ;;  %v5257_v37 = vsel %vm5221_vm9, %v4791_v55, -inf  ;;  %v5264_v39 = vsel %vm5221_vm9, %v4790_v61, -inf }
 0x437   : > { %v5252_v12 = vmax.f32 %v5250_v18, %v5251_v23  ;;  %v5258_v15 = vrot.slane %v5257_v37, 4  ;;  %v5265_v5 = vrot.slane %v5264_v39, 4 }
 0x438   : > { %v5271_v24 = vsel %vm5221_vm9, %v4792_v58, -inf }
 0x439   : > { %v5253_v21 = vrot.slane %v5252_v12, 2  ;;  %v5259_v16 = vmax.f32 %v5257_v37, %v5258_v15  ;;  %v5266_v57 = vmax.f32 %v5264_v39, %v5265_v5  ;;  %v5272_v22 = vrot.slane %v5271_v24, 4 }
 0x43b   : > { %v5254_v0 = vmax.f32 %v5252_v12, %v5253_v21  ;;  %v5260_v17 = vrot.slane %v5259_v16, 2  ;;  %v5267_v36 = vrot.slane %v5266_v57, 2  ;;  %v5273_v14 = vmax.f32 %v5271_v24, %v5272_v22 }
 0x43d   : > { %v5255_v41 = vrot.slane %v5254_v0, 1  ;;  %v5261_v7 = vmax.f32 %v5259_v16, %v5260_v17  ;;  %v5268_v8 = vmax.f32 %v5266_v57, %v5267_v36  ;;  %v5274_v26 = vrot.slane %v5273_v14, 2 }
 0x43f   : > { %v5256_v60 = vmax.f32 %v5254_v0, %v5255_v41  ;;  %v5262_v63 = vrot.slane %v5261_v7, 1  ;;  %v5269_v52 = vrot.slane %v5268_v8, 1  ;;  %v5275_v29 = vmax.f32 %v5273_v14, %v5274_v26 }
 0x441   : > { %v5263_v44 = vmax.f32 %v5261_v7, %v5262_v63  ;;  %v5270_v48 = vmax.f32 %v5268_v8, %v5269_v52  ;;  %v5276_v46 = vrot.slane %v5275_v29, 1  ;;  %v5929_v42 = vsel %vm3756_vm0, %v5256_v60, %v5928_v56 }
 0x442   : > { %v6028_v2 = vsel %vm3754_vm15, %v5256_v60, %v6027_v53  ;;  %v6126_v27 = vsel %vm3752_vm14, %v5256_v60, %v6125_v31 }
 0x443   : > { %v5277_v34 = vmax.f32 %v5275_v29, %v5276_v46  ;;  %v5930_v30 = vsel %vm3758_vm1, %v5263_v44, %v5929_v42  ;;  %v6029_v33 = vsel %vm3756_vm0, %v5263_v44, %v6028_v2  ;;  %v6127_v20 = vsel %vm3754_vm15, %v5263_v44, %v6126_v27 }
 0x444   : > { %v5931_v35 = vsel %vm3760_vm3, %v5270_v48, %v5930_v30  ;;  %v6030_v32 = vsel %vm3758_vm1, %v5270_v48, %v6029_v33  ;;  %v6128_v3 = vsel %vm3756_vm0, %v5270_v48, %v6127_v20  ;;  %v4616_v40 = vpop.f32.mrb[16].mxu1 }
 0x445   : > { %6013 = vst [vmem:[#allocation4] sm:$0xfe] %v5931_v35  ;;  %v6031_v62 = vsel %vm3760_vm3, %v5277_v34, %v6030_v32  ;;  %v4617_v50 = vadd.f32 %v15052_v1, %v4616_v40  ;;  %v6129_v54 = vsel %vm3758_vm1, %v5277_v34, %v6128_v3  ;;  %v4618_v47 = vpop.f32.mrb[17].mxu1 }
 0x446   : > { %6428 = vmatprep.mubr.f32.mxu0 %v6031_v62 }
 0x447   : > { %v4717_v28 = vmax.f32 %v4617_v50, 0.0 }
 0x449   : > { %v4793_v13 = vcombine.high %v4717_v28, %v4717_v28  ;;  %v4800_v19 = vrot.slane %v4717_v28, %v17910_v43 }
 0x44b   : > { %v4807_v6 = vrot.slane %v4793_v13, %v17910_v43  ;;  %v4808_v25 = vcombine.high %v4800_v19, %v4800_v19  ;;  %v5278_v61 = vsel %vm5221_vm9, %v4800_v19, -inf }
 0x44c   : > { %v5279_v55 = vrot.slane %v5278_v61, 4  ;;  %v6223_v18 = vld [vmem:[#allocation4] sm:$0xff] }
 0x44d   : > { %v4809_v23 = vcombine.high %v4807_v6, %v4807_v6  ;;  %v5285_v45 = vsel %vm5221_vm9, %v4808_v25, -inf  ;;  %v5292_v58 = vsel %vm5221_vm9, %v4807_v6, -inf  ;;  %6429 = vmatmul.mubr.f32.vlgmr.msra.gmra.mrb[32].mxu0 %v6223_v18 }
 0x44e   : > { %v5280_v37 = vmax.f32 %v5278_v61, %v5279_v55  ;;  %v5286_v39 = vrot.slane %v5285_v45, 4  ;;  %v5293_v4 = vrot.slane %v5292_v58, 4 }
 0x44f   : > { %v5299_v12 = vsel %vm5221_vm9, %v4809_v23, -inf }
 0x450   : > { %v5281_v15 = vrot.slane %v5280_v37, 2  ;;  %v5287_v5 = vmax.f32 %v5285_v45, %v5286_v39  ;;  %v5294_v38 = vmax.f32 %v5292_v58, %v5293_v4  ;;  %v5300_v9 = vrot.slane %v5299_v12, 4 }
 0x452   : > { %v5282_v11 = vmax.f32 %v5280_v37, %v5281_v15  ;;  %v5288_v24 = vrot.slane %v5287_v5, 2  ;;  %v5295_v21 = vrot.slane %v5294_v38, 2  ;;  %v5301_v16 = vmax.f32 %v5299_v12, %v5300_v9 }
 0x454   : > { %v5283_v57 = vrot.slane %v5282_v11, 1  ;;  %v5289_v22 = vmax.f32 %v5287_v5, %v5288_v24  ;;  %v5296_v0 = vmax.f32 %v5294_v38, %v5295_v21  ;;  %v5302_v17 = vrot.slane %v5301_v16, 2 }
 0x456   : > { %v5284_v36 = vmax.f32 %v5282_v11, %v5283_v57  ;;  %v5290_v14 = vrot.slane %v5289_v22, 1  ;;  %v5297_v10 = vrot.slane %v5296_v0, 1  ;;  %v5303_v59 = vmax.f32 %v5301_v16, %v5302_v17 }
 0x458   : > { %v5291_v51 = vmax.f32 %v5289_v22, %v5290_v14  ;;  %v5298_v49 = vmax.f32 %v5296_v0, %v5297_v10  ;;  %v5304_v41 = vrot.slane %v5303_v59, 1  ;;  %v5932_v7 = vsel %vm3762_vm13, %v5284_v36, %v5277_v34 }
 0x459   : > { %v6130_v8 = vsel %vm3760_vm3, %v5284_v36, %v6129_v54 }
 0x45a   : > { %v5305_v26 = vmax.f32 %v5303_v59, %v5304_v41  ;;  %v5933_v60 = vsel %vm3750_vm12, %v5291_v51, %v5932_v7  ;;  %6211 = vst [vmem:[#allocation4 + $0x10] sm:$0xff] %v6130_v8  ;;  %v6032_v3 = vsel %vm3762_vm13, %v5291_v51, %v5284_v36  ;;  %v6131_v61 = vsel %vm3762_vm13, %v5298_v49, %v5291_v51 }
 0x45b   : > { %v5934_v63 = vsel %vm3752_vm14, %v5298_v49, %v5933_v60  ;;  %v6033_v25 = vsel %vm3750_vm12, %v5298_v49, %v6032_v3 }
 0x45c   : > { %v4621_v52 = vpop.f32.mrb[18].mxu1  ;;  %v5935_v29 = vsel %vm3754_vm15, %v5305_v26, %v5934_v63  ;;  %v6034_v12 = vsel %vm3752_vm14, %v5305_v26, %v6033_v25  ;;  %v6132_v15 = vsel %vm3750_vm12, %v5305_v26, %v6131_v61 }
 0x45d   : > { %v4622_v56 = vadd.f32 %v15052_v1, %v4621_v52  ;;  %v4623_v53 = vpop.f32.mrb[19].mxu1 }
 0x45f   : > { %v4718_v31 = vmax.f32 %v4622_v56, 0.0 }
 0x461   : > { %v4810_v44 = vcombine.high %v4718_v31, %v4718_v31  ;;  %v4817_v48 = vrot.slane %v4718_v31, %v17910_v43 }
 0x463   : > { %v4824_v46 = vrot.slane %v4810_v44, %v17910_v43  ;;  %v4825_v42 = vcombine.high %v4817_v48, %v4817_v48  ;;  %v5306_v2 = vsel %vm5221_vm9, %v4817_v48, -inf }
 0x464   : > { %v5307_v27 = vrot.slane %v5306_v2, 4 }
 0x465   : > { %v4826_v34 = vcombine.high %v4824_v46, %v4824_v46  ;;  %v5313_v30 = vsel %vm5221_vm9, %v4825_v42, -inf  ;;  %v5320_v33 = vsel %vm5221_vm9, %v4824_v46, -inf }
 0x466   : > { %v5308_v20 = vmax.f32 %v5306_v2, %v5307_v27  ;;  %v5314_v35 = vrot.slane %v5313_v30, 4  ;;  %v5321_v32 = vrot.slane %v5320_v33, 4 }
 0x467   : > { %v5327_v40 = vsel %vm5221_vm9, %v4826_v34, -inf }
 0x468   : > { %v5309_v62 = vrot.slane %v5308_v20, 2  ;;  %v5315_v50 = vmax.f32 %v5313_v30, %v5314_v35  ;;  %v5322_v54 = vmax.f32 %v5320_v33, %v5321_v32  ;;  %v5328_v47 = vrot.slane %v5327_v40, 4 }
 0x46a   : > { %v5310_v28 = vmax.f32 %v5308_v20, %v5309_v62  ;;  %v5316_v13 = vrot.slane %v5315_v50, 2  ;;  %v5323_v19 = vrot.slane %v5322_v54, 2  ;;  %v5329_v6 = vmax.f32 %v5327_v40, %v5328_v47 }
 0x46c   : > { %v5311_v55 = vrot.slane %v5310_v28, 1  ;;  %v5317_v18 = vmax.f32 %v5315_v50, %v5316_v13  ;;  %v5324_v23 = vmax.f32 %v5322_v54, %v5323_v19  ;;  %v5330_v45 = vrot.slane %v5329_v6, 2 }
 0x46e   : > { %v5312_v58 = vmax.f32 %v5310_v28, %v5311_v55  ;;  %v5318_v37 = vrot.slane %v5317_v18, 1  ;;  %v5325_v39 = vrot.slane %v5324_v23, 1  ;;  %v5331_v4 = vmax.f32 %v5329_v6, %v5330_v45 }
 0x470   : > { %v4626_v5 = vpop.f32.mrb[20].mxu1  ;;  %v5319_v38 = vmax.f32 %v5317_v18, %v5318_v37  ;;  %v5326_v9 = vmax.f32 %v5324_v23, %v5325_v39  ;;  %v5332_v11 = vrot.slane %v5331_v4, 1  ;;  %v5936_v24 = vsel %vm3756_vm0, %v5312_v58, %v5935_v29 }
 0x471   : > { %v4628_v21 = vpop.f32.mrb[21].mxu1  ;;  %v6035_v16 = vsel %vm3754_vm15, %v5312_v58, %v6034_v12  ;;  %v6133_v57 = vsel %vm3752_vm14, %v5312_v58, %v6132_v15  ;;  %v4627_v22 = vadd.f32 %v15052_v1, %v4626_v5 }
 0x472   : > { %v15118_v0 = vmax.f32 %v5331_v4, %v5332_v11  ;;  %v5937_v17 = vsel %vm3758_vm1, %v5319_v38, %v5936_v24  ;;  %v6036_v36 = vsel %vm3756_vm0, %v5319_v38, %v6035_v16  ;;  %v6134_v14 = vsel %vm3754_vm15, %v5319_v38, %v6133_v57 }
 0x473   : > { %v5938_v10 = vsel %vm3760_vm3, %v5326_v9, %v5937_v17  ;;  %v6037_v59 = vsel %vm3758_vm1, %v5326_v9, %v6036_v36  ;;  %v6135_v51 = vsel %vm3756_vm0, %v5326_v9, %v6134_v14  ;;  %v4719_v49 = vmax.f32 %v4627_v22, 0.0 }
 0x474   : > { %v6038_v41 = vsel %vm3760_vm3, %v15118_v0, %v6037_v59  ;;  %v15130_v7 = vsel %vm3758_vm1, %v15118_v0, %v6135_v51 }
 0x475   : > { %v4827_v8 = vcombine.high %v4719_v49, %v4719_v49  ;;  %v4834_v26 = vrot.slane %v4719_v49, %v17910_v43  ;;  %6434 = vmatprep.mubr.f32.mxu0 %v6038_v41 }
 0x476   : > { %v4631_v60 = vpop.f32.mrb[22].mxu1  ;;  %6435 = vmatmul.mubr.f32.gmra.mrb[34].mxu0 %v5938_v10 }
 0x477   : > { %v4632_v63 = vadd.f32 %v15052_v1, %v4631_v60  ;;  %v4633_v52 = vpop.f32.mrb[23].mxu1  ;;  %v4841_v29 = vrot.slane %v4827_v8, %v17910_v43  ;;  %v4842_v56 = vcombine.high %v4834_v26, %v4834_v26  ;;  %v5334_v53 = vsel %vm5221_vm9, %v4834_v26, -inf }
 0x478   : > { %v5335_v31 = vrot.slane %v5334_v53, 4 }
 0x479   : > { %v4720_v44 = vmax.f32 %v4632_v63, 0.0  ;;  %v4843_v48 = vcombine.high %v4841_v29, %v4841_v29  ;;  %v5341_v46 = vsel %vm5221_vm9, %v4842_v56, -inf  ;;  %v5348_v42 = vsel %vm5221_vm9, %v4841_v29, -inf }
 0x47a   : > { %v5336_v2 = vmax.f32 %v5334_v53, %v5335_v31  ;;  %v5342_v27 = vrot.slane %v5341_v46, 4  ;;  %v5349_v34 = vrot.slane %v5348_v42, 4 }
 0x47b   : > { %v4844_v30 = vcombine.high %v4720_v44, %v4720_v44  ;;  %v5355_v33 = vsel %vm5221_vm9, %v4843_v48, -inf  ;;  %v4851_v20 = vrot.slane %v4720_v44, %v17910_v43 }
 0x47c   : > { %v4636_v35 = vpop.f32.mrb[24].mxu1  ;;  %v5337_v32 = vrot.slane %v5336_v2, 2  ;;  %v5343_v3 = vmax.f32 %v5341_v46, %v5342_v27  ;;  %v5350_v40 = vmax.f32 %v5348_v42, %v5349_v34  ;;  %v5356_v62 = vrot.slane %v5355_v33, 4 }
 0x47d   : > { %v4638_v50 = vpop.f32.mrb[25].mxu1  ;;  %v4858_v54 = vrot.slane %v4844_v30, %v17910_v43  ;;  %v4859_v47 = vcombine.high %v4851_v20, %v4851_v20  ;;  %v5362_v28 = vsel %vm5221_vm9, %v4851_v20, -inf  ;;  %v4637_v13 = vadd.f32 %v15052_v1, %v4636_v35 }
 0x47e   : > { %v5338_v19 = vmax.f32 %v5336_v2, %v5337_v32  ;;  %v5344_v6 = vrot.slane %v5343_v3, 2  ;;  %v5351_v25 = vrot.slane %v5350_v40, 2  ;;  %v5357_v61 = vmax.f32 %v5355_v33, %v5356_v62 }
 0x47f   : > { %v4860_v55 = vcombine.high %v4858_v54, %v4858_v54  ;;  %v5363_v18 = vrot.slane %v5362_v28, 4  ;;  %v5369_v23 = vsel %vm5221_vm9, %v4859_v47, -inf  ;;  %v5376_v45 = vsel %vm5221_vm9, %v4858_v54, -inf }
 0x480   : > { %v5339_v58 = vrot.slane %v5338_v19, 1  ;;  %v5345_v37 = vmax.f32 %v5343_v3, %v5344_v6  ;;  %v5352_v39 = vmax.f32 %v5350_v40, %v5351_v25  ;;  %v5358_v4 = vrot.slane %v5357_v61, 2 }
 0x481   : > { %v5364_v12 = vmax.f32 %v5362_v28, %v5363_v18  ;;  %v5370_v15 = vrot.slane %v5369_v23, 4  ;;  %v5377_v5 = vrot.slane %v5376_v45, 4  ;;  %v5383_v38 = vsel %vm5221_vm9, %v4860_v55, -inf }
 0x482   : > { %v5340_v9 = vmax.f32 %v5338_v19, %v5339_v58  ;;  %v5346_v11 = vrot.slane %v5345_v37, 1  ;;  %v5353_v24 = vrot.slane %v5352_v39, 1  ;;  %v5359_v21 = vmax.f32 %v5357_v61, %v5358_v4 }
 0x483   : > { %v5365_v57 = vrot.slane %v5364_v12, 2  ;;  %v5371_v22 = vmax.f32 %v5369_v23, %v5370_v15  ;;  %v5378_v17 = vmax.f32 %v5376_v45, %v5377_v5  ;;  %v5384_v36 = vrot.slane %v5383_v38, 4 }
 0x484   : > { %v5347_v10 = vmax.f32 %v5345_v37, %v5346_v11  ;;  %v5354_v59 = vmax.f32 %v5352_v39, %v5353_v24  ;;  %v5360_v51 = vrot.slane %v5359_v21, 1  ;;  %v5939_v49 = vsel %vm3762_vm13, %v5340_v9, %v15118_v0 }
 0x485   : > { %v6137_v41 = vsel %vm3760_vm3, %v5340_v9, %v15130_v7  ;;  %v5366_v8 = vmax.f32 %v5364_v12, %v5365_v57  ;;  %v5372_v26 = vrot.slane %v5371_v22, 2  ;;  %v5379_v60 = vrot.slane %v5378_v17, 2 }
 0x486   : > { %v5361_v63 = vmax.f32 %v5359_v21, %v5360_v51  ;;  %v5940_v52 = vsel %vm3750_vm12, %v5347_v10, %v5939_v49  ;;  %v6039_v29 = vsel %vm3762_vm13, %v5347_v10, %v5340_v9  ;;  %v6138_v56 = vsel %vm3762_vm13, %v5354_v59, %v5347_v10  ;;  %6212 = vst [vmem:[#allocation4 + $0x28] sm:$0xff] %v6137_v41 }
 0x487   : > { %v4641_v16 = vpop.f32.mrb[26].mxu1  ;;  %v5941_v31 = vsel %vm3752_vm14, %v5354_v59, %v5940_v52  ;;  %v6040_v44 = vsel %vm3750_vm12, %v5354_v59, %v6039_v29  ;;  %v5367_v0 = vrot.slane %v5366_v8, 1  ;;  %v5373_v48 = vmax.f32 %v5371_v22, %v5372_v26 }
 0x488   : > { %v4643_v14 = vpop.f32.mrb[27].mxu1  ;;  %v5380_v7 = vmax.f32 %v5378_v17, %v5379_v60  ;;  %v5385_v42 = vmax.f32 %v5383_v38, %v5384_v36  ;;  %v5942_v2 = vsel %vm3754_vm15, %v5361_v63, %v5941_v31  ;;  %v6041_v27 = vsel %vm3752_vm14, %v5361_v63, %v6040_v44 }
 0x489   : > { %v5368_v34 = vmax.f32 %v5366_v8, %v5367_v0  ;;  %v5374_v30 = vrot.slane %v5373_v48, 1  ;;  %v6139_v33 = vsel %vm3750_vm12, %v5361_v63, %v6138_v56  ;;  %v4721_v20 = vmax.f32 %v4637_v13, 0.0 }
 0x48a   : > { %v5381_v35 = vrot.slane %v5380_v7, 1  ;;  %v5386_v32 = vrot.slane %v5385_v42, 2  ;;  %v4642_v3 = vadd.f32 %v15052_v1, %v4641_v16 }
 0x48b   : > { %v4646_v53 = vpop.f32.mrb[28].mxu1  ;;  %v5375_v50 = vmax.f32 %v5373_v48, %v5374_v30  ;;  %v5943_v54 = vsel %vm3756_vm0, %v5368_v34, %v5942_v2  ;;  %v6042_v47 = vsel %vm3754_vm15, %v5368_v34, %v6041_v27  ;;  %v6140_v28 = vsel %vm3752_vm14, %v5368_v34, %v6139_v33 }
 0x48c   : > { %v4648_v46 = vpop.f32.mrb[29].mxu1  ;;  %v4647_v40 = vadd.f32 %v15052_v1, %v4646_v53  ;;  %v5382_v6 = vmax.f32 %v5380_v7, %v5381_v35  ;;  %v5387_v25 = vmax.f32 %v5385_v42, %v5386_v32  ;;  %v4861_v61 = vcombine.high %v4721_v20, %v4721_v20 }
 0x48d   : > { %v4868_v13 = vrot.slane %v4721_v20, %v17910_v43  ;;  %v5944_v55 = vsel %vm3758_vm1, %v5375_v50, %v5943_v54  ;;  %v6043_v18 = vsel %vm3756_vm0, %v5375_v50, %v6042_v47  ;;  %v6141_v23 = vsel %vm3754_vm15, %v5375_v50, %v6140_v28 }
 0x48e   : > { %v4722_v45 = vmax.f32 %v4642_v3, 0.0  ;;  %v5388_v58 = vrot.slane %v5387_v25, 1  ;;  %v5945_v37 = vsel %vm3760_vm3, %v5382_v6, %v5944_v55  ;;  %v6044_v39 = vsel %vm3758_vm1, %v5382_v6, %v6043_v18 }
 0x48f   : > { %v15160_v62 = vpop.f32.mrb[30].mxu1  ;;  %v6142_v4 = vsel %vm3756_vm0, %v5382_v6, %v6141_v23  ;;  %v4875_v15 = vrot.slane %v4861_v61, %v17910_v43  ;;  %v4876_v5 = vcombine.high %v4868_v13, %v4868_v13  ;;  %v5390_v38 = vsel %vm5221_vm9, %v4868_v13, -inf }
 0x490   : > { %v4653_v19 = vpop.f32.mrb[31].mxu1  ;;  %v4878_v9 = vcombine.high %v4722_v45, %v4722_v45  ;;  %v5389_v24 = vmax.f32 %v5387_v25, %v5388_v58  ;;  %v5391_v21 = vrot.slane %v5390_v38, 4  ;;  %v4885_v16 = vrot.slane %v4722_v45, %v17910_v43 }
 0x491   : > { %v15177_v57 = vmax.f32 %v4647_v40, 0.0  ;;  %v4877_v22 = vcombine.high %v4875_v15, %v4875_v15  ;;  %v5397_v17 = vsel %vm5221_vm9, %v4876_v5, -inf  ;;  %v5404_v36 = vsel %vm5221_vm9, %v4875_v15, -inf }
 0x492   : > { %v4892_v14 = vrot.slane %v4878_v9, %v17910_v43  ;;  %v6045_v10 = vsel %vm3760_vm3, %v5389_v24, %v6044_v39  ;;  %v5392_v59 = vmax.f32 %v5390_v38, %v5391_v21  ;;  %v5398_v51 = vrot.slane %v5397_v17, 4 }
 0x493   : > { %v15172_v12 = vpop.f32.mrb[32].mxu1  ;;  %v5405_v49 = vrot.slane %v5404_v36, 4  ;;  %v5411_v8 = vsel %vm5221_vm9, %v4877_v22, -inf  ;;  %v6143_v26 = vsel %vm3758_vm1, %v5389_v24, %v6142_v4  ;;  %v4893_v60 = vcombine.high %v4885_v16, %v4885_v16  ;;  %6440 = vmatprep.mubr.f32.mxu0 %v6045_v10 }
 0x494   : > { %v4658_v11 = vpop.f32.mrb[33].mxu1  ;;  %v4894_v63 = vcombine.high %v4892_v14, %v4892_v14  ;;  %v5393_v29 = vrot.slane %v5392_v59, 2  ;;  %v5399_v56 = vmax.f32 %v5397_v17, %v5398_v51  ;;  %v5412_v31 = vrot.slane %v5411_v8, 4  ;;  %6441 = vmatmul.mubr.f32.gmra.mrb[36].mxu0 %v5945_v37 }
 0x495   : > { %v5406_v53 = vmax.f32 %v5404_v36, %v5405_v49  ;;  %v5418_v44 = vsel %vm5221_vm9, %v4885_v16, -inf  ;;  %v5425_v0 = vsel %vm5221_vm9, %v4893_v60, -inf  ;;  %v5432_v48 = vsel %vm5221_vm9, %v4892_v14, -inf }
 0x496   : > { %v5439_v46 = vsel %vm5221_vm9, %v4894_v63, -inf  ;;  %v5394_v7 = vmax.f32 %v5392_v59, %v5393_v29  ;;  %v5400_v42 = vrot.slane %v5399_v56, 2  ;;  %v5413_v27 = vmax.f32 %v5411_v8, %v5412_v31 }
 0x497   : > { %v15183_v41 = vpop.f32.mrb[34].mxu1  ;;  %v5407_v2 = vrot.slane %v5406_v53, 2  ;;  %v5419_v30 = vrot.slane %v5418_v44, 4  ;;  %v5426_v33 = vrot.slane %v5425_v0, 4  ;;  %v5433_v20 = vrot.slane %v5432_v48, 4 }
 0x498   : > { %v4663_v52 = vpop.f32.mrb[35].mxu1  ;;  %v5440_v35 = vrot.slane %v5439_v46, 4  ;;  %v5395_v3 = vrot.slane %v5394_v7, 1  ;;  %v5401_v40 = vmax.f32 %v5399_v56, %v5400_v42  ;;  %v5414_v54 = vrot.slane %v5413_v27, 2 }
 0x499   : > { %v5408_v50 = vmax.f32 %v5406_v53, %v5407_v2  ;;  %v5420_v47 = vmax.f32 %v5418_v44, %v5419_v30  ;;  %v5427_v28 = vmax.f32 %v5425_v0, %v5426_v33  ;;  %v5434_v19 = vmax.f32 %v5432_v48, %v5433_v20 }
 0x49a   : > { %v5441_v6 = vmax.f32 %v5439_v46, %v5440_v35  ;;  %v5396_v25 = vmax.f32 %v5394_v7, %v5395_v3  ;;  %v5402_v61 = vrot.slane %v5401_v40, 1  ;;  %v5415_v55 = vmax.f32 %v5413_v27, %v5414_v54 }
 0x49b   : > { %v15191_v34 = vpop.f32.mrb[36].mxu1  ;;  %v5409_v13 = vrot.slane %v5408_v50, 1  ;;  %v5421_v23 = vrot.slane %v5420_v47, 2  ;;  %v5428_v45 = vrot.slane %v5427_v28, 2  ;;  %v5435_v58 = vrot.slane %v5434_v19, 2 }
 0x49c   : > { %v4668_v32 = vpop.f32.mrb[37].mxu1  ;;  %v5442_v37 = vrot.slane %v5441_v6, 2  ;;  %v5403_v4 = vmax.f32 %v5401_v40, %v5402_v61  ;;  %v5416_v5 = vrot.slane %v5415_v55, 1  ;;  %v5946_v38 = vsel %vm3762_vm13, %v5396_v25, %v5389_v24 }
 0x49d   : > { %v5410_v15 = vmax.f32 %v5408_v50, %v5409_v13  ;;  %v6144_v9 = vsel %vm3760_vm3, %v5396_v25, %v6143_v26  ;;  %v5422_v11 = vmax.f32 %v5420_v47, %v5421_v23  ;;  %v5429_v21 = vmax.f32 %v5427_v28, %v5428_v45 }
 0x49e   : > { %v5436_v16 = vmax.f32 %v5434_v19, %v5435_v58  ;;  %v5417_v22 = vmax.f32 %v5415_v55, %v5416_v5  ;;  %v5947_v17 = vsel %vm3750_vm12, %v5403_v4, %v5946_v38  ;;  %v6046_v36 = vsel %vm3762_vm13, %v5403_v4, %v5396_v25  ;;  %6213 = vst [vmem:[#allocation4 + $0x40] sm:$0xff] %v6144_v9 }
 0x49f   : > { %v15193_v18 = vpop.f32.mrb[38].mxu1  ;;  %v6145_v14 = vsel %vm3762_vm13, %v5410_v15, %v5403_v4  ;;  %v5948_v59 = vsel %vm3752_vm14, %v5410_v15, %v5947_v17  ;;  %v6047_v51 = vsel %vm3750_vm12, %v5410_v15, %v6046_v36  ;;  %v5423_v24 = vrot.slane %v5422_v11, 1 }
 0x4a0   : > { %v4673_v39 = vpop.f32.mrb[39].mxu1  ;;  %v5430_v49 = vrot.slane %v5429_v21, 1  ;;  %v5437_v26 = vrot.slane %v5436_v16, 1  ;;  %v5443_v60 = vmax.f32 %v5441_v6, %v5442_v37  ;;  %v5949_v63 = vsel %vm3754_vm15, %v5417_v22, %v5948_v59 }
 0x4a1   : > { %v6048_v52 = vsel %vm3752_vm14, %v5417_v22, %v6047_v51  ;;  %v5424_v29 = vmax.f32 %v5422_v11, %v5423_v24  ;;  %v6146_v53 = vsel %vm3750_vm12, %v5417_v22, %v6145_v14  ;;  %v4895_v31 = vcombine.high %v15177_v57, %v15177_v57 }
 0x4a2   : > { %v5431_v56 = vmax.f32 %v5429_v21, %v5430_v49  ;;  %v5438_v44 = vmax.f32 %v5436_v16, %v5437_v26  ;;  %v5444_v0 = vrot.slane %v5443_v60, 1  ;;  %v4902_v48 = vrot.slane %v15177_v57, %v17910_v43 }
 0x4a3   : > { %v15200_v10 = vpop.f32.mrb[40].mxu1  ;;  %v4652_v46 = vadd.f32 %v15052_v1, %v15160_v62  ;;  %v5950_v42 = vsel %vm3756_vm0, %v5424_v29, %v5949_v63  ;;  %v6049_v2 = vsel %vm3754_vm15, %v5424_v29, %v6048_v52  ;;  %v6147_v27 = vsel %vm3752_vm14, %v5424_v29, %v6146_v53 }
 0x4a4   : > { %v4678_v8 = vpop.f32.mrb[41].mxu1  ;;  %v4909_v30 = vrot.slane %v4895_v31, %v17910_v43  ;;  %v15219_v20 = vmax.f32 %v5443_v60, %v5444_v0  ;;  %v5951_v35 = vsel %vm3758_vm1, %v5431_v56, %v5950_v42  ;;  %v6050_v57 = vsel %vm3756_vm0, %v5431_v56, %v6049_v2 }
 0x4a5   : > { %v6148_v32 = vsel %vm3754_vm15, %v5431_v56, %v6147_v27  ;;  %v5952_v62 = vsel %vm3760_vm3, %v5438_v44, %v5951_v35  ;;  %v6051_v3 = vsel %vm3758_vm1, %v5438_v44, %v6050_v57  ;;  %v4910_v50 = vcombine.high %v4902_v48, %v4902_v48 }
 0x4a6   : > { %v6149_v40 = vsel %vm3756_vm0, %v5438_v44, %v6148_v32  ;;  %v6052_v54 = vsel %vm3760_vm3, %v15219_v20, %v6051_v3  ;;  %v4911_v47 = vcombine.high %v4909_v30, %v4909_v30  ;;  %v5446_v28 = vsel %vm5221_vm9, %v4902_v48, -inf }
 0x4a7   : > { %v15213_v7 = vpop.f32.mrb[42].mxu1  ;;  %v5460_v19 = vsel %vm5221_vm9, %v4909_v30, -inf  ;;  %v5447_v6 = vrot.slane %v5446_v28, 4  ;;  %v5453_v25 = vsel %vm5221_vm9, %v4910_v50, -inf  ;;  %v6150_v13 = vsel %vm3758_vm1, %v15219_v20, %v6149_v40  ;;  %6446 = vmatprep.mubr.f32.mxu0 %v6052_v54 }
 0x4a8   : > { %v4683_v33 = vpop.f32.mrb[43].mxu1  ;;  %v5461_v61 = vrot.slane %v5460_v19, 4  ;;  %v5454_v55 = vrot.slane %v5453_v25, 4  ;;  %v5467_v23 = vsel %vm5221_vm9, %v4911_v47, -inf  ;;  %v4724_v45 = vmax.f32 %v4652_v46, 0.0  ;;  %6447 = vmatmul.mubr.f32.gmra.mrb[38].mxu0 %v5952_v62 }
 0x4a9   : > { %v4657_v58 = vadd.f32 %v15052_v1, %v15172_v12  ;;  %v5448_v37 = vmax.f32 %v5446_v28, %v5447_v6  ;;  %v5468_v4 = vrot.slane %v5467_v23, 4  ;;  %v4662_v15 = vadd.f32 %v15052_v1, %v15183_v41 }
 0x4aa   : > { %v5462_v39 = vmax.f32 %v5460_v19, %v5461_v61  ;;  %v5455_v5 = vmax.f32 %v5453_v25, %v5454_v55  ;;  %v4912_v38 = vcombine.high %v4724_v45, %v4724_v45  ;;  %v4919_v9 = vrot.slane %v4724_v45, %v17910_v43 }
 0x4ab   : > { %v15240_v11 = vmax.f32 %v4657_v58, 0.0  ;;  %v5449_v21 = vrot.slane %v5448_v37, 2  ;;  %v5469_v22 = vmax.f32 %v5467_v23, %v5468_v4  ;;  %v15242_v17 = vmax.f32 %v4662_v15, 0.0 }
 0x4ac   : > { %v5463_v16 = vrot.slane %v5462_v39, 2  ;;  %v5456_v36 = vrot.slane %v5455_v5, 2  ;;  %v4926_v12 = vrot.slane %v4912_v38, %v17910_v43  ;;  %v4927_v14 = vcombine.high %v4919_v9, %v4919_v9 }
 0x4ad   : > { %v5474_v59 = vsel %vm5221_vm9, %v4919_v9, -inf  ;;  %v5450_v51 = vmax.f32 %v5448_v37, %v5449_v21  ;;  %v5470_v1 = vrot.slane %v5469_v22, 2  ;;  %v4929_v4 = vcombine.high %v15240_v11, %v15240_v11 }
 0x4ae   : > { %v5464_v24 = vmax.f32 %v5462_v39, %v5463_v16  ;;  %v5475_v41 = vrot.slane %v5474_v59, 4  ;;  %v5457_v49 = vmax.f32 %v5455_v5, %v5456_v36  ;;  %v4928_v8 = vcombine.high %v4926_v12, %v4926_v12 }
 0x4af   : > { %v5481_v26 = vsel %vm5221_vm9, %v4927_v14, -inf  ;;  %v5488_v60 = vsel %vm5221_vm9, %v4926_v12, -inf  ;;  %v5451_v63 = vrot.slane %v5450_v51, 1  ;;  %v5471_v29 = vmax.f32 %v5469_v22, %v5470_v1 }
 0x4b0   : > { %v5465_v52 = vrot.slane %v5464_v24, 1  ;;  %v5476_v56 = vmax.f32 %v5474_v59, %v5475_v41  ;;  %v5458_v53 = vrot.slane %v5457_v49, 1  ;;  %v5482_v31 = vrot.slane %v5481_v26, 4 }
 0x4b1   : > { %v5489_v44 = vrot.slane %v5488_v60, 4  ;;  %v5495_v0 = vsel %vm5221_vm9, %v4928_v8, -inf  ;;  %v5452_v48 = vmax.f32 %v5450_v51, %v5451_v63  ;;  %v5472_v42 = vrot.slane %v5471_v29, 1 }
 0x4b2   : > { %v5466_v46 = vmax.f32 %v5464_v24, %v5465_v52  ;;  %v5477_v2 = vrot.slane %v5476_v56, 2  ;;  %v5459_v27 = vmax.f32 %v5457_v49, %v5458_v53  ;;  %v5483_v30 = vmax.f32 %v5481_v26, %v5482_v31  ;;  %v15249_v57 = vpop.f32.mrb[44].mxu1 }
 0x4b3   : > { %v5490_v33 = vmax.f32 %v5488_v60, %v5489_v44  ;;  %v5496_v35 = vrot.slane %v5495_v0, 4  ;;  %v5473_v32 = vmax.f32 %v5471_v29, %v5472_v42  ;;  %v5953_v62 = vsel %vm3762_vm13, %v5452_v48, %v15219_v20  ;;  %v4688_v50 = vpop.f32.mrb[45].mxu1 }
 0x4b4   : > { %v6151_v3 = vsel %vm3760_vm3, %v5452_v48, %v6150_v13  ;;  %v5478_v40 = vmax.f32 %v5476_v56, %v5477_v2  ;;  %v5954_v54 = vsel %vm3750_vm12, %v5459_v27, %v5953_v62  ;;  %v6053_v47 = vsel %vm3762_vm13, %v5459_v27, %v5452_v48 }
 0x4b5   : > { %v6152_v28 = vsel %vm3762_vm13, %v5466_v46, %v5459_v27  ;;  %6214 = vst [vmem:[#allocation4 + $0x58] sm:$0xff] %v6151_v3  ;;  %v5484_v19 = vrot.slane %v5483_v30, 2  ;;  %v5955_v6 = vsel %vm3752_vm14, %v5466_v46, %v5954_v54  ;;  %v6054_v25 = vsel %vm3750_vm12, %v5466_v46, %v6053_v47 }
 0x4b6   : > { %v5479_v61 = vrot.slane %v5478_v40, 1  ;;  %v5491_v55 = vrot.slane %v5490_v33, 2  ;;  %v5497_v20 = vmax.f32 %v5495_v0, %v5496_v35  ;;  %v5956_v13 = vsel %vm3754_vm15, %v5473_v32, %v5955_v6 }
 0x4b7   : > { %v5485_v23 = vmax.f32 %v5483_v30, %v5484_v19  ;;  %v6055_v45 = vsel %vm3752_vm14, %v5473_v32, %v6054_v25  ;;  %v6153_v39 = vsel %vm3750_vm12, %v5473_v32, %v6152_v28  ;;  %v4936_v38 = vrot.slane %v15240_v11, %v17910_v43 }
 0x4b8   : > { %v5480_v58 = vmax.f32 %v5478_v40, %v5479_v61  ;;  %v5492_v37 = vmax.f32 %v5490_v33, %v5491_v55  ;;  %v5498_v5 = vrot.slane %v5497_v20, 2  ;;  %v4946_v9 = vcombine.high %v15242_v17, %v15242_v17 }
 0x4b9   : > { %v5486_v15 = vrot.slane %v5485_v23, 1  ;;  %v4943_v59 = vrot.slane %v4929_v4, %v17910_v43  ;;  %v4944_v51 = vcombine.high %v4936_v38, %v4936_v38  ;;  %v5502_v1 = vsel %vm5221_vm9, %v4936_v38, -inf }
 0x4ba   : > { %v5493_v21 = vrot.slane %v5492_v37, 1  ;;  %v5957_v16 = vsel %vm3756_vm0, %v5480_v58, %v5956_v13  ;;  %v6056_v22 = vsel %vm3754_vm15, %v5480_v58, %v6055_v45  ;;  %v6154_v36 = vsel %vm3752_vm14, %v5480_v58, %v6153_v39 }
 0x4bb   : > { %v5487_v12 = vmax.f32 %v5485_v23, %v5486_v15  ;;  %v5499_v14 = vmax.f32 %v5497_v20, %v5498_v5  ;;  %v4953_v11 = vrot.slane %v15242_v17, %v17910_v43  ;;  %v4960_v41 = vrot.slane %v4946_v9, %v17910_v43 }
 0x4bc   : > { %v5494_v24 = vmax.f32 %v5492_v37, %v5493_v21  ;;  %v4945_v56 = vcombine.high %v4943_v59, %v4943_v59  ;;  %v5503_v31 = vrot.slane %v5502_v1, 4  ;;  %v5509_v17 = vsel %vm5221_vm9, %v4944_v51, -inf }
 0x4bd   : > { %v5500_v49 = vrot.slane %v5499_v14, 1  ;;  %v5958_v8 = vsel %vm3758_vm1, %v5487_v12, %v5957_v16  ;;  %v6057_v26 = vsel %vm3756_vm0, %v5487_v12, %v6056_v22  ;;  %v6155_v60 = vsel %vm3754_vm15, %v5487_v12, %v6154_v36 }
 0x4be   : > { %v5959_v63 = vsel %vm3760_vm3, %v5494_v24, %v5958_v8  ;;  %v6058_v52 = vsel %vm3758_vm1, %v5494_v24, %v6057_v26  ;;  %v6156_v29 = vsel %vm3756_vm0, %v5494_v24, %v6155_v60  ;;  %v5516_v44 = vsel %vm5221_vm9, %v4943_v59, -inf }
 0x4bf   : > { %v5501_v53 = vmax.f32 %v5499_v14, %v5500_v49  ;;  %v5510_v0 = vrot.slane %v5509_v17, 4  ;;  %v5517_v48 = vrot.slane %v5516_v44, 4  ;;  %v5523_v46 = vsel %vm5221_vm9, %v4945_v56, -inf }
 0x4c0   : > { %v4961_v42 = vcombine.high %v4953_v11, %v4953_v11  ;;  %v5504_v27 = vmax.f32 %v5502_v1, %v5503_v31  ;;  %v5524_v30 = vrot.slane %v5523_v46, 4  ;;  %v4962_v62 = vcombine.high %v4960_v41, %v4960_v41 }
 0x4c1   : > { %v6059_v2 = vsel %vm3760_vm3, %v5501_v53, %v6058_v52  ;;  %v6157_v33 = vsel %vm3758_vm1, %v5501_v53, %v6156_v29  ;;  %v5511_v35 = vmax.f32 %v5509_v17, %v5510_v0  ;;  %v5518_v32 = vmax.f32 %v5516_v44, %v5517_v48 }
 0x4c2   : > { %v5530_v3 = vsel %vm5221_vm9, %v4953_v11, -inf  ;;  %6452 = vmatprep.mubr.f32.mxu0 %v6059_v2  ;;  %v5505_v40 = vrot.slane %v5504_v27, 2  ;;  %v5525_v50 = vmax.f32 %v5523_v46, %v5524_v30  ;;  %v5537_v47 = vsel %vm5221_vm9, %v4961_v42, -inf }
 0x4c3   : > { %v5531_v54 = vrot.slane %v5530_v3, 4  ;;  %6453 = vmatmul.mubr.f32.gmra.mrb[40].mxu0 %v5959_v63  ;;  %v5512_v28 = vrot.slane %v5511_v35, 2  ;;  %v5519_v19 = vrot.slane %v5518_v32, 2  ;;  %v5538_v6 = vrot.slane %v5537_v47, 4 }
 0x4c4   : > { %v5544_v25 = vsel %vm5221_vm9, %v4960_v41, -inf  ;;  %v5506_v61 = vmax.f32 %v5504_v27, %v5505_v40  ;;  %v5526_v55 = vrot.slane %v5525_v50, 2  ;;  %v5551_v37 = vsel %vm5221_vm9, %v4962_v62, -inf }
 0x4c5   : > { %v5532_v23 = vmax.f32 %v5530_v3, %v5531_v54  ;;  %v5545_v20 = vrot.slane %v5544_v25, 4  ;;  %v5513_v13 = vmax.f32 %v5511_v35, %v5512_v28  ;;  %v5520_v45 = vmax.f32 %v5518_v32, %v5519_v19  ;;  %v15310_v54 = vld [vmem:[%s17537_s4] ss:$0 sm:$0xff] }
 0x4c6   : > { %v5539_v58 = vmax.f32 %v5537_v47, %v5538_v6  ;;  %v5507_v39 = vrot.slane %v5506_v61, 1  ;;  %v5527_v4 = vmax.f32 %v5525_v50, %v5526_v55  ;;  %v5552_v16 = vrot.slane %v5551_v37, 4 }
 0x4c7   : > { %v5533_v15 = vrot.slane %v5532_v23, 2  ;;  %v5546_v5 = vmax.f32 %v5544_v25, %v5545_v20  ;;  %v5514_v38 = vrot.slane %v5513_v13, 1  ;;  %v5521_v9 = vrot.slane %v5520_v45, 1  ;;  %v4691_v59 = vpop.f32.mrb[46].mxu1 }
 0x4c8   : > { %v5540_v21 = vrot.slane %v5539_v58, 2  ;;  %v5508_v22 = vmax.f32 %v5506_v61, %v5507_v39  ;;  %v5528_v36 = vrot.slane %v5527_v4, 1  ;;  %v5553_v11 = vmax.f32 %v5551_v37, %v5552_v16  ;;  %v4693_v41 = vpop.f32.mrb[47].mxu1 }
 0x4c9   : > { %v5534_v12 = vmax.f32 %v5532_v23, %v5533_v15  ;;  %v5547_v14 = vrot.slane %v5546_v5, 2  ;;  %v5515_v51 = vmax.f32 %v5513_v13, %v5514_v38  ;;  %v5522_v24 = vmax.f32 %v5520_v45, %v5521_v9 }
 0x4ca   : > { %v5541_v1 = vmax.f32 %v5539_v58, %v5540_v21  ;;  %v5529_v49 = vmax.f32 %v5527_v4, %v5528_v36  ;;  %v5960_v8 = vsel %vm3762_vm13, %v5508_v22, %v5501_v53  ;;  %v6158_v26 = vsel %vm3760_vm3, %v5508_v22, %v6157_v33 }
 0x4cb   : > { %v5535_v60 = vrot.slane %v5534_v12, 1  ;;  %v5961_v63 = vsel %vm3750_vm12, %v5515_v51, %v5960_v8  ;;  %v6060_v52 = vsel %vm3762_vm13, %v5515_v51, %v5508_v22  ;;  %v6159_v29 = vsel %vm3762_vm13, %v5522_v24, %v5515_v51  ;;  %6215 = vst [vmem:[#allocation4 + $0x70] sm:$0xff] %v6158_v26 }
 0x4cc   : > { %v5542_v56 = vrot.slane %v5541_v1, 1  ;;  %v5962_v31 = vsel %vm3752_vm14, %v5522_v24, %v5961_v63  ;;  %v6061_v17 = vsel %vm3750_vm12, %v5522_v24, %v6060_v52  ;;  %v5548_v0 = vmax.f32 %v5546_v5, %v5547_v14 }
 0x4cd   : > { %v5536_v44 = vmax.f32 %v5534_v12, %v5535_v60  ;;  %v5554_v46 = vrot.slane %v5553_v11, 2  ;;  %v5963_v53 = vsel %vm3754_vm15, %v5529_v49, %v5962_v31  ;;  %v6062_v42 = vsel %vm3752_vm14, %v5529_v49, %v6061_v17 }
 0x4ce   : > { %v5543_v48 = vmax.f32 %v5541_v1, %v5542_v56  ;;  %v5549_v2 = vrot.slane %v5548_v0, 1  ;;  %v6160_v33 = vsel %vm3750_vm12, %v5529_v49, %v6159_v29  ;;  %v4667_v47 = vadd.f32 %v15310_v54, %v15191_v34 }
 0x4cf   : > { %v5964_v27 = vsel %vm3756_vm0, %v5536_v44, %v5963_v53  ;;  %v6063_v30 = vsel %vm3754_vm15, %v5536_v44, %v6062_v42  ;;  %v5555_v35 = vmax.f32 %v5553_v11, %v5554_v46  ;;  %v6161_v3 = vsel %vm3752_vm14, %v5536_v44, %v6160_v33 }
 0x4d0   : > { %v5965_v32 = vsel %vm3758_vm1, %v5543_v48, %v5964_v27  ;;  %v6064_v62 = vsel %vm3756_vm0, %v5543_v48, %v6063_v30  ;;  %v5550_v40 = vmax.f32 %v5548_v0, %v5549_v2  ;;  %v6162_v50 = vsel %vm3754_vm15, %v5543_v48, %v6161_v3 }
 0x4d1   : > { %v4672_v28 = vadd.f32 %v15310_v54, %v15193_v18  ;;  %v5556_v19 = vrot.slane %v5555_v35, 1  ;;  %v4677_v6 = vadd.f32 %v15310_v54, %v15200_v10  ;;  %v4682_v25 = vadd.f32 %v15310_v54, %v15213_v7 }
 0x4d2   : > { %v4687_v61 = vadd.f32 %v15310_v54, %v15249_v57  ;;  %v5966_v55 = vsel %vm3760_vm3, %v5550_v40, %v5965_v32  ;;  %v6065_v23 = vsel %vm3758_vm1, %v5550_v40, %v6064_v62  ;;  %v6163_v20 = vsel %vm3756_vm0, %v5550_v40, %v6162_v50 }
 0x4d3   : > { %v4727_v34 = vmax.f32 %v4667_v47, 0.0  ;;  %v15325_v13 = vmax.f32 %v5555_v35, %v5556_v19  ;;  %v4728_v18 = vmax.f32 %v4672_v28, 0.0  ;;  %v15327_v45 = vmax.f32 %v4677_v6, 0.0 }
 0x4d4   : > { %v15329_v58 = vmax.f32 %v4682_v25, 0.0  ;;  %v15332_v37 = vmax.f32 %v4687_v61, 0.0  ;;  %v15335_v57 = vadd.f32 %v15310_v54, %v4691_v59 }
 0x4d5   : > { %v4963_v10 = vcombine.high %v4727_v34, %v4727_v34  ;;  %v4970_v7 = vrot.slane %v4727_v34, %v17910_v43  ;;  %v6066_v39 = vsel %vm3760_vm3, %v15325_v13, %v6065_v23  ;;  %v15341_v4 = vsel %vm3758_vm1, %v15325_v13, %v6163_v20 }
 0x4d6   : > { %v4980_v15 = vcombine.high %v4728_v18, %v4728_v18  ;;  %v4987_v5 = vrot.slane %v4728_v18, %v17910_v43  ;;  %v4997_v16 = vcombine.high %v15327_v45, %v15327_v45  ;;  %6458 = vmatprep.mubr.f32.mxu0 %v6066_v39 }
 0x4d7   : > { %v4977_v38 = vrot.slane %v4963_v10, %v17910_v43  ;;  %v4978_v9 = vcombine.high %v4970_v7, %v4970_v7  ;;  %v5558_v21 = vsel %vm5221_vm9, %v4970_v7, -inf  ;;  %6459 = vmatmul.mubr.f32.gmra.mrb[42].mxu0 %v5966_v55 }
 0x4d8   : > { %v5559_v22 = vrot.slane %v5558_v21, 4  ;;  %v4994_v36 = vrot.slane %v4980_v15, %v17910_v43  ;;  %v4995_v12 = vcombine.high %v4987_v5, %v4987_v5  ;;  %v5586_v14 = vsel %vm5221_vm9, %v4987_v5, -inf }
 0x4d9   : > { %v4979_v59 = vcombine.high %v4977_v38, %v4977_v38  ;;  %v5565_v51 = vsel %vm5221_vm9, %v4978_v9, -inf  ;;  %v5572_v24 = vsel %vm5221_vm9, %v4977_v38, -inf  ;;  %v5587_v1 = vrot.slane %v5586_v14, 4 }
 0x4da   : > { %v5560_v11 = vmax.f32 %v5558_v21, %v5559_v22  ;;  %v5566_v41 = vrot.slane %v5565_v51, 4  ;;  %v5573_v49 = vrot.slane %v5572_v24, 4  ;;  %v4996_v8 = vcombine.high %v4994_v36, %v4994_v36 }
 0x4db   : > { %v5579_v26 = vsel %vm5221_vm9, %v4979_v59, -inf  ;;  %v5588_v60 = vmax.f32 %v5586_v14, %v5587_v1  ;;  %v5593_v63 = vsel %vm5221_vm9, %v4995_v12, -inf  ;;  %v5600_v52 = vsel %vm5221_vm9, %v4994_v36, -inf }
 0x4dc   : > { %v5561_v29 = vrot.slane %v5560_v11, 2  ;;  %v5567_v56 = vmax.f32 %v5565_v51, %v5566_v41  ;;  %v5574_v31 = vmax.f32 %v5572_v24, %v5573_v49  ;;  %v5580_v17 = vrot.slane %v5579_v26, 4 }
 0x4dd   : > { %v5589_v44 = vrot.slane %v5588_v60, 2  ;;  %v5594_v0 = vrot.slane %v5593_v63, 4  ;;  %v5601_v48 = vrot.slane %v5600_v52, 4  ;;  %v5607_v46 = vsel %vm5221_vm9, %v4996_v8, -inf }
 0x4de   : > { %v5562_v53 = vmax.f32 %v5560_v11, %v5561_v29  ;;  %v5568_v42 = vrot.slane %v5567_v56, 2  ;;  %v5575_v2 = vrot.slane %v5574_v31, 2  ;;  %v5581_v27 = vmax.f32 %v5579_v26, %v5580_v17 }
 0x4df   : > { %v5590_v30 = vmax.f32 %v5588_v60, %v5589_v44  ;;  %v5595_v33 = vmax.f32 %v5593_v63, %v5594_v0  ;;  %v5602_v35 = vmax.f32 %v5600_v52, %v5601_v48  ;;  %v5608_v32 = vrot.slane %v5607_v46, 4  ;;  %v15356_v47 = vpop.f32.mrb[48].mxu1 }
 0x4e0   : > { %v5563_v62 = vrot.slane %v5562_v53, 1  ;;  %v5569_v3 = vmax.f32 %v5567_v56, %v5568_v42  ;;  %v5576_v40 = vmax.f32 %v5574_v31, %v5575_v2  ;;  %v5582_v50 = vrot.slane %v5581_v27, 2  ;;  %v4698_v61 = vpop.f32.mrb[49].mxu1 }
 0x4e1   : > { %v5591_v28 = vrot.slane %v5590_v30, 1  ;;  %v5596_v19 = vrot.slane %v5595_v33, 2  ;;  %v5603_v6 = vrot.slane %v5602_v35, 2  ;;  %v5609_v25 = vmax.f32 %v5607_v46, %v5608_v32 }
 0x4e2   : > { %v5564_v55 = vmax.f32 %v5562_v53, %v5563_v62  ;;  %v5570_v23 = vrot.slane %v5569_v3, 1  ;;  %v5577_v20 = vrot.slane %v5576_v40, 1  ;;  %v5583_v34 = vmax.f32 %v5581_v27, %v5582_v50 }
 0x4e3   : > { %v5592_v18 = vmax.f32 %v5590_v30, %v5591_v28  ;;  %v5597_v10 = vmax.f32 %v5595_v33, %v5596_v19  ;;  %v5604_v7 = vmax.f32 %v5602_v35, %v5603_v6  ;;  %v5610_v39 = vrot.slane %v5609_v25, 2 }
 0x4e4   : > { %v5571_v15 = vmax.f32 %v5569_v3, %v5570_v23  ;;  %v5578_v5 = vmax.f32 %v5576_v40, %v5577_v20  ;;  %v5584_v38 = vrot.slane %v5583_v34, 1  ;;  %v5967_v9 = vsel %vm3762_vm13, %v5564_v55, %v15325_v13 }
 0x4e5   : > { %v6165_v21 = vsel %vm3760_vm3, %v5564_v55, %v15341_v4  ;;  %v5598_v22 = vrot.slane %v5597_v10, 1  ;;  %v5605_v36 = vrot.slane %v5604_v7, 1  ;;  %v5611_v12 = vmax.f32 %v5609_v25, %v5610_v39 }
 0x4e6   : > { %v5585_v14 = vmax.f32 %v5583_v34, %v5584_v38  ;;  %v5968_v59 = vsel %vm3750_vm12, %v5571_v15, %v5967_v9  ;;  %v6067_v51 = vsel %vm3762_vm13, %v5571_v15, %v5564_v55  ;;  %v6166_v24 = vsel %vm3762_vm13, %v5578_v5, %v5571_v15  ;;  %6216 = vst [vmem:[#allocation4 + $0x88] sm:$0xff] %v6165_v21 }
 0x4e7   : > { %v5969_v1 = vsel %vm3752_vm14, %v5578_v5, %v5968_v59  ;;  %v6068_v11 = vsel %vm3750_vm12, %v5578_v5, %v6067_v51  ;;  %v5599_v41 = vmax.f32 %v5597_v10, %v5598_v22  ;;  %v5606_v13 = vmax.f32 %v5604_v7, %v5605_v36 }
 0x4e8   : > { %v5612_v49 = vrot.slane %v5611_v12, 1  ;;  %v5970_v4 = vsel %vm3754_vm15, %v5585_v14, %v5969_v1  ;;  %v6069_v8 = vsel %vm3752_vm14, %v5585_v14, %v6068_v11  ;;  %v6167_v26 = vsel %vm3750_vm12, %v5585_v14, %v6166_v24 }
 0x4e9   : > { %v5971_v60 = vsel %vm3756_vm0, %v5592_v18, %v5970_v4  ;;  %v6070_v63 = vsel %vm3754_vm15, %v5592_v18, %v6069_v8  ;;  %v6168_v52 = vsel %vm3752_vm14, %v5592_v18, %v6167_v26  ;;  %v5004_v29 = vrot.slane %v15327_v45, %v17910_v43 }
 0x4ea   : > { %v15375_v56 = vmax.f32 %v5611_v12, %v5612_v49  ;;  %v5972_v31 = vsel %vm3758_vm1, %v5599_v41, %v5971_v60  ;;  %v6071_v17 = vsel %vm3756_vm0, %v5599_v41, %v6070_v63  ;;  %v6169_v44 = vsel %vm3754_vm15, %v5599_v41, %v6168_v52 }
 0x4eb   : > { %v5973_v0 = vsel %vm3760_vm3, %v5606_v13, %v5972_v31  ;;  %v6072_v48 = vsel %vm3758_vm1, %v5606_v13, %v6071_v17  ;;  %v6170_v46 = vsel %vm3756_vm0, %v5606_v13, %v6169_v44  ;;  %v5011_v53 = vrot.slane %v4997_v16, %v17910_v43  ;;  %v15387_v42 = vpop.f32.mrb[50].mxu1 }
 0x4ec   : > { %v6073_v2 = vsel %vm3760_vm3, %v15375_v56, %v6072_v48  ;;  %v5012_v27 = vcombine.high %v5004_v29, %v5004_v29  ;;  %v5614_v30 = vsel %vm5221_vm9, %v5004_v29, -inf  ;;  %v6171_v33 = vsel %vm3758_vm1, %v15375_v56, %v6170_v46  ;;  %v4703_v35 = vpop.f32.mrb[51].mxu1 }
 0x4ed   : > { %v5013_v32 = vcombine.high %v5011_v53, %v5011_v53  ;;  %v5615_v62 = vrot.slane %v5614_v30, 4  ;;  %v5628_v3 = vsel %vm5221_vm9, %v5011_v53, -inf  ;;  %v5014_v45 = vcombine.high %v15329_v58, %v15329_v58  ;;  %6464 = vmatprep.mubr.f32.mxu0 %v6073_v2 }
 0x4ee   : > { %v5621_v16 = vsel %vm5221_vm9, %v5012_v27, -inf  ;;  %v5629_v40 = vrot.slane %v5628_v3, 4  ;;  %v5021_v50 = vrot.slane %v15329_v58, %v17910_v43  ;;  %v5031_v28 = vcombine.high %v15332_v37, %v15332_v37  ;;  %6465 = vmatmul.mubr.f32.gmra.mrb[44].mxu0 %v5973_v0 }
 0x4ef   : > { %v5616_v19 = vmax.f32 %v5614_v30, %v5615_v62  ;;  %v5622_v6 = vrot.slane %v5621_v16, 4  ;;  %v5635_v25 = vsel %vm5221_vm9, %v5013_v32, -inf  ;;  %v5028_v61 = vrot.slane %v5014_v45, %v17910_v43 }
 0x4f0   : > { %v5630_v55 = vmax.f32 %v5628_v3, %v5629_v40  ;;  %v5636_v23 = vrot.slane %v5635_v25, 4  ;;  %v5029_v20 = vcombine.high %v5021_v50, %v5021_v50  ;;  %v5642_v34 = vsel %vm5221_vm9, %v5021_v50, -inf  ;;  %v15405_v18 = vpop.f32.mrb[52].mxu1 }
 0x4f1   : > { %v5617_v10 = vrot.slane %v5616_v19, 2  ;;  %v5623_v7 = vmax.f32 %v5621_v16, %v5622_v6  ;;  %v5030_v58 = vcombine.high %v5028_v61, %v5028_v61  ;;  %v5643_v39 = vrot.slane %v5642_v34, 4  ;;  %v4708_v15 = vpop.f32.mrb[53].mxu1 }
 0x4f2   : > { %v5631_v5 = vrot.slane %v5630_v55, 2  ;;  %v5637_v38 = vmax.f32 %v5635_v25, %v5636_v23  ;;  %v5649_v9 = vsel %vm5221_vm9, %v5029_v20, -inf  ;;  %v5656_v21 = vsel %vm5221_vm9, %v5028_v61, -inf }
 0x4f3   : > { %v5618_v22 = vmax.f32 %v5616_v19, %v5617_v10  ;;  %v5624_v36 = vrot.slane %v5623_v7, 2  ;;  %v5644_v12 = vmax.f32 %v5642_v34, %v5643_v39  ;;  %v5650_v14 = vrot.slane %v5649_v9, 4 }
 0x4f4   : > { %v5632_v59 = vmax.f32 %v5630_v55, %v5631_v5  ;;  %v5638_v51 = vrot.slane %v5637_v38, 2  ;;  %v5657_v24 = vrot.slane %v5656_v21, 4  ;;  %v5663_v1 = vsel %vm5221_vm9, %v5030_v58, -inf }
 0x4f5   : > { %v5619_v11 = vrot.slane %v5618_v22, 1  ;;  %v5625_v41 = vmax.f32 %v5623_v7, %v5624_v36  ;;  %v5645_v13 = vrot.slane %v5644_v12, 2  ;;  %v5651_v49 = vmax.f32 %v5649_v9, %v5650_v14  ;;  %v15410_v4 = vpop.f32.mrb[54].mxu1 }
 0x4f6   : > { %v5633_v8 = vrot.slane %v5632_v59, 1  ;;  %v5639_v26 = vmax.f32 %v5637_v38, %v5638_v51  ;;  %v5658_v60 = vmax.f32 %v5656_v21, %v5657_v24  ;;  %v5664_v63 = vrot.slane %v5663_v1, 4  ;;  %v4713_v52 = vpop.f32.mrb[55].mxu1 }
 0x4f7   : > { %v5620_v29 = vmax.f32 %v5618_v22, %v5619_v11  ;;  %v5626_v31 = vrot.slane %v5625_v41, 1  ;;  %v5646_v17 = vmax.f32 %v5644_v12, %v5645_v13  ;;  %v5652_v44 = vrot.slane %v5651_v49, 2 }
 0x4f8   : > { %v5634_v0 = vmax.f32 %v5632_v59, %v5633_v8  ;;  %v5640_v48 = vrot.slane %v5639_v26, 1  ;;  %v5659_v46 = vrot.slane %v5658_v60, 2  ;;  %v5665_v53 = vmax.f32 %v5663_v1, %v5664_v63  ;;  %v6323_v8 = vld [vmem:[#allocation8 + $0x218] sm:$0xff] }
 0x4f9   : > { %v5627_v2 = vmax.f32 %v5625_v41, %v5626_v31  ;;  %v5974_v27 = vsel %vm3762_vm13, %v5620_v29, %v15375_v56  ;;  %v15415_v30 = vsel %vm3760_vm3, %v5620_v29, %v6171_v33  ;;  %v5647_v35 = vrot.slane %v5646_v17, 1 }
 0x4fa   : > { %v5641_v32 = vmax.f32 %v5639_v26, %v5640_v48  ;;  %v5653_v62 = vmax.f32 %v5651_v49, %v5652_v44  ;;  %v5660_v3 = vmax.f32 %v5658_v60, %v5659_v46  ;;  %v5666_v45 = vrot.slane %v5665_v53, 2  ;;  %v6321_v49 = vld [vmem:[#allocation8 + $0x208] sm:$0xff] }
 0x4fb   : > { %v5975_v16 = vsel %vm3750_vm12, %v5627_v2, %v5974_v27  ;;  %v6074_v40 = vsel %vm3762_vm13, %v5627_v2, %v5620_v29  ;;  %v6173_v50 = vsel %vm3762_vm13, %v5634_v0, %v5627_v2  ;;  %v5648_v19 = vmax.f32 %v5646_v17, %v5647_v35 }
 0x4fc   : > { %v5976_v6 = vsel %vm3752_vm14, %v5634_v0, %v5975_v16  ;;  %v6075_v25 = vsel %vm3750_vm12, %v5634_v0, %v6074_v40  ;;  %v5654_v56 = vrot.slane %v5653_v62, 1  ;;  %v5661_v61 = vrot.slane %v5660_v3, 1 }
 0x4fd   : > { %v5667_v33 = vmax.f32 %v5665_v53, %v5666_v45  ;;  %v5977_v55 = vsel %vm3754_vm15, %v5641_v32, %v5976_v6  ;;  %v6076_v23 = vsel %vm3752_vm14, %v5641_v32, %v6075_v25  ;;  %v6174_v20 = vsel %vm3750_vm12, %v5641_v32, %v6173_v50 }
 0x4fe   : > { %v5655_v34 = vmax.f32 %v5653_v62, %v5654_v56  ;;  %v5662_v10 = vmax.f32 %v5660_v3, %v5661_v61  ;;  %v5978_v7 = vsel %vm3756_vm0, %v5648_v19, %v5977_v55  ;;  %v6077_v58 = vsel %vm3754_vm15, %v5648_v19, %v6076_v23 }
 0x4ff   : > { %v5668_v39 = vrot.slane %v5667_v33, 1  ;;  %v6175_v15 = vsel %vm3752_vm14, %v5648_v19, %v6174_v20  ;;  %v5038_v5 = vrot.slane %v15332_v37, %v17910_v43  ;;  %v5045_v38 = vrot.slane %v5031_v28, %v17910_v43 }
 0x500   : > { %v5979_v9 = vsel %vm3758_vm1, %v5655_v34, %v5978_v7  ;;  %v6078_v21 = vsel %vm3756_vm0, %v5655_v34, %v6077_v58  ;;  %v6176_v22 = vsel %vm3754_vm15, %v5655_v34, %v6175_v15  ;;  %v4732_v36 = vmax.f32 %v15335_v57, 0.0 }
 0x501   : > { %v15438_v12 = vmax.f32 %v5667_v33, %v5668_v39  ;;  %v5980_v14 = vsel %vm3760_vm3, %v5662_v10, %v5979_v9  ;;  %v6079_v59 = vsel %vm3758_vm1, %v5662_v10, %v6078_v21  ;;  %v6177_v51 = vsel %vm3756_vm0, %v5662_v10, %v6176_v22 }
 0x502   : > { %v5046_v24 = vcombine.high %v5038_v5, %v5038_v5  ;;  %v5047_v1 = vcombine.high %v5045_v38, %v5045_v38  ;;  %v5670_v37 = vsel %vm5221_vm9, %v5038_v5, -inf  ;;  %v5684_v28 = vsel %vm5221_vm9, %v5045_v38, -inf }
 0x503   : > { %v6080_v11 = vsel %vm3760_vm3, %v15438_v12, %v6079_v59  ;;  %v5671_v41 = vrot.slane %v5670_v37, 4  ;;  %v5685_v13 = vrot.slane %v5684_v28, 4  ;;  %v6178_v57 = vsel %vm3758_vm1, %v15438_v12, %v6177_v51  ;;  %v6320_v59 = vld [vmem:[#allocation8 + $0x200] sm:$0xff]  ;;  %v6322_v51 = vld [vmem:[#allocation8 + $0x210] sm:$0xff] }
 0x504   : > { %v5677_v26 = vsel %vm5221_vm9, %v5046_v24, -inf  ;;  %v5691_v60 = vsel %vm5221_vm9, %v5047_v1, -inf  ;;  %v5048_v63 = vcombine.high %v4732_v36, %v4732_v36  ;;  %v5055_v52 = vrot.slane %v4732_v36, %v17910_v43  ;;  %6470 = vmatprep.mubr.f32.mxu0 %v6080_v11 }
 0x505   : > { %v5672_v29 = vmax.f32 %v5670_v37, %v5671_v41  ;;  %v5678_v31 = vrot.slane %v5677_v26, 4  ;;  %v5686_v17 = vmax.f32 %v5684_v28, %v5685_v13  ;;  %v5692_v44 = vrot.slane %v5691_v60, 4  ;;  %6471 = vmatmul.mubr.f32.gmra.mrb[46].mxu0 %v5980_v14 }
 0x506   : > { %v5062_v0 = vrot.slane %v5048_v63, %v17910_v43  ;;  %v5063_v48 = vcombine.high %v5055_v52, %v5055_v52  ;;  %v5698_v46 = vsel %vm5221_vm9, %v5055_v52, -inf  ;;  %v11765_v53 = vpack.c.bf16 %v6323_v8, %v6321_v49  ;;  %v6325_v52 = vld [vmem:[#allocation8 + $0x228] sm:$0xff] }
 0x507   : > { %v5673_v2 = vrot.slane %v5672_v29, 2  ;;  %v5679_v27 = vmax.f32 %v5677_v26, %v5678_v31  ;;  %v5687_v35 = vrot.slane %v5686_v17, 2  ;;  %v5693_v32 = vmax.f32 %v5691_v60, %v5692_v44  ;;  %v6324_v44 = vld [vmem:[#allocation8 + $0x220] sm:$0xff] }
 0x508   : > { %v5064_v62 = vcombine.high %v5062_v0, %v5062_v0  ;;  %v5699_v3 = vrot.slane %v5698_v46, 4  ;;  %v5705_v45 = vsel %vm5221_vm9, %v5063_v48, -inf  ;;  %v5712_v16 = vsel %vm5221_vm9, %v5062_v0, -inf  ;;  %11766 = vmatprep.subr.bf16.mxu0 %v11765_v53  ;;  %v6326_v0 = vld [vmem:[#allocation8 + $0x230] sm:$0xff] }
 0x509   : > { %v5674_v40 = vmax.f32 %v5672_v29, %v5673_v2  ;;  %v5680_v50 = vrot.slane %v5679_v27, 2  ;;  %v5688_v19 = vmax.f32 %v5686_v17, %v5687_v35  ;;  %v5694_v6 = vrot.slane %v5693_v32, 2  ;;  %v6331_v35 = vld [vmem:[#allocation8 + $0x258] sm:$0xff] }
 0x50a   : > { %v5700_v25 = vmax.f32 %v5698_v46, %v5699_v3  ;;  %v5706_v56 = vrot.slane %v5705_v45, 4  ;;  %v5713_v61 = vrot.slane %v5712_v16, 4  ;;  %v5719_v33 = vsel %vm5221_vm9, %v5064_v62, -inf }
 0x50b   : > { %v5675_v55 = vrot.slane %v5674_v40, 1  ;;  %v5681_v23 = vmax.f32 %v5679_v27, %v5680_v50  ;;  %v5689_v20 = vrot.slane %v5688_v19, 1  ;;  %v5695_v34 = vmax.f32 %v5693_v32, %v5694_v6  ;;  %v6329_v27 = vld [vmem:[#allocation8 + $0x248] sm:$0xff]  ;;  %v6328_v32 = vld [vmem:[#allocation8 + $0x240] sm:$0xff] }
 0x50c   : > { %v5701_v10 = vrot.slane %v5700_v25, 2  ;;  %v5707_v7 = vmax.f32 %v5705_v45, %v5706_v56  ;;  %v5714_v58 = vmax.f32 %v5712_v16, %v5713_v61  ;;  %v5720_v39 = vrot.slane %v5719_v33, 4  ;;  %v6333_v50 = vld [vmem:[#allocation8 + $0x268] sm:$0xff] }
 0x50d   : > { %v5676_v15 = vmax.f32 %v5674_v40, %v5675_v55  ;;  %v5682_v5 = vrot.slane %v5681_v23, 1  ;;  %v5690_v38 = vmax.f32 %v5688_v19, %v5689_v20  ;;  %v5696_v9 = vrot.slane %v5695_v34, 1  ;;  %v6330_v40 = vld [vmem:[#allocation8 + $0x250] sm:$0xff]  ;;  %v6335_v19 = vld [vmem:[#allocation8 + $0x278] sm:$0xff] }
 0x50e   : > { %v5702_v21 = vmax.f32 %v5700_v25, %v5701_v10  ;;  %v5708_v22 = vrot.slane %v5707_v7, 2  ;;  %v5715_v36 = vrot.slane %v5714_v58, 2  ;;  %v5721_v14 = vmax.f32 %v5719_v33, %v5720_v39  ;;  %v15473_v33 = vld [vmem:[#allocation8 + $0x260] sm:$0xff]  ;;  %v15475_v55 = vld [vmem:[#allocation8 + $0x270] sm:$0xff] }
 0x50f   : > { %v5683_v24 = vmax.f32 %v5681_v23, %v5682_v5  ;;  %v5697_v1 = vmax.f32 %v5695_v34, %v5696_v9  ;;  %v5981_v37 = vsel %vm3762_vm13, %v5676_v15, %v15438_v12  ;;  %v15460_v28 = vsel %vm3760_vm3, %v5676_v15, %v6178_v57  ;;  %v6327_v57 = vld [vmem:[#allocation8 + $0x238] sm:$0xff]  ;;  %v15477_v23 = vld [vmem:[#allocation8 + $0x288] sm:$0xff]  ;;  %v15484_v39 = vld [vmem:[#allocation8 + $0x280] sm:$0xff] }
 0x510   : > { %v5703_v11 = vrot.slane %v5702_v21, 1  ;;  %v5709_v41 = vmax.f32 %v5707_v7, %v5708_v22  ;;  %v5716_v13 = vmax.f32 %v5714_v58, %v5715_v36  ;;  %v5722_v49 = vrot.slane %v5721_v14, 2  ;;  %v15482_v58 = vld [vmem:[#allocation8 + $0x298] sm:$0xff]  ;;  %v15493_v22 = vld [vmem:[#allocation8 + $0x2a8] sm:$0xff] }
 0x511   : > { %v5982_v8 = vsel %vm3750_vm12, %v5683_v24, %v5981_v37  ;;  %v6081_v26 = vsel %vm3762_vm13, %v5683_v24, %v5676_v15  ;;  %v6180_v60 = vsel %vm3762_vm13, %v5690_v38, %v5683_v24  ;;  %v11767_v63 = vpack.c.bf16 %v6322_v51, %v6320_v59  ;;  %v15486_v15 = vld [vmem:[#allocation8 + $0x290] sm:$0xff]  ;;  %v15495_v36 = vld [vmem:[#allocation8 + $0x2b8] sm:$0xff] }
 0x512   : > { %v5983_v29 = vsel %vm3752_vm14, %v5690_v38, %v5982_v8  ;;  %v6082_v31 = vsel %vm3750_vm12, %v5690_v38, %v6081_v26  ;;  %v5704_v12 = vmax.f32 %v5702_v21, %v5703_v11  ;;  %v5710_v17 = vrot.slane %v5709_v41, 1  ;;  %v15501_v37 = vld [vmem:[#allocation8 + $0x2b0] sm:$0xff]  ;;  %v15503_v11 = vld [vmem:[#allocation8 + $0x2c8] sm:$0xff]  ;;  %v15517_v26 = vld [vmem:[#allocation8 + $0x2c0] sm:$0xff] }
 0x513   : > { %v5717_v48 = vrot.slane %v5716_v13, 1  ;;  %v5723_v46 = vmax.f32 %v5721_v14, %v5722_v49  ;;  %v5984_v53 = vsel %vm3754_vm15, %v5697_v1, %v5983_v29  ;;  %v6083_v2 = vsel %vm3752_vm14, %v5697_v1, %v6082_v31  ;;  %11768 = vmatpush1.bf16.msra.mxu0 %v11767_v63  ;;  %v15497_v14 = vld [vmem:[#allocation8 + $0x2a0] sm:$0xff] }
 0x514   : > { %v5711_v62 = vmax.f32 %v5709_v41, %v5710_v17  ;;  %v5985_v3 = vsel %vm3756_vm0, %v5704_v12, %v5984_v53  ;;  %v6084_v45 = vsel %vm3754_vm15, %v5704_v12, %v6083_v2  ;;  %v6181_v16 = vsel %vm3750_vm12, %v5697_v1, %v6180_v60  ;;  %v15505_v41 = vld [vmem:[#allocation8 + $0x2d8] sm:$0xff]  ;;  %v15519_v60 = vld [vmem:[#allocation8 + $0x2d0] sm:$0xff] }
 0x515   : > { %v5718_v6 = vmax.f32 %v5716_v13, %v5717_v48  ;;  %v5724_v25 = vrot.slane %v5723_v46, 1  ;;  %v6182_v56 = vsel %vm3752_vm14, %v5704_v12, %v6181_v16  ;;  %v11769_v61 = vpack.c.bf16 %v6327_v57, %v6325_v52  ;;  %v15529_v12 = vld [vmem:[#allocation8 + $0x2f8] sm:$0xff] }
 0x516   : > { %v5986_v20 = vsel %vm3758_vm1, %v5711_v62, %v5985_v3  ;;  %v6085_v34 = vsel %vm3756_vm0, %v5711_v62, %v6084_v45  ;;  %v6183_v10 = vsel %vm3754_vm15, %v5711_v62, %v6182_v56  ;;  %v11771_v7 = vpack.c.bf16 %v6326_v0, %v6324_v44 }
 0x517   : > { %v15488_v5 = vmax.f32 %v5723_v46, %v5724_v25  ;;  %v5987_v38 = vsel %vm3760_vm3, %v5718_v6, %v5986_v20  ;;  %v6086_v9 = vsel %vm3758_vm1, %v5718_v6, %v6085_v34  ;;  %v6184_v21 = vsel %vm3756_vm0, %v5718_v6, %v6183_v10  ;;  %11770 = vmatprep.subr.bf16.mxu0 %v11769_v61 }
 0x518   : > { %11772 = vmatpush1.bf16.msra.mxu0 %v11771_v7  ;;  %v4697_v59 = vadd.f32 %v15310_v54, %v15356_v47  ;;  %v11773_v51 = vpack.c.bf16 %v6331_v35, %v6329_v27  ;;  %v11775_v24 = vpack.c.bf16 %v6330_v40, %v6328_v32  ;;  %v11777_v1 = vpack.c.bf16 %v6335_v19, %v6333_v50 }
 0x519   : > { %v6087_v13 = vsel %vm3760_vm3, %v15488_v5, %v6086_v9  ;;  %v15511_v49 = vsel %vm3758_vm1, %v15488_v5, %v6184_v21  ;;  %v4702_v8 = vadd.f32 %v15310_v54, %v15387_v42  ;;  %v11779_v47 = vpack.c.bf16 %v15475_v55, %v15473_v33  ;;  %v15527_v42 = vld [vmem:[#allocation8 + $0x2e8] sm:$0xff] }
 0x51a   : > { %v4733_v63 = vmax.f32 %v4697_v59, 0.0  ;;  %11774 = vmatprep.subr.bf16.mxu0 %v11773_v51  ;;  %v11781_v52 = vpack.c.bf16 %v15482_v58, %v15477_v23  ;;  %v11783_v29 = vpack.c.bf16 %v15486_v15, %v15484_v39  ;;  %v11785_v31 = vpack.c.bf16 %v15495_v36, %v15493_v22  ;;  %6476 = vmatprep.mubr.f32.mxu0 %v6087_v13 }
 0x51b   : > { %v4734_v17 = vmax.f32 %v4702_v8, 0.0  ;;  %v11787_v57 = vpack.c.bf16 %v15501_v37, %v15497_v14  ;;  %v4707_v44 = vadd.f32 %v15310_v54, %v15405_v18  ;;  %v11789_v0 = vpack.c.bf16 %v15505_v41, %v15503_v11  ;;  %6477 = vmatmul.mubr.f32.gmra.mrb[48].mxu0 %v5987_v38 }
 0x51c   : > { %v5065_v48 = vcombine.high %v4733_v63, %v4733_v63  ;;  %v5072_v46 = vrot.slane %v4733_v63, %v17910_v43  ;;  %11776 = vmatpush1.bf16.msra.mxu0 %v11775_v24  ;;  %v11791_v53 = vpack.c.bf16 %v15519_v60, %v15517_v26  ;;  %v4712_v2 = vadd.f32 %v15310_v54, %v15410_v4 }
 0x51d   : > { %11778 = vmatprep.subr.bf16.mxu0 %v11777_v1  ;;  %v5082_v27 = vcombine.high %v4734_v17, %v4734_v17  ;;  %v5089_v35 = vrot.slane %v4734_v17, %v17910_v43  ;;  %v15543_v32 = vmax.f32 %v4707_v44, 0.0  ;;  %v11793_v18 = vpack.c.bf16 %v15529_v12, %v15527_v42 }
 0x51e   : > { %v17911_v62 = vmov 0.0   ;;  %v5079_v3 = vrot.slane %v5065_v48, %v17910_v43  ;;  %v5080_v45 = vcombine.high %v5072_v46, %v5072_v46  ;;  %v5726_v16 = vsel %vm5221_vm9, %v5072_v46, -inf }
 0x51f   : > { %6559 = vmatprep.mubr.f32.mxu0 %v17911_v62  ;;  %v15550_v40 = vmax.f32 %v4712_v2, 0.0  ;;  %v5727_v50 = vrot.slane %v5726_v16, 4  ;;  %v5096_v54 = vrot.slane %v5082_v27, %v17910_v43  ;;  %v5097_v4 = vcombine.high %v5089_v35, %v5089_v35 }
 0x520   : > { %v5754_v19 = vsel %vm5221_vm9, %v5089_v35, -inf  ;;  %v5081_v6 = vcombine.high %v5079_v3, %v5079_v3  ;;  %v5733_v25 = vsel %vm5221_vm9, %v5080_v45, -inf  ;;  %v5740_v56 = vsel %vm5221_vm9, %v5079_v3, -inf  ;;  %11780 = vmatpush1.bf16.msra.mxu0 %v11779_v47 }
 0x521   : > { %v5755_v61 = vrot.slane %v5754_v19, 4  ;;  %v5728_v33 = vmax.f32 %v5726_v16, %v5727_v50  ;;  %v5734_v55 = vrot.slane %v5733_v25, 4  ;;  %v5741_v23 = vrot.slane %v5740_v56, 4  ;;  %11782 = vmatprep.subr.bf16.mxu0 %v11781_v52 }
 0x522   : > { %v5098_v20 = vcombine.high %v5096_v54, %v5096_v54  ;;  %v5747_v34 = vsel %vm5221_vm9, %v5081_v6, -inf  ;;  %v5761_v7 = vsel %vm5221_vm9, %v5097_v4, -inf  ;;  %v5768_v58 = vsel %vm5221_vm9, %v5096_v54, -inf }
 0x523   : > { %v5756_v10 = vmax.f32 %v5754_v19, %v5755_v61  ;;  %v5729_v39 = vrot.slane %v5728_v33, 2  ;;  %v5735_v15 = vmax.f32 %v5733_v25, %v5734_v55  ;;  %v5742_v38 = vmax.f32 %v5740_v56, %v5741_v23 }
 0x524   : > { %v5748_v9 = vrot.slane %v5747_v34, 4  ;;  %v5762_v22 = vrot.slane %v5761_v7, 4  ;;  %v5769_v36 = vrot.slane %v5768_v58, 4  ;;  %v5775_v59 = vsel %vm5221_vm9, %v5098_v20, -inf  ;;  %11784 = vmatpush1.bf16.msra.mxu0 %v11783_v29 }
 0x525   : > { %v5757_v21 = vrot.slane %v5756_v10, 2  ;;  %v5730_v51 = vmax.f32 %v5728_v33, %v5729_v39  ;;  %v5736_v24 = vrot.slane %v5735_v15, 2  ;;  %v5743_v1 = vrot.slane %v5742_v38, 2  ;;  %11786 = vmatprep.subr.bf16.mxu0 %v11785_v31 }
 0x526   : > { %v5749_v13 = vmax.f32 %v5747_v34, %v5748_v9  ;;  %v5763_v47 = vmax.f32 %v5761_v7, %v5762_v22  ;;  %v5770_v63 = vmax.f32 %v5768_v58, %v5769_v36  ;;  %v5776_v52 = vrot.slane %v5775_v59, 4  ;;  %v6350_v9 = vld [vmem:[#allocation8 + $0x2f0] sm:$0xff] }
 0x527   : > { %v5758_v8 = vmax.f32 %v5756_v10, %v5757_v21  ;;  %v5731_v17 = vrot.slane %v5730_v51, 1  ;;  %v5737_v44 = vmax.f32 %v5735_v15, %v5736_v24  ;;  %v5744_v48 = vmax.f32 %v5742_v38, %v5743_v1  ;;  %v6348_v38 = vld [vmem:[#allocation8 + $0x2e0] sm:$0xff] }
 0x528   : > { %v5750_v46 = vrot.slane %v5749_v13, 2  ;;  %v5764_v27 = vrot.slane %v5763_v47, 2  ;;  %v5771_v35 = vrot.slane %v5770_v63, 2  ;;  %v5777_v3 = vmax.f32 %v5775_v59, %v5776_v52  ;;  %11788 = vmatpush1.bf16.msra.mxu0 %v11787_v57 }
 0x529   : > { %v5759_v2 = vrot.slane %v5758_v8, 1  ;;  %v5732_v29 = vmax.f32 %v5730_v51, %v5731_v17  ;;  %v5738_v45 = vrot.slane %v5737_v44, 1  ;;  %v5745_v16 = vrot.slane %v5744_v48, 1  ;;  %11790 = vmatprep.subr.bf16.mxu0 %v11789_v0 }
 0x52a   : > { %v5751_v31 = vmax.f32 %v5749_v13, %v5750_v46  ;;  %v5765_v54 = vmax.f32 %v5763_v47, %v5764_v27  ;;  %v5772_v4 = vmax.f32 %v5770_v63, %v5771_v35  ;;  %v5778_v19 = vrot.slane %v5777_v3, 2 }
 0x52b   : > { %v5760_v50 = vmax.f32 %v5758_v8, %v5759_v2  ;;  %v5739_v6 = vmax.f32 %v5737_v44, %v5738_v45  ;;  %v5746_v25 = vmax.f32 %v5744_v48, %v5745_v16  ;;  %v5988_v61 = vsel %vm3762_vm13, %v5732_v29, %v15488_v5 }
 0x52c   : > { %v5752_v56 = vrot.slane %v5751_v31, 1  ;;  %v15570_v14 = vsel %vm3760_vm3, %v5732_v29, %v15511_v49  ;;  %v5766_v37 = vrot.slane %v5765_v54, 1  ;;  %v5773_v57 = vrot.slane %v5772_v4, 1  ;;  %11792 = vmatpush1.bf16.msra.mxu0 %v11791_v53 }
 0x52d   : > { %v5779_v33 = vmax.f32 %v5777_v3, %v5778_v19  ;;  %v5989_v41 = vsel %vm3750_vm12, %v5739_v6, %v5988_v61  ;;  %v6088_v0 = vsel %vm3762_vm13, %v5739_v6, %v5732_v29  ;;  %v6187_v55 = vsel %vm3762_vm13, %v5746_v25, %v5739_v6  ;;  %11794 = vmatprep.subr.bf16.mxu0 %v11793_v18 }
 0x52e   : > { %v5753_v11 = vmax.f32 %v5751_v31, %v5752_v56  ;;  %v5990_v5 = vsel %vm3752_vm14, %v5746_v25, %v5989_v41  ;;  %v6089_v49 = vsel %vm3750_vm12, %v5746_v25, %v6088_v0  ;;  %v5767_v23 = vmax.f32 %v5765_v54, %v5766_v37 }
 0x52f   : > { %v5774_v20 = vmax.f32 %v5772_v4, %v5773_v57  ;;  %v5780_v34 = vrot.slane %v5779_v33, 1  ;;  %v5099_v12 = vcombine.high %v15543_v32, %v15543_v32  ;;  %v5106_v59 = vrot.slane %v15543_v32, %v17910_v43  ;;  %v6225_v4 = vld [vmem:[#allocation4 + $0x10] sm:$0xff] }
 0x530   : > { %v5991_v26 = vsel %vm3754_vm15, %v5753_v11, %v5990_v5  ;;  %v6090_v60 = vsel %vm3752_vm14, %v5753_v11, %v6089_v49  ;;  %v6188_v53 = vsel %vm3750_vm12, %v5753_v11, %v6187_v55  ;;  %v5116_v13 = vcombine.high %v15550_v40, %v15550_v40 }
 0x531   : > { %v5992_v10 = vsel %vm3756_vm0, %v5760_v50, %v5991_v26  ;;  %v6091_v7 = vsel %vm3754_vm15, %v5760_v50, %v6090_v60  ;;  %v6189_v42 = vsel %vm3752_vm14, %v5760_v50, %v6188_v53  ;;  %v15591_v18 = vmax.f32 %v5779_v33, %v5780_v34  ;;  %v6228_v34 = vld [vmem:[#allocation4 + $0x28] sm:$0xff] }
 0x532   : > { %v5993_v58 = vsel %vm3758_vm1, %v5767_v23, %v5992_v10  ;;  %v6092_v39 = vsel %vm3756_vm0, %v5767_v23, %v6091_v7  ;;  %v6190_v15 = vsel %vm3754_vm15, %v5767_v23, %v6189_v42  ;;  %v5113_v24 = vrot.slane %v5099_v12, %v17910_v43 }
 0x533   : > { %v5994_v21 = vsel %vm3760_vm3, %v5774_v20, %v5993_v58  ;;  %v6093_v22 = vsel %vm3758_vm1, %v5774_v20, %v6092_v39  ;;  %v6191_v36 = vsel %vm3756_vm0, %v5774_v20, %v6190_v15  ;;  %v5114_v8 = vcombine.high %v5106_v59, %v5106_v59 }
 0x534   : > { %v6094_v51 = vsel %vm3760_vm3, %v15591_v18, %v6093_v22  ;;  %v15606_v1 = vsel %vm3758_vm1, %v15591_v18, %v6191_v36  ;;  %v5782_v47 = vsel %vm5221_vm9, %v5106_v59, -inf  ;;  %v5123_v63 = vrot.slane %v15550_v40, %v17910_v43 }
 0x535   : > { %v11795_v52 = vpack.c.bf16 %v6350_v9, %v6348_v38  ;;  %6482 = vmatprep.mubr.f32.mxu1 %v6094_v51  ;;  %v5115_v32 = vcombine.high %v5113_v24, %v5113_v24  ;;  %v5783_v17 = vrot.slane %v5782_v47, 4  ;;  %v5796_v44 = vsel %vm5221_vm9, %v5113_v24, -inf  ;;  %v6231_v51 = vld [vmem:[#allocation4 + $0x40] sm:$0xff] }
 0x536   : > { %v5130_v48 = vrot.slane %v5116_v13, %v17910_v43  ;;  %6483 = vmatmul.mubr.f32.vlgmr.msra.gmra.mrb[56].mxu1 %v5994_v21  ;;  %v5789_v46 = vsel %vm5221_vm9, %v5114_v8, -inf  ;;  %v5797_v2 = vrot.slane %v5796_v44, 4  ;;  %v5131_v27 = vcombine.high %v5123_v63, %v5123_v63 }
 0x537   : > { %v5810_v35 = vsel %vm5221_vm9, %v5123_v63, -inf  ;;  %11796 = vmatpush1.bf16.msra.mxu0 %v11795_v52  ;;  %v5784_v3 = vmax.f32 %v5782_v47, %v5783_v17  ;;  %v5790_v29 = vrot.slane %v5789_v46, 4  ;;  %v5803_v40 = vsel %vm5221_vm9, %v5115_v32, -inf }
 0x538   : > { %v5132_v45 = vcombine.high %v5130_v48, %v5130_v48  ;;  %v5798_v16 = vmax.f32 %v5796_v44, %v5797_v2  ;;  %v5804_v31 = vrot.slane %v5803_v40, 4  ;;  %v5811_v50 = vrot.slane %v5810_v35, 4 }
 0x539   : > { %v5817_v54 = vsel %vm5221_vm9, %v5131_v27, -inf  ;;  %v5785_v19 = vrot.slane %v5784_v3, 2  ;;  %v5791_v6 = vmax.f32 %v5789_v46, %v5790_v29  ;;  %v5824_v56 = vsel %vm5221_vm9, %v5130_v48, -inf }
 0x53a   : > { %v5818_v25 = vrot.slane %v5817_v54, 4  ;;  %6560 = vmatmul.mubr.f32.vlgmr.msra.gmra.mrb[32].mxu0 %v6225_v4  ;;  %v5799_v61 = vrot.slane %v5798_v16, 2  ;;  %v5805_v37 = vmax.f32 %v5803_v40, %v5804_v31  ;;  %v5812_v57 = vmax.f32 %v5810_v35, %v5811_v50 }
 0x53b   : > { %v5825_v33 = vrot.slane %v5824_v56, 4  ;;  %6565 = vmatprep.mubr.f32.mxu0 %v17911_v62  ;;  %v5786_v11 = vmax.f32 %v5784_v3, %v5785_v19  ;;  %v5792_v41 = vrot.slane %v5791_v6, 2  ;;  %v5831_v55 = vsel %vm5221_vm9, %v5132_v45, -inf  ;;  %v6234_v3 = vld [vmem:[#allocation4 + $0x58] sm:$0xff] }
 0x53c   : > { %v5819_v0 = vmax.f32 %v5817_v54, %v5818_v25  ;;  %v5800_v5 = vmax.f32 %v5798_v16, %v5799_v61  ;;  %v5806_v49 = vrot.slane %v5805_v37, 2  ;;  %v5813_v23 = vrot.slane %v5812_v57, 2 }
 0x53d   : > { %v5826_v20 = vmax.f32 %v5824_v56, %v5825_v33  ;;  %v5787_v26 = vrot.slane %v5786_v11, 1  ;;  %v5793_v60 = vmax.f32 %v5791_v6, %v5792_v41  ;;  %v5832_v10 = vrot.slane %v5831_v55, 4  ;;  %v6240_v41 = vld [vmem:[#allocation4 + $0x88] sm:$0xff] }
 0x53e   : > { %v5820_v53 = vrot.slane %v5819_v0, 2  ;;  %6566 = vmatmul.mubr.f32.gmra.mrb[34].mxu0 %v6228_v34  ;;  %v5801_v7 = vrot.slane %v5800_v5, 1  ;;  %v5807_v42 = vmax.f32 %v5805_v37, %v5806_v49  ;;  %v5814_v12 = vmax.f32 %v5812_v57, %v5813_v23  ;;  %v6237_v57 = vld [vmem:[#allocation4 + $0x70] sm:$0xff] }
 0x53f   : > { %v5827_v58 = vrot.slane %v5826_v20, 2  ;;  %6571 = vmatprep.mubr.f32.mxu0 %v17911_v62  ;;  %v5788_v39 = vmax.f32 %v5786_v11, %v5787_v26  ;;  %v5794_v15 = vrot.slane %v5793_v60, 1  ;;  %v5833_v9 = vmax.f32 %v5831_v55, %v5832_v10  ;;  %v17912_v55 = vld [vmem:[#allocation17_spill] sm:$0xff] }
 0x540   : > { %v5821_v38 = vmax.f32 %v5819_v0, %v5820_v53  ;;  %v5802_v21 = vmax.f32 %v5800_v5, %v5801_v7  ;;  %v5808_v22 = vrot.slane %v5807_v42, 1  ;;  %v5815_v36 = vrot.slane %v5814_v12, 1 }
 0x541   : > { %v5828_v59 = vmax.f32 %v5826_v20, %v5827_v58  ;;  %v5795_v24 = vmax.f32 %v5793_v60, %v5794_v15  ;;  %v5995_v13 = vsel %vm3762_vm13, %v5788_v39, %v15591_v18  ;;  %v6193_v8 = vsel %vm3760_vm3, %v5788_v39, %v15606_v1 }
 0x542   : > { %v5822_v47 = vrot.slane %v5821_v38, 1  ;;  %6572 = vmatmul.mubr.f32.gmra.mrb[36].mxu0 %v6231_v51  ;;  %v5809_v63 = vmax.f32 %v5807_v42, %v5808_v22  ;;  %v5816_v52 = vmax.f32 %v5814_v12, %v5815_v36  ;;  %v5834_v17 = vrot.slane %v5833_v9, 2 }
 0x543   : > { %v5829_v32 = vrot.slane %v5828_v59, 1  ;;  %6577 = vmatprep.mubr.f32.mxu0 %v17911_v62  ;;  %v5996_v44 = vsel %vm3750_vm12, %v5795_v24, %v5995_v13  ;;  %v6095_v48 = vsel %vm3762_vm13, %v5795_v24, %v5788_v39  ;;  %v6194_v46 = vsel %vm3762_vm13, %v5802_v21, %v5795_v24 }
 0x544   : > { %v5823_v2 = vmax.f32 %v5821_v38, %v5822_v47  ;;  %v5997_v18 = vsel %vm3752_vm14, %v5802_v21, %v5996_v44  ;;  %v6096_v27 = vsel %vm3750_vm12, %v5802_v21, %v6095_v48  ;;  %v5835_v35 = vmax.f32 %v5833_v9, %v5834_v17 }
 0x545   : > { %v5830_v1 = vmax.f32 %v5828_v59, %v5829_v32  ;;  %v5998_v29 = vsel %vm3754_vm15, %v5809_v63, %v5997_v18  ;;  %v6097_v40 = vsel %vm3752_vm14, %v5809_v63, %v6096_v27  ;;  %v6195_v45 = vsel %vm3750_vm12, %v5809_v63, %v6194_v46 }
 0x546   : > { %6578 = vmatmul.mubr.f32.gmra.mrb[38].mxu0 %v6234_v3  ;;  %v5836_v16 = vrot.slane %v5835_v35, 1  ;;  %v5999_v31 = vsel %vm3756_vm0, %v5816_v52, %v5998_v29  ;;  %v6098_v50 = vsel %vm3754_vm15, %v5816_v52, %v6097_v40  ;;  %v6196_v54 = vsel %vm3752_vm14, %v5816_v52, %v6195_v45 }
 0x547   : > { %6583 = vmatprep.mubr.f32.mxu0 %v17911_v62  ;;  %v6000_v4 = vsel %vm3758_vm1, %v5823_v2, %v5999_v31  ;;  %v6099_v19 = vsel %vm3756_vm0, %v5823_v2, %v6098_v50  ;;  %v6197_v6 = vsel %vm3754_vm15, %v5823_v2, %v6196_v54  ;;  %v6356_v5 = vsub.s32 0, %v17912_v55 }
 0x548   : > { %v5837_v25 = vmax.f32 %v5835_v35, %v5836_v16  ;;  %v6001_v56 = vsel %vm3760_vm3, %v5830_v1, %v6000_v4  ;;  %v6100_v61 = vsel %vm3758_vm1, %v5830_v1, %v6099_v19  ;;  %v6198_v37 = vsel %vm3756_vm0, %v5830_v1, %v6197_v6 }
 0x549   : > { %v6360_v49 = vsub.s32 1, %v17912_v55 }
 0x54a   : > { %6584 = vmatmul.mubr.f32.gmra.mrb[40].mxu0 %v6237_v57  ;;  %v6101_v33 = vsel %vm3760_vm3, %v5837_v25, %v6100_v61  ;;  %v6199_v11 = vsel %vm3758_vm1, %v5837_v25, %v6198_v37 }
 0x54b   : > { %6589 = vmatprep.mubr.f32.mxu0 %v17911_v62  ;;  %6221 = vst [vmem:[#allocation4 + $0x100] sm:$0x7f] %v6199_v11  ;;  %6488 = vmatprep.mubr.f32.mxu1 %v6101_v33 }
 0x54c   : > { %6489 = vmatmul.mubr.f32.gmra.mrb[58].mxu1 %v6001_v56 }
 0x54e   : > { %6590 = vmatmul.mubr.f32.gmra.mrb[42].mxu0 %v6240_v41 }
 0x54f   : > { %6595 = vmatprep.mubr.f32.mxu0 %v17911_v62 }
 0x552   : > { %6596 = vmatmul.mubr.f32.gmra.mrb[44].mxu0 %v15415_v30  ;;  %v6255_v0 = vld [vmem:[#allocation4 + $0x100] sm:$0xff] }
 0x553   : > { %6601 = vmatprep.mubr.f32.mxu0 %v17911_v62  ;;  %v6352_v30 = vld [vmem:[%s17539_s6] sm:$0x3] }
 0x554   : > { %v15662_v23 = vrot.slane %v6352_v30, %v6356_v5 }
 0x556   : > { %6602 = vmatmul.mubr.f32.gmra.mrb[46].mxu0 %v15460_v28 }
 0x557   : > { %6607 = vmatprep.mubr.f32.mxu0 %v17911_v62 }
 0x55a   : > { %6608 = vmatmul.mubr.f32.gmra.mrb[48].mxu0 %v15570_v14  ;;  %v15664_v14 = vrot.slane %v6352_v30, %v6360_v49 }
 0x55b   : > { %6613 = vmatprep.mubr.f32.mxu0 %v17911_v62 }
 0x55e   : > { %6614 = vmatmul.mubr.f32.gmra.mrb[50].mxu0 %v6193_v8 }
 0x55f   : > { %6619 = vmatprep.mubr.f32.mxu0 %v17911_v62 }
 0x562   : > { %6620 = vmatmul.mubr.f32.gmra.mrb[52].mxu0 %v6255_v0 }
 0x609   : > { %v6484_v28 = vpop.f32.mrb[56].mxu1 }
 0x60a   : > { %v6486_v20 = vpop.f32.mrb[57].mxu1  ;;  %v15676_v24 = vadd.f32 %v6484_v28, %v15662_v23 }
 0x60b   : > { %v15679_v13 = vadd.f32 %v6486_v20, %v15664_v14 }
 0x60d   : > { %v6561_v34 = vpop.f32.mrb[32].mxu0 }
 0x60e   : > { %v11831_v26 = vadd.f32 %v6561_v34, %v15662_v23  ;;  %v6563_v62 = vpop.f32.mrb[33].mxu0 }
 0x60f   : > { %v11832_v60 = vadd.f32 %v6563_v62, %v15664_v14 }
 0x610   : > { %v6626_v53 = vmax.f32 %v11831_v26, 0.0 }
 0x611   : > { %v6627_v10 = vmax.f32 %v11832_v60, 0.0  ;;  %v6567_v7 = vpop.f32.mrb[34].mxu0 }
 0x612   : > { %v11833_v42 = vadd.f32 %v6567_v7, %v15662_v23  ;;  %v6569_v12 = vpop.f32.mrb[35].mxu0 }
 0x613   : > { %v6670_v58 = vcombine.low %v6626_v53, %v6627_v10  ;;  %v6671_v39 = vcombine.high %v6626_v53, %v6627_v10  ;;  %v11834_v15 = vadd.f32 %v6569_v12, %v15664_v14 }
 0x614   : > { %v6628_v38 = vmax.f32 %v11833_v42, 0.0 }
 0x615   : > { %v6678_v9 = vrot.slane %v6670_v58, %v17910_v43  ;;  %v6685_v21 = vrot.slane %v6671_v39, %v17910_v43  ;;  %v6629_v22 = vmax.f32 %v11834_v15, 0.0  ;;  %v6573_v36 = vpop.f32.mrb[36].mxu0 }
 0x616   : > { %v15673_v59 = vadd.f32 %v6573_v36, %v15662_v23  ;;  %v6575_v51 = vpop.f32.mrb[37].mxu0 }
 0x617   : > { %v6686_v8 = vcombine.high %v6678_v9, %v6678_v9  ;;  %v6687_v47 = vcombine.high %v6685_v21, %v6685_v21  ;;  %v6874_v63 = vrot.slane %v6678_v9, %v17910_v43  ;;  %v6890_v52 = vrot.slane %v6685_v21, %v17910_v43 }
 0x618   : > { %v6688_v32 = vcombine.low %v6628_v38, %v6629_v22  ;;  %v6689_v17 = vcombine.high %v6628_v38, %v6629_v22  ;;  %v6630_v44 = vmax.f32 %v15673_v59, 0.0  ;;  %v15685_v48 = vadd.f32 %v6575_v51, %v15664_v14 }
 0x619   : > { %v6875_v46 = vcombine.high %v6874_v63, %v6874_v63  ;;  %v6882_v2 = vrot.slane %v6686_v8, %v17910_v43  ;;  %v6891_v18 = vcombine.high %v6890_v52, %v6890_v52  ;;  %v6898_v27 = vrot.slane %v6687_v47, %v17910_v43  ;;  %v15689_v1 = vpop.f32.mrb[38].mxu0 }
 0x61a   : > { %v7308_v35 = vsel %vm5221_vm9, %v6874_v63, -inf  ;;  %v7336_v3 = vsel %vm5221_vm9, %v6890_v52, -inf  ;;  %v15694_v29 = vrot.slane %v6688_v32, %v17910_v43  ;;  %v15697_v40 = vrot.slane %v6689_v17, %v17910_v43  ;;  %v15699_v45 = vpop.f32.mrb[39].mxu0 }
 0x61b   : > { %v6883_v16 = vcombine.high %v6882_v2, %v6882_v2  ;;  %v6899_v31 = vcombine.high %v6898_v27, %v6898_v27  ;;  %v7309_v50 = vrot.slane %v7308_v35, 4  ;;  %v7315_v54 = vsel %vm5221_vm9, %v6875_v46, -inf }
 0x61c   : > { %v7316_v4 = vrot.slane %v7315_v54, 4  ;;  %v7322_v19 = vsel %vm5221_vm9, %v6882_v2, -inf  ;;  %v7337_v6 = vrot.slane %v7336_v3, 4  ;;  %v7343_v25 = vsel %vm5221_vm9, %v6891_v18, -inf }
 0x61d   : > { %v7310_v56 = vmax.f32 %v7308_v35, %v7309_v50  ;;  %v7323_v61 = vrot.slane %v7322_v19, 4  ;;  %v7329_v37 = vsel %vm5221_vm9, %v6883_v16, -inf  ;;  %v7344_v57 = vrot.slane %v7343_v25, 4  ;;  %v15705_v33 = vpop.f32.mrb[40].mxu0 }
 0x61e   : > { %v7317_v11 = vmax.f32 %v7315_v54, %v7316_v4  ;;  %v7330_v41 = vrot.slane %v7329_v37, 4  ;;  %v7338_v0 = vmax.f32 %v7336_v3, %v7337_v6  ;;  %v7350_v55 = vsel %vm5221_vm9, %v6898_v27, -inf  ;;  %v15708_v5 = vpop.f32.mrb[41].mxu0 }
 0x61f   : > { %v7311_v30 = vrot.slane %v7310_v56, 2  ;;  %v7324_v49 = vmax.f32 %v7322_v19, %v7323_v61  ;;  %v7345_v28 = vmax.f32 %v7343_v25, %v7344_v57  ;;  %v7351_v20 = vrot.slane %v7350_v55, 4  ;;  %v15711_v53 = vpop.f32.mrb[58].mxu1 }
 0x620   : > { %v7318_v34 = vrot.slane %v7317_v11, 2  ;;  %v7331_v26 = vmax.f32 %v7329_v37, %v7330_v41  ;;  %v7339_v62 = vrot.slane %v7338_v0, 2  ;;  %v7357_v60 = vsel %vm5221_vm9, %v6899_v31, -inf  ;;  %v15715_v39 = vpop.f32.mrb[59].mxu1 }
 0x621   : > { %v7312_v10 = vmax.f32 %v7310_v56, %v7311_v30  ;;  %v7325_v7 = vrot.slane %v7324_v49, 2  ;;  %v7346_v42 = vrot.slane %v7345_v28, 2  ;;  %v7352_v12 = vmax.f32 %v7350_v55, %v7351_v20  ;;  %v15713_v58 = vpop.f32.mrb[42].mxu0 }
 0x622   : > { %v7319_v15 = vmax.f32 %v7317_v11, %v7318_v34  ;;  %v7332_v38 = vrot.slane %v7331_v26, 2  ;;  %v7340_v9 = vmax.f32 %v7338_v0, %v7339_v62  ;;  %v7358_v21 = vrot.slane %v7357_v60, 4  ;;  %v15717_v22 = vpop.f32.mrb[43].mxu0 }
 0x623   : > { %v7313_v36 = vrot.slane %v7312_v10, 1  ;;  %v7326_v51 = vmax.f32 %v7324_v49, %v7325_v7  ;;  %v7347_v8 = vmax.f32 %v7345_v28, %v7346_v42  ;;  %v7353_v47 = vrot.slane %v7352_v12, 2 }
 0x624   : > { %v7320_v63 = vrot.slane %v7319_v15, 1  ;;  %v7333_v52 = vmax.f32 %v7331_v26, %v7332_v38  ;;  %v7341_v32 = vrot.slane %v7340_v9, 1  ;;  %v7359_v17 = vmax.f32 %v7357_v60, %v7358_v21 }
 0x625   : > { %v15719_v46 = vmax.f32 %v7312_v10, %v7313_v36  ;;  %v7327_v2 = vrot.slane %v7326_v51, 1  ;;  %v7348_v18 = vrot.slane %v7347_v8, 1  ;;  %v7354_v27 = vmax.f32 %v7352_v12, %v7353_v47  ;;  %v15721_v35 = vpop.f32.mrb[44].mxu0 }
 0x626   : > { %v15723_v3 = vmax.f32 %v7319_v15, %v7320_v63  ;;  %v7334_v16 = vrot.slane %v7333_v52, 1  ;;  %v15725_v31 = vmax.f32 %v7340_v9, %v7341_v32  ;;  %v7360_v50 = vrot.slane %v7359_v17, 2  ;;  %v15727_v54 = vpop.f32.mrb[45].mxu0 }
 0x627   : > { %v15729_v4 = vmax.f32 %v7326_v51, %v7327_v2  ;;  %v15731_v19 = vmax.f32 %v7347_v8, %v7348_v18  ;;  %v7355_v6 = vrot.slane %v7354_v27, 1  ;;  %v6704_v25 = vcombine.high %v15694_v29, %v15694_v29 }
 0x628   : > { %v15735_v56 = vmax.f32 %v7333_v52, %v7334_v16  ;;  %v7361_v61 = vmax.f32 %v7359_v17, %v7360_v50  ;;  %v6705_v37 = vcombine.high %v15697_v40, %v15697_v40  ;;  %v6906_v57 = vrot.slane %v15694_v29, %v17910_v43 }
 0x629   : > { %v15741_v11 = vmax.f32 %v7354_v27, %v7355_v6  ;;  %v6914_v41 = vrot.slane %v6704_v25, %v17910_v43  ;;  %v6922_v0 = vrot.slane %v15697_v40, %v17910_v43  ;;  %v6631_v55 = vmax.f32 %v15685_v48, 0.0  ;;  %v15747_v30 = vpop.f32.mrb[46].mxu0 }
 0x62a   : > { %v7362_v49 = vrot.slane %v7361_v61, 1  ;;  %v6907_v28 = vcombine.high %v6906_v57, %v6906_v57  ;;  %v6930_v20 = vrot.slane %v6705_v37, %v17910_v43  ;;  %v7364_v34 = vsel %vm5221_vm9, %v6906_v57, -inf  ;;  %v15751_v26 = vpop.f32.mrb[47].mxu0 }
 0x62b   : > { %v6915_v29 = vcombine.high %v6914_v41, %v6914_v41  ;;  %v6923_v62 = vcombine.high %v6922_v0, %v6922_v0  ;;  %v7365_v60 = vrot.slane %v7364_v34, 4  ;;  %v7378_v10 = vsel %vm5221_vm9, %v6914_v41, -inf }
 0x62c   : > { %v15754_v7 = vmax.f32 %v7361_v61, %v7362_v49  ;;  %v6931_v40 = vcombine.high %v6930_v20, %v6930_v20  ;;  %v7371_v42 = vsel %vm5221_vm9, %v6907_v28, -inf  ;;  %v7379_v12 = vrot.slane %v7378_v10, 4 }
 0x62d   : > { %v7366_v15 = vmax.f32 %v7364_v34, %v7365_v60  ;;  %v7372_v38 = vrot.slane %v7371_v42, 4  ;;  %v7385_v9 = vsel %vm5221_vm9, %v6915_v29, -inf  ;;  %v7392_v21 = vsel %vm5221_vm9, %v6922_v0, -inf  ;;  %v15759_v36 = vpop.f32.mrb[48].mxu0 }
 0x62e   : > { %v7380_v51 = vmax.f32 %v7378_v10, %v7379_v12  ;;  %v7386_v8 = vrot.slane %v7385_v9, 4  ;;  %v7393_v47 = vrot.slane %v7392_v21, 4  ;;  %v7399_v63 = vsel %vm5221_vm9, %v6923_v62, -inf  ;;  %v15762_v52 = vpop.f32.mrb[49].mxu0 }
 0x62f   : > { %v7367_v32 = vrot.slane %v7366_v15, 2  ;;  %v7373_v17 = vmax.f32 %v7371_v42, %v7372_v38  ;;  %v7400_v2 = vrot.slane %v7399_v63, 4  ;;  %v7406_v18 = vsel %vm5221_vm9, %v6930_v20, -inf }
 0x630   : > { %v7381_v27 = vrot.slane %v7380_v51, 2  ;;  %v7387_v16 = vmax.f32 %v7385_v9, %v7386_v8  ;;  %v7394_v50 = vmax.f32 %v7392_v21, %v7393_v47  ;;  %v7407_v6 = vrot.slane %v7406_v18, 4 }
 0x631   : > { %v7368_v25 = vmax.f32 %v7366_v15, %v7367_v32  ;;  %v7374_v61 = vrot.slane %v7373_v17, 2  ;;  %v7401_v37 = vmax.f32 %v7399_v63, %v7400_v2  ;;  %v7413_v57 = vsel %vm5221_vm9, %v6931_v40, -inf  ;;  %v15766_v41 = vpop.f32.mrb[50].mxu0 }
 0x632   : > { %v7382_v0 = vmax.f32 %v7380_v51, %v7381_v27  ;;  %v7388_v49 = vrot.slane %v7387_v16, 2  ;;  %v7395_v28 = vrot.slane %v7394_v50, 2  ;;  %v7408_v34 = vmax.f32 %v7406_v18, %v7407_v6  ;;  %v15778_v27 = vpop.f32.mrb[51].mxu0 }
 0x633   : > { %v7369_v29 = vrot.slane %v7368_v25, 1  ;;  %v7375_v62 = vmax.f32 %v7373_v17, %v7374_v61  ;;  %v7402_v60 = vrot.slane %v7401_v37, 2  ;;  %v7414_v10 = vrot.slane %v7413_v57, 4 }
 0x634   : > { %v7383_v20 = vrot.slane %v7382_v0, 1  ;;  %v7389_v42 = vmax.f32 %v7387_v16, %v7388_v49  ;;  %v7396_v12 = vmax.f32 %v7394_v50, %v7395_v28  ;;  %v7409_v38 = vrot.slane %v7408_v34, 2 }
 0x635   : > { %v15768_v9 = vmax.f32 %v7368_v25, %v7369_v29  ;;  %v7376_v15 = vrot.slane %v7375_v62, 1  ;;  %v7403_v21 = vmax.f32 %v7401_v37, %v7402_v60  ;;  %v7415_v8 = vmax.f32 %v7413_v57, %v7414_v10 }
 0x636   : > { %v15770_v40 = vmax.f32 %v7382_v0, %v7383_v20  ;;  %v7390_v47 = vrot.slane %v7389_v42, 1  ;;  %v7397_v51 = vrot.slane %v7396_v12, 1  ;;  %v7410_v63 = vmax.f32 %v7408_v34, %v7409_v38 }
 0x637   : > { %v15772_v32 = vmax.f32 %v7375_v62, %v7376_v15  ;;  %v7404_v2 = vrot.slane %v7403_v21, 1  ;;  %v7416_v17 = vrot.slane %v7415_v8, 2  ;;  %v6706_v18 = vcombine.low %v6630_v44, %v6631_v55 }
 0x638   : > { %17913 = vst [vmem:[#allocation19_spill] sm:$0xff] %v15770_v40  ;;  %v15780_v16 = vmax.f32 %v7389_v42, %v7390_v47  ;;  %v15782_v50 = vmax.f32 %v7396_v12, %v7397_v51  ;;  %v7411_v6 = vrot.slane %v7410_v63, 1  ;;  %v6707_v25 = vcombine.high %v6630_v44, %v6631_v55 }
 0x639   : > { %17914 = vst [vmem:[#allocation30_spill] sm:$0xff] %v15772_v32  ;;  %v15788_v61 = vmax.f32 %v7403_v21, %v7404_v2  ;;  %v7417_v37 = vmax.f32 %v7415_v8, %v7416_v17  ;;  %v6714_v57 = vrot.slane %v6706_v18, %v17910_v43  ;;  %v15793_v0 = vadd.f32 %v15689_v1, %v15662_v23 }
 0x63a   : > { %17915 = vst [vmem:[#allocation31_spill] sm:$0xff] %v15780_v16  ;;  %17916 = vst [vmem:[#allocation83_spill] sm:$0xff] %v15782_v50  ;;  %v15795_v49 = vmax.f32 %v7410_v63, %v7411_v6  ;;  %v6721_v28 = vrot.slane %v6707_v25, %v17910_v43  ;;  %v15800_v34 = vadd.f32 %v15699_v45, %v15664_v14  ;;  %v15819_v25 = vpop.f32.mrb[52].mxu0 }
 0x63b   : > { %17917 = vst [vmem:[#allocation34_spill] sm:$0xff] %v15788_v61  ;;  %v15804_v59 = vadd.f32 %v15705_v33, %v15662_v23  ;;  %v7418_v44 = vrot.slane %v7417_v37, 1  ;;  %v6722_v48 = vcombine.high %v6714_v57, %v6714_v57  ;;  %v6938_v55 = vrot.slane %v6714_v57, %v17910_v43 }
 0x63c   : > { %17918 = vst [vmem:[#allocation22_spill] sm:$0xff] %v15795_v49  ;;  %v6723_v1 = vcombine.high %v6721_v28, %v6721_v28  ;;  %v6954_v62 = vrot.slane %v6721_v28, %v17910_v43 }
 0x63d   : > { %v15811_v20 = vmax.f32 %v7417_v37, %v7418_v44  ;;  %v6939_v45 = vcombine.high %v6938_v55, %v6938_v55  ;;  %v6946_v42 = vrot.slane %v6722_v48, %v17910_v43  ;;  %v7420_v33 = vsel %vm5221_vm9, %v6938_v55, -inf  ;;  %v15824_v48 = vpop.f32.mrb[53].mxu0 }
 0x63e   : > { %v6955_v12 = vcombine.high %v6954_v62, %v6954_v62  ;;  %v6962_v38 = vrot.slane %v6723_v1, %v17910_v43  ;;  %v7421_v15 = vrot.slane %v7420_v33, 4  ;;  %v7448_v21 = vsel %vm5221_vm9, %v6954_v62, -inf }
 0x63f   : > { %17919 = vst [vmem:[#allocation21_spill] sm:$0xff] %v15811_v20  ;;  %v6947_v8 = vcombine.high %v6946_v42, %v6946_v42  ;;  %v7427_v47 = vsel %vm5221_vm9, %v6939_v45, -inf  ;;  %v7434_v51 = vsel %vm5221_vm9, %v6946_v42, -inf  ;;  %v7449_v63 = vrot.slane %v7448_v21, 4 }
 0x640   : > { %v6963_v2 = vcombine.high %v6962_v38, %v6962_v38  ;;  %v7422_v17 = vmax.f32 %v7420_v33, %v7421_v15  ;;  %v7428_v18 = vrot.slane %v7427_v47, 4  ;;  %v7435_v6 = vrot.slane %v7434_v51, 4 }
 0x641   : > { %v7441_v37 = vsel %vm5221_vm9, %v6947_v8, -inf  ;;  %v7450_v57 = vmax.f32 %v7448_v21, %v7449_v63  ;;  %v7455_v28 = vsel %vm5221_vm9, %v6955_v12, -inf  ;;  %v7462_v44 = vsel %vm5221_vm9, %v6962_v38, -inf }
 0x642   : > { %v7423_v55 = vrot.slane %v7422_v17, 2  ;;  %v7429_v1 = vmax.f32 %v7427_v47, %v7428_v18  ;;  %v7436_v62 = vmax.f32 %v7434_v51, %v7435_v6  ;;  %v7442_v45 = vrot.slane %v7441_v37, 4 }
 0x643   : > { %v7451_v42 = vrot.slane %v7450_v57, 2  ;;  %v7456_v10 = vrot.slane %v7455_v28, 4  ;;  %v7463_v33 = vrot.slane %v7462_v44, 4  ;;  %v7469_v15 = vsel %vm5221_vm9, %v6963_v2, -inf }
 0x644   : > { %v7424_v29 = vmax.f32 %v7422_v17, %v7423_v55  ;;  %v7430_v60 = vrot.slane %v7429_v1, 2  ;;  %v7437_v20 = vrot.slane %v7436_v62, 2  ;;  %v7443_v8 = vmax.f32 %v7441_v37, %v7442_v45 }
 0x645   : > { %v7452_v21 = vmax.f32 %v7450_v57, %v7451_v42  ;;  %v7457_v63 = vmax.f32 %v7455_v28, %v7456_v10  ;;  %v7464_v12 = vmax.f32 %v7462_v44, %v7463_v33  ;;  %v7470_v49 = vrot.slane %v7469_v15, 4 }
 0x646   : > { %v7425_v38 = vrot.slane %v7424_v29, 1  ;;  %v7431_v61 = vmax.f32 %v7429_v1, %v7430_v60  ;;  %v7438_v50 = vmax.f32 %v7436_v62, %v7437_v20  ;;  %v7444_v16 = vrot.slane %v7443_v8, 2 }
 0x647   : > { %v7453_v47 = vrot.slane %v7452_v21, 1  ;;  %v7458_v51 = vrot.slane %v7457_v63, 2  ;;  %v7465_v18 = vrot.slane %v7464_v12, 2  ;;  %v7471_v6 = vmax.f32 %v7469_v15, %v7470_v49 }
 0x648   : > { %v15827_v40 = vmax.f32 %v7424_v29, %v7425_v38  ;;  %v7432_v32 = vrot.slane %v7431_v61, 1  ;;  %v7439_v2 = vrot.slane %v7438_v50, 1  ;;  %v7445_v17 = vmax.f32 %v7443_v8, %v7444_v16 }
 0x649   : > { %v15829_v55 = vmax.f32 %v7452_v21, %v7453_v47  ;;  %v7459_v37 = vmax.f32 %v7457_v63, %v7458_v51  ;;  %v7466_v57 = vmax.f32 %v7464_v12, %v7465_v18  ;;  %v7472_v10 = vrot.slane %v7471_v6, 2 }
 0x64a   : > { %v15831_v28 = vmax.f32 %v7431_v61, %v7432_v32  ;;  %v15833_v44 = vmax.f32 %v7438_v50, %v7439_v2  ;;  %v7446_v60 = vrot.slane %v7445_v17, 1  ;;  %v17923_v20 = vmax.f32 %v15800_v34, 0.0 }
 0x64b   : > { %17920 = vst [vmem:[#allocation36_spill] sm:$0xff] %v15829_v55  ;;  %v17924_v1 = vmax.f32 %v15793_v0, 0.0  ;;  %v7460_v29 = vrot.slane %v7459_v37, 1  ;;  %v7467_v62 = vrot.slane %v7466_v57, 1  ;;  %v7473_v45 = vmax.f32 %v7471_v6, %v7472_v10 }
 0x64c   : > { %17921 = vst [vmem:[#allocation57_spill] sm:$0xff] %v15831_v28  ;;  %17922 = vst [vmem:[#allocation37_spill] sm:$0xff] %v15833_v44  ;;  %v17925_v16 = vmov %v17923_v20  ;;  %v15843_v15 = vmax.f32 %v7445_v17, %v7446_v60  ;;  %v15848_v50 = vadd.f32 %v15708_v5, %v15664_v14  ;;  %v15852_v61 = vadd.f32 %v15713_v58, %v15662_v23 }
 0x64d   : > { %v6724_v49 = vcombine.low %v17924_v1, %v17923_v20  ;;  %v17926_v42 = vmov %v17924_v1  ;;  %v15854_v8 = vmax.f32 %v7459_v37, %v7460_v29  ;;  %v15856_v21 = vmax.f32 %v7466_v57, %v7467_v62 }
 0x64e   : > { %v6725_v33 = vcombine.high %v17926_v42, %v17925_v16  ;;  %17927 = vst [vmem:[#allocation86_spill] sm:$0xff] %v15843_v15  ;;  %v7474_v34 = vrot.slane %v7473_v45, 1  ;;  %v6635_v38 = vmax.f32 %v15848_v50, 0.0  ;;  %v15867_v18 = vadd.f32 %v15717_v22, %v15664_v14 }
 0x64f   : > { %v6732_v32 = vrot.slane %v6724_v49, %v17910_v43  ;;  %17928 = vst [vmem:[#allocation39_spill] sm:$0xff] %v15854_v8  ;;  %17929 = vst [vmem:[#allocation27_spill] sm:$0xff] %v15856_v21  ;;  %v17931_v37 = vmax.f32 %v15804_v59, 0.0 }
 0x650   : > { %v6739_v0 = vrot.slane %v6725_v33, %v17910_v43  ;;  %v15862_v5 = vmax.f32 %v7473_v45, %v7474_v34 }
 0x651   : > { %v6740_v63 = vcombine.high %v6732_v32, %v6732_v32  ;;  %v6970_v12 = vrot.slane %v6732_v32, %v17910_v43  ;;  %v6742_v57 = vcombine.low %v17931_v37, %v6635_v38 }
 0x652   : > { %17930 = vst [vmem:[#allocation25_spill] sm:$0xff] %v15862_v5  ;;  %v6741_v51 = vcombine.high %v6739_v0, %v6739_v0  ;;  %v6986_v58 = vrot.slane %v6739_v0, %v17910_v43 }
 0x653   : > { %v6971_v6 = vcombine.high %v6970_v12, %v6970_v12  ;;  %v6978_v2 = vrot.slane %v6740_v63, %v17910_v43  ;;  %v7476_v17 = vsel %vm5221_vm9, %v6970_v12, -inf }
 0x654   : > { %v6987_v10 = vcombine.high %v6986_v58, %v6986_v58  ;;  %v6994_v60 = vrot.slane %v6741_v51, %v17910_v43  ;;  %v7477_v20 = vrot.slane %v7476_v17, 4  ;;  %v7504_v1 = vsel %vm5221_vm9, %v6986_v58, -inf }
 0x655   : > { %v6979_v49 = vcombine.high %v6978_v2, %v6978_v2  ;;  %v7483_v29 = vsel %vm5221_vm9, %v6971_v6, -inf  ;;  %v7490_v22 = vsel %vm5221_vm9, %v6978_v2, -inf  ;;  %v7505_v62 = vrot.slane %v7504_v1, 4 }
 0x656   : > { %v6995_v45 = vcombine.high %v6994_v60, %v6994_v60  ;;  %v7478_v16 = vmax.f32 %v7476_v17, %v7477_v20  ;;  %v7484_v42 = vrot.slane %v7483_v29, 4  ;;  %v7491_v33 = vrot.slane %v7490_v22, 4 }
 0x657   : > { %v7497_v32 = vsel %vm5221_vm9, %v6979_v49, -inf  ;;  %v7506_v50 = vmax.f32 %v7504_v1, %v7505_v62  ;;  %v7511_v34 = vsel %vm5221_vm9, %v6987_v10, -inf  ;;  %v7518_v0 = vsel %vm5221_vm9, %v6994_v60, -inf }
 0x658   : > { %v7479_v63 = vrot.slane %v7478_v16, 2  ;;  %v7485_v12 = vmax.f32 %v7483_v29, %v7484_v42  ;;  %v7492_v51 = vmax.f32 %v7490_v22, %v7491_v33  ;;  %v7498_v58 = vrot.slane %v7497_v32, 4 }
 0x659   : > { %v7507_v37 = vrot.slane %v7506_v50, 2  ;;  %v7512_v6 = vrot.slane %v7511_v34, 4  ;;  %v7519_v47 = vrot.slane %v7518_v0, 4  ;;  %v7525_v2 = vsel %vm5221_vm9, %v6995_v45, -inf }
 0x65a   : > { %v7480_v5 = vmax.f32 %v7478_v16, %v7479_v63  ;;  %v7486_v17 = vrot.slane %v7485_v12, 2  ;;  %v7493_v20 = vrot.slane %v7492_v51, 2  ;;  %v7499_v21 = vmax.f32 %v7497_v32, %v7498_v58 }
 0x65b   : > { %v7508_v8 = vmax.f32 %v7506_v50, %v7507_v37  ;;  %v7513_v49 = vmax.f32 %v7511_v34, %v7512_v6  ;;  %v7520_v1 = vmax.f32 %v7518_v0, %v7519_v47  ;;  %v7526_v62 = vrot.slane %v7525_v2, 4 }
 0x65c   : > { %v7481_v10 = vrot.slane %v7480_v5, 1  ;;  %v7487_v55 = vmax.f32 %v7485_v12, %v7486_v17  ;;  %v7494_v60 = vmax.f32 %v7492_v51, %v7493_v20  ;;  %v7500_v15 = vrot.slane %v7499_v21, 2 }
 0x65d   : > { %v7509_v29 = vrot.slane %v7508_v8, 1  ;;  %v7514_v22 = vrot.slane %v7513_v49, 2  ;;  %v7521_v42 = vrot.slane %v7520_v1, 2  ;;  %v7527_v33 = vmax.f32 %v7525_v2, %v7526_v62 }
 0x65e   : > { %v15881_v44 = vmax.f32 %v7480_v5, %v7481_v10  ;;  %v7488_v28 = vrot.slane %v7487_v55, 1  ;;  %v7495_v45 = vrot.slane %v7494_v60, 1  ;;  %v7501_v16 = vmax.f32 %v7499_v21, %v7500_v15 }
 0x65f   : > { %v15883_v63 = vmax.f32 %v7508_v8, %v7509_v29  ;;  %v7515_v32 = vmax.f32 %v7513_v49, %v7514_v22  ;;  %v7522_v50 = vmax.f32 %v7520_v1, %v7521_v42  ;;  %v7528_v34 = vrot.slane %v7527_v33, 2 }
 0x660   : > { %v15885_v47 = vmax.f32 %v7487_v55, %v7488_v28  ;;  %v15887_v0 = vmax.f32 %v7494_v60, %v7495_v45  ;;  %v7502_v12 = vrot.slane %v7501_v16, 1  ;;  %v17933_v51 = vmax.f32 %v15804_v59, 0.0 }
 0x661   : > { %17932 = vst [vmem:[#allocation40_spill] sm:$0xff] %v15883_v63  ;;  %v7516_v37 = vrot.slane %v7515_v32, 1  ;;  %v7523_v6 = vrot.slane %v7522_v50, 1  ;;  %v7529_v5 = vmax.f32 %v7527_v33, %v7528_v34  ;;  %v6750_v2 = vrot.slane %v6742_v57, %v17910_v43 }
 0x662   : > { %v6743_v58 = vcombine.high %v17933_v51, %v6635_v38  ;;  %v15892_v17 = vmax.f32 %v7501_v16, %v7502_v12  ;;  %v6637_v8 = vmax.f32 %v15867_v18, 0.0  ;;  %v15898_v55 = vadd.f32 %v15721_v35, %v15662_v23 }
 0x663   : > { %v15900_v28 = vmax.f32 %v7515_v32, %v7516_v37  ;;  %v15902_v21 = vmax.f32 %v7522_v50, %v7523_v6  ;;  %v7530_v59 = vrot.slane %v7529_v5, 1  ;;  %v6758_v38 = vcombine.high %v6750_v2, %v6750_v2 }
 0x664   : > { %17934 = vst [vmem:[#allocation92_spill] sm:$0xff] %v15892_v17  ;;  %v6757_v15 = vrot.slane %v6743_v58, %v17910_v43  ;;  %v7002_v49 = vrot.slane %v6750_v2, %v17910_v43  ;;  %v17937_v1 = vmax.f32 %v15852_v61, 0.0 }
 0x665   : > { %17935 = vst [vmem:[#allocation43_spill] sm:$0xff] %v15900_v28  ;;  %17936 = vst [vmem:[#allocation46_spill] sm:$0xff] %v15902_v21  ;;  %v15908_v10 = vmax.f32 %v7529_v5, %v7530_v59  ;;  %v7010_v18 = vrot.slane %v6758_v38, %v17910_v43 }
 0x666   : > { %v6759_v20 = vcombine.high %v6757_v15, %v6757_v15  ;;  %v7018_v57 = vrot.slane %v6757_v15, %v17910_v43  ;;  %v6760_v62 = vcombine.low %v17937_v1, %v6637_v8  ;;  %v17939_v35 = vmov %v17937_v1 }
 0x667   : > { %17938 = vst [vmem:[#allocation35_spill] sm:$0xff] %v15908_v10  ;;  %v6761_v60 = vcombine.high %v17939_v35, %v6637_v8  ;;  %v7003_v22 = vcombine.high %v7002_v49, %v7002_v49  ;;  %v7532_v45 = vsel %vm5221_vm9, %v7002_v49, -inf  ;;  %v7011_v16 = vcombine.high %v7010_v18, %v7010_v18 }
 0x668   : > { %v7019_v42 = vcombine.high %v7018_v57, %v7018_v57  ;;  %v7026_v33 = vrot.slane %v6759_v20, %v17910_v43  ;;  %v7533_v32 = vrot.slane %v7532_v45, 4  ;;  %v7546_v50 = vsel %vm5221_vm9, %v7010_v18, -inf }
 0x669   : > { %v7560_v34 = vsel %vm5221_vm9, %v7018_v57, -inf  ;;  %v7539_v51 = vsel %vm5221_vm9, %v7003_v22, -inf  ;;  %v7547_v58 = vrot.slane %v7546_v50, 4  ;;  %v7553_v5 = vsel %vm5221_vm9, %v7011_v16, -inf }
 0x66a   : > { %v7027_v12 = vcombine.high %v7026_v33, %v7026_v33  ;;  %v7561_v61 = vrot.slane %v7560_v34, 4  ;;  %v7534_v37 = vmax.f32 %v7532_v45, %v7533_v32  ;;  %v7540_v6 = vrot.slane %v7539_v51, 4 }
 0x66b   : > { %v7567_v2 = vsel %vm5221_vm9, %v7019_v42, -inf  ;;  %v7548_v15 = vmax.f32 %v7546_v50, %v7547_v58  ;;  %v7554_v8 = vrot.slane %v7553_v5, 4  ;;  %v7574_v1 = vsel %vm5221_vm9, %v7026_v33, -inf }
 0x66c   : > { %v7562_v59 = vmax.f32 %v7560_v34, %v7561_v61  ;;  %v7568_v38 = vrot.slane %v7567_v2, 4  ;;  %v7535_v20 = vrot.slane %v7534_v37, 2  ;;  %v7541_v49 = vmax.f32 %v7539_v51, %v7540_v6 }
 0x66d   : > { %v7581_v57 = vsel %vm5221_vm9, %v7027_v12, -inf  ;;  %v7549_v18 = vrot.slane %v7548_v15, 2  ;;  %v7555_v35 = vmax.f32 %v7553_v5, %v7554_v8  ;;  %v7575_v10 = vrot.slane %v7574_v1, 4 }
 0x66e   : > { %v7563_v22 = vrot.slane %v7562_v59, 2  ;;  %v7569_v29 = vmax.f32 %v7567_v2, %v7568_v38  ;;  %v7536_v45 = vmax.f32 %v7534_v37, %v7535_v20  ;;  %v7542_v32 = vrot.slane %v7541_v49, 2 }
 0x66f   : > { %v7582_v16 = vrot.slane %v7581_v57, 4  ;;  %v7550_v21 = vmax.f32 %v7548_v15, %v7549_v18  ;;  %v7556_v42 = vrot.slane %v7555_v35, 2  ;;  %v7576_v28 = vmax.f32 %v7574_v1, %v7575_v10 }
 0x670   : > { %v7564_v50 = vmax.f32 %v7562_v59, %v7563_v22  ;;  %v7570_v58 = vrot.slane %v7569_v29, 2  ;;  %v7537_v34 = vrot.slane %v7536_v45, 1  ;;  %v7543_v61 = vmax.f32 %v7541_v49, %v7542_v32 }
 0x671   : > { %v7583_v51 = vmax.f32 %v7581_v57, %v7582_v16  ;;  %v7551_v6 = vrot.slane %v7550_v21, 1  ;;  %v7557_v33 = vmax.f32 %v7555_v35, %v7556_v42  ;;  %v7577_v2 = vrot.slane %v7576_v28, 2 }
 0x672   : > { %v7565_v63 = vrot.slane %v7564_v50, 1  ;;  %v7571_v12 = vmax.f32 %v7569_v29, %v7570_v58  ;;  %v15923_v17 = vmax.f32 %v7536_v45, %v7537_v34  ;;  %v7544_v5 = vrot.slane %v7543_v61, 1 }
 0x673   : > { %v7584_v37 = vrot.slane %v7583_v51, 2  ;;  %v15925_v8 = vmax.f32 %v7550_v21, %v7551_v6  ;;  %v7558_v38 = vrot.slane %v7557_v33, 1  ;;  %v7578_v49 = vmax.f32 %v7576_v28, %v7577_v2 }
 0x674   : > { %v15927_v15 = vmax.f32 %v7564_v50, %v7565_v63  ;;  %v7572_v59 = vrot.slane %v7571_v12, 1  ;;  %v15929_v20 = vmax.f32 %v7543_v61, %v7544_v5  ;;  %v6768_v1 = vrot.slane %v6760_v62, %v17910_v43 }
 0x675   : > { %17940 = vst [vmem:[#allocation33_spill] sm:$0xff] %v15925_v8  ;;  %v7585_v10 = vmax.f32 %v7583_v51, %v7584_v37  ;;  %v15932_v57 = vmax.f32 %v7557_v33, %v7558_v38  ;;  %v6775_v18 = vrot.slane %v6761_v60, %v17910_v43  ;;  %v15939_v21 = vadd.f32 %v15727_v54, %v15664_v14 }
 0x676   : > { %17941 = vst [vmem:[#allocation47_spill] sm:$0xff] %v15927_v15  ;;  %17942 = vst [vmem:[#allocation50_spill] sm:$0xff] %v15929_v20  ;;  %v15934_v29 = vmax.f32 %v7571_v12, %v7572_v59  ;;  %v7579_v35 = vrot.slane %v7578_v49, 1  ;;  %v6776_v22 = vcombine.high %v6768_v1, %v6768_v1  ;;  %v7034_v45 = vrot.slane %v6768_v1, %v17910_v43 }
 0x677   : > { %17943 = vst [vmem:[#allocation52_spill] sm:$0xff] %v15932_v57  ;;  %v7586_v63 = vrot.slane %v7585_v10, 1  ;;  %v6777_v32 = vcombine.high %v6775_v18, %v6775_v18  ;;  %v7050_v28 = vrot.slane %v6775_v18, %v17910_v43  ;;  %v15946_v16 = vadd.f32 %v15711_v53, %v15662_v23 }
 0x678   : > { %17944 = vst [vmem:[#allocation41_spill] sm:$0xff] %v15934_v29  ;;  %v15948_v42 = vmax.f32 %v7578_v49, %v7579_v35  ;;  %v7035_v54 = vcombine.high %v7034_v45, %v7034_v45  ;;  %v7042_v50 = vrot.slane %v6776_v22, %v17910_v43  ;;  %v7588_v61 = vsel %vm5221_vm9, %v7034_v45, -inf }
 0x679   : > { %v15950_v60 = vmax.f32 %v7585_v10, %v7586_v63  ;;  %v7051_v58 = vcombine.high %v7050_v28, %v7050_v28  ;;  %v7058_v34 = vrot.slane %v6777_v32, %v17910_v43  ;;  %v7616_v51 = vsel %vm5221_vm9, %v7050_v28, -inf }
 0x67a   : > { %17945 = vst [vmem:[#allocation38_spill] sm:$0xff] %v15948_v42  ;;  %v7043_v6 = vcombine.high %v7042_v50, %v7042_v50  ;;  %v7589_v33 = vrot.slane %v7588_v61, 4  ;;  %v7595_v12 = vsel %vm5221_vm9, %v7035_v54, -inf  ;;  %v7602_v53 = vsel %vm5221_vm9, %v7042_v50, -inf }
 0x67b   : > { %17946 = vst [vmem:[#allocation24_spill] sm:$0xff] %v15950_v60  ;;  %v7059_v5 = vcombine.high %v7058_v34, %v7058_v34  ;;  %v7596_v2 = vrot.slane %v7595_v12, 4  ;;  %v7603_v37 = vrot.slane %v7602_v53, 4  ;;  %v7617_v38 = vrot.slane %v7616_v51, 4 }
 0x67c   : > { %v7590_v59 = vmax.f32 %v7588_v61, %v7589_v33  ;;  %v7609_v49 = vsel %vm5221_vm9, %v7043_v6, -inf  ;;  %v7623_v10 = vsel %vm5221_vm9, %v7051_v58, -inf  ;;  %v7630_v1 = vsel %vm5221_vm9, %v7058_v34, -inf }
 0x67d   : > { %v7597_v18 = vmax.f32 %v7595_v12, %v7596_v2  ;;  %v7604_v35 = vmax.f32 %v7602_v53, %v7603_v37  ;;  %v7610_v63 = vrot.slane %v7609_v49, 4  ;;  %v7618_v22 = vmax.f32 %v7616_v51, %v7617_v38 }
 0x67e   : > { %v7591_v45 = vrot.slane %v7590_v59, 2  ;;  %v7624_v32 = vrot.slane %v7623_v10, 4  ;;  %v7631_v28 = vrot.slane %v7630_v1, 4  ;;  %v7637_v54 = vsel %vm5221_vm9, %v7059_v5, -inf }
 0x67f   : > { %v7598_v50 = vrot.slane %v7597_v18, 2  ;;  %v7605_v62 = vrot.slane %v7604_v35, 2  ;;  %v7611_v60 = vmax.f32 %v7609_v49, %v7610_v63  ;;  %v7619_v42 = vrot.slane %v7618_v22, 2 }
 0x680   : > { %v7592_v61 = vmax.f32 %v7590_v59, %v7591_v45  ;;  %v7625_v33 = vmax.f32 %v7623_v10, %v7624_v32  ;;  %v7632_v6 = vmax.f32 %v7630_v1, %v7631_v28  ;;  %v7638_v29 = vrot.slane %v7637_v54, 4 }
 0x681   : > { %v7599_v58 = vmax.f32 %v7597_v18, %v7598_v50  ;;  %v7606_v15 = vmax.f32 %v7604_v35, %v7605_v62  ;;  %v7612_v34 = vrot.slane %v7611_v60, 2  ;;  %v7620_v12 = vmax.f32 %v7618_v22, %v7619_v42 }
 0x682   : > { %v7593_v53 = vrot.slane %v7592_v61, 1  ;;  %v7626_v2 = vrot.slane %v7625_v33, 2  ;;  %v7633_v51 = vrot.slane %v7632_v6, 2  ;;  %v7639_v37 = vmax.f32 %v7637_v54, %v7638_v29 }
 0x683   : > { %v7600_v38 = vrot.slane %v7599_v58, 1  ;;  %v7607_v57 = vrot.slane %v7606_v15, 1  ;;  %v7613_v8 = vmax.f32 %v7611_v60, %v7612_v34  ;;  %v7621_v5 = vrot.slane %v7620_v12, 1 }
 0x684   : > { %v15962_v20 = vmax.f32 %v7592_v61, %v7593_v53  ;;  %v7627_v49 = vmax.f32 %v7625_v33, %v7626_v2  ;;  %v7634_v63 = vmax.f32 %v7632_v6, %v7633_v51  ;;  %v7640_v59 = vrot.slane %v7639_v37, 2 }
 0x685   : > { %v15964_v10 = vmax.f32 %v7599_v58, %v7600_v38  ;;  %v15966_v1 = vmax.f32 %v7606_v15, %v7607_v57  ;;  %v7614_v62 = vrot.slane %v7613_v8, 1  ;;  %v15968_v18 = vmax.f32 %v7620_v12, %v7621_v5 }
 0x686   : > { %v7628_v42 = vrot.slane %v7627_v49, 1  ;;  %v7635_v35 = vrot.slane %v7634_v63, 1  ;;  %v7641_v22 = vmax.f32 %v7639_v37, %v7640_v59  ;;  %v17947_v29 = vmax.f32 %v15939_v21, 0.0 }
 0x687   : > { %v17948_v60 = vmax.f32 %v15898_v55, 0.0  ;;  %v15974_v32 = vmax.f32 %v7613_v8, %v7614_v62  ;;  %v15982_v15 = vadd.f32 %v15747_v30, %v15662_v23  ;;  %v15986_v57 = vadd.f32 %v15715_v39, %v15664_v14 }
 0x688   : > { %v17949_v28 = vmov %v17947_v29  ;;  %v15988_v61 = vmax.f32 %v7627_v49, %v7628_v42  ;;  %v15990_v33 = vmax.f32 %v7634_v63, %v7635_v35  ;;  %v7642_v6 = vrot.slane %v7641_v22, 1 }
 0x689   : > { %v6778_v45 = vcombine.low %v17948_v60, %v17947_v29  ;;  %v17950_v54 = vmov %v17948_v60  ;;  %v15997_v58 = vadd.f32 %v15751_v26, %v15664_v14  ;;  %v16001_v30 = vadd.f32 %v15759_v36, %v15662_v23 }
 0x68a   : > { %v6779_v50 = vcombine.high %v17950_v54, %v17949_v28  ;;  %17951 = vst [vmem:[#allocation53_spill] sm:$0xff] %v15988_v61  ;;  %17952 = vst [vmem:[#allocation55_spill] sm:$0xff] %v15990_v33  ;;  %v16003_v39 = vmax.f32 %v7641_v22, %v7642_v6  ;;  %v16008_v53 = vadd.f32 %v15762_v52, %v15664_v14 }
 0x68b   : > { %v6786_v8 = vrot.slane %v6778_v45, %v17910_v43  ;;  %v6641_v37 = vmax.f32 %v15997_v58, 0.0 }
 0x68c   : > { %v6793_v21 = vrot.slane %v6779_v50, %v17910_v43  ;;  %17953 = vst [vmem:[#allocation45_spill] sm:$0xff] %v16003_v39  ;;  %v6643_v5 = vmax.f32 %v16008_v53, 0.0 }
 0x68d   : > { %v6794_v34 = vcombine.high %v6786_v8, %v6786_v8  ;;  %v7066_v12 = vrot.slane %v6786_v8, %v17910_v43 }
 0x68e   : > { %v6795_v2 = vcombine.high %v6793_v21, %v6793_v21  ;;  %v7082_v51 = vrot.slane %v6793_v21, %v17910_v43 }
 0x68f   : > { %v7067_v38 = vcombine.high %v7066_v12, %v7066_v12  ;;  %v7074_v23 = vrot.slane %v6794_v34, %v17910_v43  ;;  %v7644_v36 = vsel %vm5221_vm9, %v7066_v12, -inf }
 0x690   : > { %v7083_v49 = vcombine.high %v7082_v51, %v7082_v51  ;;  %v7090_v63 = vrot.slane %v6795_v2, %v17910_v43  ;;  %v7645_v59 = vrot.slane %v7644_v36, 4  ;;  %v7672_v14 = vsel %vm5221_vm9, %v7082_v51, -inf }
 0x691   : > { %v7075_v52 = vcombine.high %v7074_v23, %v7074_v23  ;;  %v7651_v62 = vsel %vm5221_vm9, %v7067_v38, -inf  ;;  %v7658_v42 = vsel %vm5221_vm9, %v7074_v23, -inf  ;;  %v7673_v35 = vrot.slane %v7672_v14, 4 }
 0x692   : > { %v7091_v22 = vcombine.high %v7090_v63, %v7090_v63  ;;  %v7646_v29 = vmax.f32 %v7644_v36, %v7645_v59  ;;  %v7652_v60 = vrot.slane %v7651_v62, 4  ;;  %v7659_v45 = vrot.slane %v7658_v42, 4 }
 0x693   : > { %v7665_v28 = vsel %vm5221_vm9, %v7075_v52, -inf  ;;  %v7674_v54 = vmax.f32 %v7672_v14, %v7673_v35  ;;  %v7679_v50 = vsel %vm5221_vm9, %v7083_v49, -inf  ;;  %v7686_v6 = vsel %vm5221_vm9, %v7090_v63, -inf }
 0x694   : > { %v7647_v8 = vrot.slane %v7646_v29, 2  ;;  %v7653_v21 = vmax.f32 %v7651_v62, %v7652_v60  ;;  %v7660_v58 = vmax.f32 %v7658_v42, %v7659_v45  ;;  %v7666_v34 = vrot.slane %v7665_v28, 4 }
 0x695   : > { %v7675_v12 = vrot.slane %v7674_v54, 2  ;;  %v7680_v53 = vrot.slane %v7679_v50, 4  ;;  %v7687_v2 = vrot.slane %v7686_v6, 4  ;;  %v7693_v51 = vsel %vm5221_vm9, %v7091_v22, -inf }
 0x696   : > { %v7648_v38 = vmax.f32 %v7646_v29, %v7647_v8  ;;  %v7654_v23 = vrot.slane %v7653_v21, 2  ;;  %v7661_v36 = vrot.slane %v7660_v58, 2  ;;  %v7667_v59 = vmax.f32 %v7665_v28, %v7666_v34 }
 0x697   : > { %v7676_v26 = vmax.f32 %v7674_v54, %v7675_v12  ;;  %v7681_v52 = vmax.f32 %v7679_v50, %v7680_v53  ;;  %v7688_v14 = vmax.f32 %v7686_v6, %v7687_v2  ;;  %v7694_v35 = vrot.slane %v7693_v51, 4 }
 0x698   : > { %v7649_v49 = vrot.slane %v7648_v38, 1  ;;  %v7655_v55 = vmax.f32 %v7653_v21, %v7654_v23  ;;  %v7662_v63 = vmax.f32 %v7660_v58, %v7661_v36  ;;  %v7668_v39 = vrot.slane %v7667_v59, 2 }
 0x699   : > { %v7677_v62 = vrot.slane %v7676_v26, 1  ;;  %v7682_v42 = vrot.slane %v7681_v52, 2  ;;  %v7689_v60 = vrot.slane %v7688_v14, 2  ;;  %v7695_v45 = vmax.f32 %v7693_v51, %v7694_v35 }
 0x69a   : > { %v16024_v33 = vmax.f32 %v7648_v38, %v7649_v49  ;;  %v7656_v61 = vrot.slane %v7655_v55, 1  ;;  %v7663_v22 = vrot.slane %v7662_v63, 1  ;;  %v7669_v29 = vmax.f32 %v7667_v59, %v7668_v39 }
 0x69b   : > { %v16026_v8 = vmax.f32 %v7676_v26, %v7677_v62  ;;  %v7683_v28 = vmax.f32 %v7681_v52, %v7682_v42  ;;  %v7690_v54 = vmax.f32 %v7688_v14, %v7689_v60  ;;  %v7696_v50 = vrot.slane %v7695_v45, 2 }
 0x69c   : > { %v16028_v6 = vmax.f32 %v7655_v55, %v7656_v61  ;;  %v16030_v34 = vmax.f32 %v7662_v63, %v7663_v22  ;;  %v7670_v21 = vrot.slane %v7669_v29, 1  ;;  %v17956_v58 = vmax.f32 %v15982_v15, 0.0 }
 0x69d   : > { %17954 = vst [vmem:[#allocation44_spill] sm:$0xff] %v16026_v8  ;;  %v7684_v53 = vrot.slane %v7683_v28, 1  ;;  %v7691_v2 = vrot.slane %v7690_v54, 1  ;;  %v7697_v51 = vmax.f32 %v7695_v45, %v7696_v50  ;;  %v17959_v36 = vmax.f32 %v16001_v30, 0.0 }
 0x69e   : > { %17955 = vst [vmem:[#allocation26_spill] sm:$0xff] %v16030_v34  ;;  %v6796_v12 = vcombine.low %v17956_v58, %v6641_v37  ;;  %v17957_v38 = vmov %v17956_v58  ;;  %v16036_v39 = vmax.f32 %v7669_v29, %v7670_v21  ;;  %v16060_v60 = vadd.f32 %v15766_v41, %v15676_v24 }
 0x69f   : > { %v6797_v23 = vcombine.high %v17957_v38, %v6641_v37  ;;  %v6814_v61 = vcombine.low %v17959_v36, %v6643_v5  ;;  %v17960_v55 = vmov %v17959_v36  ;;  %v16043_v52 = vmax.f32 %v7683_v28, %v7684_v53 }
 0x6a0   : > { %17958 = vst [vmem:[#allocation59_spill] sm:$0xff] %v16036_v39  ;;  %v6804_v26 = vrot.slane %v6796_v12, %v17910_v43  ;;  %v6815_v59 = vcombine.high %v17960_v55, %v6643_v5  ;;  %v16045_v14 = vmax.f32 %v7690_v54, %v7691_v2  ;;  %v7698_v35 = vrot.slane %v7697_v51, 1 }
 0x6a1   : > { %17961 = vst [vmem:[#allocation60_spill] sm:$0xff] %v16043_v52  ;;  %v6811_v49 = vrot.slane %v6797_v23, %v17910_v43  ;;  %v16050_v37 = vrot.slane %v6814_v61, %v17910_v43 }
 0x6a2   : > { %17962 = vst [vmem:[#allocation23_spill] sm:$0xff] %v16045_v14  ;;  %v6812_v63 = vcombine.high %v6804_v26, %v6804_v26  ;;  %v7098_v15 = vrot.slane %v6804_v26, %v17910_v43  ;;  %v16053_v62 = vrot.slane %v6815_v59, %v17910_v43  ;;  %v16055_v42 = vmax.f32 %v7697_v51, %v7698_v35 }
 0x6a3   : > { %v6813_v30 = vcombine.high %v6811_v49, %v6811_v49  ;;  %v7114_v5 = vrot.slane %v6811_v49, %v17910_v43  ;;  %v6830_v28 = vcombine.high %v16050_v37, %v16050_v37 }
 0x6a4   : > { %17963 = vst [vmem:[#allocation51_spill] sm:$0xff] %v16055_v42  ;;  %v7099_v45 = vcombine.high %v7098_v15, %v7098_v15  ;;  %v7106_v22 = vrot.slane %v6812_v63, %v17910_v43  ;;  %v7700_v29 = vsel %vm5221_vm9, %v7098_v15, -inf }
 0x6a5   : > { %v7115_v54 = vcombine.high %v7114_v5, %v7114_v5  ;;  %v7122_v50 = vrot.slane %v6813_v30, %v17910_v43  ;;  %v7701_v21 = vrot.slane %v7700_v29, 4  ;;  %v7728_v58 = vsel %vm5221_vm9, %v7114_v5, -inf }
 0x6a6   : > { %v7107_v12 = vcombine.high %v7106_v22, %v7106_v22  ;;  %v7707_v53 = vsel %vm5221_vm9, %v7099_v45, -inf  ;;  %v7714_v24 = vsel %vm5221_vm9, %v7106_v22, -inf  ;;  %v7729_v41 = vrot.slane %v7728_v58, 4 }
 0x6a7   : > { %v7123_v2 = vcombine.high %v7122_v50, %v7122_v50  ;;  %v7702_v51 = vmax.f32 %v7700_v29, %v7701_v21  ;;  %v7708_v38 = vrot.slane %v7707_v53, 4  ;;  %v7715_v23 = vrot.slane %v7714_v24, 4 }
 0x6a8   : > { %v7721_v26 = vsel %vm5221_vm9, %v7107_v12, -inf  ;;  %v7730_v36 = vmax.f32 %v7728_v58, %v7729_v41  ;;  %v7735_v61 = vsel %vm5221_vm9, %v7115_v54, -inf  ;;  %v7742_v55 = vsel %vm5221_vm9, %v7122_v50, -inf }
 0x6a9   : > { %v7703_v59 = vrot.slane %v7702_v51, 2  ;;  %v7709_v35 = vmax.f32 %v7707_v53, %v7708_v38  ;;  %v7716_v49 = vmax.f32 %v7714_v24, %v7715_v23  ;;  %v7722_v63 = vrot.slane %v7721_v26, 4 }
 0x6aa   : > { %v7731_v15 = vrot.slane %v7730_v36, 2  ;;  %v7736_v30 = vrot.slane %v7735_v61, 4  ;;  %v7743_v5 = vrot.slane %v7742_v55, 4  ;;  %v7749_v45 = vsel %vm5221_vm9, %v7123_v2, -inf }
 0x6ab   : > { %v7704_v22 = vmax.f32 %v7702_v51, %v7703_v59  ;;  %v7710_v29 = vrot.slane %v7709_v35, 2  ;;  %v7717_v21 = vrot.slane %v7716_v49, 2  ;;  %v7723_v42 = vmax.f32 %v7721_v26, %v7722_v63 }
 0x6ac   : > { %v7732_v14 = vmax.f32 %v7730_v36, %v7731_v15  ;;  %v7737_v12 = vmax.f32 %v7735_v61, %v7736_v30  ;;  %v7744_v58 = vmax.f32 %v7742_v55, %v7743_v5  ;;  %v7750_v41 = vrot.slane %v7749_v45, 4 }
 0x6ad   : > { %v7705_v54 = vrot.slane %v7704_v22, 1  ;;  %v7711_v52 = vmax.f32 %v7709_v35, %v7710_v29  ;;  %v7718_v50 = vmax.f32 %v7716_v49, %v7717_v21  ;;  %v7724_v8 = vrot.slane %v7723_v42, 2 }
 0x6ae   : > { %v7733_v53 = vrot.slane %v7732_v14, 1  ;;  %v7738_v24 = vrot.slane %v7737_v12, 2  ;;  %v7745_v38 = vrot.slane %v7744_v58, 2  ;;  %v7751_v23 = vmax.f32 %v7749_v45, %v7750_v41 }
 0x6af   : > { %v16074_v39 = vmax.f32 %v7704_v22, %v7705_v54  ;;  %v7712_v34 = vrot.slane %v7711_v52, 1  ;;  %v7719_v2 = vrot.slane %v7718_v50, 1  ;;  %v7725_v51 = vmax.f32 %v7723_v42, %v7724_v8 }
 0x6b0   : > { %v16076_v59 = vmax.f32 %v7732_v14, %v7733_v53  ;;  %v7739_v26 = vmax.f32 %v7737_v12, %v7738_v24  ;;  %v7746_v36 = vmax.f32 %v7744_v58, %v7745_v38  ;;  %v7752_v61 = vrot.slane %v7751_v23, 2 }
 0x6b1   : > { %v16078_v55 = vmax.f32 %v7711_v52, %v7712_v34  ;;  %v16080_v63 = vmax.f32 %v7718_v50, %v7719_v2  ;;  %v7726_v35 = vrot.slane %v7725_v51, 1  ;;  %v6831_v49 = vcombine.high %v16053_v62, %v16053_v62 }
 0x6b2   : > { %17964 = vst [vmem:[#allocation65_spill] sm:$0xff] %v16076_v59  ;;  %v7740_v15 = vrot.slane %v7739_v26, 1  ;;  %v7747_v30 = vrot.slane %v7746_v36, 1  ;;  %v7753_v5 = vmax.f32 %v7751_v23, %v7752_v61  ;;  %v7130_v45 = vrot.slane %v16050_v37, %v17910_v43 }
 0x6b3   : > { %v16086_v8 = vmax.f32 %v7725_v51, %v7726_v35  ;;  %v7138_v14 = vrot.slane %v6830_v28, %v17910_v43  ;;  %v7146_v34 = vrot.slane %v16053_v62, %v17910_v43  ;;  %v7154_v52 = vrot.slane %v6831_v49, %v17910_v43 }
 0x6b4   : > { %v16092_v42 = vmax.f32 %v7739_v26, %v7740_v15  ;;  %v16094_v22 = vmax.f32 %v7746_v36, %v7747_v30  ;;  %v7754_v29 = vrot.slane %v7753_v5, 1  ;;  %v7131_v21 = vcombine.high %v7130_v45, %v7130_v45 }
 0x6b5   : > { %17965 = vst [vmem:[#allocation56_spill] sm:$0xff] %v16086_v8  ;;  %v7139_v12 = vcombine.high %v7138_v14, %v7138_v14  ;;  %v7147_v58 = vcombine.high %v7146_v34, %v7146_v34  ;;  %v7155_v41 = vcombine.high %v7154_v52, %v7154_v52  ;;  %v7756_v37 = vsel %vm5221_vm9, %v7130_v45, -inf }
 0x6b6   : > { %17966 = vst [vmem:[#allocation72_spill] sm:$0xff] %v16092_v42  ;;  %17967 = vst [vmem:[#allocation32_spill] sm:$0xff] %v16094_v22  ;;  %v16097_v54 = vmax.f32 %v7753_v5, %v7754_v29  ;;  %v7757_v50 = vrot.slane %v7756_v37, 4  ;;  %v7763_v28 = vsel %vm5221_vm9, %v7131_v21, -inf  ;;  %v7770_v62 = vsel %vm5221_vm9, %v7138_v14, -inf }
 0x6b7   : > { %v7764_v53 = vrot.slane %v7763_v28, 4  ;;  %v7771_v24 = vrot.slane %v7770_v62, 4  ;;  %v7777_v38 = vsel %vm5221_vm9, %v7139_v12, -inf  ;;  %v7784_v23 = vsel %vm5221_vm9, %v7146_v34, -inf }
 0x6b8   : > { %17968 = vst [vmem:[#allocation61_spill] sm:$0xff] %v16097_v54  ;;  %v7758_v2 = vmax.f32 %v7756_v37, %v7757_v50  ;;  %v7778_v51 = vrot.slane %v7777_v38, 4  ;;  %v7785_v26 = vrot.slane %v7784_v23, 4  ;;  %v7791_v36 = vsel %vm5221_vm9, %v7147_v58, -inf }
 0x6b9   : > { %v7765_v61 = vmax.f32 %v7763_v28, %v7764_v53  ;;  %v7772_v35 = vmax.f32 %v7770_v62, %v7771_v24  ;;  %v7792_v49 = vrot.slane %v7791_v36, 4  ;;  %v7798_v15 = vsel %vm5221_vm9, %v7154_v52, -inf }
 0x6ba   : > { %v7759_v30 = vrot.slane %v7758_v2, 2  ;;  %v7779_v5 = vmax.f32 %v7777_v38, %v7778_v51  ;;  %v7786_v45 = vmax.f32 %v7784_v23, %v7785_v26  ;;  %v7799_v14 = vrot.slane %v7798_v15, 4 }
 0x6bb   : > { %v7766_v29 = vrot.slane %v7765_v61, 2  ;;  %v7773_v21 = vrot.slane %v7772_v35, 2  ;;  %v7793_v54 = vmax.f32 %v7791_v36, %v7792_v49  ;;  %v7805_v12 = vsel %vm5221_vm9, %v7155_v41, -inf }
 0x6bc   : > { %v7760_v34 = vmax.f32 %v7758_v2, %v7759_v30  ;;  %v7780_v37 = vrot.slane %v7779_v5, 2  ;;  %v7787_v50 = vrot.slane %v7786_v45, 2  ;;  %v7800_v22 = vmax.f32 %v7798_v15, %v7799_v14 }
 0x6bd   : > { %v7767_v42 = vmax.f32 %v7765_v61, %v7766_v29  ;;  %v7774_v58 = vmax.f32 %v7772_v35, %v7773_v21  ;;  %v7794_v28 = vrot.slane %v7793_v54, 2  ;;  %v7806_v62 = vrot.slane %v7805_v12, 4  ;;  %v16131_v21 = vld [vmem:[%s17540_s7 + $0x128] sm:$0xff] }
 0x6be   : > { %v7761_v53 = vrot.slane %v7760_v34, 1  ;;  %v7781_v24 = vmax.f32 %v7779_v5, %v7780_v37  ;;  %v7788_v52 = vmax.f32 %v7786_v45, %v7787_v50  ;;  %v7801_v59 = vrot.slane %v7800_v22, 2 }
 0x6bf   : > { %v7768_v38 = vrot.slane %v7767_v42, 1  ;;  %v7775_v23 = vrot.slane %v7774_v58, 1  ;;  %v7795_v51 = vmax.f32 %v7793_v54, %v7794_v28  ;;  %v7807_v26 = vmax.f32 %v7805_v12, %v7806_v62  ;;  %v16120_v54 = vld [vmem:[%s17540_s7 + $0x120] sm:$0xff] }
 0x6c0   : > { %v16106_v8 = vmax.f32 %v7760_v34, %v7761_v53  ;;  %v7782_v36 = vrot.slane %v7781_v24, 1  ;;  %v7789_v41 = vrot.slane %v7788_v52, 1  ;;  %v7802_v2 = vmax.f32 %v7800_v22, %v7801_v59 }
 0x6c1   : > { %v16108_v49 = vmax.f32 %v7767_v42, %v7768_v38  ;;  %v16110_v15 = vmax.f32 %v7774_v58, %v7775_v23  ;;  %v7796_v61 = vrot.slane %v7795_v51, 1  ;;  %v7808_v35 = vrot.slane %v7807_v26, 2 }
 0x6c2   : > { %17969 = vst [vmem:[#allocation54_spill] sm:$0xff] %v16106_v8  ;;  %v16112_v30 = vmax.f32 %v7781_v24, %v7782_v36  ;;  %v16114_v5 = vmax.f32 %v7788_v52, %v7789_v41  ;;  %v7803_v45 = vrot.slane %v7802_v2, 1  ;;  %v6644_v14 = vmax.f32 %v16060_v60, 0.0  ;;  %v18013_v8 = vld [vmem:[#allocation21_spill] sm:$0xff] }
 0x6c3   : > { %17970 = vst [vmem:[#allocation58_spill] sm:$0xff] %v16108_v49  ;;  %17971 = vst [vmem:[#allocation78_spill] sm:$0xff] %v16110_v15  ;;  %v16122_v29 = vmax.f32 %v7795_v51, %v7796_v61  ;;  %v7809_v59 = vmax.f32 %v7807_v26, %v7808_v35  ;;  %v6618_v42 = vadd.f32 %v15778_v27, %v15679_v13 }
 0x6c4   : > { %17972 = vst [vmem:[#allocation67_spill] sm:$0xff] %v16112_v30  ;;  %17973 = vst [vmem:[#allocation62_spill] sm:$0xff] %v16114_v5  ;;  %v6622_v22 = vadd.f32 %v15819_v25, %v15946_v16  ;;  %v16133_v60 = vmax.f32 %v7802_v2, %v7803_v45  ;;  %v6624_v12 = vadd.f32 %v15824_v48, %v15986_v57 }
 0x6c5   : > { %17974 = vst [vmem:[#allocation66_spill] sm:$0xff] %v16122_v29  ;;  %v7810_v50 = vrot.slane %v7809_v59, 1  ;;  %v6645_v58 = vmax.f32 %v6618_v42, 0.0 }
 0x6c6   : > { %17975 = vst [vmem:[#allocation68_spill] sm:$0xff] %v16133_v60  ;;  %v6646_v13 = vmax.f32 %v6622_v22, 0.0  ;;  %v6647_v25 = vmax.f32 %v6624_v12, 0.0 }
 0x6c7   : > { %v16143_v53 = vmax.f32 %v7809_v59, %v7810_v50  ;;  %v6832_v24 = vcombine.low %v6644_v14, %v6645_v58  ;;  %v6833_v48 = vcombine.high %v6644_v14, %v6645_v58 }
 0x6c8   : > { %v6850_v52 = vcombine.low %v6646_v13, %v6647_v25  ;;  %v6851_v38 = vcombine.high %v6646_v13, %v6647_v25 }
 0x6c9   : > { %17976 = vst [vmem:[#allocation42_spill] sm:$0xff] %v16143_v53  ;;  %v6840_v26 = vrot.slane %v6832_v24, %v17910_v43  ;;  %v6847_v36 = vrot.slane %v6833_v48, %v17910_v43 }
 0x6ca   : > { %v6858_v61 = vrot.slane %v6850_v52, %v17910_v43  ;;  %v16154_v35 = vrot.slane %v6851_v38, %v17910_v43 }
 0x6cb   : > { %v6848_v59 = vcombine.high %v6840_v26, %v6840_v26  ;;  %v6849_v42 = vcombine.high %v6847_v36, %v6847_v36  ;;  %v7162_v22 = vrot.slane %v6840_v26, %v17910_v43  ;;  %v7178_v12 = vrot.slane %v6847_v36, %v17910_v43 }
 0x6cc   : > { %v6866_v50 = vcombine.high %v6858_v61, %v6858_v61  ;;  %v16163_v13 = vrot.slane %v6858_v61, %v17910_v43  ;;  %v16167_v25 = vrot.slane %v16154_v35, %v17910_v43 }
 0x6cd   : > { %v7163_v24 = vcombine.high %v7162_v22, %v7162_v22  ;;  %v7170_v48 = vrot.slane %v6848_v59, %v17910_v43  ;;  %v7179_v52 = vcombine.high %v7178_v12, %v7178_v12  ;;  %v7186_v38 = vrot.slane %v6849_v42, %v17910_v43 }
 0x6ce   : > { %v7812_v26 = vsel %vm5221_vm9, %v7162_v22, -inf  ;;  %v7840_v36 = vsel %vm5221_vm9, %v7178_v12, -inf  ;;  %v7195_v14 = vcombine.high %v16163_v13, %v16163_v13  ;;  %v16176_v61 = vrot.slane %v6866_v50, %v17910_v43 }
 0x6cf   : > { %v7171_v45 = vcombine.high %v7170_v48, %v7170_v48  ;;  %v7187_v2 = vcombine.high %v7186_v38, %v7186_v38  ;;  %v7813_v41 = vrot.slane %v7812_v26, 4  ;;  %v7819_v51 = vsel %vm5221_vm9, %v7163_v24, -inf }
 0x6d0   : > { %v7820_v23 = vrot.slane %v7819_v51, 4  ;;  %v7826_v59 = vsel %vm5221_vm9, %v7170_v48, -inf  ;;  %v7841_v57 = vrot.slane %v7840_v36, 4  ;;  %v7847_v42 = vsel %vm5221_vm9, %v7179_v52, -inf }
 0x6d1   : > { %v7814_v22 = vmax.f32 %v7812_v26, %v7813_v41  ;;  %v7827_v62 = vrot.slane %v7826_v59, 4  ;;  %v7833_v12 = vsel %vm5221_vm9, %v7171_v45, -inf  ;;  %v7848_v28 = vrot.slane %v7847_v42, 4 }
 0x6d2   : > { %v7821_v16 = vmax.f32 %v7819_v51, %v7820_v23  ;;  %v7834_v27 = vrot.slane %v7833_v12, 4  ;;  %v7842_v50 = vmax.f32 %v7840_v36, %v7841_v57  ;;  %v7854_v37 = vsel %vm5221_vm9, %v7186_v38, -inf }
 0x6d3   : > { %v7815_v34 = vrot.slane %v7814_v22, 2  ;;  %v7828_v58 = vmax.f32 %v7826_v59, %v7827_v62  ;;  %v7849_v53 = vmax.f32 %v7847_v42, %v7848_v28  ;;  %v7855_v24 = vrot.slane %v7854_v37, 4 }
 0x6d4   : > { %v7822_v60 = vrot.slane %v7821_v16, 2  ;;  %v7835_v29 = vmax.f32 %v7833_v12, %v7834_v27  ;;  %v7843_v48 = vrot.slane %v7842_v50, 2  ;;  %v7861_v5 = vsel %vm5221_vm9, %v7187_v2, -inf }
 0x6d5   : > { %v7816_v52 = vmax.f32 %v7814_v22, %v7815_v34  ;;  %v7829_v41 = vrot.slane %v7828_v58, 2  ;;  %v7850_v26 = vrot.slane %v7849_v53, 2  ;;  %v7856_v30 = vmax.f32 %v7854_v37, %v7855_v24 }
 0x6d6   : > { %v7823_v45 = vmax.f32 %v7821_v16, %v7822_v60  ;;  %v7836_v15 = vrot.slane %v7835_v29, 2  ;;  %v7844_v23 = vmax.f32 %v7842_v50, %v7843_v48  ;;  %v7862_v51 = vrot.slane %v7861_v5, 4 }
 0x6d7   : > { %v7817_v57 = vrot.slane %v7816_v52, 1  ;;  %v7830_v36 = vmax.f32 %v7828_v58, %v7829_v41  ;;  %v7851_v38 = vmax.f32 %v7849_v53, %v7850_v26  ;;  %v7857_v49 = vrot.slane %v7856_v30, 2 }
 0x6d8   : > { %v7824_v62 = vrot.slane %v7823_v45, 1  ;;  %v7837_v28 = vmax.f32 %v7835_v29, %v7836_v15  ;;  %v7845_v59 = vrot.slane %v7844_v23, 1  ;;  %v7863_v42 = vmax.f32 %v7861_v5, %v7862_v51 }
 0x6d9   : > { %v16184_v27 = vmax.f32 %v7816_v52, %v7817_v57  ;;  %v7831_v12 = vrot.slane %v7830_v36, 1  ;;  %v7852_v2 = vrot.slane %v7851_v38, 1  ;;  %v7858_v34 = vmax.f32 %v7856_v30, %v7857_v49 }
 0x6da   : > { %v16186_v22 = vmax.f32 %v7823_v45, %v7824_v62  ;;  %v7838_v37 = vrot.slane %v7837_v28, 1  ;;  %v16188_v60 = vmax.f32 %v7844_v23, %v7845_v59  ;;  %v7864_v16 = vrot.slane %v7863_v42, 2 }
 0x6db   : > { %17977 = vst [vmem:[#allocation63_spill] sm:$0xff] %v16184_v27  ;;  %v16190_v50 = vmax.f32 %v7830_v36, %v7831_v12  ;;  %v16192_v58 = vmax.f32 %v7851_v38, %v7852_v2  ;;  %v7859_v53 = vrot.slane %v7858_v34, 1  ;;  %v7203_v15 = vcombine.high %v16176_v61, %v16176_v61 }
 0x6dc   : > { %17978 = vst [vmem:[#allocation81_spill] sm:$0xff] %v16186_v22  ;;  %17979 = vst [vmem:[#allocation73_spill] sm:$0xff] %v16188_v60  ;;  %v16196_v5 = vmax.f32 %v7837_v28, %v7838_v37  ;;  %v7865_v29 = vmax.f32 %v7863_v42, %v7864_v16  ;;  %v7211_v49 = vcombine.high %v16167_v25, %v16167_v25  ;;  %v7868_v52 = vsel %vm5221_vm9, %v16163_v13, -inf  ;;  %v18011_v22 = vld [vmem:[#allocation22_spill] sm:$0xff] }
 0x6dd   : > { %17980 = vst [vmem:[#allocation74_spill] sm:$0xff] %v16190_v50  ;;  %17981 = vst [vmem:[#allocation64_spill] sm:$0xff] %v16192_v58  ;;  %v17983_v30 = vcombine.high %v16154_v35, %v16154_v35  ;;  %v16204_v48 = vmax.f32 %v7858_v34, %v7859_v53  ;;  %v7875_v41 = vsel %vm5221_vm9, %v7195_v14, -inf  ;;  %v7882_v26 = vsel %vm5221_vm9, %v16176_v61, -inf }
 0x6de   : > { %17982 = vst [vmem:[#allocation70_spill] sm:$0xff] %v16196_v5  ;;  %v7866_v45 = vrot.slane %v7865_v29, 1  ;;  %v7869_v51 = vrot.slane %v7868_v52, 4  ;;  %v7876_v57 = vrot.slane %v7875_v41, 4  ;;  %v7883_v36 = vrot.slane %v7882_v26, 4  ;;  %v18009_v5 = vld [vmem:[#allocation34_spill] sm:$0xff] }
 0x6df   : > { %v7218_v24 = vrot.slane %v17983_v30, %v17910_v43  ;;  %17984 = vst [vmem:[#allocation85_spill] sm:$0xff] %v16204_v48  ;;  %v7889_v38 = vsel %vm5221_vm9, %v7203_v15, -inf  ;;  %v7896_v43 = vsel %vm5221_vm9, %v16167_v25, -inf  ;;  %v7903_v35 = vsel %vm5221_vm9, %v7211_v49, -inf }
 0x6e0   : > { %v16215_v62 = vmax.f32 %v7865_v29, %v7866_v45  ;;  %v7870_v13 = vmax.f32 %v7868_v52, %v7869_v51  ;;  %v7877_v28 = vmax.f32 %v7875_v41, %v7876_v57  ;;  %v7890_v14 = vrot.slane %v7889_v38, 4 }
 0x6e1   : > { %v7219_v23 = vcombine.high %v7218_v24, %v7218_v24  ;;  %v7884_v59 = vmax.f32 %v7882_v26, %v7883_v36  ;;  %v7897_v42 = vrot.slane %v7896_v43, 4  ;;  %v7904_v61 = vrot.slane %v7903_v35, 4 }
 0x6e2   : > { %17985 = vst [vmem:[#allocation49_spill] sm:$0xff] %v16215_v62  ;;  %v7910_v12 = vsel %vm5221_vm9, %v7218_v24, -inf  ;;  %v7871_v2 = vrot.slane %v7870_v13, 2  ;;  %v7878_v34 = vrot.slane %v7877_v28, 2  ;;  %v7891_v37 = vmax.f32 %v7889_v38, %v7890_v14 }
 0x6e3   : > { %v7911_v16 = vrot.slane %v7910_v12, 4  ;;  %v7885_v53 = vrot.slane %v7884_v59, 2  ;;  %v7898_v15 = vmax.f32 %v7896_v43, %v7897_v42  ;;  %v7905_v30 = vmax.f32 %v7903_v35, %v7904_v61 }
 0x6e4   : > { %v7917_v25 = vsel %vm5221_vm9, %v7219_v23, -inf  ;;  %v7872_v49 = vmax.f32 %v7870_v13, %v7871_v2  ;;  %v7879_v29 = vmax.f32 %v7877_v28, %v7878_v34  ;;  %v7892_v45 = vrot.slane %v7891_v37, 2 }
 0x6e5   : > { %v7912_v52 = vmax.f32 %v7910_v12, %v7911_v16  ;;  %v7886_v41 = vmax.f32 %v7884_v59, %v7885_v53  ;;  %v7899_v51 = vrot.slane %v7898_v15, 2  ;;  %v7906_v26 = vrot.slane %v7905_v30, 2 }
 0x6e6   : > { %v7918_v57 = vrot.slane %v7917_v25, 4  ;;  %v7873_v36 = vrot.slane %v7872_v49, 1  ;;  %v7880_v62 = vrot.slane %v7879_v29, 1  ;;  %v7893_v24 = vmax.f32 %v7891_v37, %v7892_v45 }
 0x6e7   : > { %v7913_v48 = vrot.slane %v7912_v52, 2  ;;  %v7887_v58 = vrot.slane %v7886_v41, 1  ;;  %v7900_v38 = vmax.f32 %v7898_v15, %v7899_v51  ;;  %v7907_v14 = vmax.f32 %v7905_v30, %v7906_v26 }
 0x6e8   : > { %v7919_v60 = vmax.f32 %v7917_v25, %v7918_v57  ;;  %v16219_v43 = vmax.f32 %v7872_v49, %v7873_v36  ;;  %v16221_v35 = vmax.f32 %v7879_v29, %v7880_v62  ;;  %v7894_v23 = vrot.slane %v7893_v24, 1 }
 0x6e9   : > { %v7914_v13 = vmax.f32 %v7912_v52, %v7913_v48  ;;  %v16223_v28 = vmax.f32 %v7886_v41, %v7887_v58  ;;  %v7901_v59 = vrot.slane %v7900_v38, 1  ;;  %v7908_v42 = vrot.slane %v7907_v14, 1 }
 0x6ea   : > { %17986 = vst [vmem:[#allocation79_spill] sm:$0xff] %v16219_v43  ;;  %17987 = vst [vmem:[#allocation71_spill] sm:$0xff] %v16221_v35  ;;  %v7920_v61 = vrot.slane %v7919_v60, 2  ;;  %v16225_v12 = vmax.f32 %v7893_v24, %v7894_v23  ;;  %v9656_v34 = vrot.slane %v16131_v21, 7  ;;  %v9807_v37 = vmul.f32 %v16120_v54, %v15719_v46 }
 0x6eb   : > { %17988 = vst [vmem:[#allocation76_spill] sm:$0xff] %v16223_v28  ;;  %v7915_v2 = vrot.slane %v7914_v13, 1  ;;  %v16230_v16 = vmax.f32 %v7900_v38, %v7901_v59  ;;  %v16232_v53 = vmax.f32 %v7907_v14, %v7908_v42  ;;  %v9808_v58 = vmul.f32 %v16131_v21, %v15723_v3  ;;  %v18000_v14 = vld [vmem:[#allocation30_spill] sm:$0xff]  ;;  %v18002_v59 = vld [vmem:[#allocation19_spill] sm:$0xff] }
 0x6ec   : > { %17989 = vst [vmem:[#allocation91_spill] sm:$0xff] %v16225_v12  ;;  %v7921_v62 = vmax.f32 %v7919_v60, %v7920_v61  ;;  %v17993_v15 = vrot.slane %v16120_v54, 1  ;;  %v17994_v25 = vrot.slane %v16131_v21, 1  ;;  %v17995_v29 = vrot.slane %v16120_v54, 2 }
 0x6ed   : > { %17990 = vst [vmem:[#allocation82_spill] sm:$0xff] %v16230_v16  ;;  %17991 = vst [vmem:[#allocation77_spill] sm:$0xff] %v16232_v53  ;;  %v16236_v48 = vmax.f32 %v7914_v13, %v7915_v2  ;;  %v17996_v60 = vrot.slane %v16131_v21, 2  ;;  %v17997_v51 = vrot.slane %v16120_v54, 3  ;;  %v17998_v57 = vrot.slane %v16131_v21, 3  ;;  %v18004_v2 = vld [vmem:[#allocation31_spill] sm:$0xff] }
 0x6ee   : > { %v9809_v30 = vmul.f32 %v17993_v15, %v15729_v4  ;;  %v9810_v49 = vmul.f32 %v17994_v25, %v15735_v56  ;;  %v9811_v45 = vmul.f32 %v17995_v29, %v15725_v31  ;;  %v7922_v52 = vrot.slane %v7921_v62, 1 }
 0x6ef   : > { %17992 = vst [vmem:[#allocation87_spill] sm:$0xff] %v16236_v48  ;;  %v9812_v41 = vmul.f32 %v17996_v60, %v15731_v19  ;;  %v9813_v26 = vmul.f32 %v17997_v51, %v15741_v11  ;;  %v9814_v36 = vmul.f32 %v17998_v57, %v15754_v7  ;;  %v17999_v24 = vrot.slane %v16120_v54, 4  ;;  %v18007_v60 = vld [vmem:[#allocation83_spill] sm:$0xff] }
 0x6f0   : > { %v18001_v23 = vrot.slane %v16131_v21, 4  ;;  %v18003_v42 = vrot.slane %v16120_v54, 5  ;;  %v18005_v15 = vrot.slane %v16131_v21, 5  ;;  %v16268_v29 = vmax.f32 %v7921_v62, %v7922_v52 }
 0x6f1   : > { %v9815_v38 = vmul.f32 %v17999_v24, %v15768_v9  ;;  %v18008_v51 = vrot.slane %v16120_v54, 6  ;;  %v18010_v24 = vrot.slane %v16131_v21, 6  ;;  %v9983_v48 = vrot.slane %v9809_v30, 7  ;;  %v7927_v21 = vld [vmem:[%s17540_s7] sm:$0xff] }
 0x6f2   : > { %v9816_v13 = vmul.f32 %v18001_v23, %v18000_v14  ;;  %v9817_v61 = vmul.f32 %v18003_v42, %v18002_v59  ;;  %v9818_v25 = vmul.f32 %v18005_v15, %v18004_v2  ;;  %18006 = vst [vmem:[#allocation80_spill] sm:$0xff] %v16268_v29  ;;  %v18012_v23 = vrot.slane %v16120_v54, 7 }
 0x6f3   : > { %v9819_v57 = vmul.f32 %v18008_v51, %v18007_v60  ;;  %v9820_v50 = vmul.f32 %v18010_v24, %v18009_v5  ;;  %v9822_v42 = vmul.f32 %v9656_v34, %v18013_v8  ;;  %v9985_v53 = vrot.slane %v9811_v45, 6  ;;  %v7928_v45 = vld [vmem:[%s17540_s7 + $0x8] sm:$0xff] }
 0x6f4   : > { %v9821_v27 = vmul.f32 %v18012_v23, %v18011_v22  ;;  %v9987_v16 = vrot.slane %v9813_v26, 5  ;;  %v9989_v15 = vrot.slane %v9815_v38, 4  ;;  %v9991_v62 = vrot.slane %v9817_v61, 3 }
 0x6f5   : > { %v9993_v52 = vrot.slane %v9819_v57, 2  ;;  %v9984_v12 = vsel %vm3762_vm13, %v9983_v48, %v9807_v37  ;;  %v9997_v51 = vrot.slane %v9810_v49, 7  ;;  %v9999_v28 = vrot.slane %v9812_v41, 6 }
 0x6f6   : > { %v9995_v29 = vrot.slane %v9821_v27, 1  ;;  %v10001_v35 = vrot.slane %v9814_v36, 5  ;;  %v9986_v54 = vsel %vm3750_vm12, %v9985_v53, %v9984_v12  ;;  %v10003_v24 = vrot.slane %v9816_v13, 4 }
 0x6f7   : > { %v10005_v34 = vrot.slane %v9818_v25, 3  ;;  %v10007_v30 = vrot.slane %v9820_v50, 2  ;;  %v9988_v27 = vsel %vm3752_vm14, %v9987_v16, %v9986_v54  ;;  %v9998_v37 = vsel %vm3762_vm13, %v9997_v51, %v9808_v58 }
 0x6f8   : > { %v10009_v48 = vrot.slane %v9822_v42, 1  ;;  %v7951_v49 = vrot.slane %v7927_v21, 1  ;;  %v9990_v41 = vsel %vm3754_vm15, %v9989_v15, %v9988_v27  ;;  %v10000_v26 = vsel %vm3750_vm12, %v9999_v28, %v9998_v37 }
 0x6f9   : > { %v7952_v36 = vrot.slane %v7928_v45, 1  ;;  %v7953_v38 = vrot.slane %v7927_v21, 2  ;;  %v9992_v12 = vsel %vm3756_vm0, %v9991_v62, %v9990_v41  ;;  %v10002_v50 = vsel %vm3752_vm14, %v10001_v35, %v10000_v26 }
 0x6fa   : > { %v7954_v53 = vrot.slane %v7928_v45, 2  ;;  %v7955_v13 = vrot.slane %v7927_v21, 3  ;;  %v9994_v61 = vsel %vm3758_vm1, %v9993_v52, %v9992_v12  ;;  %v10004_v16 = vsel %vm3754_vm15, %v10003_v24, %v10002_v50 }
 0x6fb   : > { %v7956_v25 = vrot.slane %v7928_v45, 3  ;;  %v7957_v58 = vrot.slane %v7927_v21, 4  ;;  %v9996_v57 = vsel %vm3760_vm3, %v9995_v29, %v9994_v61  ;;  %v10006_v23 = vsel %vm3756_vm0, %v10005_v34, %v10004_v16 }
 0x6fc   : > { %v7958_v42 = vrot.slane %v7928_v45, 4  ;;  %v7959_v28 = vrot.slane %v7927_v21, 5  ;;  %v10008_v15 = vsel %vm3758_vm1, %v10007_v30, %v10006_v23  ;;  %v7960_v51 = vrot.slane %v7928_v45, 5 }
 0x6fd   : > { %v7961_v62 = vrot.slane %v7927_v21, 6  ;;  %v7962_v54 = vrot.slane %v7928_v45, 6  ;;  %v10010_v35 = vsel %vm3760_vm3, %v10009_v48, %v10008_v15  ;;  %v7963_v27 = vrot.slane %v7927_v21, 7 }
 0x6fe   : > { %v7964_v37 = vrot.slane %v7928_v45, 7  ;;  %v8115_v52 = vmul.f32 %v7927_v21, %v15719_v46  ;;  %v10147_v24 = vadd.f32 %v10010_v35, %v9996_v57  ;;  %v8116_v41 = vmul.f32 %v7928_v45, %v15723_v3 }
 0x6ff   : > { %v8117_v29 = vmul.f32 %v7951_v49, %v15729_v4  ;;  %v8118_v34 = vmul.f32 %v7952_v36, %v15735_v56  ;;  %v8119_v26 = vmul.f32 %v7953_v38, %v15725_v31  ;;  %v8120_v30 = vmul.f32 %v7954_v53, %v15731_v19 }
 0x700   : > { %v8121_v12 = vmul.f32 %v7955_v13, %v15741_v11  ;;  %v8122_v50 = vmul.f32 %v7956_v25, %v15754_v7  ;;  %10148 = vadd.xlane.f32.xlu1 %v10147_v24  ;;  %v8123_v48 = vmul.f32 %v7957_v58, %v15768_v9  ;;  %v8124_v21 = vmul.f32 %v7958_v42, %v18000_v14 }
 0x701   : > { %v8125_v61 = vmul.f32 %v7959_v28, %v18002_v59  ;;  %v8126_v45 = vmul.f32 %v7960_v51, %v18004_v2  ;;  %v8127_v49 = vmul.f32 %v7961_v62, %v18007_v60  ;;  %v8128_v36 = vmul.f32 %v7962_v54, %v18009_v5  ;;  %v11516_v62 = vld [vmem:[%s17540_s7 + $0x180] sm:$0xff] }
 0x702   : > { %v8129_v38 = vmul.f32 %v7963_v27, %v18011_v22  ;;  %v8130_v53 = vmul.f32 %v7964_v37, %v18013_v8  ;;  %v8291_v13 = vrot.slane %v8117_v29, 7  ;;  %v8293_v16 = vrot.slane %v8119_v26, 6  ;;  %v11517_v26 = vld [vmem:[%s17540_s7 + $0x188] sm:$0xff] }
 0x703   : > { %v8295_v25 = vrot.slane %v8121_v12, 5  ;;  %v8297_v57 = vrot.slane %v8123_v48, 4  ;;  %v8299_v23 = vrot.slane %v8125_v61, 3  ;;  %v8301_v58 = vrot.slane %v8127_v49, 2 }
 0x704   : > { %v8303_v15 = vrot.slane %v8129_v38, 1  ;;  %v8305_v42 = vrot.slane %v8118_v34, 7  ;;  %v8292_v28 = vsel %vm3762_vm13, %v8291_v13, %v8115_v52  ;;  %v8307_v35 = vrot.slane %v8120_v30, 6 }
 0x705   : > { %v8309_v51 = vrot.slane %v8122_v50, 5  ;;  %v8311_v24 = vrot.slane %v8124_v21, 4  ;;  %v8294_v54 = vsel %vm3750_vm12, %v8293_v16, %v8292_v28  ;;  %v8313_v37 = vrot.slane %v8126_v45, 3 }
 0x706   : > { %v8306_v27 = vsel %vm3762_vm13, %v8305_v42, %v8116_v41  ;;  %v8315_v29 = vrot.slane %v8128_v36, 2  ;;  %v8296_v34 = vsel %vm3752_vm14, %v8295_v25, %v8294_v54  ;;  %v8317_v30 = vrot.slane %v8130_v53, 1 }
 0x707   : > { %v8308_v52 = vsel %vm3750_vm12, %v8307_v35, %v8306_v27  ;;  %v10207_v12 = vrot.slane %v11516_v62, 1  ;;  %v8298_v50 = vsel %vm3754_vm15, %v8297_v57, %v8296_v34  ;;  %v10208_v21 = vrot.slane %v11517_v26, 1 }
 0x708   : > { %v8310_v48 = vsel %vm3752_vm14, %v8309_v51, %v8308_v52  ;;  %v10209_v61 = vrot.slane %v11516_v62, 2  ;;  %v8300_v41 = vsel %vm3756_vm0, %v8299_v23, %v8298_v50  ;;  %v10210_v49 = vrot.slane %v11517_v26, 2 }
 0x709   : > { %v8312_v45 = vsel %vm3754_vm15, %v8311_v24, %v8310_v48  ;;  %v10211_v36 = vrot.slane %v11516_v62, 3  ;;  %v8302_v38 = vsel %vm3758_vm1, %v8301_v58, %v8300_v41  ;;  %v10212_v16 = vrot.slane %v11517_v26, 3 }
 0x70a   : > { %v8314_v13 = vsel %vm3756_vm0, %v8313_v37, %v8312_v45  ;;  %v10213_v25 = vrot.slane %v11516_v62, 4  ;;  %v8304_v53 = vsel %vm3760_vm3, %v8303_v15, %v8302_v38  ;;  %v10214_v42 = vrot.slane %v11517_v26, 4 }
 0x70b   : > { %v8316_v57 = vsel %vm3758_vm1, %v8315_v29, %v8314_v13  ;;  %v10215_v28 = vrot.slane %v11516_v62, 5  ;;  %v10216_v51 = vrot.slane %v11517_v26, 5  ;;  %v10217_v23 = vrot.slane %v11516_v62, 6 }
 0x70c   : > { %v8318_v35 = vsel %vm3760_vm3, %v8317_v30, %v8316_v57  ;;  %v10218_v54 = vrot.slane %v11517_v26, 6  ;;  %v10219_v27 = vrot.slane %v11516_v62, 7  ;;  %v10220_v34 = vrot.slane %v11517_v26, 7 }
 0x70d   : > { %v8455_v24 = vadd.f32 %v8318_v35, %v8304_v53  ;;  %v10371_v58 = vmul.f32 %v11516_v62, %v15719_v46  ;;  %v10372_v37 = vmul.f32 %v11517_v26, %v15723_v3  ;;  %v10373_v52 = vmul.f32 %v10207_v12, %v15729_v4 }
 0x70e   : > { %v10374_v15 = vmul.f32 %v10208_v21, %v15735_v56  ;;  %v10375_v29 = vmul.f32 %v10209_v61, %v15725_v31  ;;  %v10376_v50 = vmul.f32 %v10210_v49, %v15731_v19  ;;  %v10377_v30 = vmul.f32 %v10211_v36, %v15741_v11 }
 0x70f   : > { %8456 = vadd.xlane.f32.xlu0 %v8455_v24  ;;  %v10378_v48 = vmul.f32 %v10212_v16, %v15754_v7  ;;  %v10379_v41 = vmul.f32 %v10213_v25, %v15768_v9  ;;  %v10380_v45 = vmul.f32 %v10214_v42, %v18000_v14  ;;  %v10381_v62 = vmul.f32 %v10215_v28, %v18002_v59 }
 0x710   : > { %v10382_v26 = vmul.f32 %v10216_v51, %v18004_v2  ;;  %v10383_v12 = vmul.f32 %v10217_v23, %v18007_v60  ;;  %v10384_v21 = vmul.f32 %v10218_v54, %v18009_v5  ;;  %v10385_v61 = vmul.f32 %v10219_v27, %v18011_v22  ;;  %v11480_v54 = vld [vmem:[%s17540_s7 + $0x60] sm:$0xff] }
 0x711   : > { %v10386_v49 = vmul.f32 %v10220_v34, %v18013_v8  ;;  %v10547_v38 = vrot.slane %v10373_v52, 7  ;;  %v10549_v36 = vrot.slane %v10375_v29, 6  ;;  %v10551_v13 = vrot.slane %v10377_v30, 5 }
 0x712   : > { %v10553_v16 = vrot.slane %v10379_v41, 4  ;;  %v10555_v53 = vrot.slane %v10381_v62, 3  ;;  %v10557_v57 = vrot.slane %v10383_v12, 2  ;;  %v10559_v42 = vrot.slane %v10385_v61, 1 }
 0x713   : > { %v10548_v25 = vsel %vm3762_vm13, %v10547_v38, %v10371_v58  ;;  %v10561_v28 = vrot.slane %v10374_v15, 7  ;;  %v10563_v51 = vrot.slane %v10376_v50, 6  ;;  %v10565_v23 = vrot.slane %v10378_v48, 5  ;;  %v11481_v58 = vld [vmem:[%s17540_s7 + $0x68] sm:$0xff] }
 0x714   : > { %v10550_v35 = vsel %vm3750_vm12, %v10549_v36, %v10548_v25  ;;  %v10567_v24 = vrot.slane %v10380_v45, 4  ;;  %v10569_v52 = vrot.slane %v10382_v26, 3  ;;  %v10571_v29 = vrot.slane %v10384_v21, 2 }
 0x715   : > { %v10552_v27 = vsel %vm3752_vm14, %v10551_v13, %v10550_v35  ;;  %v10562_v34 = vsel %vm3762_vm13, %v10561_v28, %v10372_v37  ;;  %v10573_v30 = vrot.slane %v10386_v49, 1  ;;  %v8515_v48 = vrot.slane %v11480_v54, 1 }
 0x716   : > { %v10554_v15 = vsel %vm3754_vm15, %v10553_v16, %v10552_v27  ;;  %v10564_v50 = vsel %vm3750_vm12, %v10563_v51, %v10562_v34  ;;  %v8516_v62 = vrot.slane %v11481_v58, 1  ;;  %v8517_v12 = vrot.slane %v11480_v54, 2 }
 0x717   : > { %v10556_v41 = vsel %vm3756_vm0, %v10555_v53, %v10554_v15  ;;  %v10566_v45 = vsel %vm3752_vm14, %v10565_v23, %v10564_v50  ;;  %v8518_v21 = vrot.slane %v11481_v58, 2  ;;  %v8519_v61 = vrot.slane %v11480_v54, 3 }
 0x718   : > { %v10558_v37 = vsel %vm3758_vm1, %v10557_v57, %v10556_v41  ;;  %v10568_v26 = vsel %vm3754_vm15, %v10567_v24, %v10566_v45  ;;  %v8520_v13 = vrot.slane %v11481_v58, 3  ;;  %v8521_v16 = vrot.slane %v11480_v54, 4 }
 0x719   : > { %v10560_v38 = vsel %vm3760_vm3, %v10559_v42, %v10558_v37  ;;  %v10570_v36 = vsel %vm3756_vm0, %v10569_v52, %v10568_v26  ;;  %v8522_v25 = vrot.slane %v11481_v58, 4  ;;  %v8523_v53 = vrot.slane %v11480_v54, 5 }
 0x71a   : > { %v10572_v49 = vsel %vm3758_vm1, %v10571_v29, %v10570_v36  ;;  %v8524_v28 = vrot.slane %v11481_v58, 5  ;;  %v8525_v51 = vrot.slane %v11480_v54, 6  ;;  %v8526_v23 = vrot.slane %v11481_v58, 6 }
 0x71b   : > { %v10574_v35 = vsel %vm3760_vm3, %v10573_v30, %v10572_v49  ;;  %v8527_v57 = vrot.slane %v11480_v54, 7  ;;  %v8528_v24 = vrot.slane %v11481_v58, 7  ;;  %v8679_v34 = vmul.f32 %v11480_v54, %v15719_v46 }
 0x71c   : > { %v10711_v27 = vadd.f32 %v10574_v35, %v10560_v38  ;;  %v8680_v42 = vmul.f32 %v11481_v58, %v15723_v3  ;;  %v8681_v52 = vmul.f32 %v8515_v48, %v15729_v4  ;;  %v8682_v15 = vmul.f32 %v8516_v62, %v15735_v56 }
 0x71d   : > { %v8683_v29 = vmul.f32 %v8517_v12, %v15725_v31  ;;  %v8684_v50 = vmul.f32 %v8518_v21, %v15731_v19  ;;  %v8685_v30 = vmul.f32 %v8519_v61, %v15741_v11  ;;  %v8686_v41 = vmul.f32 %v8520_v13, %v15754_v7 }
 0x71e   : > { %10712 = vadd.xlane.f32.xlu1 %v10711_v27  ;;  %v8687_v45 = vmul.f32 %v8521_v16, %v15768_v9  ;;  %v8688_v37 = vmul.f32 %v8522_v25, %v18000_v14  ;;  %v8689_v54 = vmul.f32 %v8523_v53, %v18002_v59  ;;  %v8690_v58 = vmul.f32 %v8524_v28, %v18004_v2 }
 0x71f   : > { %v8691_v48 = vmul.f32 %v8525_v51, %v18007_v60  ;;  %v8692_v62 = vmul.f32 %v8526_v23, %v18009_v5  ;;  %v8693_v12 = vmul.f32 %v8527_v57, %v18011_v22  ;;  %v8694_v26 = vmul.f32 %v8528_v24, %v18013_v8  ;;  %v11528_v57 = vld [vmem:[%s17540_s7 + $0x1e0] sm:$0xff]  ;;  %v11529_v24 = vld [vmem:[%s17540_s7 + $0x1e8] sm:$0xff] }
 0x720   : > { %v8855_v21 = vrot.slane %v8681_v52, 7  ;;  %v8857_v61 = vrot.slane %v8683_v29, 6  ;;  %v8859_v38 = vrot.slane %v8685_v30, 5  ;;  %v8861_v36 = vrot.slane %v8687_v45, 4 }
 0x721   : > { %v8863_v13 = vrot.slane %v8689_v54, 3  ;;  %v8865_v16 = vrot.slane %v8691_v48, 2  ;;  %v8867_v25 = vrot.slane %v8693_v12, 1  ;;  %v8869_v53 = vrot.slane %v8682_v15, 7 }
 0x722   : > { %v8856_v49 = vsel %vm3762_vm13, %v8855_v21, %v8679_v34  ;;  %v8871_v35 = vrot.slane %v8684_v50, 6  ;;  %v8873_v51 = vrot.slane %v8686_v41, 5  ;;  %v8875_v27 = vrot.slane %v8688_v37, 4 }
 0x723   : > { %v8858_v28 = vsel %vm3750_vm12, %v8857_v61, %v8856_v49  ;;  %v8877_v23 = vrot.slane %v8690_v58, 3  ;;  %v8870_v34 = vsel %vm3762_vm13, %v8869_v53, %v8680_v42  ;;  %v8879_v29 = vrot.slane %v8692_v62, 2 }
 0x724   : > { %v8860_v52 = vsel %vm3752_vm14, %v8859_v38, %v8858_v28  ;;  %v8881_v15 = vrot.slane %v8694_v26, 1  ;;  %v8872_v30 = vsel %vm3750_vm12, %v8871_v35, %v8870_v34  ;;  %v10771_v41 = vrot.slane %v11528_v57, 1 }
 0x725   : > { %v8862_v50 = vsel %vm3754_vm15, %v8861_v36, %v8860_v52  ;;  %v10772_v45 = vrot.slane %v11529_v24, 1  ;;  %v8874_v54 = vsel %vm3752_vm14, %v8873_v51, %v8872_v30  ;;  %v10773_v58 = vrot.slane %v11528_v57, 2 }
 0x726   : > { %v8864_v37 = vsel %vm3756_vm0, %v8863_v13, %v8862_v50  ;;  %v10774_v48 = vrot.slane %v11529_v24, 2  ;;  %v8876_v21 = vsel %vm3754_vm15, %v8875_v27, %v8874_v54  ;;  %v10775_v61 = vrot.slane %v11528_v57, 3 }
 0x727   : > { %v8866_v12 = vsel %vm3758_vm1, %v8865_v16, %v8864_v37  ;;  %v10776_v42 = vrot.slane %v11529_v24, 3  ;;  %v8878_v26 = vsel %vm3756_vm0, %v8877_v23, %v8876_v21  ;;  %v10777_v38 = vrot.slane %v11528_v57, 4 }
 0x728   : > { %v8868_v62 = vsel %vm3760_vm3, %v8867_v25, %v8866_v12  ;;  %v10778_v36 = vrot.slane %v11529_v24, 4  ;;  %v8880_v49 = vsel %vm3758_vm1, %v8879_v29, %v8878_v26  ;;  %v10779_v53 = vrot.slane %v11528_v57, 5 }
 0x729   : > { %v10780_v13 = vrot.slane %v11529_v24, 5  ;;  %v10781_v35 = vrot.slane %v11528_v57, 6  ;;  %v8882_v28 = vsel %vm3760_vm3, %v8881_v15, %v8880_v49  ;;  %v10782_v51 = vrot.slane %v11529_v24, 6 }
 0x72a   : > { %v10783_v52 = vrot.slane %v11528_v57, 7  ;;  %v10784_v16 = vrot.slane %v11529_v24, 7  ;;  %v9019_v34 = vadd.f32 %v8882_v28, %v8868_v62  ;;  %v10935_v27 = vmul.f32 %v11528_v57, %v15719_v46 }
 0x72b   : > { %v10936_v50 = vmul.f32 %v11529_v24, %v15723_v3  ;;  %v10937_v25 = vmul.f32 %v10771_v41, %v15729_v4  ;;  %v10938_v23 = vmul.f32 %v10772_v45, %v15735_v56  ;;  %v10939_v30 = vmul.f32 %v10773_v58, %v15725_v31 }
 0x72c   : > { %v10940_v29 = vmul.f32 %v10774_v48, %v15731_v19  ;;  %v10941_v37 = vmul.f32 %v10775_v61, %v15741_v11  ;;  %9020 = vadd.xlane.f32.xlu0 %v9019_v34  ;;  %v10942_v15 = vmul.f32 %v10776_v42, %v15754_v7  ;;  %v10943_v54 = vmul.f32 %v10777_v38, %v15768_v9 }
 0x72d   : > { %v10944_v12 = vmul.f32 %v10778_v36, %v18000_v14  ;;  %v10945_v57 = vmul.f32 %v10779_v53, %v18002_v59  ;;  %v10946_v24 = vmul.f32 %v10780_v13, %v18004_v2  ;;  %v10947_v41 = vmul.f32 %v10781_v35, %v18007_v60  ;;  %v11492_v35 = vld [vmem:[%s17540_s7 + $0xc0] sm:$0xff] }
 0x72e   : > { %v10948_v45 = vmul.f32 %v10782_v51, %v18009_v5  ;;  %v10949_v58 = vmul.f32 %v10783_v52, %v18011_v22  ;;  %v10950_v48 = vmul.f32 %v10784_v16, %v18013_v8  ;;  %v11111_v21 = vrot.slane %v10937_v25, 7  ;;  %v11493_v25 = vld [vmem:[%s17540_s7 + $0xc8] sm:$0xff] }
 0x72f   : > { %v11113_v61 = vrot.slane %v10939_v30, 6  ;;  %v11115_v62 = vrot.slane %v10941_v37, 5  ;;  %v11117_v42 = vrot.slane %v10943_v54, 4  ;;  %v11119_v26 = vrot.slane %v10945_v57, 3 }
 0x730   : > { %v11121_v38 = vrot.slane %v10947_v41, 2  ;;  %v11123_v49 = vrot.slane %v10949_v58, 1  ;;  %v11112_v36 = vsel %vm3762_vm13, %v11111_v21, %v10935_v27  ;;  %v11125_v53 = vrot.slane %v10938_v23, 7 }
 0x731   : > { %v11127_v28 = vrot.slane %v10940_v29, 6  ;;  %v11129_v13 = vrot.slane %v10942_v15, 5  ;;  %v11114_v51 = vsel %vm3750_vm12, %v11113_v61, %v11112_v36  ;;  %v11131_v52 = vrot.slane %v10944_v12, 4 }
 0x732   : > { %v11133_v16 = vrot.slane %v10946_v24, 3  ;;  %v11135_v34 = vrot.slane %v10948_v45, 2  ;;  %v11116_v30 = vsel %vm3752_vm14, %v11115_v62, %v11114_v51  ;;  %v11126_v27 = vsel %vm3762_vm13, %v11125_v53, %v10936_v50 }
 0x733   : > { %v11137_v23 = vrot.slane %v10950_v48, 1  ;;  %v9079_v29 = vrot.slane %v11492_v35, 1  ;;  %v11118_v37 = vsel %vm3754_vm15, %v11117_v42, %v11116_v30  ;;  %v11128_v15 = vsel %vm3750_vm12, %v11127_v28, %v11126_v27 }
 0x734   : > { %v9080_v54 = vrot.slane %v11493_v25, 1  ;;  %v9081_v57 = vrot.slane %v11492_v35, 2  ;;  %v11120_v12 = vsel %vm3756_vm0, %v11119_v26, %v11118_v37  ;;  %v11130_v24 = vsel %vm3752_vm14, %v11129_v13, %v11128_v15 }
 0x735   : > { %v9082_v41 = vrot.slane %v11493_v25, 2  ;;  %v9083_v45 = vrot.slane %v11492_v35, 3  ;;  %v11122_v58 = vsel %vm3758_vm1, %v11121_v38, %v11120_v12  ;;  %v11132_v21 = vsel %vm3754_vm15, %v11131_v52, %v11130_v24 }
 0x736   : > { %v9084_v61 = vrot.slane %v11493_v25, 3  ;;  %v9085_v50 = vrot.slane %v11492_v35, 4  ;;  %v11124_v48 = vsel %vm3760_vm3, %v11123_v49, %v11122_v58  ;;  %v11134_v62 = vsel %vm3756_vm0, %v11133_v16, %v11132_v21  ;;  %v7930_v21 = vld [vmem:[%s17540_s7 + $0x18] sm:$0xff] }
 0x737   : > { %v9086_v42 = vrot.slane %v11493_v25, 4  ;;  %v9087_v36 = vrot.slane %v11492_v35, 5  ;;  %v11136_v53 = vsel %vm3758_vm1, %v11135_v34, %v11134_v62  ;;  %v9088_v28 = vrot.slane %v11493_v25, 5 }
 0x738   : > { %v9089_v26 = vrot.slane %v11492_v35, 6  ;;  %v9090_v51 = vrot.slane %v11493_v25, 6  ;;  %v11138_v13 = vsel %vm3760_vm3, %v11137_v23, %v11136_v53  ;;  %v9091_v30 = vrot.slane %v11492_v35, 7 }
 0x739   : > { %v9092_v27 = vrot.slane %v11493_v25, 7  ;;  %v9243_v38 = vmul.f32 %v11492_v35, %v15719_v46  ;;  %v11275_v52 = vadd.f32 %v11138_v13, %v11124_v48  ;;  %v9244_v37 = vmul.f32 %v11493_v25, %v15723_v3 }
 0x73a   : > { %v9245_v49 = vmul.f32 %v9079_v29, %v15729_v4  ;;  %v9246_v16 = vmul.f32 %v9080_v54, %v15735_v56  ;;  %v9247_v15 = vmul.f32 %v9081_v57, %v15725_v31  ;;  %v9248_v34 = vmul.f32 %v9082_v41, %v15731_v19 }
 0x73b   : > { %v9249_v12 = vmul.f32 %v9083_v45, %v15741_v11  ;;  %v9250_v24 = vmul.f32 %v9084_v61, %v15754_v7  ;;  %11276 = vadd.xlane.f32.xlu1 %v11275_v52  ;;  %v9251_v23 = vmul.f32 %v9085_v50, %v15768_v9  ;;  %v9252_v46 = vmul.f32 %v9086_v42, %v18000_v14 }
 0x73c   : > { %v9253_v35 = vmul.f32 %v9087_v36, %v18002_v59  ;;  %v9254_v3 = vmul.f32 %v9088_v28, %v18004_v2  ;;  %v9255_v4 = vmul.f32 %v9089_v26, %v18007_v60  ;;  %v9256_v56 = vmul.f32 %v9090_v51, %v18009_v5  ;;  %v7929_v5 = vld [vmem:[%s17540_s7 + $0x10] sm:$0xff] }
 0x73d   : > { %v9257_v31 = vmul.f32 %v9091_v30, %v18011_v22  ;;  %v9258_v19 = vmul.f32 %v9092_v27, %v18013_v8  ;;  %v9419_v11 = vrot.slane %v9245_v49, 7  ;;  %v9421_v25 = vrot.slane %v9247_v15, 6 }
 0x73e   : > { %v9423_v7 = vrot.slane %v9249_v12, 5  ;;  %v9425_v29 = vrot.slane %v9251_v23, 4  ;;  %v9427_v54 = vrot.slane %v9253_v35, 3  ;;  %v9429_v9 = vrot.slane %v9255_v4, 2 }
 0x73f   : > { %v9431_v57 = vrot.slane %v9257_v31, 1  ;;  %v9433_v14 = vrot.slane %v9246_v16, 7  ;;  %v9420_v59 = vsel %vm3762_vm13, %v9419_v11, %v9243_v38  ;;  %v9435_v41 = vrot.slane %v9248_v34, 6  ;;  %v18014_v31 = vld [vmem:[#allocation57_spill] sm:$0xff] }
 0x740   : > { %v9437_v2 = vrot.slane %v9250_v24, 5  ;;  %v9439_v45 = vrot.slane %v9252_v46, 4  ;;  %v9422_v22 = vsel %vm3750_vm12, %v9421_v25, %v9420_v59  ;;  %v9441_v60 = vrot.slane %v9254_v3, 3  ;;  %v18015_v11 = vld [vmem:[#allocation37_spill] sm:$0xff]  ;;  %v18019_v59 = vld [vmem:[#allocation27_spill] sm:$0xff] }
 0x741   : > { %v9434_v8 = vsel %vm3762_vm13, %v9433_v14, %v9244_v37  ;;  %v9443_v58 = vrot.slane %v9256_v56, 2  ;;  %v9424_v61 = vsel %vm3752_vm14, %v9423_v7, %v9422_v22  ;;  %v9445_v48 = vrot.slane %v9258_v19, 1  ;;  %v18016_v7 = vld [vmem:[#allocation86_spill] sm:$0xff] }
 0x742   : > { %v9436_v50 = vsel %vm3750_vm12, %v9435_v41, %v9434_v8  ;;  %v7965_v62 = vrot.slane %v7929_v5, 1  ;;  %v9426_v42 = vsel %vm3754_vm15, %v9425_v29, %v9424_v61  ;;  %v7966_v53 = vrot.slane %v7930_v21, 1 }
 0x743   : > { %v9438_v36 = vsel %vm3752_vm14, %v9437_v2, %v9436_v50  ;;  %v7967_v28 = vrot.slane %v7929_v5, 2  ;;  %v9428_v26 = vsel %vm3756_vm0, %v9427_v54, %v9426_v42  ;;  %v7968_v13 = vrot.slane %v7930_v21, 2  ;;  %v18017_v54 = vld [vmem:[#allocation36_spill] sm:$0xff]  ;;  %v18020_v2 = vld [vmem:[#allocation25_spill] sm:$0xff]  ;;  %v18023_v50 = vld [vmem:[#allocation43_spill] sm:$0xff] }
 0x744   : > { %v9440_v51 = vsel %vm3754_vm15, %v9439_v45, %v9438_v36  ;;  %v7969_v30 = vrot.slane %v7929_v5, 3  ;;  %v9430_v27 = vsel %vm3758_vm1, %v9429_v9, %v9428_v26  ;;  %v7970_v52 = vrot.slane %v7930_v21, 3  ;;  %v18025_v36 = vld [vmem:[#allocation35_spill] sm:$0xff] }
 0x745   : > { %v9442_v38 = vsel %vm3756_vm0, %v9441_v60, %v9440_v51  ;;  %v7971_v37 = vrot.slane %v7929_v5, 4  ;;  %v9432_v49 = vsel %vm3760_vm3, %v9431_v57, %v9430_v27  ;;  %v7972_v15 = vrot.slane %v7930_v21, 4  ;;  %v18018_v57 = vld [vmem:[#allocation39_spill] sm:$0xff]  ;;  %v18021_v60 = vld [vmem:[#allocation92_spill] sm:$0xff] }
 0x746   : > { %v9444_v16 = vsel %vm3758_vm1, %v9443_v58, %v9442_v38  ;;  %v7973_v34 = vrot.slane %v7929_v5, 5  ;;  %v7974_v24 = vrot.slane %v7930_v21, 5  ;;  %v7975_v23 = vrot.slane %v7929_v5, 6 }
 0x747   : > { %v9446_v12 = vsel %vm3760_vm3, %v9445_v48, %v9444_v16  ;;  %v7976_v46 = vrot.slane %v7930_v21, 6  ;;  %v7977_v3 = vrot.slane %v7929_v5, 7  ;;  %v7978_v4 = vrot.slane %v7930_v21, 7 }
 0x748   : > { %v9583_v35 = vadd.f32 %v9446_v12, %v9432_v49  ;;  %v8131_v56 = vmul.f32 %v7929_v5, %v15827_v40  ;;  %v8132_v19 = vmul.f32 %v7930_v21, %v18014_v31  ;;  %v8133_v25 = vmul.f32 %v7965_v62, %v18015_v11  ;;  %v18022_v21 = vld [vmem:[#allocation40_spill] sm:$0xff]  ;;  %v18024_v62 = vld [vmem:[#allocation46_spill] sm:$0xff] }
 0x749   : > { %v8134_v29 = vmul.f32 %v7966_v53, %v18016_v7  ;;  %v8135_v9 = vmul.f32 %v7967_v28, %v18017_v54  ;;  %v8136_v14 = vmul.f32 %v7968_v13, %v18018_v57  ;;  %v8137_v41 = vmul.f32 %v7969_v30, %v18019_v59  ;;  %v11506_v12 = vld [vmem:[%s17540_s7 + $0x130] sm:$0xff] }
 0x74a   : > { %9584 = vadd.xlane.f32.xlu0 %v9583_v35  ;;  %v8138_v45 = vmul.f32 %v7970_v52, %v18020_v2  ;;  %v8139_v22 = vmul.f32 %v7971_v37, %v15881_v44  ;;  %v8140_v8 = vmul.f32 %v7972_v15, %v15885_v47  ;;  %v8141_v5 = vmul.f32 %v7973_v34, %v15887_v0 }
 0x74b   : > { %v8142_v58 = vmul.f32 %v7974_v24, %v18021_v60  ;;  %v8143_v61 = vmul.f32 %v7975_v23, %v18022_v21  ;;  %v8144_v48 = vmul.f32 %v7976_v46, %v18023_v50  ;;  %v8145_v42 = vmul.f32 %v7977_v3, %v18024_v62  ;;  %v11507_v3 = vld [vmem:[%s17540_s7 + $0x138] sm:$0xff] }
 0x74c   : > { %v8146_v53 = vmul.f32 %v7978_v4, %v18025_v36  ;;  %v8319_v28 = vrot.slane %v8133_v25, 7  ;;  %v8321_v26 = vrot.slane %v8135_v9, 6  ;;  %v8323_v51 = vrot.slane %v8137_v41, 5 }
 0x74d   : > { %v8325_v13 = vrot.slane %v8139_v22, 4  ;;  %v8327_v30 = vrot.slane %v8141_v5, 3  ;;  %v8329_v38 = vrot.slane %v8143_v61, 2  ;;  %v8331_v52 = vrot.slane %v8145_v42, 1 }
 0x74e   : > { %v8320_v27 = vsel %vm3762_vm13, %v8319_v28, %v8131_v56  ;;  %v8333_v37 = vrot.slane %v8134_v29, 7  ;;  %v8335_v16 = vrot.slane %v8136_v14, 6  ;;  %v8337_v15 = vrot.slane %v8138_v45, 5 }
 0x74f   : > { %v8322_v49 = vsel %vm3750_vm12, %v8321_v26, %v8320_v27  ;;  %v8339_v34 = vrot.slane %v8140_v8, 4  ;;  %v8341_v46 = vrot.slane %v8142_v58, 3  ;;  %v8343_v35 = vrot.slane %v8144_v48, 2 }
 0x750   : > { %v8324_v24 = vsel %vm3752_vm14, %v8323_v51, %v8322_v49  ;;  %v8334_v23 = vsel %vm3762_vm13, %v8333_v37, %v8132_v19  ;;  %v8345_v25 = vrot.slane %v8146_v53, 1  ;;  %v9657_v29 = vrot.slane %v11506_v12, 1 }
 0x751   : > { %v8326_v4 = vsel %vm3754_vm15, %v8325_v13, %v8324_v24  ;;  %v8336_v56 = vsel %vm3750_vm12, %v8335_v16, %v8334_v23  ;;  %v9658_v41 = vrot.slane %v11507_v3, 1  ;;  %v9659_v45 = vrot.slane %v11506_v12, 2 }
 0x752   : > { %v8328_v9 = vsel %vm3756_vm0, %v8327_v30, %v8326_v4  ;;  %v8338_v14 = vsel %vm3752_vm14, %v8337_v15, %v8336_v56  ;;  %v9660_v8 = vrot.slane %v11507_v3, 2  ;;  %v9661_v5 = vrot.slane %v11506_v12, 3 }
 0x753   : > { %v8330_v19 = vsel %vm3758_vm1, %v8329_v38, %v8328_v9  ;;  %v8340_v22 = vsel %vm3754_vm15, %v8339_v34, %v8338_v14  ;;  %v9662_v48 = vrot.slane %v11507_v3, 3  ;;  %v9663_v42 = vrot.slane %v11506_v12, 4 }
 0x754   : > { %v8332_v58 = vsel %vm3760_vm3, %v8331_v52, %v8330_v19  ;;  %v8342_v61 = vsel %vm3756_vm0, %v8341_v46, %v8340_v22  ;;  %v9664_v28 = vrot.slane %v11507_v3, 4  ;;  %v9665_v26 = vrot.slane %v11506_v12, 5 }
 0x755   : > { %v8344_v53 = vsel %vm3758_vm1, %v8343_v35, %v8342_v61  ;;  %v9666_v51 = vrot.slane %v11507_v3, 5  ;;  %v9667_v30 = vrot.slane %v11506_v12, 6  ;;  %v9668_v27 = vrot.slane %v11507_v3, 6 }
 0x756   : > { %v8346_v13 = vsel %vm3760_vm3, %v8345_v25, %v8344_v53  ;;  %v9669_v38 = vrot.slane %v11506_v12, 7  ;;  %v9670_v49 = vrot.slane %v11507_v3, 7  ;;  %v9823_v16 = vmul.f32 %v11506_v12, %v15827_v40 }
 0x757   : > { %v8458_v37 = vadd.f32 %v8346_v13, %v8332_v58  ;;  %v9824_v52 = vmul.f32 %v11507_v3, %v18014_v31  ;;  %v9825_v15 = vmul.f32 %v9657_v29, %v18015_v11  ;;  %v9826_v34 = vmul.f32 %v9658_v41, %v18016_v7  ;;  %v11482_v13 = vld [vmem:[%s17540_s7 + $0x70] sm:$0xff] }
 0x758   : > { %v9827_v24 = vmul.f32 %v9659_v45, %v18017_v54  ;;  %v9828_v23 = vmul.f32 %v9660_v8, %v18018_v57  ;;  %v9829_v46 = vmul.f32 %v9661_v5, %v18019_v59  ;;  %v9830_v35 = vmul.f32 %v9662_v48, %v18020_v2 }
 0x759   : > { %8459 = vadd.xlane.f32.xlu1 %v8458_v37  ;;  %v9831_v4 = vmul.f32 %v9663_v42, %v15881_v44  ;;  %v9832_v56 = vmul.f32 %v9664_v28, %v15885_v47  ;;  %v9833_v12 = vmul.f32 %v9665_v26, %v15887_v0  ;;  %v9834_v3 = vmul.f32 %v9666_v51, %v18021_v60 }
 0x75a   : > { %v9835_v25 = vmul.f32 %v9667_v30, %v18022_v21  ;;  %v9836_v29 = vmul.f32 %v9668_v27, %v18023_v50  ;;  %v9837_v9 = vmul.f32 %v9669_v38, %v18024_v62  ;;  %v9838_v14 = vmul.f32 %v9670_v49, %v18025_v36  ;;  %v11483_v30 = vld [vmem:[%s17540_s7 + $0x78] sm:$0xff] }
 0x75b   : > { %v10011_v41 = vrot.slane %v9825_v15, 7  ;;  %v10013_v45 = vrot.slane %v9827_v24, 6  ;;  %v10015_v19 = vrot.slane %v9829_v46, 5  ;;  %v10017_v22 = vrot.slane %v9831_v4, 4 }
 0x75c   : > { %v10019_v8 = vrot.slane %v9833_v12, 3  ;;  %v10021_v5 = vrot.slane %v9835_v25, 2  ;;  %v10023_v61 = vrot.slane %v9837_v9, 1  ;;  %v10025_v48 = vrot.slane %v9826_v34, 7 }
 0x75d   : > { %v10012_v58 = vsel %vm3762_vm13, %v10011_v41, %v9823_v16  ;;  %v10027_v42 = vrot.slane %v9828_v23, 6  ;;  %v10029_v28 = vrot.slane %v9830_v35, 5  ;;  %v10031_v26 = vrot.slane %v9832_v56, 4 }
 0x75e   : > { %v10014_v53 = vsel %vm3750_vm12, %v10013_v45, %v10012_v58  ;;  %v10033_v51 = vrot.slane %v9834_v3, 3  ;;  %v10026_v38 = vsel %vm3762_vm13, %v10025_v48, %v9824_v52  ;;  %v10035_v37 = vrot.slane %v9836_v29, 2 }
 0x75f   : > { %v10016_v27 = vsel %vm3752_vm14, %v10015_v19, %v10014_v53  ;;  %v10037_v49 = vrot.slane %v9838_v14, 1  ;;  %v10028_v15 = vsel %vm3750_vm12, %v10027_v42, %v10026_v38  ;;  %v8529_v34 = vrot.slane %v11482_v13, 1 }
 0x760   : > { %v10018_v16 = vsel %vm3754_vm15, %v10017_v22, %v10016_v27  ;;  %v8530_v24 = vrot.slane %v11483_v30, 1  ;;  %v10030_v46 = vsel %vm3752_vm14, %v10029_v28, %v10028_v15  ;;  %v8531_v35 = vrot.slane %v11482_v13, 2 }
 0x761   : > { %v10020_v23 = vsel %vm3756_vm0, %v10019_v8, %v10018_v16  ;;  %v8532_v4 = vrot.slane %v11483_v30, 2  ;;  %v10032_v12 = vsel %vm3754_vm15, %v10031_v26, %v10030_v46  ;;  %v8533_v3 = vrot.slane %v11482_v13, 3 }
 0x762   : > { %v10022_v56 = vsel %vm3758_vm1, %v10021_v5, %v10020_v23  ;;  %v8534_v52 = vrot.slane %v11483_v30, 3  ;;  %v10034_v29 = vsel %vm3756_vm0, %v10033_v51, %v10032_v12  ;;  %v8535_v9 = vrot.slane %v11482_v13, 4 }
 0x763   : > { %v10024_v25 = vsel %vm3760_vm3, %v10023_v61, %v10022_v56  ;;  %v8536_v14 = vrot.slane %v11483_v30, 4  ;;  %v10036_v41 = vsel %vm3758_vm1, %v10035_v37, %v10034_v29  ;;  %v8537_v45 = vrot.slane %v11482_v13, 5 }
 0x764   : > { %v8538_v19 = vrot.slane %v11483_v30, 5  ;;  %v8539_v22 = vrot.slane %v11482_v13, 6  ;;  %v10038_v8 = vsel %vm3760_vm3, %v10037_v49, %v10036_v41  ;;  %v8540_v58 = vrot.slane %v11483_v30, 6  ;;  %v11518_v41 = vld [vmem:[%s17540_s7 + $0x190] sm:$0xff] }
 0x765   : > { %v8541_v48 = vrot.slane %v11482_v13, 7  ;;  %v8542_v5 = vrot.slane %v11483_v30, 7  ;;  %v10150_v42 = vadd.f32 %v10038_v8, %v10024_v25  ;;  %v8695_v53 = vmul.f32 %v11482_v13, %v15827_v40 }
 0x766   : > { %v8696_v28 = vmul.f32 %v11483_v30, %v18014_v31  ;;  %v8697_v61 = vmul.f32 %v8529_v34, %v18015_v11  ;;  %v8698_v26 = vmul.f32 %v8530_v24, %v18016_v7  ;;  %v8699_v51 = vmul.f32 %v8531_v35, %v18017_v54 }
 0x767   : > { %v8700_v27 = vmul.f32 %v8532_v4, %v18018_v57  ;;  %v8701_v38 = vmul.f32 %v8533_v3, %v18019_v59  ;;  %10151 = vadd.xlane.f32.xlu0 %v10150_v42  ;;  %v8702_v37 = vmul.f32 %v8534_v52, %v18020_v2  ;;  %v8703_v49 = vmul.f32 %v8535_v9, %v15881_v44 }
 0x768   : > { %v8704_v16 = vmul.f32 %v8536_v14, %v15885_v47  ;;  %v8705_v13 = vmul.f32 %v8537_v45, %v15887_v0  ;;  %v8706_v30 = vmul.f32 %v8538_v19, %v18021_v60  ;;  %v8707_v15 = vmul.f32 %v8539_v22, %v18022_v21 }
 0x769   : > { %v8708_v34 = vmul.f32 %v8540_v58, %v18023_v50  ;;  %v8709_v24 = vmul.f32 %v8541_v48, %v18024_v62  ;;  %v8710_v23 = vmul.f32 %v8542_v5, %v18025_v36  ;;  %v8883_v46 = vrot.slane %v8697_v61, 7  ;;  %v11519_v58 = vld [vmem:[%s17540_s7 + $0x198] sm:$0xff] }
 0x76a   : > { %v8885_v35 = vrot.slane %v8699_v51, 6  ;;  %v8887_v4 = vrot.slane %v8701_v38, 5  ;;  %v8889_v56 = vrot.slane %v8703_v49, 4  ;;  %v8891_v12 = vrot.slane %v8705_v13, 3 }
 0x76b   : > { %v8893_v3 = vrot.slane %v8707_v15, 2  ;;  %v8895_v52 = vrot.slane %v8709_v24, 1  ;;  %v8884_v25 = vsel %vm3762_vm13, %v8883_v46, %v8695_v53  ;;  %v8897_v29 = vrot.slane %v8698_v26, 7 }
 0x76c   : > { %v8899_v9 = vrot.slane %v8700_v27, 6  ;;  %v8901_v14 = vrot.slane %v8702_v37, 5  ;;  %v8886_v45 = vsel %vm3750_vm12, %v8885_v35, %v8884_v25  ;;  %v8903_v19 = vrot.slane %v8704_v16, 4 }
 0x76d   : > { %v8905_v22 = vrot.slane %v8706_v30, 3  ;;  %v8907_v8 = vrot.slane %v8708_v34, 2  ;;  %v8888_v48 = vsel %vm3752_vm14, %v8887_v4, %v8886_v45  ;;  %v8898_v5 = vsel %vm3762_vm13, %v8897_v29, %v8696_v28 }
 0x76e   : > { %v8909_v42 = vrot.slane %v8710_v23, 1  ;;  %v10221_v53 = vrot.slane %v11518_v41, 1  ;;  %v8890_v61 = vsel %vm3754_vm15, %v8889_v56, %v8888_v48  ;;  %v8900_v26 = vsel %vm3750_vm12, %v8899_v9, %v8898_v5 }
 0x76f   : > { %v10222_v51 = vrot.slane %v11519_v58, 1  ;;  %v10223_v27 = vrot.slane %v11518_v41, 2  ;;  %v8892_v38 = vsel %vm3756_vm0, %v8891_v12, %v8890_v61  ;;  %v8902_v37 = vsel %vm3752_vm14, %v8901_v14, %v8900_v26 }
 0x770   : > { %v10224_v49 = vrot.slane %v11519_v58, 2  ;;  %v10225_v16 = vrot.slane %v11518_v41, 3  ;;  %v8894_v13 = vsel %vm3758_vm1, %v8893_v3, %v8892_v38  ;;  %v8904_v30 = vsel %vm3754_vm15, %v8903_v19, %v8902_v37 }
 0x771   : > { %v10226_v15 = vrot.slane %v11519_v58, 3  ;;  %v10227_v28 = vrot.slane %v11518_v41, 4  ;;  %v8896_v34 = vsel %vm3760_vm3, %v8895_v52, %v8894_v13  ;;  %v8906_v24 = vsel %vm3756_vm0, %v8905_v22, %v8904_v30 }
 0x772   : > { %v10228_v23 = vrot.slane %v11519_v58, 4  ;;  %v10229_v46 = vrot.slane %v11518_v41, 5  ;;  %v8908_v35 = vsel %vm3758_vm1, %v8907_v8, %v8906_v24  ;;  %v10230_v4 = vrot.slane %v11519_v58, 5 }
 0x773   : > { %v10231_v56 = vrot.slane %v11518_v41, 6  ;;  %v10232_v12 = vrot.slane %v11519_v58, 6  ;;  %v8910_v25 = vsel %vm3760_vm3, %v8909_v42, %v8908_v35  ;;  %v10233_v29 = vrot.slane %v11518_v41, 7  ;;  %v11494_v35 = vld [vmem:[%s17540_s7 + $0xd0] sm:$0xff] }
 0x774   : > { %v10234_v9 = vrot.slane %v11519_v58, 7  ;;  %v10387_v3 = vmul.f32 %v11518_v41, %v15827_v40  ;;  %v9022_v14 = vadd.f32 %v8910_v25, %v8896_v34  ;;  %v10388_v45 = vmul.f32 %v11519_v58, %v18014_v31 }
 0x775   : > { %v10389_v52 = vmul.f32 %v10221_v53, %v18015_v11  ;;  %v10390_v19 = vmul.f32 %v10222_v51, %v18016_v7  ;;  %v10391_v22 = vmul.f32 %v10223_v27, %v18017_v54  ;;  %v10392_v8 = vmul.f32 %v10224_v49, %v18018_v57 }
 0x776   : > { %v10393_v48 = vmul.f32 %v10225_v16, %v18019_v59  ;;  %v10394_v5 = vmul.f32 %v10226_v15, %v18020_v2  ;;  %9023 = vadd.xlane.f32.xlu1 %v9022_v14  ;;  %v10395_v42 = vmul.f32 %v10227_v28, %v15881_v44  ;;  %v10396_v41 = vmul.f32 %v10228_v23, %v15885_v47 }
 0x777   : > { %v10397_v61 = vmul.f32 %v10229_v46, %v15887_v0  ;;  %v10398_v58 = vmul.f32 %v10230_v4, %v18021_v60  ;;  %v10399_v53 = vmul.f32 %v10231_v56, %v18022_v21  ;;  %v10400_v26 = vmul.f32 %v10232_v12, %v18023_v50 }
 0x778   : > { %v10401_v51 = vmul.f32 %v10233_v29, %v18024_v62  ;;  %v10402_v27 = vmul.f32 %v10234_v9, %v18025_v36  ;;  %v10575_v38 = vrot.slane %v10389_v52, 7  ;;  %v10577_v37 = vrot.slane %v10391_v22, 6  ;;  %v11495_v29 = vld [vmem:[%s17540_s7 + $0xd8] sm:$0xff] }
 0x779   : > { %v10579_v49 = vrot.slane %v10393_v48, 5  ;;  %v10581_v16 = vrot.slane %v10395_v42, 4  ;;  %v10583_v13 = vrot.slane %v10397_v61, 3  ;;  %v10585_v30 = vrot.slane %v10399_v53, 2 }
 0x77a   : > { %v10587_v15 = vrot.slane %v10401_v51, 1  ;;  %v10589_v28 = vrot.slane %v10390_v19, 7  ;;  %v10576_v34 = vsel %vm3762_vm13, %v10575_v38, %v10387_v3  ;;  %v10591_v24 = vrot.slane %v10392_v8, 6 }
 0x77b   : > { %v10593_v23 = vrot.slane %v10394_v5, 5  ;;  %v10595_v46 = vrot.slane %v10396_v41, 4  ;;  %v10578_v4 = vsel %vm3750_vm12, %v10577_v37, %v10576_v34  ;;  %v10597_v12 = vrot.slane %v10398_v58, 3 }
 0x77c   : > { %v10590_v56 = vsel %vm3762_vm13, %v10589_v28, %v10388_v45  ;;  %v10599_v25 = vrot.slane %v10400_v26, 2  ;;  %v10580_v9 = vsel %vm3752_vm14, %v10579_v49, %v10578_v4  ;;  %v10601_v14 = vrot.slane %v10402_v27, 1 }
 0x77d   : > { %v10592_v3 = vsel %vm3750_vm12, %v10591_v24, %v10590_v56  ;;  %v9093_v52 = vrot.slane %v11494_v35, 1  ;;  %v10582_v19 = vsel %vm3754_vm15, %v10581_v16, %v10580_v9  ;;  %v9094_v8 = vrot.slane %v11495_v29, 1 }
 0x77e   : > { %v10594_v22 = vsel %vm3752_vm14, %v10593_v23, %v10592_v3  ;;  %v9095_v48 = vrot.slane %v11494_v35, 2  ;;  %v10584_v45 = vsel %vm3756_vm0, %v10583_v13, %v10582_v19  ;;  %v9096_v42 = vrot.slane %v11495_v29, 2 }
 0x77f   : > { %v10596_v5 = vsel %vm3754_vm15, %v10595_v46, %v10594_v22  ;;  %v9097_v41 = vrot.slane %v11494_v35, 3  ;;  %v10586_v61 = vsel %vm3758_vm1, %v10585_v30, %v10584_v45  ;;  %v9098_v53 = vrot.slane %v11495_v29, 3 }
 0x780   : > { %v10598_v58 = vsel %vm3756_vm0, %v10597_v12, %v10596_v5  ;;  %v9099_v26 = vrot.slane %v11494_v35, 4  ;;  %v10588_v51 = vsel %vm3760_vm3, %v10587_v15, %v10586_v61  ;;  %v9100_v38 = vrot.slane %v11495_v29, 4 }
 0x781   : > { %v10600_v27 = vsel %vm3758_vm1, %v10599_v25, %v10598_v58  ;;  %v9101_v37 = vrot.slane %v11494_v35, 5  ;;  %v9102_v16 = vrot.slane %v11495_v29, 5  ;;  %v9103_v13 = vrot.slane %v11494_v35, 6 }
 0x782   : > { %v10602_v49 = vsel %vm3760_vm3, %v10601_v14, %v10600_v27  ;;  %v9104_v28 = vrot.slane %v11495_v29, 6  ;;  %v9105_v24 = vrot.slane %v11494_v35, 7  ;;  %v9106_v23 = vrot.slane %v11495_v29, 7 }
 0x783   : > { %v10714_v34 = vadd.f32 %v10602_v49, %v10588_v51  ;;  %v9259_v30 = vmul.f32 %v11494_v35, %v15827_v40  ;;  %v9260_v46 = vmul.f32 %v11495_v29, %v18014_v31  ;;  %v9261_v4 = vmul.f32 %v9093_v52, %v18015_v11  ;;  %v11530_v49 = vld [vmem:[%s17540_s7 + $0x1f0] sm:$0xff] }
 0x784   : > { %v9262_v15 = vmul.f32 %v9094_v8, %v18016_v7  ;;  %v9263_v56 = vmul.f32 %v9095_v48, %v18017_v54  ;;  %v9264_v12 = vmul.f32 %v9096_v42, %v18018_v57  ;;  %v9265_v25 = vmul.f32 %v9097_v41, %v18019_v59 }
 0x785   : > { %10715 = vadd.xlane.f32.xlu0 %v10714_v34  ;;  %v9266_v9 = vmul.f32 %v9098_v53, %v18020_v2  ;;  %v9267_v3 = vmul.f32 %v9099_v26, %v15881_v44  ;;  %v9268_v14 = vmul.f32 %v9100_v38, %v15885_v47  ;;  %v9269_v35 = vmul.f32 %v9101_v37, %v15887_v0 }
 0x786   : > { %v9270_v29 = vmul.f32 %v9102_v16, %v18021_v60  ;;  %v9271_v52 = vmul.f32 %v9103_v13, %v18022_v21  ;;  %v9272_v19 = vmul.f32 %v9104_v28, %v18023_v50  ;;  %v9273_v22 = vmul.f32 %v9105_v24, %v18024_v62  ;;  %v11531_v24 = vld [vmem:[%s17540_s7 + $0x1f8] sm:$0xff] }
 0x787   : > { %v9274_v8 = vmul.f32 %v9106_v23, %v18025_v36  ;;  %v9447_v48 = vrot.slane %v9261_v4, 7  ;;  %v9449_v45 = vrot.slane %v9263_v56, 6  ;;  %v9451_v5 = vrot.slane %v9265_v25, 5 }
 0x788   : > { %v9453_v42 = vrot.slane %v9267_v3, 4  ;;  %v9455_v41 = vrot.slane %v9269_v35, 3  ;;  %v9457_v58 = vrot.slane %v9271_v52, 2  ;;  %v9459_v53 = vrot.slane %v9273_v22, 1 }
 0x789   : > { %v9448_v61 = vsel %vm3762_vm13, %v9447_v48, %v9259_v30  ;;  %v9461_v26 = vrot.slane %v9262_v15, 7  ;;  %v9463_v27 = vrot.slane %v9264_v12, 6  ;;  %v9465_v38 = vrot.slane %v9266_v9, 5 }
 0x78a   : > { %v9450_v51 = vsel %vm3750_vm12, %v9449_v45, %v9448_v61  ;;  %v9467_v37 = vrot.slane %v9268_v14, 4  ;;  %v9469_v28 = vrot.slane %v9270_v29, 3  ;;  %v9471_v34 = vrot.slane %v9272_v19, 2 }
 0x78b   : > { %v9452_v16 = vsel %vm3752_vm14, %v9451_v5, %v9450_v51  ;;  %v9462_v13 = vsel %vm3762_vm13, %v9461_v26, %v9260_v46  ;;  %v9473_v4 = vrot.slane %v9274_v8, 1  ;;  %v10785_v15 = vrot.slane %v11530_v49, 1 }
 0x78c   : > { %v9454_v23 = vsel %vm3754_vm15, %v9453_v42, %v9452_v16  ;;  %v9464_v30 = vsel %vm3750_vm12, %v9463_v27, %v9462_v13  ;;  %v10786_v25 = vrot.slane %v11531_v24, 1  ;;  %v10787_v9 = vrot.slane %v11530_v49, 2 }
 0x78d   : > { %v9456_v56 = vsel %vm3756_vm0, %v9455_v41, %v9454_v23  ;;  %v9466_v12 = vsel %vm3752_vm14, %v9465_v38, %v9464_v30  ;;  %v10788_v14 = vrot.slane %v11531_v24, 2  ;;  %v10789_v35 = vrot.slane %v11530_v49, 3 }
 0x78e   : > { %v9458_v46 = vsel %vm3758_vm1, %v9457_v58, %v9456_v56  ;;  %v9468_v3 = vsel %vm3754_vm15, %v9467_v37, %v9466_v12  ;;  %v10790_v19 = vrot.slane %v11531_v24, 3  ;;  %v10791_v22 = vrot.slane %v11530_v49, 4 }
 0x78f   : > { %v9460_v29 = vsel %vm3760_vm3, %v9459_v53, %v9458_v46  ;;  %v9470_v52 = vsel %vm3756_vm0, %v9469_v28, %v9468_v3  ;;  %v10792_v48 = vrot.slane %v11531_v24, 4  ;;  %v10793_v45 = vrot.slane %v11530_v49, 5 }
 0x790   : > { %v9472_v8 = vsel %vm3758_vm1, %v9471_v34, %v9470_v52  ;;  %v10794_v5 = vrot.slane %v11531_v24, 5  ;;  %v10795_v41 = vrot.slane %v11530_v49, 6  ;;  %v10796_v61 = vrot.slane %v11531_v24, 6 }
 0x791   : > { %v9474_v42 = vsel %vm3760_vm3, %v9473_v4, %v9472_v8  ;;  %v10797_v58 = vrot.slane %v11530_v49, 7  ;;  %v10798_v51 = vrot.slane %v11531_v24, 7  ;;  %v10951_v27 = vmul.f32 %v11530_v49, %v15827_v40 }
 0x792   : > { %v9586_v26 = vadd.f32 %v9474_v42, %v9460_v29  ;;  %v10952_v53 = vmul.f32 %v11531_v24, %v18014_v31  ;;  %v10953_v38 = vmul.f32 %v10785_v15, %v18015_v11  ;;  %v10954_v37 = vmul.f32 %v10786_v25, %v18016_v7 }
 0x793   : > { %v10955_v16 = vmul.f32 %v10787_v9, %v18017_v54  ;;  %v10956_v13 = vmul.f32 %v10788_v14, %v18018_v57  ;;  %v10957_v28 = vmul.f32 %v10789_v35, %v18019_v59  ;;  %v10958_v34 = vmul.f32 %v10790_v19, %v18020_v2 }
 0x794   : > { %9587 = vadd.xlane.f32.xlu1 %v9586_v26  ;;  %v10959_v23 = vmul.f32 %v10791_v22, %v15881_v44  ;;  %v10960_v30 = vmul.f32 %v10792_v48, %v15885_v47  ;;  %v10961_v40 = vmul.f32 %v10793_v45, %v15887_v0  ;;  %v10962_v31 = vmul.f32 %v10794_v5, %v18021_v60 }
 0x795   : > { %v10963_v11 = vmul.f32 %v10795_v41, %v18022_v21  ;;  %v10964_v7 = vmul.f32 %v10796_v61, %v18023_v50  ;;  %v10965_v54 = vmul.f32 %v10797_v58, %v18024_v62  ;;  %v10966_v57 = vmul.f32 %v10798_v51, %v18025_v36  ;;  %v11484_v62 = vld [vmem:[%s17540_s7 + $0x80] sm:$0xff]  ;;  %v11485_v36 = vld [vmem:[%s17540_s7 + $0x88] sm:$0xff] }
 0x796   : > { %v11139_v49 = vrot.slane %v10953_v38, 7  ;;  %v11141_v59 = vrot.slane %v10955_v16, 6  ;;  %v11143_v24 = vrot.slane %v10957_v28, 5  ;;  %v11145_v2 = vrot.slane %v10959_v23, 4 }
 0x797   : > { %v11147_v4 = vrot.slane %v10961_v40, 3  ;;  %v11149_v44 = vrot.slane %v10963_v11, 2  ;;  %v11151_v15 = vrot.slane %v10965_v54, 1  ;;  %v11153_v0 = vrot.slane %v10954_v37, 7  ;;  %v18026_v40 = vld [vmem:[#allocation50_spill] sm:$0xff]  ;;  %v18027_v11 = vld [vmem:[#allocation33_spill] sm:$0xff] }
 0x798   : > { %v11140_v47 = vsel %vm3762_vm13, %v11139_v49, %v10951_v27  ;;  %v11155_v56 = vrot.slane %v10956_v13, 6  ;;  %v11157_v21 = vrot.slane %v10958_v34, 5  ;;  %v11159_v12 = vrot.slane %v10960_v30, 4  ;;  %v18028_v54 = vld [vmem:[#allocation52_spill] sm:$0xff]  ;;  %v18029_v49 = vld [vmem:[#allocation47_spill] sm:$0xff] }
 0x799   : > { %v11142_v60 = vsel %vm3750_vm12, %v11141_v59, %v11140_v47  ;;  %v11161_v50 = vrot.slane %v10962_v31, 3  ;;  %v11154_v9 = vsel %vm3762_vm13, %v11153_v0, %v10952_v53  ;;  %v11163_v46 = vrot.slane %v10964_v7, 2  ;;  %v18032_v47 = vld [vmem:[#allocation24_spill] sm:$0xff] }
 0x79a   : > { %v11144_v25 = vsel %vm3752_vm14, %v11143_v24, %v11142_v60  ;;  %v11165_v3 = vrot.slane %v10966_v57, 1  ;;  %v11156_v35 = vsel %vm3750_vm12, %v11155_v56, %v11154_v9  ;;  %v8543_v29 = vrot.slane %v11484_v62, 1  ;;  %v18030_v24 = vld [vmem:[#allocation41_spill] sm:$0xff] }
 0x79b   : > { %v11146_v14 = vsel %vm3754_vm15, %v11145_v2, %v11144_v25  ;;  %v8544_v52 = vrot.slane %v11485_v36, 1  ;;  %v11158_v22 = vsel %vm3752_vm14, %v11157_v21, %v11156_v35  ;;  %v8545_v8 = vrot.slane %v11484_v62, 2  ;;  %v18035_v9 = vld [vmem:[#allocation45_spill] sm:$0xff] }
 0x79c   : > { %v11148_v19 = vsel %vm3756_vm0, %v11147_v4, %v11146_v14  ;;  %v8546_v48 = vrot.slane %v11485_v36, 2  ;;  %v11160_v5 = vsel %vm3754_vm15, %v11159_v12, %v11158_v22  ;;  %v8547_v42 = vrot.slane %v11484_v62, 3  ;;  %v18031_v4 = vld [vmem:[#allocation38_spill] sm:$0xff] }
 0x79d   : > { %v11150_v45 = vsel %vm3758_vm1, %v11149_v44, %v11148_v19  ;;  %v8548_v41 = vrot.slane %v11485_v36, 3  ;;  %v11162_v58 = vsel %vm3756_vm0, %v11161_v50, %v11160_v5  ;;  %v8549_v26 = vrot.slane %v11484_v62, 4  ;;  %v18033_v50 = vld [vmem:[#allocation53_spill] sm:$0xff] }
 0x79e   : > { %v11152_v61 = vsel %vm3760_vm3, %v11151_v15, %v11150_v45  ;;  %v8550_v51 = vrot.slane %v11485_v36, 4  ;;  %v11164_v27 = vsel %vm3758_vm1, %v11163_v46, %v11162_v58  ;;  %v8551_v53 = vrot.slane %v11484_v62, 5 }
 0x79f   : > { %v8552_v38 = vrot.slane %v11485_v36, 5  ;;  %v8553_v37 = vrot.slane %v11484_v62, 6  ;;  %v11166_v16 = vsel %vm3760_vm3, %v11165_v3, %v11164_v27  ;;  %v8554_v13 = vrot.slane %v11485_v36, 6 }
 0x7a0   : > { %v8555_v28 = vrot.slane %v11484_v62, 7  ;;  %v8556_v34 = vrot.slane %v11485_v36, 7  ;;  %v11278_v23 = vadd.f32 %v11166_v16, %v11152_v61  ;;  %v8711_v30 = vmul.f32 %v11484_v62, %v15923_v17 }
 0x7a1   : > { %v8712_v31 = vmul.f32 %v11485_v36, %v18026_v40  ;;  %v8713_v7 = vmul.f32 %v8543_v29, %v18027_v11  ;;  %v8714_v57 = vmul.f32 %v8544_v52, %v18028_v54  ;;  %v8715_v59 = vmul.f32 %v8545_v8, %v18029_v49  ;;  %v18034_v36 = vld [vmem:[#allocation55_spill] sm:$0xff] }
 0x7a2   : > { %v8716_v2 = vmul.f32 %v8546_v48, %v18030_v24  ;;  %v8717_v44 = vmul.f32 %v8547_v42, %v18031_v4  ;;  %11279 = vadd.xlane.f32.xlu0 %v11278_v23  ;;  %v8718_v15 = vmul.f32 %v8548_v41, %v18032_v47  ;;  %v8719_v0 = vmul.f32 %v8549_v26, %v15962_v20  ;;  %v7931_v42 = vld [vmem:[%s17540_s7 + $0x20] sm:$0xff] }
 0x7a3   : > { %v8720_v56 = vmul.f32 %v8550_v51, %v15964_v10  ;;  %v8721_v60 = vmul.f32 %v8551_v53, %v15966_v1  ;;  %v8722_v21 = vmul.f32 %v8552_v38, %v15974_v32  ;;  %v8723_v12 = vmul.f32 %v8553_v37, %v15968_v18  ;;  %v7932_v51 = vld [vmem:[%s17540_s7 + $0x28] sm:$0xff] }
 0x7a4   : > { %v8724_v62 = vmul.f32 %v8554_v13, %v18033_v50  ;;  %v8725_v25 = vmul.f32 %v8555_v28, %v18034_v36  ;;  %v8726_v46 = vmul.f32 %v8556_v34, %v18035_v9  ;;  %v8911_v3 = vrot.slane %v8713_v7, 7 }
 0x7a5   : > { %v8913_v14 = vrot.slane %v8715_v59, 6  ;;  %v8915_v35 = vrot.slane %v8717_v44, 5  ;;  %v8917_v29 = vrot.slane %v8719_v0, 4  ;;  %v8919_v52 = vrot.slane %v8721_v60, 3 }
 0x7a6   : > { %v8921_v19 = vrot.slane %v8723_v12, 2  ;;  %v8923_v22 = vrot.slane %v8725_v25, 1  ;;  %v8912_v8 = vsel %vm3762_vm13, %v8911_v3, %v8711_v30  ;;  %v8925_v48 = vrot.slane %v8714_v57, 7 }
 0x7a7   : > { %v8927_v45 = vrot.slane %v8716_v2, 6  ;;  %v8929_v5 = vrot.slane %v8718_v15, 5  ;;  %v8914_v41 = vsel %vm3750_vm12, %v8913_v14, %v8912_v8  ;;  %v8931_v61 = vrot.slane %v8720_v56, 4 }
 0x7a8   : > { %v8933_v58 = vrot.slane %v8722_v21, 3  ;;  %v8935_v26 = vrot.slane %v8724_v62, 2  ;;  %v8916_v27 = vsel %vm3752_vm14, %v8915_v35, %v8914_v41  ;;  %v8926_v53 = vsel %vm3762_vm13, %v8925_v48, %v8712_v31 }
 0x7a9   : > { %v8937_v38 = vrot.slane %v8726_v46, 1  ;;  %v7979_v37 = vrot.slane %v7931_v42, 1  ;;  %v8918_v16 = vsel %vm3754_vm15, %v8917_v29, %v8916_v27  ;;  %v8928_v13 = vsel %vm3750_vm12, %v8927_v45, %v8926_v53 }
 0x7aa   : > { %v7980_v28 = vrot.slane %v7932_v51, 1  ;;  %v7981_v34 = vrot.slane %v7931_v42, 2  ;;  %v8920_v23 = vsel %vm3756_vm0, %v8919_v52, %v8918_v16  ;;  %v8930_v30 = vsel %vm3752_vm14, %v8929_v5, %v8928_v13 }
 0x7ab   : > { %v7982_v7 = vrot.slane %v7932_v51, 2  ;;  %v7983_v57 = vrot.slane %v7931_v42, 3  ;;  %v8922_v59 = vsel %vm3758_vm1, %v8921_v19, %v8920_v23  ;;  %v8932_v2 = vsel %vm3754_vm15, %v8931_v61, %v8930_v30 }
 0x7ac   : > { %v7984_v44 = vrot.slane %v7932_v51, 3  ;;  %v7985_v31 = vrot.slane %v7931_v42, 4  ;;  %v8924_v15 = vsel %vm3760_vm3, %v8923_v22, %v8922_v59  ;;  %v8934_v0 = vsel %vm3756_vm0, %v8933_v58, %v8932_v2 }
 0x7ad   : > { %v7986_v56 = vrot.slane %v7932_v51, 4  ;;  %v7987_v60 = vrot.slane %v7931_v42, 5  ;;  %v8936_v21 = vsel %vm3758_vm1, %v8935_v26, %v8934_v0  ;;  %v7988_v12 = vrot.slane %v7932_v51, 5 }
 0x7ae   : > { %v7989_v62 = vrot.slane %v7931_v42, 6  ;;  %v7990_v25 = vrot.slane %v7932_v51, 6  ;;  %v8938_v46 = vsel %vm3760_vm3, %v8937_v38, %v8936_v21  ;;  %v7991_v3 = vrot.slane %v7931_v42, 7 }
 0x7af   : > { %v7992_v14 = vrot.slane %v7932_v51, 7  ;;  %v8147_v35 = vmul.f32 %v7931_v42, %v15923_v17  ;;  %v9025_v29 = vadd.f32 %v8938_v46, %v8924_v15  ;;  %v8148_v52 = vmul.f32 %v7932_v51, %v18026_v40 }
 0x7b0   : > { %v8149_v19 = vmul.f32 %v7979_v37, %v18027_v11  ;;  %v8150_v22 = vmul.f32 %v7980_v28, %v18028_v54  ;;  %v8151_v8 = vmul.f32 %v7981_v34, %v18029_v49  ;;  %v8152_v48 = vmul.f32 %v7982_v7, %v18030_v24 }
 0x7b1   : > { %v8153_v45 = vmul.f32 %v7983_v57, %v18031_v4  ;;  %v8154_v5 = vmul.f32 %v7984_v44, %v18032_v47  ;;  %9026 = vadd.xlane.f32.xlu1 %v9025_v29  ;;  %v8155_v41 = vmul.f32 %v7985_v31, %v15962_v20  ;;  %v8156_v42 = vmul.f32 %v7986_v56, %v15964_v10  ;;  %v11486_v44 = vld [vmem:[%s17540_s7 + $0x90] sm:$0xff] }
 0x7b2   : > { %v8157_v61 = vmul.f32 %v7987_v60, %v15966_v1  ;;  %v8158_v58 = vmul.f32 %v7988_v12, %v15974_v32  ;;  %v8159_v26 = vmul.f32 %v7989_v62, %v15968_v18  ;;  %v8160_v51 = vmul.f32 %v7990_v25, %v18033_v50  ;;  %v11487_v60 = vld [vmem:[%s17540_s7 + $0x98] sm:$0xff] }
 0x7b3   : > { %v8161_v27 = vmul.f32 %v7991_v3, %v18034_v36  ;;  %v8162_v53 = vmul.f32 %v7992_v14, %v18035_v9  ;;  %v8347_v38 = vrot.slane %v8149_v19, 7  ;;  %v8349_v37 = vrot.slane %v8151_v8, 6 }
 0x7b4   : > { %v8351_v16 = vrot.slane %v8153_v45, 5  ;;  %v8353_v13 = vrot.slane %v8155_v41, 4  ;;  %v8355_v28 = vrot.slane %v8157_v61, 3  ;;  %v8357_v34 = vrot.slane %v8159_v26, 2 }
 0x7b5   : > { %v8359_v23 = vrot.slane %v8161_v27, 1  ;;  %v8361_v30 = vrot.slane %v8150_v22, 7  ;;  %v8348_v7 = vsel %vm3762_vm13, %v8347_v38, %v8147_v35  ;;  %v8363_v57 = vrot.slane %v8152_v48, 6 }
 0x7b6   : > { %v8365_v59 = vrot.slane %v8154_v5, 5  ;;  %v8367_v2 = vrot.slane %v8156_v42, 4  ;;  %v8350_v31 = vsel %vm3750_vm12, %v8349_v37, %v8348_v7  ;;  %v8369_v0 = vrot.slane %v8158_v58, 3  ;;  %v18037_v7 = vld [vmem:[#allocation59_spill] sm:$0xff] }
 0x7b7   : > { %v8362_v15 = vsel %vm3762_vm13, %v8361_v30, %v8148_v52  ;;  %v8371_v56 = vrot.slane %v8160_v51, 2  ;;  %v8352_v21 = vsel %vm3752_vm14, %v8351_v16, %v8350_v31  ;;  %v8373_v62 = vrot.slane %v8162_v53, 1 }
 0x7b8   : > { %v8364_v12 = vsel %vm3750_vm12, %v8363_v57, %v8362_v15  ;;  %v8557_v25 = vrot.slane %v11486_v44, 1  ;;  %v8354_v46 = vsel %vm3754_vm15, %v8353_v13, %v8352_v21  ;;  %v8558_v14 = vrot.slane %v11487_v60, 1  ;;  %v18038_v57 = vld [vmem:[#allocation44_spill] sm:$0xff]  ;;  %v18040_v15 = vld [vmem:[#allocation23_spill] sm:$0xff] }
 0x7b9   : > { %v8366_v3 = vsel %vm3752_vm14, %v8365_v59, %v8364_v12  ;;  %v8559_v35 = vrot.slane %v11486_v44, 2  ;;  %v8356_v29 = vsel %vm3756_vm0, %v8355_v28, %v8354_v46  ;;  %v8560_v19 = vrot.slane %v11487_v60, 2 }
 0x7ba   : > { %v8368_v52 = vsel %vm3754_vm15, %v8367_v2, %v8366_v3  ;;  %v8561_v22 = vrot.slane %v11486_v44, 3  ;;  %v8358_v8 = vsel %vm3758_vm1, %v8357_v34, %v8356_v29  ;;  %v8562_v45 = vrot.slane %v11487_v60, 3  ;;  %v18036_v34 = vld [vmem:[#allocation26_spill] sm:$0xff]  ;;  %v18039_v2 = vld [vmem:[#allocation60_spill] sm:$0xff] }
 0x7bb   : > { %v8370_v48 = vsel %vm3756_vm0, %v8369_v0, %v8368_v52  ;;  %v8563_v5 = vrot.slane %v11486_v44, 4  ;;  %v8360_v41 = vsel %vm3760_vm3, %v8359_v23, %v8358_v8  ;;  %v8564_v61 = vrot.slane %v11487_v60, 4  ;;  %v18046_v8 = vld [vmem:[#allocation61_spill] sm:$0xff] }
 0x7bc   : > { %v8372_v42 = vsel %vm3758_vm1, %v8371_v56, %v8370_v48  ;;  %v8565_v58 = vrot.slane %v11486_v44, 5  ;;  %v8566_v51 = vrot.slane %v11487_v60, 5  ;;  %v8567_v27 = vrot.slane %v11486_v44, 6  ;;  %v18041_v56 = vld [vmem:[#allocation51_spill] sm:$0xff] }
 0x7bd   : > { %v8374_v26 = vsel %vm3760_vm3, %v8373_v62, %v8372_v42  ;;  %v8568_v53 = vrot.slane %v11487_v60, 6  ;;  %v8569_v37 = vrot.slane %v11486_v44, 7  ;;  %v8570_v16 = vrot.slane %v11487_v60, 7 }
 0x7be   : > { %v8461_v38 = vadd.f32 %v8374_v26, %v8360_v41  ;;  %v8727_v13 = vmul.f32 %v11486_v44, %v16024_v33  ;;  %v8728_v28 = vmul.f32 %v11487_v60, %v16028_v6  ;;  %v8729_v30 = vmul.f32 %v8557_v25, %v18036_v34  ;;  %v18042_v60 = vld [vmem:[#allocation56_spill] sm:$0xff]  ;;  %v18043_v25 = vld [vmem:[#allocation65_spill] sm:$0xff] }
 0x7bf   : > { %v8730_v23 = vmul.f32 %v8558_v14, %v18037_v7  ;;  %v8731_v59 = vmul.f32 %v8559_v35, %v18038_v57  ;;  %v8732_v31 = vmul.f32 %v8560_v19, %v18039_v2  ;;  %v8733_v0 = vmul.f32 %v8561_v22, %v18040_v15  ;;  %v18044_v14 = vld [vmem:[#allocation72_spill] sm:$0xff] }
 0x7c0   : > { %8462 = vadd.xlane.f32.xlu0 %v8461_v38  ;;  %v8734_v21 = vmul.f32 %v8562_v45, %v18041_v56  ;;  %v8735_v12 = vmul.f32 %v8563_v5, %v16074_v39  ;;  %v8736_v62 = vmul.f32 %v8564_v61, %v16078_v55  ;;  %v8737_v44 = vmul.f32 %v8565_v58, %v16080_v63  ;;  %v18045_v35 = vld [vmem:[#allocation32_spill] sm:$0xff] }
 0x7c1   : > { %v8738_v46 = vmul.f32 %v8566_v51, %v18042_v60  ;;  %v8739_v3 = vmul.f32 %v8567_v27, %v18043_v25  ;;  %v8740_v29 = vmul.f32 %v8568_v53, %v18044_v14  ;;  %v8741_v52 = vmul.f32 %v8569_v37, %v18045_v35  ;;  %v11496_v53 = vld [vmem:[%s17540_s7 + $0xe0] sm:$0xff] }
 0x7c2   : > { %v8742_v19 = vmul.f32 %v8570_v16, %v18046_v8  ;;  %v8939_v48 = vrot.slane %v8729_v30, 7  ;;  %v8941_v22 = vrot.slane %v8731_v59, 6  ;;  %v8943_v41 = vrot.slane %v8733_v0, 5 }
 0x7c3   : > { %v8945_v45 = vrot.slane %v8735_v12, 4  ;;  %v8947_v42 = vrot.slane %v8737_v44, 3  ;;  %v8949_v61 = vrot.slane %v8739_v3, 2  ;;  %v8951_v26 = vrot.slane %v8741_v52, 1 }
 0x7c4   : > { %v8940_v5 = vsel %vm3762_vm13, %v8939_v48, %v8727_v13  ;;  %v8953_v58 = vrot.slane %v8730_v23, 7  ;;  %v8955_v38 = vrot.slane %v8732_v31, 6  ;;  %v8957_v27 = vrot.slane %v8734_v21, 5  ;;  %v11497_v13 = vld [vmem:[%s17540_s7 + $0xe8] sm:$0xff] }
 0x7c5   : > { %v8942_v51 = vsel %vm3750_vm12, %v8941_v22, %v8940_v5  ;;  %v8959_v43 = vrot.slane %v8736_v62, 4  ;;  %v8961_v30 = vrot.slane %v8738_v46, 3  ;;  %v8963_v59 = vrot.slane %v8740_v29, 2 }
 0x7c6   : > { %v8944_v37 = vsel %vm3752_vm14, %v8943_v41, %v8942_v51  ;;  %v8954_v16 = vsel %vm3762_vm13, %v8953_v58, %v8728_v28  ;;  %v8965_v0 = vrot.slane %v8742_v19, 1  ;;  %v9107_v21 = vrot.slane %v11496_v53, 1 }
 0x7c7   : > { %v8946_v23 = vsel %vm3754_vm15, %v8945_v45, %v8944_v37  ;;  %v8956_v31 = vsel %vm3750_vm12, %v8955_v38, %v8954_v16  ;;  %v9108_v44 = vrot.slane %v11497_v13, 1  ;;  %v9109_v3 = vrot.slane %v11496_v53, 2 }
 0x7c8   : > { %v8948_v12 = vsel %vm3756_vm0, %v8947_v42, %v8946_v23  ;;  %v8958_v62 = vsel %vm3752_vm14, %v8957_v27, %v8956_v31  ;;  %v9110_v29 = vrot.slane %v11497_v13, 2  ;;  %v9111_v52 = vrot.slane %v11496_v53, 3 }
 0x7c9   : > { %v8950_v28 = vsel %vm3758_vm1, %v8949_v61, %v8948_v12  ;;  %v8960_v46 = vsel %vm3754_vm15, %v8959_v43, %v8958_v62  ;;  %v9112_v41 = vrot.slane %v11497_v13, 3  ;;  %v9113_v45 = vrot.slane %v11496_v53, 4 }
 0x7ca   : > { %v8952_v48 = vsel %vm3760_vm3, %v8951_v26, %v8950_v28  ;;  %v8962_v22 = vsel %vm3756_vm0, %v8961_v30, %v8960_v46  ;;  %v9114_v5 = vrot.slane %v11497_v13, 4  ;;  %v9115_v42 = vrot.slane %v11496_v53, 5 }
 0x7cb   : > { %v8964_v19 = vsel %vm3758_vm1, %v8963_v59, %v8962_v22  ;;  %v9116_v58 = vrot.slane %v11497_v13, 5  ;;  %v9117_v38 = vrot.slane %v11496_v53, 6  ;;  %v9118_v27 = vrot.slane %v11497_v13, 6 }
 0x7cc   : > { %v8966_v51 = vsel %vm3760_vm3, %v8965_v0, %v8964_v19  ;;  %v9119_v61 = vrot.slane %v11496_v53, 7  ;;  %v9120_v43 = vrot.slane %v11497_v13, 7  ;;  %v9275_v16 = vmul.f32 %v11496_v53, %v15923_v17 }
 0x7cd   : > { %v9028_v37 = vadd.f32 %v8966_v51, %v8952_v48  ;;  %v9276_v26 = vmul.f32 %v11497_v13, %v18026_v40  ;;  %v9277_v30 = vmul.f32 %v9107_v21, %v18027_v11  ;;  %v9278_v23 = vmul.f32 %v9108_v44, %v18028_v54 }
 0x7ce   : > { %v9279_v59 = vmul.f32 %v9109_v3, %v18029_v49  ;;  %v9280_v31 = vmul.f32 %v9110_v29, %v18030_v24  ;;  %v9281_v0 = vmul.f32 %v9111_v52, %v18031_v4  ;;  %v9282_v12 = vmul.f32 %v9112_v41, %v18032_v47 }
 0x7cf   : > { %9029 = vadd.xlane.f32.xlu1 %v9028_v37  ;;  %v9283_v62 = vmul.f32 %v9113_v45, %v15962_v20  ;;  %v9284_v28 = vmul.f32 %v9114_v5, %v15964_v10  ;;  %v9285_v53 = vmul.f32 %v9115_v42, %v15966_v1  ;;  %v9286_v13 = vmul.f32 %v9116_v58, %v15974_v32 }
 0x7d0   : > { %v9287_v21 = vmul.f32 %v9117_v38, %v15968_v18  ;;  %v9288_v44 = vmul.f32 %v9118_v27, %v18033_v50  ;;  %v9289_v3 = vmul.f32 %v9119_v61, %v18034_v36  ;;  %v9290_v46 = vmul.f32 %v9120_v43, %v18035_v9  ;;  %v11498_v61 = vld [vmem:[%s17540_s7 + $0xf0] sm:$0xff]  ;;  %v11499_v43 = vld [vmem:[%s17540_s7 + $0xf8] sm:$0xff] }
 0x7d1   : > { %v9475_v29 = vrot.slane %v9277_v30, 7  ;;  %v9477_v52 = vrot.slane %v9279_v59, 6  ;;  %v9479_v48 = vrot.slane %v9281_v0, 5  ;;  %v9481_v22 = vrot.slane %v9283_v62, 4 }
 0x7d2   : > { %v9483_v41 = vrot.slane %v9285_v53, 3  ;;  %v9485_v45 = vrot.slane %v9287_v21, 2  ;;  %v9487_v5 = vrot.slane %v9289_v3, 1  ;;  %v9489_v42 = vrot.slane %v9278_v23, 7 }
 0x7d3   : > { %v9476_v19 = vsel %vm3762_vm13, %v9475_v29, %v9275_v16  ;;  %v9491_v51 = vrot.slane %v9280_v31, 6  ;;  %v9493_v38 = vrot.slane %v9282_v12, 5  ;;  %v9495_v37 = vrot.slane %v9284_v28, 4 }
 0x7d4   : > { %v9478_v58 = vsel %vm3750_vm12, %v9477_v52, %v9476_v19  ;;  %v9497_v27 = vrot.slane %v9286_v13, 3  ;;  %v9490_v16 = vsel %vm3762_vm13, %v9489_v42, %v9276_v26  ;;  %v9499_v59 = vrot.slane %v9288_v44, 2 }
 0x7d5   : > { %v9480_v30 = vsel %vm3752_vm14, %v9479_v48, %v9478_v58  ;;  %v9501_v23 = vrot.slane %v9290_v46, 1  ;;  %v9492_v0 = vsel %vm3750_vm12, %v9491_v51, %v9490_v16  ;;  %v9121_v12 = vrot.slane %v11498_v61, 1 }
 0x7d6   : > { %v9482_v31 = vsel %vm3754_vm15, %v9481_v22, %v9480_v30  ;;  %v9122_v62 = vrot.slane %v11499_v43, 1  ;;  %v9494_v53 = vsel %vm3752_vm14, %v9493_v38, %v9492_v0  ;;  %v9123_v13 = vrot.slane %v11498_v61, 2 }
 0x7d7   : > { %v9484_v28 = vsel %vm3756_vm0, %v9483_v41, %v9482_v31  ;;  %v9124_v21 = vrot.slane %v11499_v43, 2  ;;  %v9496_v29 = vsel %vm3754_vm15, %v9495_v37, %v9494_v53  ;;  %v9125_v52 = vrot.slane %v11498_v61, 3 }
 0x7d8   : > { %v9486_v3 = vsel %vm3758_vm1, %v9485_v45, %v9484_v28  ;;  %v9126_v26 = vrot.slane %v11499_v43, 3  ;;  %v9498_v46 = vsel %vm3756_vm0, %v9497_v27, %v9496_v29  ;;  %v9127_v48 = vrot.slane %v11498_v61, 4 }
 0x7d9   : > { %v9488_v44 = vsel %vm3760_vm3, %v9487_v5, %v9486_v3  ;;  %v9128_v22 = vrot.slane %v11499_v43, 4  ;;  %v9500_v19 = vsel %vm3758_vm1, %v9499_v59, %v9498_v46  ;;  %v9129_v42 = vrot.slane %v11498_v61, 5 }
 0x7da   : > { %v9130_v41 = vrot.slane %v11499_v43, 5  ;;  %v9131_v51 = vrot.slane %v11498_v61, 6  ;;  %v9502_v58 = vsel %vm3760_vm3, %v9501_v23, %v9500_v19  ;;  %v9132_v38 = vrot.slane %v11499_v43, 6 }
 0x7db   : > { %v9133_v30 = vrot.slane %v11498_v61, 7  ;;  %v9134_v45 = vrot.slane %v11499_v43, 7  ;;  %v9589_v16 = vadd.f32 %v9502_v58, %v9488_v44  ;;  %v9291_v37 = vmul.f32 %v11498_v61, %v16024_v33 }
 0x7dc   : > { %v9292_v31 = vmul.f32 %v11499_v43, %v16028_v6  ;;  %v9293_v5 = vmul.f32 %v9121_v12, %v18036_v34  ;;  %v9294_v27 = vmul.f32 %v9122_v62, %v18037_v7  ;;  %v9295_v0 = vmul.f32 %v9123_v13, %v18038_v57 }
 0x7dd   : > { %v9296_v59 = vmul.f32 %v9124_v21, %v18039_v2  ;;  %v9297_v28 = vmul.f32 %v9125_v52, %v18040_v15  ;;  %9590 = vadd.xlane.f32.xlu0 %v9589_v16  ;;  %v9298_v23 = vmul.f32 %v9126_v26, %v18041_v56  ;;  %v9299_v53 = vmul.f32 %v9127_v48, %v16074_v39 }
 0x7de   : > { %v9300_v3 = vmul.f32 %v9128_v22, %v16078_v55  ;;  %v9301_v61 = vmul.f32 %v9129_v42, %v16080_v63  ;;  %v9302_v43 = vmul.f32 %v9130_v41, %v18042_v60  ;;  %v9303_v12 = vmul.f32 %v9131_v51, %v18043_v25  ;;  %v11508_v51 = vld [vmem:[%s17540_s7 + $0x140] sm:$0xff] }
 0x7df   : > { %v9304_v62 = vmul.f32 %v9132_v38, %v18044_v14  ;;  %v9305_v13 = vmul.f32 %v9133_v30, %v18045_v35  ;;  %v9306_v21 = vmul.f32 %v9134_v45, %v18046_v8  ;;  %v9503_v29 = vrot.slane %v9293_v5, 7  ;;  %v11509_v5 = vld [vmem:[%s17540_s7 + $0x148] sm:$0xff] }
 0x7e0   : > { %v9505_v52 = vrot.slane %v9295_v0, 6  ;;  %v9507_v44 = vrot.slane %v9297_v28, 5  ;;  %v9509_v26 = vrot.slane %v9299_v53, 4  ;;  %v9511_v46 = vrot.slane %v9301_v61, 3 }
 0x7e1   : > { %v9513_v48 = vrot.slane %v9303_v12, 2  ;;  %v9515_v19 = vrot.slane %v9305_v13, 1  ;;  %v9504_v22 = vsel %vm3762_vm13, %v9503_v29, %v9291_v37  ;;  %v9517_v42 = vrot.slane %v9294_v27, 7 }
 0x7e2   : > { %v9519_v58 = vrot.slane %v9296_v59, 6  ;;  %v9521_v41 = vrot.slane %v9298_v23, 5  ;;  %v9506_v38 = vsel %vm3750_vm12, %v9505_v52, %v9504_v22  ;;  %v9523_v30 = vrot.slane %v9300_v3, 4 }
 0x7e3   : > { %v9525_v45 = vrot.slane %v9302_v43, 3  ;;  %v9527_v16 = vrot.slane %v9304_v62, 2  ;;  %v9508_v0 = vsel %vm3752_vm14, %v9507_v44, %v9506_v38  ;;  %v9518_v37 = vsel %vm3762_vm13, %v9517_v42, %v9292_v31 }
 0x7e4   : > { %v9529_v27 = vrot.slane %v9306_v21, 1  ;;  %v9671_v59 = vrot.slane %v11508_v51, 1  ;;  %v9510_v28 = vsel %vm3754_vm15, %v9509_v26, %v9508_v0  ;;  %v9520_v23 = vsel %vm3750_vm12, %v9519_v58, %v9518_v37 }
 0x7e5   : > { %v9672_v53 = vrot.slane %v11509_v5, 1  ;;  %v9673_v61 = vrot.slane %v11508_v51, 2  ;;  %v9512_v3 = vsel %vm3756_vm0, %v9511_v46, %v9510_v28  ;;  %v9522_v43 = vsel %vm3752_vm14, %v9521_v41, %v9520_v23 }
 0x7e6   : > { %v9674_v12 = vrot.slane %v11509_v5, 2  ;;  %v9675_v62 = vrot.slane %v11508_v51, 3  ;;  %v9514_v13 = vsel %vm3758_vm1, %v9513_v48, %v9512_v3  ;;  %v9524_v29 = vsel %vm3754_vm15, %v9523_v30, %v9522_v43 }
 0x7e7   : > { %v9676_v52 = vrot.slane %v11509_v5, 3  ;;  %v9677_v31 = vrot.slane %v11508_v51, 4  ;;  %v9516_v21 = vsel %vm3760_vm3, %v9515_v19, %v9514_v13  ;;  %v9526_v44 = vsel %vm3756_vm0, %v9525_v45, %v9524_v29 }
 0x7e8   : > { %v9678_v26 = vrot.slane %v11509_v5, 4  ;;  %v9679_v22 = vrot.slane %v11508_v51, 5  ;;  %v9528_v42 = vsel %vm3758_vm1, %v9527_v16, %v9526_v44  ;;  %v9680_v58 = vrot.slane %v11509_v5, 5 }
 0x7e9   : > { %v9681_v46 = vrot.slane %v11508_v51, 6  ;;  %v9682_v38 = vrot.slane %v11509_v5, 6  ;;  %v9530_v41 = vsel %vm3760_vm3, %v9529_v27, %v9528_v42  ;;  %v9683_v0 = vrot.slane %v11508_v51, 7 }
 0x7ea   : > { %v9684_v37 = vrot.slane %v11509_v5, 7  ;;  %v9839_v48 = vmul.f32 %v11508_v51, %v15923_v17  ;;  %v9592_v30 = vadd.f32 %v9530_v41, %v9516_v21  ;;  %v9840_v28 = vmul.f32 %v11509_v5, %v18026_v40 }
 0x7eb   : > { %v9841_v19 = vmul.f32 %v9671_v59, %v18027_v11  ;;  %v9842_v45 = vmul.f32 %v9672_v53, %v18028_v54  ;;  %v9843_v23 = vmul.f32 %v9673_v61, %v18029_v49  ;;  %v9844_v16 = vmul.f32 %v9674_v12, %v18030_v24 }
 0x7ec   : > { %v9845_v3 = vmul.f32 %v9675_v62, %v18031_v4  ;;  %v9846_v43 = vmul.f32 %v9676_v52, %v18032_v47  ;;  %9593 = vadd.xlane.f32.xlu1 %v9592_v30  ;;  %v9847_v27 = vmul.f32 %v9677_v31, %v15962_v20  ;;  %v9848_v51 = vmul.f32 %v9678_v26, %v15964_v10 }
 0x7ed   : > { %v9849_v13 = vmul.f32 %v9679_v22, %v15966_v1  ;;  %v9850_v5 = vmul.f32 %v9680_v58, %v15974_v32  ;;  %v9851_v59 = vmul.f32 %v9681_v46, %v15968_v18  ;;  %v9852_v53 = vmul.f32 %v9682_v38, %v18033_v50  ;;  %v11510_v46 = vld [vmem:[%s17540_s7 + $0x150] sm:$0xff] }
 0x7ee   : > { %v9853_v61 = vmul.f32 %v9683_v0, %v18034_v36  ;;  %v9854_v12 = vmul.f32 %v9684_v37, %v18035_v9  ;;  %v10039_v62 = vrot.slane %v9841_v19, 7  ;;  %v10041_v29 = vrot.slane %v9843_v23, 6  ;;  %v11511_v23 = vld [vmem:[%s17540_s7 + $0x158] sm:$0xff] }
 0x7ef   : > { %v10043_v52 = vrot.slane %v9845_v3, 5  ;;  %v10045_v21 = vrot.slane %v9847_v27, 4  ;;  %v10047_v44 = vrot.slane %v9849_v13, 3  ;;  %v10049_v31 = vrot.slane %v9851_v59, 2 }
 0x7f0   : > { %v10051_v42 = vrot.slane %v9853_v61, 1  ;;  %v10053_v26 = vrot.slane %v9842_v45, 7  ;;  %v10040_v22 = vsel %vm3762_vm13, %v10039_v62, %v9839_v48  ;;  %v10055_v41 = vrot.slane %v9844_v16, 6 }
 0x7f1   : > { %v10057_v58 = vrot.slane %v9846_v43, 5  ;;  %v10059_v30 = vrot.slane %v9848_v51, 4  ;;  %v10042_v38 = vsel %vm3750_vm12, %v10041_v29, %v10040_v22  ;;  %v10061_v37 = vrot.slane %v9850_v5, 3 }
 0x7f2   : > { %v10054_v0 = vsel %vm3762_vm13, %v10053_v26, %v9840_v28  ;;  %v10063_v19 = vrot.slane %v9852_v53, 2  ;;  %v10044_v45 = vsel %vm3752_vm14, %v10043_v52, %v10042_v38  ;;  %v10065_v16 = vrot.slane %v9854_v12, 1 }
 0x7f3   : > { %v10056_v48 = vsel %vm3750_vm12, %v10055_v41, %v10054_v0  ;;  %v9685_v3 = vrot.slane %v11510_v46, 1  ;;  %v10046_v43 = vsel %vm3754_vm15, %v10045_v21, %v10044_v45  ;;  %v9686_v51 = vrot.slane %v11511_v23, 1 }
 0x7f4   : > { %v10058_v27 = vsel %vm3752_vm14, %v10057_v58, %v10056_v48  ;;  %v9687_v13 = vrot.slane %v11510_v46, 2  ;;  %v10048_v28 = vsel %vm3756_vm0, %v10047_v44, %v10046_v43  ;;  %v9688_v59 = vrot.slane %v11511_v23, 2 }
 0x7f5   : > { %v10060_v5 = vsel %vm3754_vm15, %v10059_v30, %v10058_v27  ;;  %v9689_v53 = vrot.slane %v11510_v46, 3  ;;  %v10050_v61 = vsel %vm3758_vm1, %v10049_v31, %v10048_v28  ;;  %v9690_v29 = vrot.slane %v11511_v23, 3 }
 0x7f6   : > { %v10062_v62 = vsel %vm3756_vm0, %v10061_v37, %v10060_v5  ;;  %v9691_v52 = vrot.slane %v11510_v46, 4  ;;  %v10052_v12 = vsel %vm3760_vm3, %v10051_v42, %v10050_v61  ;;  %v9692_v26 = vrot.slane %v11511_v23, 4 }
 0x7f7   : > { %v10064_v21 = vsel %vm3758_vm1, %v10063_v19, %v10062_v62  ;;  %v9693_v22 = vrot.slane %v11510_v46, 5  ;;  %v9694_v58 = vrot.slane %v11511_v23, 5  ;;  %v9695_v44 = vrot.slane %v11510_v46, 6 }
 0x7f8   : > { %v10066_v41 = vsel %vm3760_vm3, %v10065_v16, %v10064_v21  ;;  %v9696_v38 = vrot.slane %v11511_v23, 6  ;;  %v9697_v0 = vrot.slane %v11510_v46, 7  ;;  %v9698_v45 = vrot.slane %v11511_v23, 7 }
 0x7f9   : > { %v10153_v30 = vadd.f32 %v10066_v41, %v10052_v12  ;;  %v9855_v31 = vmul.f32 %v11510_v46, %v16024_v33  ;;  %v9856_v37 = vmul.f32 %v11511_v23, %v16028_v6  ;;  %v9857_v48 = vmul.f32 %v9685_v3, %v18036_v34 }
 0x7fa   : > { %v9858_v42 = vmul.f32 %v9686_v51, %v18037_v7  ;;  %v9859_v19 = vmul.f32 %v9687_v13, %v18038_v57  ;;  %v9860_v43 = vmul.f32 %v9688_v59, %v18039_v2  ;;  %v9861_v16 = vmul.f32 %v9689_v53, %v18040_v15 }
 0x7fb   : > { %10154 = vadd.xlane.f32.xlu0 %v10153_v30  ;;  %v9862_v27 = vmul.f32 %v9690_v29, %v18041_v56  ;;  %v9863_v28 = vmul.f32 %v9691_v52, %v16074_v39  ;;  %v9864_v5 = vmul.f32 %v9692_v26, %v16078_v55  ;;  %v9865_v46 = vmul.f32 %v9693_v22, %v16080_v63 }
 0x7fc   : > { %v9866_v23 = vmul.f32 %v9694_v58, %v18042_v60  ;;  %v9867_v3 = vmul.f32 %v9695_v44, %v18043_v25  ;;  %v9868_v51 = vmul.f32 %v9696_v38, %v18044_v14  ;;  %v9869_v13 = vmul.f32 %v9697_v0, %v18045_v35  ;;  %v11520_v38 = vld [vmem:[%s17540_s7 + $0x1a0] sm:$0xff] }
 0x7fd   : > { %v9870_v59 = vmul.f32 %v9698_v45, %v18046_v8  ;;  %v10067_v61 = vrot.slane %v9857_v48, 7  ;;  %v10069_v53 = vrot.slane %v9859_v19, 6  ;;  %v10071_v62 = vrot.slane %v9861_v16, 5 }
 0x7fe   : > { %v10073_v29 = vrot.slane %v9863_v28, 4  ;;  %v10075_v12 = vrot.slane %v9865_v46, 3  ;;  %v10077_v21 = vrot.slane %v9867_v3, 2  ;;  %v10079_v26 = vrot.slane %v9869_v13, 1 }
 0x7ff   : > { %v10068_v52 = vsel %vm3762_vm13, %v10067_v61, %v9855_v31  ;;  %v10081_v22 = vrot.slane %v9858_v42, 7  ;;  %v10083_v58 = vrot.slane %v9860_v43, 6  ;;  %v10085_v44 = vrot.slane %v9862_v27, 5  ;;  %v11521_v31 = vld [vmem:[%s17540_s7 + $0x1a8] sm:$0xff] }
 0x800   : > { %v10070_v41 = vsel %vm3750_vm12, %v10069_v53, %v10068_v52  ;;  %v10087_v30 = vrot.slane %v9864_v5, 4  ;;  %v10089_v48 = vrot.slane %v9866_v23, 3  ;;  %v10091_v19 = vrot.slane %v9868_v51, 2 }
 0x801   : > { %v10072_v0 = vsel %vm3752_vm14, %v10071_v62, %v10070_v41  ;;  %v10082_v45 = vsel %vm3762_vm13, %v10081_v22, %v9856_v37  ;;  %v10093_v16 = vrot.slane %v9870_v59, 1  ;;  %v10235_v27 = vrot.slane %v11520_v38, 1 }
 0x802   : > { %v10074_v42 = vsel %vm3754_vm15, %v10073_v29, %v10072_v0  ;;  %v10084_v43 = vsel %vm3750_vm12, %v10083_v58, %v10082_v45  ;;  %v10236_v46 = vrot.slane %v11521_v31, 1  ;;  %v10237_v3 = vrot.slane %v11520_v38, 2 }
 0x803   : > { %v10076_v28 = vsel %vm3756_vm0, %v10075_v12, %v10074_v42  ;;  %v10086_v5 = vsel %vm3752_vm14, %v10085_v44, %v10084_v43  ;;  %v10238_v51 = vrot.slane %v11521_v31, 2  ;;  %v10239_v13 = vrot.slane %v11520_v38, 3 }
 0x804   : > { %v10078_v37 = vsel %vm3758_vm1, %v10077_v21, %v10076_v28  ;;  %v10088_v23 = vsel %vm3754_vm15, %v10087_v30, %v10086_v5  ;;  %v10240_v62 = vrot.slane %v11521_v31, 3  ;;  %v10241_v29 = vrot.slane %v11520_v38, 4 }
 0x805   : > { %v10080_v61 = vsel %vm3760_vm3, %v10079_v26, %v10078_v37  ;;  %v10090_v53 = vsel %vm3756_vm0, %v10089_v48, %v10088_v23  ;;  %v10242_v52 = vrot.slane %v11521_v31, 4  ;;  %v10243_v12 = vrot.slane %v11520_v38, 5 }
 0x806   : > { %v10092_v59 = vsel %vm3758_vm1, %v10091_v19, %v10090_v53  ;;  %v10244_v22 = vrot.slane %v11521_v31, 5  ;;  %v10245_v58 = vrot.slane %v11520_v38, 6  ;;  %v10246_v44 = vrot.slane %v11521_v31, 6 }
 0x807   : > { %v10094_v41 = vsel %vm3760_vm3, %v10093_v16, %v10092_v59  ;;  %v10247_v21 = vrot.slane %v11520_v38, 7  ;;  %v10248_v30 = vrot.slane %v11521_v31, 7  ;;  %v10403_v45 = vmul.f32 %v11520_v38, %v15923_v17 }
 0x808   : > { %v10156_v0 = vadd.f32 %v10094_v41, %v10080_v61  ;;  %v10404_v26 = vmul.f32 %v11521_v31, %v18026_v40  ;;  %v10405_v48 = vmul.f32 %v10235_v27, %v18027_v11  ;;  %v10406_v42 = vmul.f32 %v10236_v46, %v18028_v54 }
 0x809   : > { %v10407_v19 = vmul.f32 %v10237_v3, %v18029_v49  ;;  %v10408_v43 = vmul.f32 %v10238_v51, %v18030_v24  ;;  %v10409_v16 = vmul.f32 %v10239_v13, %v18031_v4  ;;  %v10410_v28 = vmul.f32 %v10240_v62, %v18032_v47 }
 0x80a   : > { %10157 = vadd.xlane.f32.xlu1 %v10156_v0  ;;  %v10411_v5 = vmul.f32 %v10241_v29, %v15962_v20  ;;  %v10412_v37 = vmul.f32 %v10242_v52, %v15964_v10  ;;  %v10413_v38 = vmul.f32 %v10243_v12, %v15966_v1  ;;  %v10414_v31 = vmul.f32 %v10244_v22, %v15974_v32 }
 0x80b   : > { %v10415_v27 = vmul.f32 %v10245_v58, %v15968_v18  ;;  %v10416_v46 = vmul.f32 %v10246_v44, %v18033_v50  ;;  %v10417_v3 = vmul.f32 %v10247_v21, %v18034_v36  ;;  %v10418_v23 = vmul.f32 %v10248_v30, %v18035_v9  ;;  %v11522_v21 = vld [vmem:[%s17540_s7 + $0x1b0] sm:$0xff]  ;;  %v11523_v30 = vld [vmem:[%s17540_s7 + $0x1b8] sm:$0xff] }
 0x80c   : > { %v10603_v51 = vrot.slane %v10405_v48, 7  ;;  %v10605_v13 = vrot.slane %v10407_v19, 6  ;;  %v10607_v61 = vrot.slane %v10409_v16, 5  ;;  %v10609_v53 = vrot.slane %v10411_v5, 4 }
 0x80d   : > { %v10611_v62 = vrot.slane %v10413_v38, 3  ;;  %v10613_v29 = vrot.slane %v10415_v27, 2  ;;  %v10615_v52 = vrot.slane %v10417_v3, 1  ;;  %v10617_v12 = vrot.slane %v10406_v42, 7 }
 0x80e   : > { %v10604_v59 = vsel %vm3762_vm13, %v10603_v51, %v10403_v45  ;;  %v10619_v41 = vrot.slane %v10408_v43, 6  ;;  %v10621_v58 = vrot.slane %v10410_v28, 5  ;;  %v10623_v0 = vrot.slane %v10412_v37, 4 }
 0x80f   : > { %v10606_v22 = vsel %vm3750_vm12, %v10605_v13, %v10604_v59  ;;  %v10625_v44 = vrot.slane %v10414_v31, 3  ;;  %v10618_v45 = vsel %vm3762_vm13, %v10617_v12, %v10404_v26  ;;  %v10627_v19 = vrot.slane %v10416_v46, 2 }
 0x810   : > { %v10608_v48 = vsel %vm3752_vm14, %v10607_v61, %v10606_v22  ;;  %v10629_v42 = vrot.slane %v10418_v23, 1  ;;  %v10620_v16 = vsel %vm3750_vm12, %v10619_v41, %v10618_v45  ;;  %v10249_v28 = vrot.slane %v11522_v21, 1 }
 0x811   : > { %v10610_v43 = vsel %vm3754_vm15, %v10609_v53, %v10608_v48  ;;  %v10250_v5 = vrot.slane %v11523_v30, 1  ;;  %v10622_v38 = vsel %vm3752_vm14, %v10621_v58, %v10620_v16  ;;  %v10251_v31 = vrot.slane %v11522_v21, 2 }
 0x812   : > { %v10612_v37 = vsel %vm3756_vm0, %v10611_v62, %v10610_v43  ;;  %v10252_v27 = vrot.slane %v11523_v30, 2  ;;  %v10624_v51 = vsel %vm3754_vm15, %v10623_v0, %v10622_v38  ;;  %v10253_v13 = vrot.slane %v11522_v21, 3 }
 0x813   : > { %v10614_v3 = vsel %vm3758_vm1, %v10613_v29, %v10612_v37  ;;  %v10254_v26 = vrot.slane %v11523_v30, 3  ;;  %v10626_v23 = vsel %vm3756_vm0, %v10625_v44, %v10624_v51  ;;  %v10255_v61 = vrot.slane %v11522_v21, 4 }
 0x814   : > { %v10616_v46 = vsel %vm3760_vm3, %v10615_v52, %v10614_v3  ;;  %v10256_v53 = vrot.slane %v11523_v30, 4  ;;  %v10628_v59 = vsel %vm3758_vm1, %v10627_v19, %v10626_v23  ;;  %v10257_v12 = vrot.slane %v11522_v21, 5 }
 0x815   : > { %v10258_v62 = vrot.slane %v11523_v30, 5  ;;  %v10259_v41 = vrot.slane %v11522_v21, 6  ;;  %v10630_v22 = vsel %vm3760_vm3, %v10629_v42, %v10628_v59  ;;  %v10260_v58 = vrot.slane %v11523_v30, 6 }
 0x816   : > { %v10261_v48 = vrot.slane %v11522_v21, 7  ;;  %v10262_v29 = vrot.slane %v11523_v30, 7  ;;  %v10717_v45 = vadd.f32 %v10630_v22, %v10616_v46  ;;  %v10419_v0 = vmul.f32 %v11522_v21, %v16024_v33 }
 0x817   : > { %v10420_v43 = vmul.f32 %v11523_v30, %v16028_v6  ;;  %v10421_v52 = vmul.f32 %v10249_v28, %v18036_v34  ;;  %v10422_v44 = vmul.f32 %v10250_v5, %v18037_v7  ;;  %v10423_v16 = vmul.f32 %v10251_v31, %v18038_v57 }
 0x818   : > { %v10424_v19 = vmul.f32 %v10252_v27, %v18039_v2  ;;  %v10425_v37 = vmul.f32 %v10253_v13, %v18040_v15  ;;  %10718 = vadd.xlane.f32.xlu0 %v10717_v45  ;;  %v10426_v42 = vmul.f32 %v10254_v26, %v18041_v56  ;;  %v10427_v38 = vmul.f32 %v10255_v61, %v16074_v39 }
 0x819   : > { %v10428_v3 = vmul.f32 %v10256_v53, %v16078_v55  ;;  %v10429_v21 = vmul.f32 %v10257_v12, %v16080_v63  ;;  %v10430_v30 = vmul.f32 %v10258_v62, %v18042_v60  ;;  %v10431_v28 = vmul.f32 %v10259_v41, %v18043_v25  ;;  %v11532_v41 = vld [vmem:[%s17540_s7 + $0x200] sm:$0xff] }
 0x81a   : > { %v10432_v5 = vmul.f32 %v10260_v58, %v18044_v14  ;;  %v10433_v31 = vmul.f32 %v10261_v48, %v18045_v35  ;;  %v10434_v27 = vmul.f32 %v10262_v29, %v18046_v8  ;;  %v10631_v51 = vrot.slane %v10421_v52, 7  ;;  %v11533_v52 = vld [vmem:[%s17540_s7 + $0x208] sm:$0xff] }
 0x81b   : > { %v10633_v13 = vrot.slane %v10423_v16, 6  ;;  %v10635_v46 = vrot.slane %v10425_v37, 5  ;;  %v10637_v26 = vrot.slane %v10427_v38, 4  ;;  %v10639_v23 = vrot.slane %v10429_v21, 3 }
 0x81c   : > { %v10641_v61 = vrot.slane %v10431_v28, 2  ;;  %v10643_v59 = vrot.slane %v10433_v31, 1  ;;  %v10632_v53 = vsel %vm3762_vm13, %v10631_v51, %v10419_v0  ;;  %v10645_v12 = vrot.slane %v10422_v44, 7 }
 0x81d   : > { %v10647_v22 = vrot.slane %v10424_v19, 6  ;;  %v10649_v62 = vrot.slane %v10426_v42, 5  ;;  %v10634_v58 = vsel %vm3750_vm12, %v10633_v13, %v10632_v53  ;;  %v10651_v48 = vrot.slane %v10428_v3, 4 }
 0x81e   : > { %v10653_v29 = vrot.slane %v10430_v30, 3  ;;  %v10655_v45 = vrot.slane %v10432_v5, 2  ;;  %v10636_v16 = vsel %vm3752_vm14, %v10635_v46, %v10634_v58  ;;  %v10646_v0 = vsel %vm3762_vm13, %v10645_v12, %v10420_v43 }
 0x81f   : > { %v10657_v44 = vrot.slane %v10434_v27, 1  ;;  %v10799_v19 = vrot.slane %v11532_v41, 1  ;;  %v10638_v37 = vsel %vm3754_vm15, %v10637_v26, %v10636_v16  ;;  %v10648_v42 = vsel %vm3750_vm12, %v10647_v22, %v10646_v0 }
 0x820   : > { %v10800_v38 = vrot.slane %v11533_v52, 1  ;;  %v10801_v21 = vrot.slane %v11532_v41, 2  ;;  %v10640_v3 = vsel %vm3756_vm0, %v10639_v23, %v10638_v37  ;;  %v10650_v30 = vsel %vm3752_vm14, %v10649_v62, %v10648_v42 }
 0x821   : > { %v10802_v28 = vrot.slane %v11533_v52, 2  ;;  %v10803_v5 = vrot.slane %v11532_v41, 3  ;;  %v10642_v31 = vsel %vm3758_vm1, %v10641_v61, %v10640_v3  ;;  %v10652_v51 = vsel %vm3754_vm15, %v10651_v48, %v10650_v30 }
 0x822   : > { %v10804_v13 = vrot.slane %v11533_v52, 3  ;;  %v10805_v43 = vrot.slane %v11532_v41, 4  ;;  %v10644_v27 = vsel %vm3760_vm3, %v10643_v59, %v10642_v31  ;;  %v10654_v46 = vsel %vm3756_vm0, %v10653_v29, %v10652_v51  ;;  %v11535_v51 = vld [vmem:[%s17540_s7 + $0x218] sm:$0xff] }
 0x823   : > { %v10806_v26 = vrot.slane %v11533_v52, 4  ;;  %v10807_v53 = vrot.slane %v11532_v41, 5  ;;  %v10656_v12 = vsel %vm3758_vm1, %v10655_v45, %v10654_v46  ;;  %v10808_v22 = vrot.slane %v11533_v52, 5 }
 0x824   : > { %v10809_v23 = vrot.slane %v11532_v41, 6  ;;  %v10810_v58 = vrot.slane %v11533_v52, 6  ;;  %v10658_v62 = vsel %vm3760_vm3, %v10657_v44, %v10656_v12  ;;  %v10811_v16 = vrot.slane %v11532_v41, 7 }
 0x825   : > { %v10812_v0 = vrot.slane %v11533_v52, 7  ;;  %v10967_v61 = vmul.f32 %v11532_v41, %v15923_v17  ;;  %v10720_v48 = vadd.f32 %v10658_v62, %v10644_v27  ;;  %v10968_v37 = vmul.f32 %v11533_v52, %v18026_v40 }
 0x826   : > { %v10969_v59 = vmul.f32 %v10799_v19, %v18027_v11  ;;  %v10970_v29 = vmul.f32 %v10800_v38, %v18028_v54  ;;  %v10971_v42 = vmul.f32 %v10801_v21, %v18029_v49  ;;  %v10972_v45 = vmul.f32 %v10802_v28, %v18030_v24 }
 0x827   : > { %v10973_v3 = vmul.f32 %v10803_v5, %v18031_v4  ;;  %v10974_v30 = vmul.f32 %v10804_v13, %v18032_v47  ;;  %10721 = vadd.xlane.f32.xlu1 %v10720_v48  ;;  %v10975_v44 = vmul.f32 %v10805_v43, %v15962_v20  ;;  %v10976_v17 = vmul.f32 %v10806_v26, %v15964_v10 }
 0x828   : > { %v10977_v41 = vmul.f32 %v10807_v53, %v15966_v1  ;;  %v10978_v40 = vmul.f32 %v10808_v22, %v15974_v32  ;;  %v10979_v11 = vmul.f32 %v10809_v23, %v15968_v18  ;;  %v10980_v54 = vmul.f32 %v10810_v58, %v18033_v50  ;;  %v11534_v18 = vld [vmem:[%s17540_s7 + $0x210] sm:$0xff] }
 0x829   : > { %v10981_v49 = vmul.f32 %v10811_v16, %v18034_v36  ;;  %v10982_v24 = vmul.f32 %v10812_v0, %v18035_v9  ;;  %v11167_v4 = vrot.slane %v10969_v59, 7  ;;  %v11169_v52 = vrot.slane %v10971_v42, 6 }
 0x82a   : > { %v11171_v47 = vrot.slane %v10973_v3, 5  ;;  %v11173_v19 = vrot.slane %v10975_v44, 4  ;;  %v11175_v38 = vrot.slane %v10977_v41, 3  ;;  %v11177_v20 = vrot.slane %v10979_v11, 2 }
 0x82b   : > { %v11179_v21 = vrot.slane %v10981_v49, 1  ;;  %v11181_v10 = vrot.slane %v10970_v29, 7  ;;  %v11168_v1 = vsel %vm3762_vm13, %v11167_v4, %v10967_v61  ;;  %v11183_v28 = vrot.slane %v10972_v45, 6 }
 0x82c   : > { %v11185_v32 = vrot.slane %v10974_v30, 5  ;;  %v11187_v5 = vrot.slane %v10976_v17, 4  ;;  %v11170_v50 = vsel %vm3750_vm12, %v11169_v52, %v11168_v1  ;;  %v11189_v9 = vrot.slane %v10978_v40, 3 }
 0x82d   : > { %v11182_v36 = vsel %vm3762_vm13, %v11181_v10, %v10968_v37  ;;  %v11191_v31 = vrot.slane %v10980_v54, 2  ;;  %v11172_v13 = vsel %vm3752_vm14, %v11171_v47, %v11170_v50  ;;  %v11193_v27 = vrot.slane %v10982_v24, 1 }
 0x82e   : > { %v11184_v43 = vsel %vm3750_vm12, %v11183_v28, %v11182_v36  ;;  %v10813_v46 = vrot.slane %v11534_v18, 1  ;;  %v11174_v26 = vsel %vm3754_vm15, %v11173_v19, %v11172_v13  ;;  %v10814_v12 = vrot.slane %v11535_v51, 1 }
 0x82f   : > { %v11186_v53 = vsel %vm3752_vm14, %v11185_v32, %v11184_v43  ;;  %v10815_v22 = vrot.slane %v11534_v18, 2  ;;  %v11176_v23 = vsel %vm3756_vm0, %v11175_v38, %v11174_v26  ;;  %v10816_v62 = vrot.slane %v11535_v51, 2 }
 0x830   : > { %v11188_v58 = vsel %vm3754_vm15, %v11187_v5, %v11186_v53  ;;  %v10817_v16 = vrot.slane %v11534_v18, 3  ;;  %v11178_v0 = vsel %vm3758_vm1, %v11177_v20, %v11176_v23  ;;  %v10818_v48 = vrot.slane %v11535_v51, 3  ;;  %v7933_v23 = vld [vmem:[%s17540_s7 + $0x30] sm:$0xff] }
 0x831   : > { %v11190_v61 = vsel %vm3756_vm0, %v11189_v9, %v11188_v58  ;;  %v10819_v37 = vrot.slane %v11534_v18, 4  ;;  %v11180_v59 = vsel %vm3760_vm3, %v11179_v21, %v11178_v0  ;;  %v10820_v42 = vrot.slane %v11535_v51, 4 }
 0x832   : > { %v11192_v29 = vsel %vm3758_vm1, %v11191_v31, %v11190_v61  ;;  %v10821_v45 = vrot.slane %v11534_v18, 5  ;;  %v10822_v30 = vrot.slane %v11535_v51, 5  ;;  %v10823_v44 = vrot.slane %v11534_v18, 6  ;;  %v7934_v61 = vld [vmem:[%s17540_s7 + $0x38] sm:$0xff] }
 0x833   : > { %v11194_v3 = vsel %vm3760_vm3, %v11193_v27, %v11192_v29  ;;  %v10824_v17 = vrot.slane %v11535_v51, 6  ;;  %v10825_v40 = vrot.slane %v11534_v18, 7  ;;  %v10826_v11 = vrot.slane %v11535_v51, 7 }
 0x834   : > { %v11281_v41 = vadd.f32 %v11194_v3, %v11180_v59  ;;  %v10983_v54 = vmul.f32 %v11534_v18, %v16024_v33  ;;  %v10984_v49 = vmul.f32 %v11535_v51, %v16028_v6  ;;  %v10985_v24 = vmul.f32 %v10813_v46, %v18036_v34 }
 0x835   : > { %v10986_v4 = vmul.f32 %v10814_v12, %v18037_v7  ;;  %v10987_v52 = vmul.f32 %v10815_v22, %v18038_v57  ;;  %v10988_v47 = vmul.f32 %v10816_v62, %v18039_v2  ;;  %v10989_v19 = vmul.f32 %v10817_v16, %v18040_v15 }
 0x836   : > { %11282 = vadd.xlane.f32.xlu0 %v11281_v41  ;;  %v10990_v38 = vmul.f32 %v10818_v48, %v18041_v56  ;;  %v10991_v20 = vmul.f32 %v10819_v37, %v16074_v39  ;;  %v10992_v21 = vmul.f32 %v10820_v42, %v16078_v55  ;;  %v10993_v10 = vmul.f32 %v10821_v45, %v16080_v63 }
 0x837   : > { %v10994_v1 = vmul.f32 %v10822_v30, %v18042_v60  ;;  %v10995_v28 = vmul.f32 %v10823_v44, %v18043_v25  ;;  %v10996_v32 = vmul.f32 %v10824_v17, %v18044_v14  ;;  %v10997_v5 = vmul.f32 %v10825_v40, %v18045_v35 }
 0x838   : > { %v10998_v18 = vmul.f32 %v10826_v11, %v18046_v8  ;;  %v11195_v50 = vrot.slane %v10985_v24, 7  ;;  %v11197_v36 = vrot.slane %v10987_v52, 6  ;;  %v11199_v9 = vrot.slane %v10989_v19, 5 }
 0x839   : > { %v11201_v31 = vrot.slane %v10991_v20, 4  ;;  %v11203_v51 = vrot.slane %v10993_v10, 3  ;;  %v11205_v43 = vrot.slane %v10995_v28, 2  ;;  %v11207_v27 = vrot.slane %v10997_v5, 1 }
 0x83a   : > { %v11196_v13 = vsel %vm3762_vm13, %v11195_v50, %v10983_v54  ;;  %v11209_v46 = vrot.slane %v10986_v4, 7  ;;  %v11211_v53 = vrot.slane %v10988_v47, 6  ;;  %v11213_v12 = vrot.slane %v10990_v38, 5 }
 0x83b   : > { %v11198_v26 = vsel %vm3750_vm12, %v11197_v36, %v11196_v13  ;;  %v11215_v22 = vrot.slane %v10992_v21, 4  ;;  %v11217_v16 = vrot.slane %v10994_v1, 3  ;;  %v11219_v0 = vrot.slane %v10996_v32, 2 }
 0x83c   : > { %v11200_v58 = vsel %vm3752_vm14, %v11199_v9, %v11198_v26  ;;  %v11210_v62 = vsel %vm3762_vm13, %v11209_v46, %v10984_v49  ;;  %v11221_v59 = vrot.slane %v10998_v18, 1  ;;  %v7993_v29 = vrot.slane %v7933_v23, 1 }
 0x83d   : > { %v11202_v48 = vsel %vm3754_vm15, %v11201_v31, %v11200_v58  ;;  %v11212_v37 = vsel %vm3750_vm12, %v11211_v53, %v11210_v62  ;;  %v7994_v3 = vrot.slane %v7934_v61, 1  ;;  %v7995_v30 = vrot.slane %v7933_v23, 2 }
 0x83e   : > { %v11204_v42 = vsel %vm3756_vm0, %v11203_v51, %v11202_v48  ;;  %v11214_v45 = vsel %vm3752_vm14, %v11213_v12, %v11212_v37  ;;  %v7996_v41 = vrot.slane %v7934_v61, 2  ;;  %v7997_v40 = vrot.slane %v7933_v23, 3 }
 0x83f   : > { %v11206_v44 = vsel %vm3758_vm1, %v11205_v43, %v11204_v42  ;;  %v11216_v17 = vsel %vm3754_vm15, %v11215_v22, %v11214_v45  ;;  %v7998_v49 = vrot.slane %v7934_v61, 3  ;;  %v7999_v24 = vrot.slane %v7933_v23, 4  ;;  %v7938_v22 = vld [vmem:[%s17540_s7 + $0x58] sm:$0xf] }
 0x840   : > { %v11208_v11 = vsel %vm3760_vm3, %v11207_v27, %v11206_v44  ;;  %v11218_v54 = vsel %vm3756_vm0, %v11217_v16, %v11216_v17  ;;  %v8000_v52 = vrot.slane %v7934_v61, 4  ;;  %v8001_v47 = vrot.slane %v7933_v23, 5 }
 0x841   : > { %v11220_v4 = vsel %vm3758_vm1, %v11219_v0, %v11218_v54  ;;  %v8002_v19 = vrot.slane %v7934_v61, 5  ;;  %v8003_v20 = vrot.slane %v7933_v23, 6  ;;  %v8004_v21 = vrot.slane %v7934_v61, 6 }
 0x842   : > { %v11222_v38 = vsel %vm3760_vm3, %v11221_v59, %v11220_v4  ;;  %v8005_v10 = vrot.slane %v7933_v23, 7  ;;  %v8006_v28 = vrot.slane %v7934_v61, 7  ;;  %v8163_v32 = vmul.f32 %v7933_v23, %v16024_v33 }
 0x843   : > { %v11284_v1 = vadd.f32 %v11222_v38, %v11208_v11  ;;  %v8164_v5 = vmul.f32 %v7934_v61, %v16028_v6  ;;  %v8165_v18 = vmul.f32 %v7993_v29, %v18036_v34  ;;  %v8166_v50 = vmul.f32 %v7994_v3, %v18037_v7  ;;  %v18047_v11 = vld [vmem:[#allocation79_spill] sm:$0xff] }
 0x844   : > { %v8167_v36 = vmul.f32 %v7995_v30, %v18038_v57  ;;  %v8168_v9 = vmul.f32 %v7996_v41, %v18039_v2  ;;  %v8169_v31 = vmul.f32 %v7997_v40, %v18040_v15  ;;  %v8170_v51 = vmul.f32 %v7998_v49, %v18041_v56  ;;  %v18048_v49 = vld [vmem:[#allocation71_spill] sm:$0xff] }
 0x845   : > { %11285 = vadd.xlane.f32.xlu1 %v11284_v1  ;;  %v8171_v13 = vmul.f32 %v7999_v24, %v16074_v39  ;;  %v8172_v43 = vmul.f32 %v8000_v52, %v16078_v55  ;;  %v8173_v33 = vmul.f32 %v8001_v47, %v16080_v63  ;;  %v8174_v6 = vmul.f32 %v8002_v19, %v18042_v60  ;;  %v7937_v60 = vld [vmem:[%s17540_s7 + $0x50] sm:$0xf]  ;;  %v18049_v52 = vld [vmem:[#allocation76_spill] sm:$0xff]  ;;  %v18050_v19 = vld [vmem:[#allocation91_spill] sm:$0xff] }
 0x846   : > { %v8175_v34 = vmul.f32 %v8003_v20, %v18043_v25  ;;  %v8176_v7 = vmul.f32 %v8004_v21, %v18044_v14  ;;  %v8177_v57 = vmul.f32 %v8005_v10, %v18045_v35  ;;  %v8178_v2 = vmul.f32 %v8006_v28, %v18046_v8  ;;  %v18051_v20 = vld [vmem:[#allocation82_spill] sm:$0xff]  ;;  %v18052_v1 = vld [vmem:[#allocation77_spill] sm:$0xff] }
 0x847   : > { %v8375_v27 = vrot.slane %v8165_v18, 7  ;;  %v8377_v15 = vrot.slane %v8167_v36, 6  ;;  %v8379_v46 = vrot.slane %v8169_v31, 5  ;;  %v8381_v56 = vrot.slane %v8171_v13, 4  ;;  %v18054_v18 = vld [vmem:[#allocation80_spill] sm:$0xff] }
 0x848   : > { %v8383_v26 = vrot.slane %v8173_v33, 3  ;;  %v8385_v39 = vrot.slane %v8175_v34, 2  ;;  %v8387_v53 = vrot.slane %v8177_v57, 1  ;;  %v8389_v63 = vrot.slane %v8166_v50, 7  ;;  %v7935_v36 = vld [vmem:[%s17540_s7 + $0x40] sm:$0xff] }
 0x849   : > { %v8376_v55 = vsel %vm3762_vm13, %v8375_v27, %v8163_v32  ;;  %v8391_v12 = vrot.slane %v8168_v9, 6  ;;  %v8393_v14 = vrot.slane %v8170_v51, 5  ;;  %v8395_v35 = vrot.slane %v8172_v43, 4  ;;  %v18053_v32 = vld [vmem:[#allocation87_spill] sm:$0xff]  ;;  %v7936_v43 = vld [vmem:[%s17540_s7 + $0x48] sm:$0xff] }
 0x84a   : > { %v8378_v25 = vsel %vm3750_vm12, %v8377_v15, %v8376_v55  ;;  %v8397_v8 = vrot.slane %v8174_v6, 3  ;;  %v8390_v58 = vsel %vm3762_vm13, %v8389_v63, %v8164_v5  ;;  %v8399_v62 = vrot.slane %v8176_v7, 2 }
 0x84b   : > { %v8380_v23 = vsel %vm3752_vm14, %v8379_v46, %v8378_v25  ;;  %v8401_v16 = vrot.slane %v8178_v2, 1  ;;  %v8392_v61 = vsel %vm3750_vm12, %v8391_v12, %v8390_v58  ;;  %v8021_v48 = vrot.slane %v7937_v60, 1 }
 0x84c   : > { %v8382_v0 = vsel %vm3754_vm15, %v8381_v56, %v8380_v23  ;;  %v8022_v37 = vrot.slane %v7938_v22, 1  ;;  %v8394_v29 = vsel %vm3752_vm14, %v8393_v14, %v8392_v61  ;;  %v8023_v42 = vrot.slane %v7937_v60, 2 }
 0x84d   : > { %v8384_v59 = vsel %vm3756_vm0, %v8383_v26, %v8382_v0  ;;  %v8024_v45 = vrot.slane %v7938_v22, 2  ;;  %v8396_v30 = vsel %vm3754_vm15, %v8395_v35, %v8394_v29  ;;  %v8025_v44 = vrot.slane %v7937_v60, 3  ;;  %v18055_v0 = vld [vmem:[#allocation54_spill] sm:$0xff] }
 0x84e   : > { %v8386_v3 = vsel %vm3758_vm1, %v8385_v39, %v8384_v59  ;;  %v8026_v17 = vrot.slane %v7938_v22, 3  ;;  %v8398_v40 = vsel %vm3756_vm0, %v8397_v8, %v8396_v30  ;;  %v8195_v54 = vmul.f32 %v7937_v60, %v18047_v11  ;;  %v18057_v59 = vld [vmem:[#allocation78_spill] sm:$0xff] }
 0x84f   : > { %v8388_v41 = vsel %vm3760_vm3, %v8387_v53, %v8386_v3  ;;  %v8196_v24 = vmul.f32 %v7938_v22, %v18048_v49  ;;  %v8400_v4 = vsel %vm3758_vm1, %v8399_v62, %v8398_v40  ;;  %v8197_v47 = vmul.f32 %v8021_v48, %v18049_v52  ;;  %v18056_v48 = vld [vmem:[#allocation58_spill] sm:$0xff] }
 0x850   : > { %v8198_v38 = vmul.f32 %v8022_v37, %v18050_v19  ;;  %v8199_v21 = vmul.f32 %v8023_v42, %v18051_v20  ;;  %v8402_v10 = vsel %vm3760_vm3, %v8401_v16, %v8400_v4  ;;  %v8200_v28 = vmul.f32 %v8024_v45, %v18052_v1  ;;  %v18058_v42 = vld [vmem:[#allocation67_spill] sm:$0xff]  ;;  %v18059_v3 = vld [vmem:[#allocation62_spill] sm:$0xff] }
 0x851   : > { %v8201_v5 = vmul.f32 %v8025_v44, %v18053_v32  ;;  %v8202_v50 = vmul.f32 %v8026_v17, %v18054_v18  ;;  %v8464_v9 = vadd.f32 %v8402_v10, %v8388_v41  ;;  %v8431_v31 = vrot.slane %v8197_v47, 7  ;;  %v18060_v44 = vld [vmem:[#allocation66_spill] sm:$0xff]  ;;  %v18061_v41 = vld [vmem:[#allocation68_spill] sm:$0xff]  ;;  %v18063_v4 = vld [vmem:[#allocation63_spill] sm:$0xff] }
 0x852   : > { %v8433_v51 = vrot.slane %v8199_v21, 6  ;;  %v8437_v13 = vrot.slane %v8198_v38, 7  ;;  %v8439_v6 = vrot.slane %v8200_v28, 6  ;;  %v8007_v7 = vrot.slane %v7935_v36, 1  ;;  %v18064_v38 = vld [vmem:[#allocation81_spill] sm:$0xff]  ;;  %v18065_v10 = vld [vmem:[#allocation74_spill] sm:$0xff] }
 0x853   : > { %v8435_v33 = vrot.slane %v8201_v5, 5  ;;  %v8441_v34 = vrot.slane %v8202_v50, 5  ;;  %8465 = vadd.xlane.f32.xlu0 %v8464_v9  ;;  %v8432_v57 = vsel %vm3762_vm13, %v8431_v31, %v8195_v54  ;;  %v8008_v27 = vrot.slane %v7936_v43, 1  ;;  %v18062_v54 = vld [vmem:[#allocation42_spill] sm:$0xff]  ;;  %v18068_v31 = vld [vmem:[#allocation64_spill] sm:$0xff] }
 0x854   : > { %v8438_v2 = vsel %vm3762_vm13, %v8437_v13, %v8196_v24  ;;  %v8009_v15 = vrot.slane %v7935_v36, 2  ;;  %v8434_v46 = vsel %vm3750_vm12, %v8433_v51, %v8432_v57  ;;  %v8010_v26 = vrot.slane %v7936_v43, 2  ;;  %v18066_v5 = vld [vmem:[#allocation70_spill] sm:$0xff]  ;;  %v18069_v13 = vld [vmem:[#allocation85_spill] sm:$0xff] }
 0x855   : > { %v8440_v56 = vsel %vm3750_vm12, %v8439_v6, %v8438_v2  ;;  %v8011_v39 = vrot.slane %v7935_v36, 3  ;;  %v8436_v55 = vsel %vm3752_vm14, %v8435_v33, %v8434_v46  ;;  %v8012_v63 = vrot.slane %v7936_v43, 3  ;;  %v18070_v33 = vld [vmem:[#allocation49_spill] sm:$0xff] }
 0x856   : > { %v8442_v53 = vsel %vm3752_vm14, %v8441_v34, %v8440_v56  ;;  %v8013_v12 = vrot.slane %v7935_v36, 4  ;;  %v8470_v60 = vsel %vm1039_vm2, %v8436_v55, 0.0  ;;  %v8014_v14 = vrot.slane %v7936_v43, 4  ;;  %v11490_v55 = vld [vmem:[%s17540_s7 + $0xb0] sm:$0xf] }
 0x857   : > { %v8471_v25 = vsel %vm1039_vm2, %v8442_v53, 0.0  ;;  %v8015_v35 = vrot.slane %v7935_v36, 5  ;;  %v8016_v22 = vrot.slane %v7936_v43, 5  ;;  %v8017_v23 = vrot.slane %v7935_v36, 6 }
 0x858   : > { %v8472_v8 = vadd.f32 %v8471_v25, %v8470_v60  ;;  %v8018_v58 = vrot.slane %v7936_v43, 6  ;;  %v8019_v62 = vrot.slane %v7935_v36, 7  ;;  %v8020_v16 = vrot.slane %v7936_v43, 7  ;;  %v11491_v25 = vld [vmem:[%s17540_s7 + $0xb8] sm:$0xf] }
 0x859   : > { %v8179_v61 = vmul.f32 %v7935_v36, %v18055_v0  ;;  %v8180_v37 = vmul.f32 %v7936_v43, %v18056_v48  ;;  %v8181_v29 = vmul.f32 %v8007_v7, %v18057_v59  ;;  %v8182_v45 = vmul.f32 %v8008_v27, %v18058_v42  ;;  %v18067_v36 = vld [vmem:[#allocation73_spill] sm:$0xff] }
 0x85a   : > { %8473 = vadd.xlane.f32.xlu1 %v8472_v8  ;;  %v8183_v30 = vmul.f32 %v8009_v15, %v18059_v3  ;;  %v8184_v17 = vmul.f32 %v8010_v26, %v18060_v44  ;;  %v8185_v40 = vmul.f32 %v8011_v39, %v18061_v41  ;;  %v8186_v24 = vmul.f32 %v8012_v63, %v18062_v54 }
 0x85b   : > { %v8187_v47 = vmul.f32 %v8013_v12, %v18063_v4  ;;  %v8188_v21 = vmul.f32 %v8014_v14, %v18064_v38  ;;  %v8189_v28 = vmul.f32 %v8015_v35, %v18065_v10  ;;  %v8190_v50 = vmul.f32 %v8016_v22, %v18066_v5 }
 0x85c   : > { %v8191_v9 = vmul.f32 %v8017_v23, %v18067_v36  ;;  %v8192_v51 = vmul.f32 %v8018_v58, %v18068_v31  ;;  %v8193_v43 = vmul.f32 %v8019_v62, %v18069_v13  ;;  %v8194_v6 = vmul.f32 %v8020_v16, %v18070_v33 }
 0x85d   : > { %v8403_v34 = vrot.slane %v8181_v29, 7  ;;  %v8405_v7 = vrot.slane %v8183_v30, 6  ;;  %v8407_v57 = vrot.slane %v8185_v40, 5  ;;  %v8409_v2 = vrot.slane %v8187_v47, 4 }
 0x85e   : > { %v8411_v27 = vrot.slane %v8189_v28, 3  ;;  %v8413_v15 = vrot.slane %v8191_v9, 2  ;;  %v8415_v56 = vrot.slane %v8193_v43, 1  ;;  %v8417_v26 = vrot.slane %v8182_v45, 7 }
 0x85f   : > { %v8404_v46 = vsel %vm3762_vm13, %v8403_v34, %v8179_v61  ;;  %v8419_v39 = vrot.slane %v8184_v17, 6  ;;  %v8421_v63 = vrot.slane %v8186_v24, 5  ;;  %v8423_v12 = vrot.slane %v8188_v21, 4 }
 0x860   : > { %v8406_v53 = vsel %vm3750_vm12, %v8405_v7, %v8404_v46  ;;  %v8425_v60 = vrot.slane %v8190_v50, 3  ;;  %v8418_v35 = vsel %vm3762_vm13, %v8417_v26, %v8180_v37  ;;  %v8427_v8 = vrot.slane %v8192_v51, 2 }
 0x861   : > { %v8408_v14 = vsel %vm3752_vm14, %v8407_v57, %v8406_v53  ;;  %v8429_v22 = vrot.slane %v8194_v6, 1  ;;  %v8420_v58 = vsel %vm3750_vm12, %v8419_v39, %v8418_v35  ;;  %v8585_v62 = vrot.slane %v11490_v55, 1  ;;  %v11489_v39 = vld [vmem:[%s17540_s7 + $0xa8] sm:$0xff] }
 0x862   : > { %v8410_v23 = vsel %vm3754_vm15, %v8409_v2, %v8408_v14  ;;  %v8586_v16 = vrot.slane %v11491_v25, 1  ;;  %v8422_v29 = vsel %vm3752_vm14, %v8421_v63, %v8420_v58  ;;  %v8587_v45 = vrot.slane %v11490_v55, 2 }
 0x863   : > { %v8412_v61 = vsel %vm3756_vm0, %v8411_v27, %v8410_v23  ;;  %v8588_v30 = vrot.slane %v11491_v25, 2  ;;  %v8424_v40 = vsel %vm3754_vm15, %v8423_v12, %v8422_v29  ;;  %v8589_v24 = vrot.slane %v11490_v55, 3  ;;  %v11488_v27 = vld [vmem:[%s17540_s7 + $0xa0] sm:$0xff] }
 0x864   : > { %v8414_v17 = vsel %vm3758_vm1, %v8413_v15, %v8412_v61  ;;  %v8590_v37 = vrot.slane %v11491_v25, 3  ;;  %v8426_v21 = vsel %vm3756_vm0, %v8425_v60, %v8424_v40  ;;  %v8759_v28 = vmul.f32 %v11490_v55, %v18047_v11 }
 0x865   : > { %v8416_v47 = vsel %vm3760_vm3, %v8415_v56, %v8414_v17  ;;  %v8760_v50 = vmul.f32 %v11491_v25, %v18048_v49  ;;  %v8428_v9 = vsel %vm3758_vm1, %v8427_v8, %v8426_v21  ;;  %v8761_v51 = vmul.f32 %v8585_v62, %v18049_v52 }
 0x866   : > { %v8762_v43 = vmul.f32 %v8586_v16, %v18050_v19  ;;  %v8763_v6 = vmul.f32 %v8587_v45, %v18051_v20  ;;  %v8430_v34 = vsel %vm3760_vm3, %v8429_v22, %v8428_v9  ;;  %v8764_v7 = vmul.f32 %v8588_v30, %v18052_v1 }
 0x867   : > { %v8765_v57 = vmul.f32 %v8589_v24, %v18053_v32  ;;  %v8766_v2 = vmul.f32 %v8590_v37, %v18054_v18  ;;  %v8467_v15 = vadd.f32 %v8430_v34, %v8416_v47  ;;  %v8995_v46 = vrot.slane %v8761_v51, 7 }
 0x868   : > { %v8997_v56 = vrot.slane %v8763_v6, 6  ;;  %v9001_v26 = vrot.slane %v8762_v43, 7  ;;  %v9003_v53 = vrot.slane %v8764_v7, 6  ;;  %v8571_v12 = vrot.slane %v11488_v27, 1 }
 0x869   : > { %v8999_v55 = vrot.slane %v8765_v57, 5  ;;  %v9005_v63 = vrot.slane %v8766_v2, 5  ;;  %8468 = vadd.xlane.f32.xlu0 %v8467_v15  ;;  %v8996_v60 = vsel %vm3762_vm13, %v8995_v46, %v8759_v28  ;;  %v8572_v14 = vrot.slane %v11489_v39, 1 }
 0x86a   : > { %v9002_v25 = vsel %vm3762_vm13, %v9001_v26, %v8760_v50  ;;  %v8573_v35 = vrot.slane %v11488_v27, 2  ;;  %v8998_v8 = vsel %vm3750_vm12, %v8997_v56, %v8996_v60  ;;  %v8574_v23 = vrot.slane %v11489_v39, 2 }
 0x86b   : > { %v9004_v22 = vsel %vm3750_vm12, %v9003_v53, %v9002_v25  ;;  %v8575_v58 = vrot.slane %v11488_v27, 3  ;;  %v9000_v62 = vsel %vm3752_vm14, %v8999_v55, %v8998_v8  ;;  %v8576_v61 = vrot.slane %v11489_v39, 3 }
 0x86c   : > { %v9006_v16 = vsel %vm3752_vm14, %v9005_v63, %v9004_v22  ;;  %v8577_v29 = vrot.slane %v11488_v27, 4  ;;  %v9034_v45 = vsel %vm1039_vm2, %v9000_v62, 0.0  ;;  %v8578_v17 = vrot.slane %v11489_v39, 4  ;;  %v11502_v62 = vld [vmem:[%s17540_s7 + $0x110] sm:$0xf] }
 0x86d   : > { %v9035_v30 = vsel %vm1039_vm2, %v9006_v16, 0.0  ;;  %v8579_v40 = vrot.slane %v11488_v27, 5  ;;  %v8580_v37 = vrot.slane %v11489_v39, 5  ;;  %v8581_v47 = vrot.slane %v11488_v27, 6 }
 0x86e   : > { %v9036_v24 = vadd.f32 %v9035_v30, %v9034_v45  ;;  %v8582_v21 = vrot.slane %v11489_v39, 6  ;;  %v8583_v28 = vrot.slane %v11488_v27, 7  ;;  %v8584_v50 = vrot.slane %v11489_v39, 7  ;;  %v11503_v30 = vld [vmem:[%s17540_s7 + $0x118] sm:$0xf] }
 0x86f   : > { %v8743_v9 = vmul.f32 %v11488_v27, %v18055_v0  ;;  %v8744_v51 = vmul.f32 %v11489_v39, %v18056_v48  ;;  %v8745_v43 = vmul.f32 %v8571_v12, %v18057_v59  ;;  %v8746_v6 = vmul.f32 %v8572_v14, %v18058_v42 }
 0x870   : > { %9037 = vadd.xlane.f32.xlu1 %v9036_v24  ;;  %v8747_v34 = vmul.f32 %v8573_v35, %v18059_v3  ;;  %v8748_v7 = vmul.f32 %v8574_v23, %v18060_v44  ;;  %v8749_v57 = vmul.f32 %v8575_v58, %v18061_v41  ;;  %v8750_v2 = vmul.f32 %v8576_v61, %v18062_v54 }
 0x871   : > { %v8751_v15 = vmul.f32 %v8577_v29, %v18063_v4  ;;  %v8752_v46 = vmul.f32 %v8578_v17, %v18064_v38  ;;  %v8753_v27 = vmul.f32 %v8579_v40, %v18065_v10  ;;  %v8754_v56 = vmul.f32 %v8580_v37, %v18066_v5 }
 0x872   : > { %v8755_v26 = vmul.f32 %v8581_v47, %v18067_v36  ;;  %v8756_v39 = vmul.f32 %v8582_v21, %v18068_v31  ;;  %v8757_v55 = vmul.f32 %v8583_v28, %v18069_v13  ;;  %v8758_v53 = vmul.f32 %v8584_v50, %v18070_v33 }
 0x873   : > { %v8967_v63 = vrot.slane %v8745_v43, 7  ;;  %v8969_v12 = vrot.slane %v8747_v34, 6  ;;  %v8971_v60 = vrot.slane %v8749_v57, 5  ;;  %v8973_v25 = vrot.slane %v8751_v15, 4 }
 0x874   : > { %v8975_v14 = vrot.slane %v8753_v27, 3  ;;  %v8977_v35 = vrot.slane %v8755_v26, 2  ;;  %v8979_v22 = vrot.slane %v8757_v55, 1  ;;  %v8981_v23 = vrot.slane %v8746_v6, 7 }
 0x875   : > { %v8968_v8 = vsel %vm3762_vm13, %v8967_v63, %v8743_v9  ;;  %v8983_v58 = vrot.slane %v8748_v7, 6  ;;  %v8985_v61 = vrot.slane %v8750_v2, 5  ;;  %v8987_v29 = vrot.slane %v8752_v46, 4 }
 0x876   : > { %v8970_v16 = vsel %vm3750_vm12, %v8969_v12, %v8968_v8  ;;  %v8989_v45 = vrot.slane %v8754_v56, 3  ;;  %v8982_v40 = vsel %vm3762_vm13, %v8981_v23, %v8744_v51  ;;  %v8991_v24 = vrot.slane %v8756_v39, 2 }
 0x877   : > { %v8972_v17 = vsel %vm3752_vm14, %v8971_v60, %v8970_v16  ;;  %v8993_v37 = vrot.slane %v8758_v53, 1  ;;  %v8984_v21 = vsel %vm3750_vm12, %v8983_v58, %v8982_v40  ;;  %v9149_v28 = vrot.slane %v11502_v62, 1  ;;  %v11501_v58 = vld [vmem:[%s17540_s7 + $0x108] sm:$0xff] }
 0x878   : > { %v8974_v47 = vsel %vm3754_vm15, %v8973_v25, %v8972_v17  ;;  %v9150_v50 = vrot.slane %v11503_v30, 1  ;;  %v8986_v43 = vsel %vm3752_vm14, %v8985_v61, %v8984_v21  ;;  %v9151_v6 = vrot.slane %v11502_v62, 2 }
 0x879   : > { %v8976_v9 = vsel %vm3756_vm0, %v8975_v14, %v8974_v47  ;;  %v9152_v34 = vrot.slane %v11503_v30, 2  ;;  %v8988_v57 = vsel %vm3754_vm15, %v8987_v29, %v8986_v43  ;;  %v9153_v2 = vrot.slane %v11502_v62, 3  ;;  %v11500_v14 = vld [vmem:[%s17540_s7 + $0x100] sm:$0xff] }
 0x87a   : > { %v8978_v7 = vsel %vm3758_vm1, %v8977_v35, %v8976_v9  ;;  %v9154_v51 = vrot.slane %v11503_v30, 3  ;;  %v8990_v46 = vsel %vm3756_vm0, %v8989_v45, %v8988_v57  ;;  %v9323_v27 = vmul.f32 %v11502_v62, %v18047_v11 }
 0x87b   : > { %v8980_v15 = vsel %vm3760_vm3, %v8979_v22, %v8978_v7  ;;  %v9324_v56 = vmul.f32 %v11503_v30, %v18048_v49  ;;  %v8992_v26 = vsel %vm3758_vm1, %v8991_v24, %v8990_v46  ;;  %v9325_v39 = vmul.f32 %v9149_v28, %v18049_v52 }
 0x87c   : > { %v9326_v55 = vmul.f32 %v9150_v50, %v18050_v19  ;;  %v9327_v53 = vmul.f32 %v9151_v6, %v18051_v20  ;;  %v8994_v63 = vsel %vm3760_vm3, %v8993_v37, %v8992_v26  ;;  %v9328_v12 = vmul.f32 %v9152_v34, %v18052_v1 }
 0x87d   : > { %v9329_v60 = vmul.f32 %v9153_v2, %v18053_v32  ;;  %v9330_v25 = vmul.f32 %v9154_v51, %v18054_v18  ;;  %v9031_v35 = vadd.f32 %v8994_v63, %v8980_v15  ;;  %v9559_v8 = vrot.slane %v9325_v39, 7 }
 0x87e   : > { %v9561_v22 = vrot.slane %v9327_v53, 6  ;;  %v9565_v23 = vrot.slane %v9326_v55, 7  ;;  %v9567_v16 = vrot.slane %v9328_v12, 6  ;;  %v9135_v29 = vrot.slane %v11500_v14, 1 }
 0x87f   : > { %v9563_v62 = vrot.slane %v9329_v60, 5  ;;  %v9569_v61 = vrot.slane %v9330_v25, 5  ;;  %9032 = vadd.xlane.f32.xlu0 %v9031_v35  ;;  %v9560_v45 = vsel %vm3762_vm13, %v9559_v8, %v9323_v27  ;;  %v9136_v17 = vrot.slane %v11501_v58, 1 }
 0x880   : > { %v9566_v30 = vsel %vm3762_vm13, %v9565_v23, %v9324_v56  ;;  %v9137_v40 = vrot.slane %v11500_v14, 2  ;;  %v9562_v24 = vsel %vm3750_vm12, %v9561_v22, %v9560_v45  ;;  %v9138_v47 = vrot.slane %v11501_v58, 2 }
 0x881   : > { %v9568_v37 = vsel %vm3750_vm12, %v9567_v16, %v9566_v30  ;;  %v9139_v21 = vrot.slane %v11500_v14, 3  ;;  %v9564_v28 = vsel %vm3752_vm14, %v9563_v62, %v9562_v24  ;;  %v9140_v9 = vrot.slane %v11501_v58, 3 }
 0x882   : > { %v9570_v50 = vsel %vm3752_vm14, %v9569_v61, %v9568_v37  ;;  %v9141_v43 = vrot.slane %v11500_v14, 4  ;;  %v9598_v6 = vsel %vm1039_vm2, %v9564_v28, 0.0  ;;  %v9142_v7 = vrot.slane %v11501_v58, 4  ;;  %v11514_v28 = vld [vmem:[%s17540_s7 + $0x170] sm:$0xf] }
 0x883   : > { %v9599_v34 = vsel %vm1039_vm2, %v9570_v50, 0.0  ;;  %v9143_v57 = vrot.slane %v11500_v14, 5  ;;  %v9144_v51 = vrot.slane %v11501_v58, 5  ;;  %v9145_v15 = vrot.slane %v11500_v14, 6 }
 0x884   : > { %v9600_v2 = vadd.f32 %v9599_v34, %v9598_v6  ;;  %v9146_v46 = vrot.slane %v11501_v58, 6  ;;  %v9147_v27 = vrot.slane %v11500_v14, 7  ;;  %v9148_v56 = vrot.slane %v11501_v58, 7  ;;  %v11515_v34 = vld [vmem:[%s17540_s7 + $0x178] sm:$0xf] }
 0x885   : > { %v9307_v26 = vmul.f32 %v11500_v14, %v18055_v0  ;;  %v9308_v39 = vmul.f32 %v11501_v58, %v18056_v48  ;;  %v9309_v55 = vmul.f32 %v9135_v29, %v18057_v59  ;;  %v9310_v53 = vmul.f32 %v9136_v17, %v18058_v42 }
 0x886   : > { %9601 = vadd.xlane.f32.xlu1 %v9600_v2  ;;  %v9311_v63 = vmul.f32 %v9137_v40, %v18059_v3  ;;  %v9312_v12 = vmul.f32 %v9138_v47, %v18060_v44  ;;  %v9313_v60 = vmul.f32 %v9139_v21, %v18061_v41  ;;  %v9314_v25 = vmul.f32 %v9140_v9, %v18062_v54 }
 0x887   : > { %v9315_v35 = vmul.f32 %v9141_v43, %v18063_v4  ;;  %v9316_v8 = vmul.f32 %v9142_v7, %v18064_v38  ;;  %v9317_v14 = vmul.f32 %v9143_v57, %v18065_v10  ;;  %v9318_v22 = vmul.f32 %v9144_v51, %v18066_v5 }
 0x888   : > { %v9319_v23 = vmul.f32 %v9145_v15, %v18067_v36  ;;  %v9320_v58 = vmul.f32 %v9146_v46, %v18068_v31  ;;  %v9321_v62 = vmul.f32 %v9147_v27, %v18069_v13  ;;  %v9322_v16 = vmul.f32 %v9148_v56, %v18070_v33 }
 0x889   : > { %v9531_v61 = vrot.slane %v9309_v55, 7  ;;  %v9533_v29 = vrot.slane %v9311_v63, 6  ;;  %v9535_v45 = vrot.slane %v9313_v60, 5  ;;  %v9537_v30 = vrot.slane %v9315_v35, 4 }
 0x88a   : > { %v9539_v17 = vrot.slane %v9317_v14, 3  ;;  %v9541_v40 = vrot.slane %v9319_v23, 2  ;;  %v9543_v37 = vrot.slane %v9321_v62, 1  ;;  %v9545_v47 = vrot.slane %v9310_v53, 7 }
 0x88b   : > { %v9532_v24 = vsel %vm3762_vm13, %v9531_v61, %v9307_v26  ;;  %v9547_v21 = vrot.slane %v9312_v12, 6  ;;  %v9549_v9 = vrot.slane %v9314_v25, 5  ;;  %v9551_v43 = vrot.slane %v9316_v8, 4 }
 0x88c   : > { %v9534_v50 = vsel %vm3750_vm12, %v9533_v29, %v9532_v24  ;;  %v9553_v6 = vrot.slane %v9318_v22, 3  ;;  %v9546_v57 = vsel %vm3762_vm13, %v9545_v47, %v9308_v39  ;;  %v9555_v2 = vrot.slane %v9320_v58, 2 }
 0x88d   : > { %v9536_v7 = vsel %vm3752_vm14, %v9535_v45, %v9534_v50  ;;  %v9557_v51 = vrot.slane %v9322_v16, 1  ;;  %v9548_v46 = vsel %vm3750_vm12, %v9547_v21, %v9546_v57  ;;  %v9713_v27 = vrot.slane %v11514_v28, 1  ;;  %v11513_v21 = vld [vmem:[%s17540_s7 + $0x168] sm:$0xff] }
 0x88e   : > { %v9538_v15 = vsel %vm3754_vm15, %v9537_v30, %v9536_v7  ;;  %v9714_v56 = vrot.slane %v11515_v34, 1  ;;  %v9550_v55 = vsel %vm3752_vm14, %v9549_v9, %v9548_v46  ;;  %v9715_v53 = vrot.slane %v11514_v28, 2 }
 0x88f   : > { %v9540_v26 = vsel %vm3756_vm0, %v9539_v17, %v9538_v15  ;;  %v9716_v63 = vrot.slane %v11515_v34, 2  ;;  %v9552_v60 = vsel %vm3754_vm15, %v9551_v43, %v9550_v55  ;;  %v9717_v25 = vrot.slane %v11514_v28, 3  ;;  %v11512_v17 = vld [vmem:[%s17540_s7 + $0x160] sm:$0xff] }
 0x890   : > { %v9542_v12 = vsel %vm3758_vm1, %v9541_v40, %v9540_v26  ;;  %v9718_v39 = vrot.slane %v11515_v34, 3  ;;  %v9554_v8 = vsel %vm3756_vm0, %v9553_v6, %v9552_v60  ;;  %v9887_v14 = vmul.f32 %v11514_v28, %v18047_v11 }
 0x891   : > { %v9544_v35 = vsel %vm3760_vm3, %v9543_v37, %v9542_v12  ;;  %v9888_v22 = vmul.f32 %v11515_v34, %v18048_v49  ;;  %v9556_v23 = vsel %vm3758_vm1, %v9555_v2, %v9554_v8  ;;  %v9889_v58 = vmul.f32 %v9713_v27, %v18049_v52 }
 0x892   : > { %v9890_v62 = vmul.f32 %v9714_v56, %v18050_v19  ;;  %v9891_v16 = vmul.f32 %v9715_v53, %v18051_v20  ;;  %v9558_v61 = vsel %vm3760_vm3, %v9557_v51, %v9556_v23  ;;  %v9892_v29 = vmul.f32 %v9716_v63, %v18052_v1 }
 0x893   : > { %v9893_v45 = vmul.f32 %v9717_v25, %v18053_v32  ;;  %v9894_v30 = vmul.f32 %v9718_v39, %v18054_v18  ;;  %v9595_v40 = vadd.f32 %v9558_v61, %v9544_v35  ;;  %v10123_v24 = vrot.slane %v9889_v58, 7 }
 0x894   : > { %v10125_v37 = vrot.slane %v9891_v16, 6  ;;  %v10129_v47 = vrot.slane %v9890_v62, 7  ;;  %v10131_v50 = vrot.slane %v9892_v29, 6  ;;  %v9699_v43 = vrot.slane %v11512_v17, 1 }
 0x895   : > { %v10127_v28 = vrot.slane %v9893_v45, 5  ;;  %v10133_v9 = vrot.slane %v9894_v30, 5  ;;  %9596 = vadd.xlane.f32.xlu0 %v9595_v40  ;;  %v10124_v6 = vsel %vm3762_vm13, %v10123_v24, %v9887_v14  ;;  %v9700_v7 = vrot.slane %v11513_v21, 1 }
 0x896   : > { %v10130_v34 = vsel %vm3762_vm13, %v10129_v47, %v9888_v22  ;;  %v9701_v57 = vrot.slane %v11512_v17, 2  ;;  %v10126_v2 = vsel %vm3750_vm12, %v10125_v37, %v10124_v6  ;;  %v9702_v15 = vrot.slane %v11513_v21, 2 }
 0x897   : > { %v10132_v51 = vsel %vm3750_vm12, %v10131_v50, %v10130_v34  ;;  %v9703_v46 = vrot.slane %v11512_v17, 3  ;;  %v10128_v27 = vsel %vm3752_vm14, %v10127_v28, %v10126_v2  ;;  %v9704_v26 = vrot.slane %v11513_v21, 3 }
 0x898   : > { %v10134_v56 = vsel %vm3752_vm14, %v10133_v9, %v10132_v51  ;;  %v9705_v55 = vrot.slane %v11512_v17, 4  ;;  %v10162_v53 = vsel %vm1039_vm2, %v10128_v27, 0.0  ;;  %v9706_v12 = vrot.slane %v11513_v21, 4 }
 0x899   : > { %v10163_v63 = vsel %vm1039_vm2, %v10134_v56, 0.0  ;;  %v9707_v60 = vrot.slane %v11512_v17, 5  ;;  %v9708_v39 = vrot.slane %v11513_v21, 5  ;;  %v9709_v35 = vrot.slane %v11512_v17, 6 }
 0x89a   : > { %v10164_v25 = vadd.f32 %v10163_v63, %v10162_v53  ;;  %v9710_v8 = vrot.slane %v11513_v21, 6  ;;  %v9711_v14 = vrot.slane %v11512_v17, 7  ;;  %v9712_v22 = vrot.slane %v11513_v21, 7  ;;  %v11536_v53 = vld [vmem:[%s17540_s7 + $0x220] sm:$0xff]  ;;  %v11537_v63 = vld [vmem:[%s17540_s7 + $0x228] sm:$0xff] }
 0x89b   : > { %v9871_v23 = vmul.f32 %v11512_v17, %v18055_v0  ;;  %v9872_v58 = vmul.f32 %v11513_v21, %v18056_v48  ;;  %v9873_v62 = vmul.f32 %v9699_v43, %v18057_v59  ;;  %v9874_v16 = vmul.f32 %v9700_v7, %v18058_v42 }
 0x89c   : > { %10165 = vadd.xlane.f32.xlu1 %v10164_v25  ;;  %v9875_v61 = vmul.f32 %v9701_v57, %v18059_v3  ;;  %v9876_v29 = vmul.f32 %v9702_v15, %v18060_v44  ;;  %v9877_v45 = vmul.f32 %v9703_v46, %v18061_v41  ;;  %v9878_v30 = vmul.f32 %v9704_v26, %v18062_v54 }
 0x89d   : > { %v9879_v40 = vmul.f32 %v9705_v55, %v18063_v4  ;;  %v9880_v24 = vmul.f32 %v9706_v12, %v18064_v38  ;;  %v9881_v17 = vmul.f32 %v9707_v60, %v18065_v10  ;;  %v9882_v37 = vmul.f32 %v9708_v39, %v18066_v5 }
 0x89e   : > { %v9883_v47 = vmul.f32 %v9709_v35, %v18067_v36  ;;  %v9884_v21 = vmul.f32 %v9710_v8, %v18068_v31  ;;  %v9885_v28 = vmul.f32 %v9711_v14, %v18069_v13  ;;  %v9886_v50 = vmul.f32 %v9712_v22, %v18070_v33 }
 0x89f   : > { %v10095_v9 = vrot.slane %v9873_v62, 7  ;;  %v10097_v43 = vrot.slane %v9875_v61, 6  ;;  %v10099_v6 = vrot.slane %v9877_v45, 5  ;;  %v10101_v34 = vrot.slane %v9879_v40, 4 }
 0x8a0   : > { %v10103_v7 = vrot.slane %v9881_v17, 3  ;;  %v10105_v57 = vrot.slane %v9883_v47, 2  ;;  %v10107_v51 = vrot.slane %v9885_v28, 1  ;;  %v10109_v15 = vrot.slane %v9874_v16, 7 }
 0x8a1   : > { %v10096_v2 = vsel %vm3762_vm13, %v10095_v9, %v9871_v23  ;;  %v10111_v46 = vrot.slane %v9876_v29, 6  ;;  %v10113_v56 = vrot.slane %v9878_v30, 5  ;;  %v10115_v26 = vrot.slane %v9880_v24, 4 }
 0x8a2   : > { %v10098_v27 = vsel %vm3750_vm12, %v10097_v43, %v10096_v2  ;;  %v10117_v55 = vrot.slane %v9882_v37, 3  ;;  %v10110_v60 = vsel %vm3762_vm13, %v10109_v15, %v9872_v58  ;;  %v10119_v25 = vrot.slane %v9884_v21, 2 }
 0x8a3   : > { %v10100_v12 = vsel %vm3752_vm14, %v10099_v6, %v10098_v27  ;;  %v10121_v39 = vrot.slane %v9886_v50, 1  ;;  %v10112_v8 = vsel %vm3750_vm12, %v10111_v46, %v10110_v60  ;;  %v10827_v14 = vrot.slane %v11536_v53, 1 }
 0x8a4   : > { %v10102_v35 = vsel %vm3754_vm15, %v10101_v34, %v10100_v12  ;;  %v10828_v22 = vrot.slane %v11537_v63, 1  ;;  %v10114_v62 = vsel %vm3752_vm14, %v10113_v56, %v10112_v8  ;;  %v10829_v16 = vrot.slane %v11536_v53, 2 }
 0x8a5   : > { %v10104_v23 = vsel %vm3756_vm0, %v10103_v7, %v10102_v35  ;;  %v10830_v61 = vrot.slane %v11537_v63, 2  ;;  %v10116_v45 = vsel %vm3754_vm15, %v10115_v26, %v10114_v62  ;;  %v10831_v30 = vrot.slane %v11536_v53, 3 }
 0x8a6   : > { %v10106_v29 = vsel %vm3758_vm1, %v10105_v57, %v10104_v23  ;;  %v10832_v58 = vrot.slane %v11537_v63, 3  ;;  %v10118_v24 = vsel %vm3756_vm0, %v10117_v55, %v10116_v45  ;;  %v10833_v17 = vrot.slane %v11536_v53, 4 }
 0x8a7   : > { %v10108_v40 = vsel %vm3760_vm3, %v10107_v51, %v10106_v29  ;;  %v10834_v37 = vrot.slane %v11537_v63, 4  ;;  %v10120_v47 = vsel %vm3758_vm1, %v10119_v25, %v10118_v24  ;;  %v10835_v21 = vrot.slane %v11536_v53, 5 }
 0x8a8   : > { %v10836_v28 = vrot.slane %v11537_v63, 5  ;;  %v10837_v50 = vrot.slane %v11536_v53, 6  ;;  %v10122_v9 = vsel %vm3760_vm3, %v10121_v39, %v10120_v47  ;;  %v10838_v43 = vrot.slane %v11537_v63, 6 }
 0x8a9   : > { %v10839_v6 = vrot.slane %v11536_v53, 7  ;;  %v10840_v34 = vrot.slane %v11537_v63, 7  ;;  %v10159_v7 = vadd.f32 %v10122_v9, %v10108_v40  ;;  %v10999_v57 = vmul.f32 %v11536_v53, %v18055_v0  ;;  %v11524_v40 = vld [vmem:[%s17540_s7 + $0x1c0] sm:$0xff] }
 0x8aa   : > { %v11000_v2 = vmul.f32 %v11537_v63, %v18056_v48  ;;  %v11001_v51 = vmul.f32 %v10827_v14, %v18057_v59  ;;  %v11002_v15 = vmul.f32 %v10828_v22, %v18058_v42  ;;  %v11003_v46 = vmul.f32 %v10829_v16, %v18059_v3 }
 0x8ab   : > { %v11004_v27 = vmul.f32 %v10830_v61, %v18060_v44  ;;  %v11005_v56 = vmul.f32 %v10831_v30, %v18061_v41  ;;  %10160 = vadd.xlane.f32.xlu0 %v10159_v7  ;;  %v11006_v26 = vmul.f32 %v10832_v58, %v18062_v54  ;;  %v11007_v55 = vmul.f32 %v10833_v17, %v18063_v4 }
 0x8ac   : > { %v11008_v12 = vmul.f32 %v10834_v37, %v18064_v38  ;;  %v11009_v53 = vmul.f32 %v10835_v21, %v18065_v10  ;;  %v11010_v63 = vmul.f32 %v10836_v28, %v18066_v5  ;;  %v11011_v60 = vmul.f32 %v10837_v50, %v18067_v36  ;;  %v11525_v21 = vld [vmem:[%s17540_s7 + $0x1c8] sm:$0xff] }
 0x8ad   : > { %v11012_v25 = vmul.f32 %v10838_v43, %v18068_v31  ;;  %v11013_v39 = vmul.f32 %v10839_v6, %v18069_v13  ;;  %v11014_v35 = vmul.f32 %v10840_v34, %v18070_v33  ;;  %v11223_v8 = vrot.slane %v11001_v51, 7 }
 0x8ae   : > { %v11225_v14 = vrot.slane %v11003_v46, 6  ;;  %v11227_v22 = vrot.slane %v11005_v56, 5  ;;  %v11229_v23 = vrot.slane %v11007_v55, 4  ;;  %v11231_v62 = vrot.slane %v11009_v53, 3 }
 0x8af   : > { %v11233_v16 = vrot.slane %v11011_v60, 2  ;;  %v11235_v61 = vrot.slane %v11013_v39, 1  ;;  %v11224_v29 = vsel %vm3762_vm13, %v11223_v8, %v10999_v57  ;;  %v11237_v45 = vrot.slane %v11002_v15, 7 }
 0x8b0   : > { %v11239_v30 = vrot.slane %v11004_v27, 6  ;;  %v11241_v58 = vrot.slane %v11006_v26, 5  ;;  %v11226_v24 = vsel %vm3750_vm12, %v11225_v14, %v11224_v29  ;;  %v11243_v17 = vrot.slane %v11008_v12, 4 }
 0x8b1   : > { %v11245_v37 = vrot.slane %v11010_v63, 3  ;;  %v11247_v47 = vrot.slane %v11012_v25, 2  ;;  %v11228_v28 = vsel %vm3752_vm14, %v11227_v22, %v11226_v24  ;;  %v11238_v50 = vsel %vm3762_vm13, %v11237_v45, %v11000_v2 }
 0x8b2   : > { %v11249_v9 = vrot.slane %v11014_v35, 1  ;;  %v10263_v43 = vrot.slane %v11524_v40, 1  ;;  %v11230_v6 = vsel %vm3754_vm15, %v11229_v23, %v11228_v28  ;;  %v11240_v34 = vsel %vm3750_vm12, %v11239_v30, %v11238_v50 }
 0x8b3   : > { %v10264_v7 = vrot.slane %v11525_v21, 1  ;;  %v10265_v57 = vrot.slane %v11524_v40, 2  ;;  %v11232_v51 = vsel %vm3756_vm0, %v11231_v62, %v11230_v6  ;;  %v11242_v15 = vsel %vm3752_vm14, %v11241_v58, %v11240_v34  ;;  %v11527_v34 = vld [vmem:[%s17540_s7 + $0x1d8] sm:$0xf] }
 0x8b4   : > { %v10266_v46 = vrot.slane %v11525_v21, 2  ;;  %v10267_v27 = vrot.slane %v11524_v40, 3  ;;  %v11234_v56 = vsel %vm3758_vm1, %v11233_v16, %v11232_v51  ;;  %v11244_v26 = vsel %vm3754_vm15, %v11243_v17, %v11242_v15 }
 0x8b5   : > { %v10268_v55 = vrot.slane %v11525_v21, 3  ;;  %v10269_v2 = vrot.slane %v11524_v40, 4  ;;  %v11236_v12 = vsel %vm3760_vm3, %v11235_v61, %v11234_v56  ;;  %v11246_v53 = vsel %vm3756_vm0, %v11245_v37, %v11244_v26 }
 0x8b6   : > { %v10270_v63 = vrot.slane %v11525_v21, 4  ;;  %v10271_v60 = vrot.slane %v11524_v40, 5  ;;  %v11248_v25 = vsel %vm3758_vm1, %v11247_v47, %v11246_v53  ;;  %v10272_v39 = vrot.slane %v11525_v21, 5 }
 0x8b7   : > { %v10273_v35 = vrot.slane %v11524_v40, 6  ;;  %v10274_v8 = vrot.slane %v11525_v21, 6  ;;  %v11250_v14 = vsel %vm3760_vm3, %v11249_v9, %v11248_v25  ;;  %v10275_v22 = vrot.slane %v11524_v40, 7 }
 0x8b8   : > { %v10276_v23 = vrot.slane %v11525_v21, 7  ;;  %v10435_v62 = vmul.f32 %v11524_v40, %v18055_v0  ;;  %v11287_v16 = vadd.f32 %v11250_v14, %v11236_v12  ;;  %v10436_v29 = vmul.f32 %v11525_v21, %v18056_v48 }
 0x8b9   : > { %v10437_v61 = vmul.f32 %v10263_v43, %v18057_v59  ;;  %v10438_v45 = vmul.f32 %v10264_v7, %v18058_v42  ;;  %v10439_v30 = vmul.f32 %v10265_v57, %v18059_v3  ;;  %v10440_v58 = vmul.f32 %v10266_v46, %v18060_v44 }
 0x8ba   : > { %v10441_v24 = vmul.f32 %v10267_v27, %v18061_v41  ;;  %v10442_v17 = vmul.f32 %v10268_v55, %v18062_v54  ;;  %11288 = vadd.xlane.f32.xlu1 %v11287_v16  ;;  %v10443_v37 = vmul.f32 %v10269_v2, %v18063_v4  ;;  %v10444_v0 = vmul.f32 %v10270_v63, %v18064_v38 }
 0x8bb   : > { %v10445_v40 = vmul.f32 %v10271_v60, %v18065_v10  ;;  %v10446_v48 = vmul.f32 %v10272_v39, %v18066_v5  ;;  %v10447_v59 = vmul.f32 %v10273_v35, %v18067_v36  ;;  %v10448_v42 = vmul.f32 %v10274_v8, %v18068_v31  ;;  %v11526_v36 = vld [vmem:[%s17540_s7 + $0x1d0] sm:$0xf] }
 0x8bc   : > { %v10449_v3 = vmul.f32 %v10275_v22, %v18069_v13  ;;  %v10450_v44 = vmul.f32 %v10276_v23, %v18070_v33  ;;  %v10659_v41 = vrot.slane %v10437_v61, 7  ;;  %v10661_v47 = vrot.slane %v10439_v30, 6 }
 0x8bd   : > { %v10663_v54 = vrot.slane %v10441_v24, 5  ;;  %v10665_v21 = vrot.slane %v10443_v37, 4  ;;  %v10667_v28 = vrot.slane %v10445_v40, 3  ;;  %v10669_v4 = vrot.slane %v10447_v59, 2  ;;  %v11538_v24 = vld [vmem:[%s17540_s7 + $0x230] sm:$0xf] }
 0x8be   : > { %v10671_v50 = vrot.slane %v10449_v3, 1  ;;  %v10673_v38 = vrot.slane %v10438_v45, 7  ;;  %v10660_v10 = vsel %vm3762_vm13, %v10659_v41, %v10435_v62  ;;  %v10675_v9 = vrot.slane %v10440_v58, 6 }
 0x8bf   : > { %v10677_v5 = vrot.slane %v10442_v17, 5  ;;  %v10679_v43 = vrot.slane %v10444_v0, 4  ;;  %v10662_v31 = vsel %vm3750_vm12, %v10661_v47, %v10660_v10  ;;  %v10681_v33 = vrot.slane %v10446_v48, 3  ;;  %v11539_v17 = vld [vmem:[%s17540_s7 + $0x238] sm:$0xf] }
 0x8c0   : > { %v10674_v13 = vsel %vm3762_vm13, %v10673_v38, %v10436_v29  ;;  %v10683_v6 = vrot.slane %v10448_v42, 2  ;;  %v10664_v7 = vsel %vm3752_vm14, %v10663_v54, %v10662_v31  ;;  %v10685_v51 = vrot.slane %v10450_v44, 1 }
 0x8c1   : > { %v10676_v57 = vsel %vm3750_vm12, %v10675_v9, %v10674_v13  ;;  %v10277_v15 = vrot.slane %v11526_v36, 1  ;;  %v10666_v46 = vsel %vm3754_vm15, %v10665_v21, %v10664_v7  ;;  %v10278_v56 = vrot.slane %v11527_v34, 1 }
 0x8c2   : > { %v10678_v27 = vsel %vm3752_vm14, %v10677_v5, %v10676_v57  ;;  %v10279_v26 = vrot.slane %v11526_v36, 2  ;;  %v10668_v55 = vsel %vm3756_vm0, %v10667_v28, %v10666_v46  ;;  %v10280_v12 = vrot.slane %v11527_v34, 2 }
 0x8c3   : > { %v10680_v2 = vsel %vm3754_vm15, %v10679_v43, %v10678_v27  ;;  %v10281_v53 = vrot.slane %v11526_v36, 3  ;;  %v10670_v63 = vsel %vm3758_vm1, %v10669_v4, %v10668_v55  ;;  %v10282_v25 = vrot.slane %v11527_v34, 3 }
 0x8c4   : > { %v10682_v60 = vsel %vm3756_vm0, %v10681_v33, %v10680_v2  ;;  %v10451_v39 = vmul.f32 %v11526_v36, %v18047_v11  ;;  %v10672_v35 = vsel %vm3760_vm3, %v10671_v50, %v10670_v63  ;;  %v10452_v14 = vmul.f32 %v11527_v34, %v18048_v49  ;;  %v8457_v2 = vpop.xlane.xlu0 %8456 }
 0x8c5   : > { %v10684_v8 = vsel %vm3758_vm1, %v10683_v6, %v10682_v60  ;;  %v10453_v22 = vmul.f32 %v10277_v15, %v18049_v52  ;;  %v10454_v62 = vmul.f32 %v10278_v56, %v18050_v19  ;;  %v10455_v16 = vmul.f32 %v10279_v26, %v18051_v20 }
 0x8c6   : > { %v10686_v23 = vsel %vm3760_vm3, %v10685_v51, %v10684_v8  ;;  %v10456_v29 = vmul.f32 %v10280_v12, %v18052_v1  ;;  %v10457_v45 = vmul.f32 %v10281_v53, %v18053_v32  ;;  %v10458_v30 = vmul.f32 %v10282_v25, %v18054_v18  ;;  %v10149_v12 = vpop.xlane.xlu1 %10148 }
 0x8c7   : > { %v10723_v61 = vadd.f32 %v10686_v23, %v10672_v35  ;;  %v10687_v58 = vrot.slane %v10453_v22, 7  ;;  %v10689_v37 = vrot.slane %v10455_v16, 6  ;;  %v10693_v0 = vrot.slane %v10454_v62, 7 }
 0x8c8   : > { %v10695_v40 = vrot.slane %v10456_v29, 6  ;;  %v10841_v48 = vrot.slane %v11538_v24, 1  ;;  %v10691_v42 = vrot.slane %v10457_v45, 5  ;;  %v10697_v3 = vrot.slane %v10458_v30, 5  ;;  %v9021_v53 = vpop.xlane.xlu0 %9020 }
 0x8c9   : > { %10724 = vadd.xlane.f32.xlu0 %v10723_v61  ;;  %v10688_v59 = vsel %vm3762_vm13, %v10687_v58, %v10451_v39  ;;  %v10842_v44 = vrot.slane %v11539_v17, 1  ;;  %v10694_v47 = vsel %vm3762_vm13, %v10693_v0, %v10452_v14  ;;  %v10843_v54 = vrot.slane %v11538_v24, 2 }
 0x8ca   : > { %v10690_v41 = vsel %vm3750_vm12, %v10689_v37, %v10688_v59  ;;  %v10844_v21 = vrot.slane %v11539_v17, 2  ;;  %v10696_v4 = vsel %vm3750_vm12, %v10695_v40, %v10694_v47  ;;  %v10845_v50 = vrot.slane %v11538_v24, 3  ;;  %v10713_v63 = vpop.xlane.xlu1 %10712 }
 0x8cb   : > { %v10692_v28 = vsel %vm3752_vm14, %v10691_v42, %v10690_v41  ;;  %v10846_v38 = vrot.slane %v11539_v17, 3  ;;  %v10698_v10 = vsel %vm3752_vm14, %v10697_v3, %v10696_v4  ;;  %v11017_v43 = vmul.f32 %v10841_v48, %v18049_v52 }
 0x8cc   : > { %v10726_v9 = vsel %vm1039_vm2, %v10692_v28, 0.0  ;;  %v10727_v5 = vsel %vm1039_vm2, %v10698_v10, 0.0  ;;  %v11018_v36 = vmul.f32 %v10842_v44, %v18050_v19  ;;  %v11019_v31 = vmul.f32 %v10843_v54, %v18051_v20  ;;  %v9585_v60 = vpop.xlane.xlu0 %9584 }
 0x8cd   : > { %v10728_v13 = vadd.f32 %v10727_v5, %v10726_v9  ;;  %v11020_v33 = vmul.f32 %v10844_v21, %v18052_v1  ;;  %v11021_v6 = vmul.f32 %v10845_v50, %v18053_v32  ;;  %v11022_v34 = vmul.f32 %v10846_v38, %v18054_v18 }
 0x8ce   : > { %v11015_v7 = vmul.f32 %v11538_v24, %v18047_v11  ;;  %v11016_v57 = vmul.f32 %v11539_v17, %v18048_v49  ;;  %v11251_v51 = vrot.slane %v11017_v43, 7  ;;  %v11257_v15 = vrot.slane %v11018_v36, 7  ;;  %v17470_v25 = vpop.xlane.xlu1 %11276 }
 0x8cf   : > { %10729 = vadd.xlane.f32.xlu0 %v10728_v13  ;;  %v11253_v46 = vrot.slane %v11019_v31, 6  ;;  %v11259_v52 = vrot.slane %v11020_v33, 6  ;;  %v11255_v27 = vrot.slane %v11021_v6, 5  ;;  %v11261_v56 = vrot.slane %v11022_v34, 5 }
 0x8d0   : > { %v11252_v19 = vsel %vm3762_vm13, %v11251_v51, %v11015_v7  ;;  %v11258_v20 = vsel %vm3762_vm13, %v11257_v15, %v11016_v57  ;;  %v10152_v39 = vpop.xlane.xlu0 %10151  ;;  %vm11310_vm15 = vcmask 40960  }
 0x8d1   : > { %v11254_v1 = vsel %vm3750_vm12, %v11253_v46, %v11252_v19  ;;  %v11260_v32 = vsel %vm3750_vm12, %v11259_v52, %v11258_v20  ;;  %v10167_v38 = vadd.f32 %v10152_v39, %v10149_v12 }
 0x8d2   : > { %v11256_v18 = vsel %vm3752_vm14, %v11255_v27, %v11254_v1  ;;  %v11262_v11 = vsel %vm3752_vm14, %v11261_v56, %v11260_v32  ;;  %v8460_v35 = vpop.xlane.xlu1 %8459 }
 0x8d3   : > { %v11290_v49 = vsel %vm1039_vm2, %v11256_v18, 0.0  ;;  %v11291_v26 = vsel %vm1039_vm2, %v11262_v11, 0.0  ;;  %v8475_v44 = vadd.f32 %v8460_v35, %v8457_v2 }
 0x8d4   : > { %v11292_v55 = vadd.f32 %v11291_v26, %v11290_v49  ;;  %v10716_v8 = vpop.xlane.xlu0 %10715 }
 0x8d5   : > { %v10731_v26 = vadd.f32 %v10716_v8, %v10713_v63 }
 0x8d6   : > { %11293 = vadd.xlane.f32.xlu0 %v11292_v55  ;;  %v9024_v14 = vpop.xlane.xlu1 %9023 }
 0x8d7   : > { %v9039_v41 = vadd.f32 %v9024_v14, %v9021_v53 }
 0x8d8   : > { %v17472_v22 = vpop.xlane.xlu0 %11279 }
 0x8da   : > { %v9588_v23 = vpop.xlane.xlu1 %9587 }
 0x8db   : > { %v9603_v21 = vadd.f32 %v9588_v23, %v9585_v60 }
 0x8dc   : > { %v8463_v62 = vpop.xlane.xlu0 %8462 }
 0x8dd   : > { %v8476_v47 = vadd.f32 %v8475_v44, %v8463_v62 }
 0x8de   : > { %v9027_v16 = vpop.xlane.xlu1 %9026 }
 0x8df   : > { %v9040_v28 = vadd.f32 %v9039_v41, %v9027_v16 }
 0x8e0   : > { %v9591_v29 = vpop.xlane.xlu0 %9590 }
 0x8e1   : > { %v9604_v9 = vadd.f32 %v9603_v21, %v9591_v29  ;;  %v11295_v29 = vadd.f32 %v17472_v22, %v17470_v25 }
 0x8e2   : > { %v9030_v61 = vpop.xlane.xlu1 %9029 }
 0x8e3   : > { %v9041_v10 = vadd.f32 %v9040_v28, %v9030_v61 }
 0x8e4   : > { %v10155_v45 = vpop.xlane.xlu0 %10154 }
 0x8e5   : > { %v10168_v31 = vadd.f32 %v10167_v38, %v10155_v45 }
 0x8e6   : > { %v9594_v30 = vpop.xlane.xlu1 %9593 }
 0x8e7   : > { %v9605_v36 = vadd.f32 %v9604_v9, %v9594_v30 }
 0x8e8   : > { %v10719_v58 = vpop.xlane.xlu0 %10718 }
 0x8e9   : > { %v10732_v53 = vadd.f32 %v10731_v26, %v10719_v58 }
 0x8ea   : > { %v10158_v24 = vpop.xlane.xlu1 %10157 }
 0x8eb   : > { %v10169_v34 = vadd.f32 %v10168_v31, %v10158_v24 }
 0x8ec   : > { %v11283_v17 = vpop.xlane.xlu0 %11282 }
 0x8ed   : > { %v11296_v63 = vadd.f32 %v11295_v29, %v11283_v17 }
 0x8ee   : > { %v10722_v37 = vpop.xlane.xlu1 %10721 }
 0x8ef   : > { %v10733_v35 = vadd.f32 %v10732_v53, %v10722_v37 }
 0x8f0   : > { %v8466_v0 = vpop.xlane.xlu0 %8465 }
 0x8f1   : > { %v8477_v4 = vadd.f32 %v8476_v47, %v8466_v0 }
 0x8f2   : > { %v11286_v40 = vpop.xlane.xlu1 %11285 }
 0x8f3   : > { %v11297_v37 = vadd.f32 %v11296_v63, %v11286_v40  ;;  %v7926_v40 = vld [vmem:[%s17541_s8] sm:$0x1] }
 0x8f6   : > { %v8469_v48 = vpop.xlane.xlu0 %8468  ;;  %v8474_v59 = vpop.xlane.xlu1 %8473 }
 0x8f7   : > { %v8478_v5 = vadd.f32 %v8477_v4, %v8469_v48  ;;  %v8479_v43 = vsel %vm1039_vm2, %v8474_v59, 0.0  ;;  %v18071_v48 = vlaneseq }
 0x8f9   : > { %v8480_v7 = vadd.f32 %v8479_v43, %v8478_v5  ;;  %v7925_v58 = vand.u32 127, %v18071_v48 }
 0x8fb   : > { %v8481_v27 = vrot.slane %v8480_v7, 4  ;;  %vm8487_vm10 = vcmp.eq.s32.totalorder %v7925_v58, 0  ;;  %vm9051_vm11 = vcmp.eq.s32.totalorder %v7925_v58, 1  ;;  %vm9615_vm12 = vcmp.eq.s32.totalorder %v7925_v58, 2 }
 0x8fc   : > { %vm10743_vm13 = vcmp.eq.s32.totalorder %v7925_v58, 4  ;;  %vm11307_vm14 = vcmp.eq.s32.totalorder %v7925_v58, 5 }
 0x8fd   : > { %v9038_v3 = vpop.xlane.xlu1 %9037  ;;  %v8482_v32 = vadd.f32 %v8481_v27, %v8480_v7 }
 0x8fe   : > { %v9043_v33 = vsel %vm1039_vm2, %v9038_v3, 0.0 }
 0x8ff   : > { %v8483_v2 = vrot.slane %v8482_v32, 2 }
 0x901   : > { %v8484_v14 = vadd.f32 %v8483_v2, %v8482_v32 }
 0x903   : > { %v8485_v8 = vrot.slane %v8484_v14, 1 }
 0x905   : > { %v8486_v47 = vadd.f32 %v8485_v8, %v8484_v14 }
 0x90c   : > { %v9033_v42 = vpop.xlane.xlu0 %9032 }
 0x90d   : > { %v9042_v13 = vadd.f32 %v9041_v10, %v9033_v42  ;;  %v8488_v10 = vsel %vm8487_vm10, %v8486_v47, 0.0 }
 0x90f   : > { %v9044_v46 = vadd.f32 %v9043_v33, %v9042_v13  ;;  %v8489_v33 = vadd.f32 %v8488_v10, %v7926_v40 }
 0x911   : > { %v9045_v56 = vrot.slane %v9044_v46, 4 }
 0x913   : > { %v9602_v50 = vpop.xlane.xlu1 %9601  ;;  %v9046_v11 = vadd.f32 %v9045_v56, %v9044_v46 }
 0x914   : > { %v9607_v15 = vsel %vm1039_vm2, %v9602_v50, 0.0 }
 0x915   : > { %v9047_v60 = vrot.slane %v9046_v11, 2 }
 0x917   : > { %v9048_v61 = vadd.f32 %v9047_v60, %v9046_v11 }
 0x919   : > { %v9049_v3 = vrot.slane %v9048_v61, 1 }
 0x91b   : > { %v9050_v4 = vadd.f32 %v9049_v3, %v9048_v61 }
 0x922   : > { %v9597_v54 = vpop.xlane.xlu0 %9596 }
 0x923   : > { %v9606_v57 = vadd.f32 %v9605_v36, %v9597_v54  ;;  %v9052_v36 = vsel %vm9051_vm11, %v9050_v4, 0.0 }
 0x925   : > { %v9608_v20 = vadd.f32 %v9607_v15, %v9606_v57  ;;  %v9053_v57 = vadd.f32 %v9052_v36, %v8489_v33 }
 0x927   : > { %v9609_v18 = vrot.slane %v9608_v20, 4 }
 0x929   : > { %v10166_v51 = vpop.xlane.xlu1 %10165  ;;  %v9610_v12 = vadd.f32 %v9609_v18, %v9608_v20 }
 0x92a   : > { %v10171_v19 = vsel %vm1039_vm2, %v10166_v51, 0.0 }
 0x92b   : > { %v9611_v23 = vrot.slane %v9610_v12, 2 }
 0x92d   : > { %v9612_v0 = vadd.f32 %v9611_v23, %v9610_v12 }
 0x92f   : > { %v9613_v54 = vrot.slane %v9612_v0, 1 }
 0x931   : > { %v9614_v9 = vadd.f32 %v9613_v54, %v9612_v0 }
 0x938   : > { %v10161_v6 = vpop.xlane.xlu0 %10160 }
 0x939   : > { %v10170_v52 = vadd.f32 %v10169_v34, %v10161_v6  ;;  %v9616_v6 = vsel %vm9615_vm12, %v9614_v9, 0.0 }
 0x93a   : > { %v9617_v46 = vadd.f32 %v9616_v6, %v9053_v57 }
 0x93b   : > { %v10172_v1 = vadd.f32 %v10171_v19, %v10170_v52 }
 0x93d   : > { %v10173_v49 = vrot.slane %v10172_v1, 4 }
 0x93f   : > { %v10174_v39 = vadd.f32 %v10173_v49, %v10172_v1 }
 0x941   : > { %v10175_v45 = vrot.slane %v10174_v39, 2 }
 0x943   : > { %v10176_v44 = vadd.f32 %v10175_v45, %v10174_v39 }
 0x945   : > { %v10177_v17 = vrot.slane %v10176_v44, 1 }
 0x947   : > { %v11289_v59 = vpop.xlane.xlu1 %11288  ;;  %v10178_v31 = vadd.f32 %v10177_v17, %v10176_v44 }
 0x948   : > { %v11298_v21 = vadd.f32 %v11297_v37, %v11289_v59 }
 0x956   : > { %v10725_v55 = vpop.xlane.xlu0 %10724 }
 0x957   : > { %v10734_v62 = vadd.f32 %v10733_v35, %v10725_v55 }
 0x95c   : > { %v10730_v16 = vpop.xlane.xlu0 %10729 }
 0x95d   : > { %v10735_v30 = vsel %vm1039_vm2, %v10730_v16, 0.0 }
 0x95e   : > { %v10736_v24 = vadd.f32 %v10735_v30, %v10734_v62 }
 0x960   : > { %v10737_v42 = vrot.slane %v10736_v24, 4 }
 0x962   : > { %v10738_v41 = vadd.f32 %v10737_v42, %v10736_v24 }
 0x963   : > { %v11294_v25 = vpop.xlane.xlu0 %11293 }
 0x964   : > { %v10739_v22 = vrot.slane %v10738_v41, 2  ;;  %v11299_v28 = vsel %vm1039_vm2, %v11294_v25, 0.0  ;;  %vm10179_vm2 = vcmp.eq.s32.totalorder %v7925_v58, 3 }
 0x965   : > { %v11300_v50 = vadd.f32 %v11299_v28, %v11298_v21  ;;  %v10180_v51 = vsel %vm10179_vm2, %v10178_v31, 0.0 }
 0x966   : > { %v10740_v38 = vadd.f32 %v10739_v22, %v10738_v41  ;;  %v10181_v27 = vadd.f32 %v10180_v51, %v9617_v46 }
 0x967   : > { %v11301_v5 = vrot.slane %v11300_v50, 4 }
 0x968   : > { %v10741_v43 = vrot.slane %v10740_v38, 1 }
 0x969   : > { %v11302_v13 = vadd.f32 %v11301_v5, %v11300_v50 }
 0x96a   : > { %v10742_v34 = vadd.f32 %v10741_v43, %v10740_v38 }
 0x96b   : > { %v11303_v7 = vrot.slane %v11302_v13, 2 }
 0x96c   : > { %v10744_v52 = vsel %vm10743_vm13, %v10742_v34, 0.0 }
 0x96d   : > { %v11304_v15 = vadd.f32 %v11303_v7, %v11302_v13  ;;  %v10745_v56 = vadd.f32 %v10744_v52, %v10181_v27 }
 0x96f   : > { %v11305_v19 = vrot.slane %v11304_v15, 1 }
 0x971   : > { %v11306_v20 = vadd.f32 %v11305_v19, %v11304_v15 }
 0x973   : > { %v11308_v1 = vsel %vm11307_vm14, %v11306_v20, 0.0 }
 0x974   : > { %v11309_v32 = vadd.f32 %v11308_v1, %v10745_v56 }
 0x976   : > { %11311 = vst.msk [vmem:[%s354_s25] sm:$0x1] %vm11310_vm15, %v11309_v32 }
 0x977   : > { %12020 = shalt.err (!%p12017_p11)
}
 0x978   : > { %s12021_s28 = scalar_lea.hbm %s17491_s18, 16  ;;  %s12025_s16 = scalar_lea.hbm %s17542_s9, 32 }
 0x979   : > { %p12022_p13 = scmp.ne.s32.totalorder %s17491_s18, %s12021_s28  ;;  %p12026_p6 = scmp.lt.u32.totalorder %s17491_s18, %s17542_s9 }
 0x97a   : > { %p12027_p9 = scmp.lt.u32.totalorder %s12025_s16, %s12021_s28  ;;  %p12029_p12 = scmp.lt.u32.totalorder %s12021_s28, %s17491_s18 }
 0x97b   : > { %p12023_p0 = pnand %p12022_p13, %p18072_p1 }
 0x97c   : > { %p12028_p10 = por %p12027_p9, %p12026_p6 }
 0x97d   : > { %p12024_p5 = pneg %p12023_p0 }
 0x97e   : > { %p12030_p2 = por %p12029_p12, %p12028_p10 }
 0x980   : > { %p12031_p3 = pnand %p12030_p2, %p12024_p5 }
 0x982   : > { %12034 = shalt.err (!%p12031_p3)
}
 0x983   : > { %11884 = dma.vmem_to_hbm [thread:$0]  (%p18072_p1), %s17493_s23, 16, %s17491_s18, %s11313_s27  }
 0x984 PF: > { %p11901_p4 = scmp.ge.s32.totalorder %s12077_s12, 2  ;;  %s11337_s25 = sand.u32 1, %s12065_s30  }
 0x985   : > { %p18073_p7 = scmp.ne.s32.totalorder %s17689_s20, 0  ;;  %s11338_s11 = scalar_lea.sflag [#allocation7], %s11337_s25 }
 0x987   : > { %p11894_p8 = pnand %p11901_p4, %p18073_p7 }
 0x989   : > { %12060 = dma.done.wait (!%p11894_p8), %s11338_s11, 16  }
 0x98a   : > { %12062 = vsyncadd (!%p11894_p8), %s11338_s11, 4294967280  ;;  %s18074_s12 = sld [smem:[#allocation15_spill]]  ;;  %s18075_s15 = sld [smem:[#allocation14_spill]] }
 0x98b   : > { %s18076_s11 = sld [smem:[#allocation16_spill]]  ;;  %s18077_s30 = smov %s12069_s10 }
 0x990   : > { %p21_p11 = scmp.ge.s32.totalorder %s18074_s12, 4   ;;  %s18078_s10 = smov %s18075_s15 }
 0x992   :  { %23 = sbr.rel (!%p21_p11) target bundleno = 5 (0x5), region = 105 }
 0x999   :  { %11342 = vsyncpa [#allocation6], 1 }
 0x99a   :  { %11344 = vsyncpa [#allocation6 + $0x1], 1 }
 0x99b   :  { %11345 = vsyncpa [#allocation9], 1 }
 0x99c   :  { %11346 = vsyncpa [#allocation7], 1 }
 0x99d   :  { %11348 = vsyncpa [#allocation7 + $0x1], 1 }

</bundles_post_ra>
